<compile_context>
chip_gen: v7x
topology: tpu7x:2x2x1
jax: 0.10.0
libtpu: 0.0.40
codegen_flags: <defaults>
</compile_context>

<pallas_src>
import jax
import jax.numpy as jnp
from jax import lax
from jax.experimental import pallas as pl
from jax.experimental.pallas import tpu as pltpu


# ----------------------------------------------------------------------------
# In-kernel helpers
# ----------------------------------------------------------------------------
def _shift_lanes(v, k):
    """out[:, p] = v[:, p + k] if 0 <= p + k < N else 0 (static k, zero fill)."""
    n = v.shape[-1]
    if k == 0:
        return v
    z = jnp.zeros((v.shape[0], abs(k)), v.dtype)
    if k > 0:
        return jnp.concatenate([v[:, k:], z], axis=1)
    return jnp.concatenate([z, v[:, : n + k]], axis=1)


def _cbam_scale(x, w1t, b1t, w2t, b2t, cw_ref, s, H, W):
    """CBAM for one scale / one batch element.

    x: (C, H*W) f32 lane-dense feature.
    w1t (8, C), b1t (8, 1), w2t (C, 8), b2t (C, 1): shared-MLP weights (Cr padded to 8).
    cw_ref: SMEM (n_scales, 99) BN-folded 7x7x2 conv weights + folded bias per scale.
    Returns (attended (C, H*W), pooled_row (1, C)).
    """
    C, HW = x.shape
    assert HW == H * W
    inv_hw = 1.0 / float(HW)

    # ---- channel attention: shared MLP over [avg | max] pooled vectors ----
    avg = jnp.sum(x, axis=1, keepdims=True) * inv_hw                 # (C, 1)
    mx = jnp.max(x, axis=1, keepdims=True)                           # (C, 1)
    stats = jnp.concatenate([avg, mx], axis=1)                       # (C, 2), in registers
    hid = jnp.dot(w1t, stats, preferred_element_type=jnp.float32) + b1t   # (8, 2)
    hid = jnp.maximum(hid, 0.0)
    mlp = jnp.dot(w2t, hid, preferred_element_type=jnp.float32) + b2t     # (C, 2)
    ch = jax.nn.sigmoid(mlp[:, 0:1] + mlp[:, 1:2])                   # (C, 1)
    xs = x * ch                                                      # (C, HW)

    # ---- spatial attention: 7x7 conv on [mean_c | max_c] in the flat layout ----
    s_avg = jnp.sum(xs, axis=0, keepdims=True) * (1.0 / float(C))    # (1, HW)
    s_max = jnp.max(xs, axis=0, keepdims=True)                       # (1, HW)

    # column index j = p mod W (W is a power of two here)
    col = lax.broadcasted_iota(jnp.int32, (1, HW), 1) & (W - 1)

    # stage 1: column-shifted, column-masked taps (mask kills cross-row bleed)
    taps = {}
    for dj in range(-3, 4):
        if dj == 0:
            taps[(0, dj)] = s_avg
            taps[(1, dj)] = s_max
            continue
        valid = (col < (W - dj)) if dj > 0 else (col >= (-dj))
        for c, src in enumerate((s_avg, s_max)):
            taps[(c, dj)] = jnp.where(valid, _shift_lanes(src, dj), 0.0)

    # stage 2: per-kernel-row partial sums, then a zero-fill row shift (di*W lanes).
    # Row-boundary handling falls out of the flat-index zero fill.
    acc = jnp.zeros((1, HW), jnp.float32)
    for di in range(-3, 4):
        u0 = jnp.zeros((1, HW), jnp.float32)
        u1 = jnp.zeros((1, HW), jnp.float32)
        for dj in range(-3, 4):
            k = (di + 3) * 7 + (dj + 3)
            u0 = u0 + taps[(0, dj)] * cw_ref[s, k]        # avg-channel weights
            u1 = u1 + taps[(1, dj)] * cw_ref[s, 49 + k]   # max-channel weights
        acc = acc + _shift_lanes(u0 + u1, di * W)
    sp = jax.nn.sigmoid(acc + cw_ref[s, 98])              # folded conv bias + BN shift

    att = xs * sp                                         # (C, HW)
    # adaptive_avg_pool2d(att, 1) as a lane row via one rhs-transposed MXU dot:
    pooled_row = lax.dot_general(
        sp, xs, (((1,), (1,)), ((), ())),
        preferred_element_type=jnp.float32) * inv_hw      # (1, C)
    return att, pooled_row


# ----------------------------------------------------------------------------
# Fused kernel: 3 x CBAM + pooled concat + fusion head, one batch element / step
# ----------------------------------------------------------------------------
def _make_iris_kernel(scale_shapes, pooled_pad):
    (C1, H1, W1), (C2, H2, W2), (C3, H3, W3) = scale_shapes

    def kernel(x1_ref, x2_ref, x3_ref,
               a1w1_ref, a1b1_ref, a1w2_ref, a1b2_ref,
               a2w1_ref, a2b1_ref, a2w2_ref, a2b2_ref,
               a3w1_ref, a3b1_ref, a3w2_ref, a3b2_ref,
               cw_ref, fw1_ref, fb1_ref, fw2_ref, fb2_ref,
               att1_ref, att2_ref, att3_ref, emb_ref):
        per_scale = (
            (x1_ref, att1_ref, a1w1_ref, a1b1_ref, a1w2_ref, a1b2_ref, (C1, H1, W1)),
            (x2_ref, att2_ref, a2w1_ref, a2b1_ref, a2w2_ref, a2b2_ref, (C2, H2, W2)),
            (x3_ref, att3_ref, a3w1_ref, a3b1_ref, a3w2_ref, a3b2_ref, (C3, H3, W3)),
        )
        pooled_rows = []
        for s, (x_ref, att_ref, w1t_ref, b1t_ref, w2t_ref, b2t_ref, (C, H, W)) \
                in enumerate(per_scale):
            att, prow = _cbam_scale(x_ref[0], w1t_ref[...], b1t_ref[...],
                                    w2t_ref[...], b2t_ref[...], cw_ref, s, H, W)
            att_ref[0] = att
            pooled_rows.append(prow)
        if pooled_pad:
            pooled_rows.append(jnp.zeros((1, pooled_pad), jnp.float32))
        pooled = jnp.concatenate(pooled_rows, axis=1)                  # (1, 128)

        # fusion head (BN1d folded; Dropout(0.5) is identity in eval mode),
        # bf16 weights with f32 accumulation
        h = jnp.dot(pooled.astype(jnp.bfloat16), fw1_ref[...],
                    preferred_element_type=jnp.float32) + fb1_ref[...]
        h = jnp.maximum(h, 0.0)
        e = jnp.dot(h.astype(jnp.bfloat16), fw2_ref[...],
                    preferred_element_type=jnp.float32) + fb2_ref[...]  # (1, 128)
        # padded columns of fw2 AND fb2 are zero -> norm over 128 == norm over 64
        nrm = jnp.sqrt(jnp.sum(e * e, axis=1, keepdims=True))
        emb_ref[0] = e / jnp.maximum(nrm, 1e-12)                        # F.normalize(p=2)

    return kernel


def iris_cbam_fusion(x_flat, scale_shapes, cbam_params, cw_all, fusion_params):
    """One pallas_call for all CBAM scales + fusion head.  x_flat[i]: (B, C_i, H_i*W_i)."""
    B = x_flat[0].shape[0]
    for (_, _, W) in scale_shapes:
        assert W > 0 and (W & (W - 1)) == 0, "flat-layout conv assumes power-of-two W"
    k_pad = fusion_params['w1'].shape[0]
    e_pad = fusion_params['w2'].shape[1]
    sum_c = sum(c for c, _, _ in scale_shapes)

    kernel = _make_iris_kernel(tuple(scale_shapes), k_pad - sum_c)

    in_specs, inputs = [], []
    for (C, H, W), xf in zip(scale_shapes, x_flat):
        in_specs.append(pl.BlockSpec((1, C, H * W), lambda b: (b, 0, 0)))
        inputs.append(xf)
    for p in cbam_params:
        for name in ('w1t', 'b1t', 'w2t', 'b2t'):
            arr = p[name]
            in_specs.append(pl.BlockSpec(arr.shape, lambda b: (0, 0)))
            inputs.append(arr)
    in_specs.append(pl.BlockSpec(memory_space=pltpu.MemorySpace.SMEM))   # conv weights
    inputs.append(cw_all)
    for name in ('w1', 'b1', 'w2', 'b2'):
        arr = fusion_params[name]
        in_specs.append(pl.BlockSpec(arr.shape, lambda b: (0, 0)))
        inputs.append(arr)

    out_specs = tuple(
        [pl.BlockSpec((1, C, H * W), lambda b: (b, 0, 0)) for (C, H, W) in scale_shapes]
        + [pl.BlockSpec((1, 1, e_pad), lambda b: (b, 0, 0))])
    out_shape = tuple(
        [jax.ShapeDtypeStruct((B, C, H * W), jnp.float32) for (C, H, W) in scale_shapes]
        + [jax.ShapeDtypeStruct((B, 1, e_pad), jnp.float32)])

    outs = pl.pallas_call(
        kernel,
        grid=(B,),
        in_specs=in_specs,
        out_specs=out_specs,
        out_shape=out_shape,
        compiler_params=pltpu.CompilerParams(dimension_semantics=("parallel",)),
    )(*inputs)
    att_list = list(outs[:-1])
    emb_padded = outs[-1][:, 0, :]
    return att_list, emb_padded


# ----------------------------------------------------------------------------
# Stand-in backbone (plain JAX glue): 3 strided 3x3 convs, NHWC / HWIO
# ----------------------------------------------------------------------------
def backbone(x_nchw, conv_params):
    h = jnp.transpose(x_nchw, (0, 2, 3, 1))                     # NCHW -> NHWC
    feats = []
    for w, b in conv_params:
        h = lax.conv_general_dilated(
            h, w, window_strides=(2, 2), padding='SAME',
            dimension_numbers=('NHWC', 'HWIO', 'NHWC'))
        h = jax.nn.relu(h + b[None, None, None, :])
        feats.append(h)
    return feats                                                # list of (B, H, W, C)


# ----------------------------------------------------------------------------
# Full IrisEncoder forward
# ----------------------------------------------------------------------------
def iris_encoder_forward(x, params, embedding_size=64):
    feats = backbone(x, params['backbone'])
    B = x.shape[0]
    scale_shapes = [(f.shape[3], f.shape[1], f.shape[2]) for f in feats]   # (C, H, W)
    x_flat = [jnp.transpose(f, (0, 3, 1, 2)).reshape(B, C, H * W)
              for f, (C, H, W) in zip(feats, scale_shapes)]

    att_flat, emb_padded = iris_cbam_fusion(
        x_flat, scale_shapes, params['cbam'], params['cw_all'], params['fusion'])

    attended = [a.reshape(B, C, H, W) for a, (C, H, W) in zip(att_flat, scale_shapes)]
    embedding = emb_padded[:, :embedding_size]        # padded cols are exactly zero
    return {'embedding': embedding, 'features': attended}


# ----------------------------------------------------------------------------
# Deterministic parameter construction (eval-BN folding, Cr->8 pad, lane padding,
# bf16 fusion weights)
# ----------------------------------------------------------------------------
def _round_up(n, m):
    return ((n + m - 1) // m) * m


def build_params(key, in_ch=3, backbone_channels=(16, 32, 64), reduction=16,
                 hidden=1024, embedding_size=64, bn_eps=1e-5):
    keys = iter(jax.random.split(key, 64))
    params = {}

    # --- stand-in backbone convs (HWIO) ---
    conv_params = []
    c_prev = in_ch
    for c in backbone_channels:
        w = 0.05 * jax.random.normal(next(keys), (3, 3, c_prev, c), jnp.float32)
        b = 0.01 * jax.random.normal(next(keys), (c,), jnp.float32)
        conv_params.append((w, b))
        c_prev = c
    params['backbone'] = conv_params

    # --- CBAM per scale; BatchNorm2d(1) eval stats folded into the 7x7 conv ---
    bn_scale = 1.0 / float(jnp.sqrt(1.0 + bn_eps))       # gamma=1, var=1, mean=0, beta=0
    cbam_params, cw_rows = [], []
    for c in backbone_channels:
        cr = max(c // reduction, 1)
        fc1_w = 0.05 * jax.random.normal(next(keys), (cr, c), jnp.float32)   # torch (out,in)
        fc1_b = 0.01 * jax.random.normal(next(keys), (cr,), jnp.float32)
        fc2_w = 0.05 * jax.random.normal(next(keys), (c, cr), jnp.float32)
        fc2_b = 0.01 * jax.random.normal(next(keys), (c,), jnp.float32)
        # pad reduced dim Cr -> 8 (MXU tile floor); zero rows/cols keep math identical
        w1t = jnp.zeros((8, c), jnp.float32).at[:cr, :].set(fc1_w)
        b1t = jnp.zeros((8, 1), jnp.float32).at[:cr, 0].set(fc1_b)
        w2t = jnp.zeros((c, 8), jnp.float32).at[:, :cr].set(fc2_w)
        b2t = fc2_b.reshape(c, 1)
        cbam_params.append({'w1t': w1t, 'b1t': b1t, 'w2t': w2t, 'b2t': b2t})

        conv_w = 0.05 * jax.random.normal(next(keys), (2, 7, 7), jnp.float32)  # (in,kh,kw)
        conv_b = 0.01 * jax.random.normal(next(keys), (), jnp.float32)
        w_fold = (conv_w * bn_scale).reshape(-1)                               # (98,)
        b_fold = jnp.reshape(conv_b * bn_scale, (1,))
        cw_rows.append(jnp.concatenate([w_fold, b_fold]))
    params['cbam'] = cbam_params
    params['cw_all'] = jnp.stack(cw_rows).astype(jnp.float32)                  # (3, 99)

    # --- fusion head: BN1d folded into the linears; K/E padded to 128; bf16 weights ---
    sum_c = sum(backbone_channels)
    k_pad = _round_up(sum_c, 128)
    e_pad = _round_up(embedding_size, 128)

    def fold_bn_rows(w, b, n):
        gamma = jnp.ones((n,), jnp.float32)
        beta = jnp.zeros((n,), jnp.float32)
        mean = jnp.zeros((n,), jnp.float32)
        var = jnp.ones((n,), jnp.float32)
        s = gamma / jnp.sqrt(var + bn_eps)
        return w * s[:, None], (b - mean) * s + beta

    l1_w = 0.05 * jax.random.normal(next(keys), (hidden, sum_c), jnp.float32)  # torch (out,in)
    l1_b = 0.01 * jax.random.normal(next(keys), (hidden,), jnp.float32)
    l1_w, l1_b = fold_bn_rows(l1_w, l1_b, hidden)
    w1 = jnp.zeros((k_pad, hidden), jnp.float32).at[:sum_c, :].set(l1_w.T)     # (128, 1024)
    b1 = l1_b.reshape(1, hidden)

    l2_w = 0.05 * jax.random.normal(next(keys), (embedding_size, hidden), jnp.float32)
    l2_b = 0.01 * jax.random.normal(next(keys), (embedding_size,), jnp.float32)
    l2_w, l2_b = fold_bn_rows(l2_w, l2_b, embedding_size)
    w2 = jnp.zeros((hidden, e_pad), jnp.float32).at[:, :embedding_size].set(l2_w.T)
    b2 = jnp.zeros((1, e_pad), jnp.float32).at[0, :embedding_size].set(l2_b)

    # L2-norm-on-padded-embedding is only valid if padded cols of BOTH w2 and b2 are zero
    assert bool(jnp.all(w2[:, embedding_size:] == 0.0))
    assert bool(jnp.all(b2[:, embedding_size:] == 0.0))

    params['fusion'] = {'w1': w1.astype(jnp.bfloat16), 'b1': b1,
                        'w2': w2.astype(jnp.bfloat16), 'b2': b2}
    return params


if __name__ == "__main__":
    key = jax.random.PRNGKey(0)
    k_x, k_p = jax.random.split(key)

    # small synthetic input image, NCHW (matches the PyTorch interface)
    x = jax.random.normal(k_x, (2, 3, 32, 32), jnp.float32)
    params = build_params(k_p)

    fwd = jax.jit(iris_encoder_forward)
    out = fwd(x, params)
    jax.block_until_ready(out['embedding'])
    for f in out['features']:
        jax.block_until_ready(f)

    assert out['embedding'].shape == (2, 64)
    assert len(out['features']) == 3
    assert out['features'][0].shape == (2, 16, 16, 16)
    assert out['features'][1].shape == (2, 32, 8, 8)
    assert out['features'][2].shape == (2, 64, 4, 4)
    norms = jnp.linalg.norm(out['embedding'], axis=1)
    assert bool(jnp.all(jnp.abs(norms - 1.0) < 1e-2))   # F.normalize semantics
    print("KERNEL_OK")
</pallas_src>

<mosaic_0001>
module attributes {stable_mosaic.version = 11 : i64} {
  func.func @kernel(%arg0: i32, %arg1: memref<1x16x256xf32, #tpu.memory_space<vmem>>, %arg2: memref<1x32x64xf32, #tpu.memory_space<vmem>>, %arg3: memref<1x64x16xf32, #tpu.memory_space<vmem>>, %arg4: memref<8x16xf32, #tpu.memory_space<vmem>>, %arg5: memref<8x1xf32, #tpu.memory_space<vmem>>, %arg6: memref<16x8xf32, #tpu.memory_space<vmem>>, %arg7: memref<16x1xf32, #tpu.memory_space<vmem>>, %arg8: memref<8x32xf32, #tpu.memory_space<vmem>>, %arg9: memref<8x1xf32, #tpu.memory_space<vmem>>, %arg10: memref<32x8xf32, #tpu.memory_space<vmem>>, %arg11: memref<32x1xf32, #tpu.memory_space<vmem>>, %arg12: memref<8x64xf32, #tpu.memory_space<vmem>>, %arg13: memref<8x1xf32, #tpu.memory_space<vmem>>, %arg14: memref<64x8xf32, #tpu.memory_space<vmem>>, %arg15: memref<64x1xf32, #tpu.memory_space<vmem>>, %arg16: memref<3x99xf32, #tpu.memory_space<smem>>, %arg17: memref<128x1024xbf16, #tpu.memory_space<vmem>>, %arg18: memref<1x1024xf32, #tpu.memory_space<vmem>>, %arg19: memref<1024x128xbf16, #tpu.memory_space<vmem>>, %arg20: memref<1x128xf32, #tpu.memory_space<vmem>>, %arg21: memref<1x16x256xf32, #tpu.memory_space<vmem>>, %arg22: memref<1x32x64xf32, #tpu.memory_space<vmem>>, %arg23: memref<1x64x16xf32, #tpu.memory_space<vmem>>, %arg24: memref<1x1x128xf32, #tpu.memory_space<vmem>>) attributes {dimension_semantics = [#tpu.dimension_semantics<parallel>], iteration_bounds = array<i64: 2>, scalar_prefetch = 0 : i64, scratch_operands = 0 : i64, tpu.core_type = #tpu.core_type<tc>, window_params = [{transform_indices = @transform_0, window_bounds = array<i64: 1, 16, 256>}, {transform_indices = @transform_1, window_bounds = array<i64: 1, 32, 64>}, {transform_indices = @transform_2, window_bounds = array<i64: 1, 64, 16>}, {pipeline_mode = #tpu.pipeline_mode<synchronous>, transform_indices = @transform_3, window_bounds = array<i64: 8, 16>}, {pipeline_mode = #tpu.pipeline_mode<synchronous>, transform_indices = @transform_4, window_bounds = array<i64: 8, 1>}, {pipeline_mode = #tpu.pipeline_mode<synchronous>, transform_indices = @transform_5, window_bounds = array<i64: 16, 8>}, {pipeline_mode = #tpu.pipeline_mode<synchronous>, transform_indices = @transform_6, window_bounds = array<i64: 16, 1>}, {pipeline_mode = #tpu.pipeline_mode<synchronous>, transform_indices = @transform_7, window_bounds = array<i64: 8, 32>}, {pipeline_mode = #tpu.pipeline_mode<synchronous>, transform_indices = @transform_8, window_bounds = array<i64: 8, 1>}, {pipeline_mode = #tpu.pipeline_mode<synchronous>, transform_indices = @transform_9, window_bounds = array<i64: 32, 8>}, {pipeline_mode = #tpu.pipeline_mode<synchronous>, transform_indices = @transform_10, window_bounds = array<i64: 32, 1>}, {pipeline_mode = #tpu.pipeline_mode<synchronous>, transform_indices = @transform_11, window_bounds = array<i64: 8, 64>}, {pipeline_mode = #tpu.pipeline_mode<synchronous>, transform_indices = @transform_12, window_bounds = array<i64: 8, 1>}, {pipeline_mode = #tpu.pipeline_mode<synchronous>, transform_indices = @transform_13, window_bounds = array<i64: 64, 8>}, {pipeline_mode = #tpu.pipeline_mode<synchronous>, transform_indices = @transform_14, window_bounds = array<i64: 64, 1>}, {transform_indices = @transform_15, window_bounds = array<i64: 3, 99>}, {pipeline_mode = #tpu.pipeline_mode<synchronous>, transform_indices = @transform_16, window_bounds = array<i64: 128, 1024>}, {pipeline_mode = #tpu.pipeline_mode<synchronous>, transform_indices = @transform_17, window_bounds = array<i64: 1, 1024>}, {pipeline_mode = #tpu.pipeline_mode<synchronous>, transform_indices = @transform_18, window_bounds = array<i64: 1024, 128>}, {pipeline_mode = #tpu.pipeline_mode<synchronous>, transform_indices = @transform_19, window_bounds = array<i64: 1, 128>}, {transform_indices = @transform_20, window_bounds = array<i64: 1, 16, 256>}, {transform_indices = @transform_21, window_bounds = array<i64: 1, 32, 64>}, {transform_indices = @transform_22, window_bounds = array<i64: 1, 64, 16>}, {transform_indices = @transform_23, window_bounds = array<i64: 1, 1, 128>}]} {
    %c0 = arith.constant 0 : index
    %c0_0 = arith.constant 0 : index
    %c0_1 = arith.constant 0 : index
    %0 = vector.load %arg1[%c0, %c0_0, %c0_1] : memref<1x16x256xf32, #tpu.memory_space<vmem>>, vector<1x16x256xf32>
    %1 = vector.shape_cast %0 : vector<1x16x256xf32> to vector<16x256xf32>
    %c0_2 = arith.constant 0 : index
    %c0_3 = arith.constant 0 : index
    %2 = vector.load %arg4[%c0_2, %c0_3] : memref<8x16xf32, #tpu.memory_space<vmem>>, vector<8x16xf32>
    %c0_4 = arith.constant 0 : index
    %c0_5 = arith.constant 0 : index
    %3 = vector.load %arg5[%c0_4, %c0_5] : memref<8x1xf32, #tpu.memory_space<vmem>>, vector<8x1xf32>
    %c0_6 = arith.constant 0 : index
    %c0_7 = arith.constant 0 : index
    %4 = vector.load %arg6[%c0_6, %c0_7] : memref<16x8xf32, #tpu.memory_space<vmem>>, vector<16x8xf32>
    %c0_8 = arith.constant 0 : index
    %c0_9 = arith.constant 0 : index
    %5 = vector.load %arg7[%c0_8, %c0_9] : memref<16x1xf32, #tpu.memory_space<vmem>>, vector<16x1xf32>
    %cst = arith.constant dense<0.000000e+00> : vector<16xf32>
    %6 = vector.multi_reduction <add>, %1, %cst [1] : vector<16x256xf32> to vector<16xf32>
    %7 = vector.shape_cast %6 : vector<16xf32> to vector<16x1xf32>
    %cst_10 = arith.constant 3.906250e-03 : f32
    %8 = vector.broadcast %cst_10 : f32 to vector<16x1xf32>
    %9 = arith.mulf %7, %8 : vector<16x1xf32>
    %cst_11 = arith.constant dense<0xFF800000> : vector<16xf32>
    %10 = vector.multi_reduction <maximumf>, %1, %cst_11 [1] : vector<16x256xf32> to vector<16xf32>
    %11 = vector.shape_cast %10 : vector<16xf32> to vector<16x1xf32>
    %12 = tpu.concatenate %9, %11 in 1 : vector<16x1xf32>, vector<16x1xf32> -> vector<16x2xf32>
    %cst_12 = arith.constant dense<0.000000e+00> : vector<8x2xf32>
    %13 = tpu.matmul %2, %12, %cst_12 {dimension_numbers = #tpu.dot_dimension_numbers<[1], [0], [0], [1], [0, 0, 1, 1], [], []>} : vector<8x16xf32>, vector<16x2xf32>, vector<8x2xf32> -> vector<8x2xf32>
    %14 = vector.broadcast %3 : vector<8x1xf32> to vector<8x2xf32>
    %15 = arith.addf %13, %14 : vector<8x2xf32>
    %cst_13 = arith.constant 0.000000e+00 : f32
    %16 = vector.broadcast %cst_13 : f32 to vector<8x2xf32>
    %17 = arith.maximumf %15, %16 : vector<8x2xf32>
    %cst_14 = arith.constant dense<0.000000e+00> : vector<16x2xf32>
    %18 = tpu.matmul %4, %17, %cst_14 {dimension_numbers = #tpu.dot_dimension_numbers<[1], [0], [0], [1], [0, 0, 1, 1], [], []>} : vector<16x8xf32>, vector<8x2xf32>, vector<16x2xf32> -> vector<16x2xf32>
    %19 = vector.broadcast %5 : vector<16x1xf32> to vector<16x2xf32>
    %20 = arith.addf %18, %19 : vector<16x2xf32>
    %21 = vector.extract_strided_slice %20 {offsets = [0, 0], sizes = [16, 1], strides = [1, 1]} : vector<16x2xf32> to vector<16x1xf32>
    %22 = vector.extract_strided_slice %20 {offsets = [0, 1], sizes = [16, 1], strides = [1, 1]} : vector<16x2xf32> to vector<16x1xf32>
    %23 = arith.addf %21, %22 : vector<16x1xf32>
    %24 = arith.negf %23 : vector<16x1xf32>
    %25 = math.exp %24 : vector<16x1xf32>
    %cst_15 = arith.constant 1.000000e+00 : f32
    %26 = vector.broadcast %cst_15 : f32 to vector<16x1xf32>
    %27 = arith.addf %26, %25 : vector<16x1xf32>
    %28 = arith.divf %26, %27 : vector<16x1xf32>
    %29 = vector.broadcast %28 : vector<16x1xf32> to vector<16x256xf32>
    %30 = arith.mulf %1, %29 : vector<16x256xf32>
    %cst_16 = arith.constant dense<0.000000e+00> : vector<256xf32>
    %31 = vector.multi_reduction <add>, %30, %cst_16 [0] : vector<16x256xf32> to vector<256xf32>
    %32 = vector.shape_cast %31 : vector<256xf32> to vector<1x256xf32>
    %cst_17 = arith.constant 6.250000e-02 : f32
    %33 = vector.broadcast %cst_17 : f32 to vector<1x256xf32>
    %34 = arith.mulf %32, %33 : vector<1x256xf32>
    %cst_18 = arith.constant dense<0xFF800000> : vector<256xf32>
    %35 = vector.multi_reduction <maximumf>, %30, %cst_18 [0] : vector<16x256xf32> to vector<256xf32>
    %36 = vector.shape_cast %35 : vector<256xf32> to vector<1x256xf32>
    %37 = tpu.iota {dimensions = array<i32: 1>} : vector<1x256xi32>
    %c15_i32 = arith.constant 15 : i32
    %38 = vector.broadcast %c15_i32 : i32 to vector<1x256xi32>
    %39 = arith.andi %37, %38 : vector<1x256xi32>
    %c3_i32 = arith.constant 3 : i32
    %40 = vector.broadcast %c3_i32 : i32 to vector<1x256xi32>
    %41 = arith.cmpi sge, %39, %40 : vector<1x256xi32>
    %cst_19 = arith.constant 0.000000e+00 : f32
    %42 = vector.broadcast %cst_19 : f32 to vector<1x3xf32>
    %43 = vector.extract_strided_slice %34 {offsets = [0, 0], sizes = [1, 253], strides = [1, 1]} : vector<1x256xf32> to vector<1x253xf32>
    %44 = tpu.concatenate %42, %43 in 1 : vector<1x3xf32>, vector<1x253xf32> -> vector<1x256xf32>
    %cst_20 = arith.constant 0.000000e+00 : f32
    %45 = vector.broadcast %cst_20 : f32 to vector<1x256xf32>
    %46 = arith.select %41, %44, %45 : vector<1x256xi1>, vector<1x256xf32>
    %cst_21 = arith.constant 0.000000e+00 : f32
    %47 = vector.broadcast %cst_21 : f32 to vector<1x3xf32>
    %48 = vector.extract_strided_slice %36 {offsets = [0, 0], sizes = [1, 253], strides = [1, 1]} : vector<1x256xf32> to vector<1x253xf32>
    %49 = tpu.concatenate %47, %48 in 1 : vector<1x3xf32>, vector<1x253xf32> -> vector<1x256xf32>
    %cst_22 = arith.constant 0.000000e+00 : f32
    %50 = vector.broadcast %cst_22 : f32 to vector<1x256xf32>
    %51 = arith.select %41, %49, %50 : vector<1x256xi1>, vector<1x256xf32>
    %c2_i32 = arith.constant 2 : i32
    %52 = vector.broadcast %c2_i32 : i32 to vector<1x256xi32>
    %53 = arith.cmpi sge, %39, %52 : vector<1x256xi32>
    %cst_23 = arith.constant 0.000000e+00 : f32
    %54 = vector.broadcast %cst_23 : f32 to vector<1x2xf32>
    %55 = vector.extract_strided_slice %34 {offsets = [0, 0], sizes = [1, 254], strides = [1, 1]} : vector<1x256xf32> to vector<1x254xf32>
    %56 = tpu.concatenate %54, %55 in 1 : vector<1x2xf32>, vector<1x254xf32> -> vector<1x256xf32>
    %cst_24 = arith.constant 0.000000e+00 : f32
    %57 = vector.broadcast %cst_24 : f32 to vector<1x256xf32>
    %58 = arith.select %53, %56, %57 : vector<1x256xi1>, vector<1x256xf32>
    %cst_25 = arith.constant 0.000000e+00 : f32
    %59 = vector.broadcast %cst_25 : f32 to vector<1x2xf32>
    %60 = vector.extract_strided_slice %36 {offsets = [0, 0], sizes = [1, 254], strides = [1, 1]} : vector<1x256xf32> to vector<1x254xf32>
    %61 = tpu.concatenate %59, %60 in 1 : vector<1x2xf32>, vector<1x254xf32> -> vector<1x256xf32>
    %cst_26 = arith.constant 0.000000e+00 : f32
    %62 = vector.broadcast %cst_26 : f32 to vector<1x256xf32>
    %63 = arith.select %53, %61, %62 : vector<1x256xi1>, vector<1x256xf32>
    %c1_i32 = arith.constant 1 : i32
    %64 = vector.broadcast %c1_i32 : i32 to vector<1x256xi32>
    %65 = arith.cmpi sge, %39, %64 : vector<1x256xi32>
    %cst_27 = arith.constant 0.000000e+00 : f32
    %66 = vector.broadcast %cst_27 : f32 to vector<1x1xf32>
    %67 = vector.extract_strided_slice %34 {offsets = [0, 0], sizes = [1, 255], strides = [1, 1]} : vector<1x256xf32> to vector<1x255xf32>
    %68 = tpu.concatenate %66, %67 in 1 : vector<1x1xf32>, vector<1x255xf32> -> vector<1x256xf32>
    %cst_28 = arith.constant 0.000000e+00 : f32
    %69 = vector.broadcast %cst_28 : f32 to vector<1x256xf32>
    %70 = arith.select %65, %68, %69 : vector<1x256xi1>, vector<1x256xf32>
    %cst_29 = arith.constant 0.000000e+00 : f32
    %71 = vector.broadcast %cst_29 : f32 to vector<1x1xf32>
    %72 = vector.extract_strided_slice %36 {offsets = [0, 0], sizes = [1, 255], strides = [1, 1]} : vector<1x256xf32> to vector<1x255xf32>
    %73 = tpu.concatenate %71, %72 in 1 : vector<1x1xf32>, vector<1x255xf32> -> vector<1x256xf32>
    %cst_30 = arith.constant 0.000000e+00 : f32
    %74 = vector.broadcast %cst_30 : f32 to vector<1x256xf32>
    %75 = arith.select %65, %73, %74 : vector<1x256xi1>, vector<1x256xf32>
    %c15_i32_31 = arith.constant 15 : i32
    %76 = vector.broadcast %c15_i32_31 : i32 to vector<1x256xi32>
    %77 = arith.cmpi slt, %39, %76 : vector<1x256xi32>
    %cst_32 = arith.constant 0.000000e+00 : f32
    %78 = vector.broadcast %cst_32 : f32 to vector<1x1xf32>
    %79 = vector.extract_strided_slice %34 {offsets = [0, 1], sizes = [1, 255], strides = [1, 1]} : vector<1x256xf32> to vector<1x255xf32>
    %80 = tpu.concatenate %79, %78 in 1 : vector<1x255xf32>, vector<1x1xf32> -> vector<1x256xf32>
    %cst_33 = arith.constant 0.000000e+00 : f32
    %81 = vector.broadcast %cst_33 : f32 to vector<1x256xf32>
    %82 = arith.select %77, %80, %81 : vector<1x256xi1>, vector<1x256xf32>
    %cst_34 = arith.constant 0.000000e+00 : f32
    %83 = vector.broadcast %cst_34 : f32 to vector<1x1xf32>
    %84 = vector.extract_strided_slice %36 {offsets = [0, 1], sizes = [1, 255], strides = [1, 1]} : vector<1x256xf32> to vector<1x255xf32>
    %85 = tpu.concatenate %84, %83 in 1 : vector<1x255xf32>, vector<1x1xf32> -> vector<1x256xf32>
    %cst_35 = arith.constant 0.000000e+00 : f32
    %86 = vector.broadcast %cst_35 : f32 to vector<1x256xf32>
    %87 = arith.select %77, %85, %86 : vector<1x256xi1>, vector<1x256xf32>
    %c14_i32 = arith.constant 14 : i32
    %88 = vector.broadcast %c14_i32 : i32 to vector<1x256xi32>
    %89 = arith.cmpi slt, %39, %88 : vector<1x256xi32>
    %cst_36 = arith.constant 0.000000e+00 : f32
    %90 = vector.broadcast %cst_36 : f32 to vector<1x2xf32>
    %91 = vector.extract_strided_slice %34 {offsets = [0, 2], sizes = [1, 254], strides = [1, 1]} : vector<1x256xf32> to vector<1x254xf32>
    %92 = tpu.concatenate %91, %90 in 1 : vector<1x254xf32>, vector<1x2xf32> -> vector<1x256xf32>
    %cst_37 = arith.constant 0.000000e+00 : f32
    %93 = vector.broadcast %cst_37 : f32 to vector<1x256xf32>
    %94 = arith.select %89, %92, %93 : vector<1x256xi1>, vector<1x256xf32>
    %cst_38 = arith.constant 0.000000e+00 : f32
    %95 = vector.broadcast %cst_38 : f32 to vector<1x2xf32>
    %96 = vector.extract_strided_slice %36 {offsets = [0, 2], sizes = [1, 254], strides = [1, 1]} : vector<1x256xf32> to vector<1x254xf32>
    %97 = tpu.concatenate %96, %95 in 1 : vector<1x254xf32>, vector<1x2xf32> -> vector<1x256xf32>
    %cst_39 = arith.constant 0.000000e+00 : f32
    %98 = vector.broadcast %cst_39 : f32 to vector<1x256xf32>
    %99 = arith.select %89, %97, %98 : vector<1x256xi1>, vector<1x256xf32>
    %c13_i32 = arith.constant 13 : i32
    %100 = vector.broadcast %c13_i32 : i32 to vector<1x256xi32>
    %101 = arith.cmpi slt, %39, %100 : vector<1x256xi32>
    %cst_40 = arith.constant 0.000000e+00 : f32
    %102 = vector.broadcast %cst_40 : f32 to vector<1x3xf32>
    %103 = vector.extract_strided_slice %34 {offsets = [0, 3], sizes = [1, 253], strides = [1, 1]} : vector<1x256xf32> to vector<1x253xf32>
    %104 = tpu.concatenate %103, %102 in 1 : vector<1x253xf32>, vector<1x3xf32> -> vector<1x256xf32>
    %cst_41 = arith.constant 0.000000e+00 : f32
    %105 = vector.broadcast %cst_41 : f32 to vector<1x256xf32>
    %106 = arith.select %101, %104, %105 : vector<1x256xi1>, vector<1x256xf32>
    %cst_42 = arith.constant 0.000000e+00 : f32
    %107 = vector.broadcast %cst_42 : f32 to vector<1x3xf32>
    %108 = vector.extract_strided_slice %36 {offsets = [0, 3], sizes = [1, 253], strides = [1, 1]} : vector<1x256xf32> to vector<1x253xf32>
    %109 = tpu.concatenate %108, %107 in 1 : vector<1x253xf32>, vector<1x3xf32> -> vector<1x256xf32>
    %cst_43 = arith.constant 0.000000e+00 : f32
    %110 = vector.broadcast %cst_43 : f32 to vector<1x256xf32>
    %111 = arith.select %101, %109, %110 : vector<1x256xi1>, vector<1x256xf32>
    %cst_44 = arith.constant 0.000000e+00 : f32
    %112 = vector.broadcast %cst_44 : f32 to vector<1x256xf32>
    %cst_45 = arith.constant 0.000000e+00 : f32
    %113 = vector.broadcast %cst_45 : f32 to vector<1x256xf32>
    %cst_46 = arith.constant 0.000000e+00 : f32
    %114 = vector.broadcast %cst_46 : f32 to vector<1x256xf32>
    %c0_47 = arith.constant 0 : index
    %c0_48 = arith.constant 0 : index
    %115 = memref.load %arg16[%c0_47, %c0_48] : memref<3x99xf32, #tpu.memory_space<smem>>
    %116 = vector.broadcast %115 : f32 to vector<1x256xf32>
    %117 = arith.mulf %46, %116 : vector<1x256xf32>
    %118 = arith.addf %113, %117 : vector<1x256xf32>
    %c0_49 = arith.constant 0 : index
    %c49 = arith.constant 49 : index
    %119 = memref.load %arg16[%c0_49, %c49] : memref<3x99xf32, #tpu.memory_space<smem>>
    %120 = vector.broadcast %119 : f32 to vector<1x256xf32>
    %121 = arith.mulf %51, %120 : vector<1x256xf32>
    %122 = arith.addf %114, %121 : vector<1x256xf32>
    %c0_50 = arith.constant 0 : index
    %c1 = arith.constant 1 : index
    %123 = memref.load %arg16[%c0_50, %c1] : memref<3x99xf32, #tpu.memory_space<smem>>
    %124 = vector.broadcast %123 : f32 to vector<1x256xf32>
    %125 = arith.mulf %58, %124 : vector<1x256xf32>
    %126 = arith.addf %118, %125 : vector<1x256xf32>
    %c0_51 = arith.constant 0 : index
    %c50 = arith.constant 50 : index
    %127 = memref.load %arg16[%c0_51, %c50] : memref<3x99xf32, #tpu.memory_space<smem>>
    %128 = vector.broadcast %127 : f32 to vector<1x256xf32>
    %129 = arith.mulf %63, %128 : vector<1x256xf32>
    %130 = arith.addf %122, %129 : vector<1x256xf32>
    %c0_52 = arith.constant 0 : index
    %c2 = arith.constant 2 : index
    %131 = memref.load %arg16[%c0_52, %c2] : memref<3x99xf32, #tpu.memory_space<smem>>
    %132 = vector.broadcast %131 : f32 to vector<1x256xf32>
    %133 = arith.mulf %70, %132 : vector<1x256xf32>
    %134 = arith.addf %126, %133 : vector<1x256xf32>
    %c0_53 = arith.constant 0 : index
    %c51 = arith.constant 51 : index
    %135 = memref.load %arg16[%c0_53, %c51] : memref<3x99xf32, #tpu.memory_space<smem>>
    %136 = vector.broadcast %135 : f32 to vector<1x256xf32>
    %137 = arith.mulf %75, %136 : vector<1x256xf32>
    %138 = arith.addf %130, %137 : vector<1x256xf32>
    %c0_54 = arith.constant 0 : index
    %c3 = arith.constant 3 : index
    %139 = memref.load %arg16[%c0_54, %c3] : memref<3x99xf32, #tpu.memory_space<smem>>
    %140 = vector.broadcast %139 : f32 to vector<1x256xf32>
    %141 = arith.mulf %34, %140 : vector<1x256xf32>
    %142 = arith.addf %134, %141 : vector<1x256xf32>
    %c0_55 = arith.constant 0 : index
    %c52 = arith.constant 52 : index
    %143 = memref.load %arg16[%c0_55, %c52] : memref<3x99xf32, #tpu.memory_space<smem>>
    %144 = vector.broadcast %143 : f32 to vector<1x256xf32>
    %145 = arith.mulf %36, %144 : vector<1x256xf32>
    %146 = arith.addf %138, %145 : vector<1x256xf32>
    %c0_56 = arith.constant 0 : index
    %c4 = arith.constant 4 : index
    %147 = memref.load %arg16[%c0_56, %c4] : memref<3x99xf32, #tpu.memory_space<smem>>
    %148 = vector.broadcast %147 : f32 to vector<1x256xf32>
    %149 = arith.mulf %82, %148 : vector<1x256xf32>
    %150 = arith.addf %142, %149 : vector<1x256xf32>
    %c0_57 = arith.constant 0 : index
    %c53 = arith.constant 53 : index
    %151 = memref.load %arg16[%c0_57, %c53] : memref<3x99xf32, #tpu.memory_space<smem>>
    %152 = vector.broadcast %151 : f32 to vector<1x256xf32>
    %153 = arith.mulf %87, %152 : vector<1x256xf32>
    %154 = arith.addf %146, %153 : vector<1x256xf32>
    %c0_58 = arith.constant 0 : index
    %c5 = arith.constant 5 : index
    %155 = memref.load %arg16[%c0_58, %c5] : memref<3x99xf32, #tpu.memory_space<smem>>
    %156 = vector.broadcast %155 : f32 to vector<1x256xf32>
    %157 = arith.mulf %94, %156 : vector<1x256xf32>
    %158 = arith.addf %150, %157 : vector<1x256xf32>
    %c0_59 = arith.constant 0 : index
    %c54 = arith.constant 54 : index
    %159 = memref.load %arg16[%c0_59, %c54] : memref<3x99xf32, #tpu.memory_space<smem>>
    %160 = vector.broadcast %159 : f32 to vector<1x256xf32>
    %161 = arith.mulf %99, %160 : vector<1x256xf32>
    %162 = arith.addf %154, %161 : vector<1x256xf32>
    %c0_60 = arith.constant 0 : index
    %c6 = arith.constant 6 : index
    %163 = memref.load %arg16[%c0_60, %c6] : memref<3x99xf32, #tpu.memory_space<smem>>
    %164 = vector.broadcast %163 : f32 to vector<1x256xf32>
    %165 = arith.mulf %106, %164 : vector<1x256xf32>
    %166 = arith.addf %158, %165 : vector<1x256xf32>
    %c0_61 = arith.constant 0 : index
    %c55 = arith.constant 55 : index
    %167 = memref.load %arg16[%c0_61, %c55] : memref<3x99xf32, #tpu.memory_space<smem>>
    %168 = vector.broadcast %167 : f32 to vector<1x256xf32>
    %169 = arith.mulf %111, %168 : vector<1x256xf32>
    %170 = arith.addf %162, %169 : vector<1x256xf32>
    %171 = arith.addf %166, %170 : vector<1x256xf32>
    %cst_62 = arith.constant 0.000000e+00 : f32
    %172 = vector.broadcast %cst_62 : f32 to vector<1x48xf32>
    %173 = vector.extract_strided_slice %171 {offsets = [0, 0], sizes = [1, 208], strides = [1, 1]} : vector<1x256xf32> to vector<1x208xf32>
    %174 = tpu.concatenate %172, %173 in 1 : vector<1x48xf32>, vector<1x208xf32> -> vector<1x256xf32>
    %175 = arith.addf %112, %174 : vector<1x256xf32>
    %cst_63 = arith.constant 0.000000e+00 : f32
    %176 = vector.broadcast %cst_63 : f32 to vector<1x256xf32>
    %cst_64 = arith.constant 0.000000e+00 : f32
    %177 = vector.broadcast %cst_64 : f32 to vector<1x256xf32>
    %c0_65 = arith.constant 0 : index
    %c7 = arith.constant 7 : index
    %178 = memref.load %arg16[%c0_65, %c7] : memref<3x99xf32, #tpu.memory_space<smem>>
    %179 = vector.broadcast %178 : f32 to vector<1x256xf32>
    %180 = arith.mulf %46, %179 : vector<1x256xf32>
    %181 = arith.addf %176, %180 : vector<1x256xf32>
    %c0_66 = arith.constant 0 : index
    %c56 = arith.constant 56 : index
    %182 = memref.load %arg16[%c0_66, %c56] : memref<3x99xf32, #tpu.memory_space<smem>>
    %183 = vector.broadcast %182 : f32 to vector<1x256xf32>
    %184 = arith.mulf %51, %183 : vector<1x256xf32>
    %185 = arith.addf %177, %184 : vector<1x256xf32>
    %c0_67 = arith.constant 0 : index
    %c8 = arith.constant 8 : index
    %186 = memref.load %arg16[%c0_67, %c8] : memref<3x99xf32, #tpu.memory_space<smem>>
    %187 = vector.broadcast %186 : f32 to vector<1x256xf32>
    %188 = arith.mulf %58, %187 : vector<1x256xf32>
    %189 = arith.addf %181, %188 : vector<1x256xf32>
    %c0_68 = arith.constant 0 : index
    %c57 = arith.constant 57 : index
    %190 = memref.load %arg16[%c0_68, %c57] : memref<3x99xf32, #tpu.memory_space<smem>>
    %191 = vector.broadcast %190 : f32 to vector<1x256xf32>
    %192 = arith.mulf %63, %191 : vector<1x256xf32>
    %193 = arith.addf %185, %192 : vector<1x256xf32>
    %c0_69 = arith.constant 0 : index
    %c9 = arith.constant 9 : index
    %194 = memref.load %arg16[%c0_69, %c9] : memref<3x99xf32, #tpu.memory_space<smem>>
    %195 = vector.broadcast %194 : f32 to vector<1x256xf32>
    %196 = arith.mulf %70, %195 : vector<1x256xf32>
    %197 = arith.addf %189, %196 : vector<1x256xf32>
    %c0_70 = arith.constant 0 : index
    %c58 = arith.constant 58 : index
    %198 = memref.load %arg16[%c0_70, %c58] : memref<3x99xf32, #tpu.memory_space<smem>>
    %199 = vector.broadcast %198 : f32 to vector<1x256xf32>
    %200 = arith.mulf %75, %199 : vector<1x256xf32>
    %201 = arith.addf %193, %200 : vector<1x256xf32>
    %c0_71 = arith.constant 0 : index
    %c10 = arith.constant 10 : index
    %202 = memref.load %arg16[%c0_71, %c10] : memref<3x99xf32, #tpu.memory_space<smem>>
    %203 = vector.broadcast %202 : f32 to vector<1x256xf32>
    %204 = arith.mulf %34, %203 : vector<1x256xf32>
    %205 = arith.addf %197, %204 : vector<1x256xf32>
    %c0_72 = arith.constant 0 : index
    %c59 = arith.constant 59 : index
    %206 = memref.load %arg16[%c0_72, %c59] : memref<3x99xf32, #tpu.memory_space<smem>>
    %207 = vector.broadcast %206 : f32 to vector<1x256xf32>
    %208 = arith.mulf %36, %207 : vector<1x256xf32>
    %209 = arith.addf %201, %208 : vector<1x256xf32>
    %c0_73 = arith.constant 0 : index
    %c11 = arith.constant 11 : index
    %210 = memref.load %arg16[%c0_73, %c11] : memref<3x99xf32, #tpu.memory_space<smem>>
    %211 = vector.broadcast %210 : f32 to vector<1x256xf32>
    %212 = arith.mulf %82, %211 : vector<1x256xf32>
    %213 = arith.addf %205, %212 : vector<1x256xf32>
    %c0_74 = arith.constant 0 : index
    %c60 = arith.constant 60 : index
    %214 = memref.load %arg16[%c0_74, %c60] : memref<3x99xf32, #tpu.memory_space<smem>>
    %215 = vector.broadcast %214 : f32 to vector<1x256xf32>
    %216 = arith.mulf %87, %215 : vector<1x256xf32>
    %217 = arith.addf %209, %216 : vector<1x256xf32>
    %c0_75 = arith.constant 0 : index
    %c12 = arith.constant 12 : index
    %218 = memref.load %arg16[%c0_75, %c12] : memref<3x99xf32, #tpu.memory_space<smem>>
    %219 = vector.broadcast %218 : f32 to vector<1x256xf32>
    %220 = arith.mulf %94, %219 : vector<1x256xf32>
    %221 = arith.addf %213, %220 : vector<1x256xf32>
    %c0_76 = arith.constant 0 : index
    %c61 = arith.constant 61 : index
    %222 = memref.load %arg16[%c0_76, %c61] : memref<3x99xf32, #tpu.memory_space<smem>>
    %223 = vector.broadcast %222 : f32 to vector<1x256xf32>
    %224 = arith.mulf %99, %223 : vector<1x256xf32>
    %225 = arith.addf %217, %224 : vector<1x256xf32>
    %c0_77 = arith.constant 0 : index
    %c13 = arith.constant 13 : index
    %226 = memref.load %arg16[%c0_77, %c13] : memref<3x99xf32, #tpu.memory_space<smem>>
    %227 = vector.broadcast %226 : f32 to vector<1x256xf32>
    %228 = arith.mulf %106, %227 : vector<1x256xf32>
    %229 = arith.addf %221, %228 : vector<1x256xf32>
    %c0_78 = arith.constant 0 : index
    %c62 = arith.constant 62 : index
    %230 = memref.load %arg16[%c0_78, %c62] : memref<3x99xf32, #tpu.memory_space<smem>>
    %231 = vector.broadcast %230 : f32 to vector<1x256xf32>
    %232 = arith.mulf %111, %231 : vector<1x256xf32>
    %233 = arith.addf %225, %232 : vector<1x256xf32>
    %234 = arith.addf %229, %233 : vector<1x256xf32>
    %cst_79 = arith.constant 0.000000e+00 : f32
    %235 = vector.broadcast %cst_79 : f32 to vector<1x32xf32>
    %236 = vector.extract_strided_slice %234 {offsets = [0, 0], sizes = [1, 224], strides = [1, 1]} : vector<1x256xf32> to vector<1x224xf32>
    %237 = tpu.concatenate %235, %236 in 1 : vector<1x32xf32>, vector<1x224xf32> -> vector<1x256xf32>
    %238 = arith.addf %175, %237 : vector<1x256xf32>
    %cst_80 = arith.constant 0.000000e+00 : f32
    %239 = vector.broadcast %cst_80 : f32 to vector<1x256xf32>
    %cst_81 = arith.constant 0.000000e+00 : f32
    %240 = vector.broadcast %cst_81 : f32 to vector<1x256xf32>
    %c0_82 = arith.constant 0 : index
    %c14 = arith.constant 14 : index
    %241 = memref.load %arg16[%c0_82, %c14] : memref<3x99xf32, #tpu.memory_space<smem>>
    %242 = vector.broadcast %241 : f32 to vector<1x256xf32>
    %243 = arith.mulf %46, %242 : vector<1x256xf32>
    %244 = arith.addf %239, %243 : vector<1x256xf32>
    %c0_83 = arith.constant 0 : index
    %c63 = arith.constant 63 : index
    %245 = memref.load %arg16[%c0_83, %c63] : memref<3x99xf32, #tpu.memory_space<smem>>
    %246 = vector.broadcast %245 : f32 to vector<1x256xf32>
    %247 = arith.mulf %51, %246 : vector<1x256xf32>
    %248 = arith.addf %240, %247 : vector<1x256xf32>
    %c0_84 = arith.constant 0 : index
    %c15 = arith.constant 15 : index
    %249 = memref.load %arg16[%c0_84, %c15] : memref<3x99xf32, #tpu.memory_space<smem>>
    %250 = vector.broadcast %249 : f32 to vector<1x256xf32>
    %251 = arith.mulf %58, %250 : vector<1x256xf32>
    %252 = arith.addf %244, %251 : vector<1x256xf32>
    %c0_85 = arith.constant 0 : index
    %c64 = arith.constant 64 : index
    %253 = memref.load %arg16[%c0_85, %c64] : memref<3x99xf32, #tpu.memory_space<smem>>
    %254 = vector.broadcast %253 : f32 to vector<1x256xf32>
    %255 = arith.mulf %63, %254 : vector<1x256xf32>
    %256 = arith.addf %248, %255 : vector<1x256xf32>
    %c0_86 = arith.constant 0 : index
    %c16 = arith.constant 16 : index
    %257 = memref.load %arg16[%c0_86, %c16] : memref<3x99xf32, #tpu.memory_space<smem>>
    %258 = vector.broadcast %257 : f32 to vector<1x256xf32>
    %259 = arith.mulf %70, %258 : vector<1x256xf32>
    %260 = arith.addf %252, %259 : vector<1x256xf32>
    %c0_87 = arith.constant 0 : index
    %c65 = arith.constant 65 : index
    %261 = memref.load %arg16[%c0_87, %c65] : memref<3x99xf32, #tpu.memory_space<smem>>
    %262 = vector.broadcast %261 : f32 to vector<1x256xf32>
    %263 = arith.mulf %75, %262 : vector<1x256xf32>
    %264 = arith.addf %256, %263 : vector<1x256xf32>
    %c0_88 = arith.constant 0 : index
    %c17 = arith.constant 17 : index
    %265 = memref.load %arg16[%c0_88, %c17] : memref<3x99xf32, #tpu.memory_space<smem>>
    %266 = vector.broadcast %265 : f32 to vector<1x256xf32>
    %267 = arith.mulf %34, %266 : vector<1x256xf32>
    %268 = arith.addf %260, %267 : vector<1x256xf32>
    %c0_89 = arith.constant 0 : index
    %c66 = arith.constant 66 : index
    %269 = memref.load %arg16[%c0_89, %c66] : memref<3x99xf32, #tpu.memory_space<smem>>
    %270 = vector.broadcast %269 : f32 to vector<1x256xf32>
    %271 = arith.mulf %36, %270 : vector<1x256xf32>
    %272 = arith.addf %264, %271 : vector<1x256xf32>
    %c0_90 = arith.constant 0 : index
    %c18 = arith.constant 18 : index
    %273 = memref.load %arg16[%c0_90, %c18] : memref<3x99xf32, #tpu.memory_space<smem>>
    %274 = vector.broadcast %273 : f32 to vector<1x256xf32>
    %275 = arith.mulf %82, %274 : vector<1x256xf32>
    %276 = arith.addf %268, %275 : vector<1x256xf32>
    %c0_91 = arith.constant 0 : index
    %c67 = arith.constant 67 : index
    %277 = memref.load %arg16[%c0_91, %c67] : memref<3x99xf32, #tpu.memory_space<smem>>
    %278 = vector.broadcast %277 : f32 to vector<1x256xf32>
    %279 = arith.mulf %87, %278 : vector<1x256xf32>
    %280 = arith.addf %272, %279 : vector<1x256xf32>
    %c0_92 = arith.constant 0 : index
    %c19 = arith.constant 19 : index
    %281 = memref.load %arg16[%c0_92, %c19] : memref<3x99xf32, #tpu.memory_space<smem>>
    %282 = vector.broadcast %281 : f32 to vector<1x256xf32>
    %283 = arith.mulf %94, %282 : vector<1x256xf32>
    %284 = arith.addf %276, %283 : vector<1x256xf32>
    %c0_93 = arith.constant 0 : index
    %c68 = arith.constant 68 : index
    %285 = memref.load %arg16[%c0_93, %c68] : memref<3x99xf32, #tpu.memory_space<smem>>
    %286 = vector.broadcast %285 : f32 to vector<1x256xf32>
    %287 = arith.mulf %99, %286 : vector<1x256xf32>
    %288 = arith.addf %280, %287 : vector<1x256xf32>
    %c0_94 = arith.constant 0 : index
    %c20 = arith.constant 20 : index
    %289 = memref.load %arg16[%c0_94, %c20] : memref<3x99xf32, #tpu.memory_space<smem>>
    %290 = vector.broadcast %289 : f32 to vector<1x256xf32>
    %291 = arith.mulf %106, %290 : vector<1x256xf32>
    %292 = arith.addf %284, %291 : vector<1x256xf32>
    %c0_95 = arith.constant 0 : index
    %c69 = arith.constant 69 : index
    %293 = memref.load %arg16[%c0_95, %c69] : memref<3x99xf32, #tpu.memory_space<smem>>
    %294 = vector.broadcast %293 : f32 to vector<1x256xf32>
    %295 = arith.mulf %111, %294 : vector<1x256xf32>
    %296 = arith.addf %288, %295 : vector<1x256xf32>
    %297 = arith.addf %292, %296 : vector<1x256xf32>
    %cst_96 = arith.constant 0.000000e+00 : f32
    %298 = vector.broadcast %cst_96 : f32 to vector<1x16xf32>
    %299 = vector.extract_strided_slice %297 {offsets = [0, 0], sizes = [1, 240], strides = [1, 1]} : vector<1x256xf32> to vector<1x240xf32>
    %300 = tpu.concatenate %298, %299 in 1 : vector<1x16xf32>, vector<1x240xf32> -> vector<1x256xf32>
    %301 = arith.addf %238, %300 : vector<1x256xf32>
    %cst_97 = arith.constant 0.000000e+00 : f32
    %302 = vector.broadcast %cst_97 : f32 to vector<1x256xf32>
    %cst_98 = arith.constant 0.000000e+00 : f32
    %303 = vector.broadcast %cst_98 : f32 to vector<1x256xf32>
    %c0_99 = arith.constant 0 : index
    %c21 = arith.constant 21 : index
    %304 = memref.load %arg16[%c0_99, %c21] : memref<3x99xf32, #tpu.memory_space<smem>>
    %305 = vector.broadcast %304 : f32 to vector<1x256xf32>
    %306 = arith.mulf %46, %305 : vector<1x256xf32>
    %307 = arith.addf %302, %306 : vector<1x256xf32>
    %c0_100 = arith.constant 0 : index
    %c70 = arith.constant 70 : index
    %308 = memref.load %arg16[%c0_100, %c70] : memref<3x99xf32, #tpu.memory_space<smem>>
    %309 = vector.broadcast %308 : f32 to vector<1x256xf32>
    %310 = arith.mulf %51, %309 : vector<1x256xf32>
    %311 = arith.addf %303, %310 : vector<1x256xf32>
    %c0_101 = arith.constant 0 : index
    %c22 = arith.constant 22 : index
    %312 = memref.load %arg16[%c0_101, %c22] : memref<3x99xf32, #tpu.memory_space<smem>>
    %313 = vector.broadcast %312 : f32 to vector<1x256xf32>
    %314 = arith.mulf %58, %313 : vector<1x256xf32>
    %315 = arith.addf %307, %314 : vector<1x256xf32>
    %c0_102 = arith.constant 0 : index
    %c71 = arith.constant 71 : index
    %316 = memref.load %arg16[%c0_102, %c71] : memref<3x99xf32, #tpu.memory_space<smem>>
    %317 = vector.broadcast %316 : f32 to vector<1x256xf32>
    %318 = arith.mulf %63, %317 : vector<1x256xf32>
    %319 = arith.addf %311, %318 : vector<1x256xf32>
    %c0_103 = arith.constant 0 : index
    %c23 = arith.constant 23 : index
    %320 = memref.load %arg16[%c0_103, %c23] : memref<3x99xf32, #tpu.memory_space<smem>>
    %321 = vector.broadcast %320 : f32 to vector<1x256xf32>
    %322 = arith.mulf %70, %321 : vector<1x256xf32>
    %323 = arith.addf %315, %322 : vector<1x256xf32>
    %c0_104 = arith.constant 0 : index
    %c72 = arith.constant 72 : index
    %324 = memref.load %arg16[%c0_104, %c72] : memref<3x99xf32, #tpu.memory_space<smem>>
    %325 = vector.broadcast %324 : f32 to vector<1x256xf32>
    %326 = arith.mulf %75, %325 : vector<1x256xf32>
    %327 = arith.addf %319, %326 : vector<1x256xf32>
    %c0_105 = arith.constant 0 : index
    %c24 = arith.constant 24 : index
    %328 = memref.load %arg16[%c0_105, %c24] : memref<3x99xf32, #tpu.memory_space<smem>>
    %329 = vector.broadcast %328 : f32 to vector<1x256xf32>
    %330 = arith.mulf %34, %329 : vector<1x256xf32>
    %331 = arith.addf %323, %330 : vector<1x256xf32>
    %c0_106 = arith.constant 0 : index
    %c73 = arith.constant 73 : index
    %332 = memref.load %arg16[%c0_106, %c73] : memref<3x99xf32, #tpu.memory_space<smem>>
    %333 = vector.broadcast %332 : f32 to vector<1x256xf32>
    %334 = arith.mulf %36, %333 : vector<1x256xf32>
    %335 = arith.addf %327, %334 : vector<1x256xf32>
    %c0_107 = arith.constant 0 : index
    %c25 = arith.constant 25 : index
    %336 = memref.load %arg16[%c0_107, %c25] : memref<3x99xf32, #tpu.memory_space<smem>>
    %337 = vector.broadcast %336 : f32 to vector<1x256xf32>
    %338 = arith.mulf %82, %337 : vector<1x256xf32>
    %339 = arith.addf %331, %338 : vector<1x256xf32>
    %c0_108 = arith.constant 0 : index
    %c74 = arith.constant 74 : index
    %340 = memref.load %arg16[%c0_108, %c74] : memref<3x99xf32, #tpu.memory_space<smem>>
    %341 = vector.broadcast %340 : f32 to vector<1x256xf32>
    %342 = arith.mulf %87, %341 : vector<1x256xf32>
    %343 = arith.addf %335, %342 : vector<1x256xf32>
    %c0_109 = arith.constant 0 : index
    %c26 = arith.constant 26 : index
    %344 = memref.load %arg16[%c0_109, %c26] : memref<3x99xf32, #tpu.memory_space<smem>>
    %345 = vector.broadcast %344 : f32 to vector<1x256xf32>
    %346 = arith.mulf %94, %345 : vector<1x256xf32>
    %347 = arith.addf %339, %346 : vector<1x256xf32>
    %c0_110 = arith.constant 0 : index
    %c75 = arith.constant 75 : index
    %348 = memref.load %arg16[%c0_110, %c75] : memref<3x99xf32, #tpu.memory_space<smem>>
    %349 = vector.broadcast %348 : f32 to vector<1x256xf32>
    %350 = arith.mulf %99, %349 : vector<1x256xf32>
    %351 = arith.addf %343, %350 : vector<1x256xf32>
    %c0_111 = arith.constant 0 : index
    %c27 = arith.constant 27 : index
    %352 = memref.load %arg16[%c0_111, %c27] : memref<3x99xf32, #tpu.memory_space<smem>>
    %353 = vector.broadcast %352 : f32 to vector<1x256xf32>
    %354 = arith.mulf %106, %353 : vector<1x256xf32>
    %355 = arith.addf %347, %354 : vector<1x256xf32>
    %c0_112 = arith.constant 0 : index
    %c76 = arith.constant 76 : index
    %356 = memref.load %arg16[%c0_112, %c76] : memref<3x99xf32, #tpu.memory_space<smem>>
    %357 = vector.broadcast %356 : f32 to vector<1x256xf32>
    %358 = arith.mulf %111, %357 : vector<1x256xf32>
    %359 = arith.addf %351, %358 : vector<1x256xf32>
    %360 = arith.addf %355, %359 : vector<1x256xf32>
    %361 = arith.addf %301, %360 : vector<1x256xf32>
    %cst_113 = arith.constant 0.000000e+00 : f32
    %362 = vector.broadcast %cst_113 : f32 to vector<1x256xf32>
    %cst_114 = arith.constant 0.000000e+00 : f32
    %363 = vector.broadcast %cst_114 : f32 to vector<1x256xf32>
    %c0_115 = arith.constant 0 : index
    %c28 = arith.constant 28 : index
    %364 = memref.load %arg16[%c0_115, %c28] : memref<3x99xf32, #tpu.memory_space<smem>>
    %365 = vector.broadcast %364 : f32 to vector<1x256xf32>
    %366 = arith.mulf %46, %365 : vector<1x256xf32>
    %367 = arith.addf %362, %366 : vector<1x256xf32>
    %c0_116 = arith.constant 0 : index
    %c77 = arith.constant 77 : index
    %368 = memref.load %arg16[%c0_116, %c77] : memref<3x99xf32, #tpu.memory_space<smem>>
    %369 = vector.broadcast %368 : f32 to vector<1x256xf32>
    %370 = arith.mulf %51, %369 : vector<1x256xf32>
    %371 = arith.addf %363, %370 : vector<1x256xf32>
    %c0_117 = arith.constant 0 : index
    %c29 = arith.constant 29 : index
    %372 = memref.load %arg16[%c0_117, %c29] : memref<3x99xf32, #tpu.memory_space<smem>>
    %373 = vector.broadcast %372 : f32 to vector<1x256xf32>
    %374 = arith.mulf %58, %373 : vector<1x256xf32>
    %375 = arith.addf %367, %374 : vector<1x256xf32>
    %c0_118 = arith.constant 0 : index
    %c78 = arith.constant 78 : index
    %376 = memref.load %arg16[%c0_118, %c78] : memref<3x99xf32, #tpu.memory_space<smem>>
    %377 = vector.broadcast %376 : f32 to vector<1x256xf32>
    %378 = arith.mulf %63, %377 : vector<1x256xf32>
    %379 = arith.addf %371, %378 : vector<1x256xf32>
    %c0_119 = arith.constant 0 : index
    %c30 = arith.constant 30 : index
    %380 = memref.load %arg16[%c0_119, %c30] : memref<3x99xf32, #tpu.memory_space<smem>>
    %381 = vector.broadcast %380 : f32 to vector<1x256xf32>
    %382 = arith.mulf %70, %381 : vector<1x256xf32>
    %383 = arith.addf %375, %382 : vector<1x256xf32>
    %c0_120 = arith.constant 0 : index
    %c79 = arith.constant 79 : index
    %384 = memref.load %arg16[%c0_120, %c79] : memref<3x99xf32, #tpu.memory_space<smem>>
    %385 = vector.broadcast %384 : f32 to vector<1x256xf32>
    %386 = arith.mulf %75, %385 : vector<1x256xf32>
    %387 = arith.addf %379, %386 : vector<1x256xf32>
    %c0_121 = arith.constant 0 : index
    %c31 = arith.constant 31 : index
    %388 = memref.load %arg16[%c0_121, %c31] : memref<3x99xf32, #tpu.memory_space<smem>>
    %389 = vector.broadcast %388 : f32 to vector<1x256xf32>
    %390 = arith.mulf %34, %389 : vector<1x256xf32>
    %391 = arith.addf %383, %390 : vector<1x256xf32>
    %c0_122 = arith.constant 0 : index
    %c80 = arith.constant 80 : index
    %392 = memref.load %arg16[%c0_122, %c80] : memref<3x99xf32, #tpu.memory_space<smem>>
    %393 = vector.broadcast %392 : f32 to vector<1x256xf32>
    %394 = arith.mulf %36, %393 : vector<1x256xf32>
    %395 = arith.addf %387, %394 : vector<1x256xf32>
    %c0_123 = arith.constant 0 : index
    %c32 = arith.constant 32 : index
    %396 = memref.load %arg16[%c0_123, %c32] : memref<3x99xf32, #tpu.memory_space<smem>>
    %397 = vector.broadcast %396 : f32 to vector<1x256xf32>
    %398 = arith.mulf %82, %397 : vector<1x256xf32>
    %399 = arith.addf %391, %398 : vector<1x256xf32>
    %c0_124 = arith.constant 0 : index
    %c81 = arith.constant 81 : index
    %400 = memref.load %arg16[%c0_124, %c81] : memref<3x99xf32, #tpu.memory_space<smem>>
    %401 = vector.broadcast %400 : f32 to vector<1x256xf32>
    %402 = arith.mulf %87, %401 : vector<1x256xf32>
    %403 = arith.addf %395, %402 : vector<1x256xf32>
    %c0_125 = arith.constant 0 : index
    %c33 = arith.constant 33 : index
    %404 = memref.load %arg16[%c0_125, %c33] : memref<3x99xf32, #tpu.memory_space<smem>>
    %405 = vector.broadcast %404 : f32 to vector<1x256xf32>
    %406 = arith.mulf %94, %405 : vector<1x256xf32>
    %407 = arith.addf %399, %406 : vector<1x256xf32>
    %c0_126 = arith.constant 0 : index
    %c82 = arith.constant 82 : index
    %408 = memref.load %arg16[%c0_126, %c82] : memref<3x99xf32, #tpu.memory_space<smem>>
    %409 = vector.broadcast %408 : f32 to vector<1x256xf32>
    %410 = arith.mulf %99, %409 : vector<1x256xf32>
    %411 = arith.addf %403, %410 : vector<1x256xf32>
    %c0_127 = arith.constant 0 : index
    %c34 = arith.constant 34 : index
    %412 = memref.load %arg16[%c0_127, %c34] : memref<3x99xf32, #tpu.memory_space<smem>>
    %413 = vector.broadcast %412 : f32 to vector<1x256xf32>
    %414 = arith.mulf %106, %413 : vector<1x256xf32>
    %415 = arith.addf %407, %414 : vector<1x256xf32>
    %c0_128 = arith.constant 0 : index
    %c83 = arith.constant 83 : index
    %416 = memref.load %arg16[%c0_128, %c83] : memref<3x99xf32, #tpu.memory_space<smem>>
    %417 = vector.broadcast %416 : f32 to vector<1x256xf32>
    %418 = arith.mulf %111, %417 : vector<1x256xf32>
    %419 = arith.addf %411, %418 : vector<1x256xf32>
    %420 = arith.addf %415, %419 : vector<1x256xf32>
    %cst_129 = arith.constant 0.000000e+00 : f32
    %421 = vector.broadcast %cst_129 : f32 to vector<1x16xf32>
    %422 = vector.extract_strided_slice %420 {offsets = [0, 16], sizes = [1, 240], strides = [1, 1]} : vector<1x256xf32> to vector<1x240xf32>
    %423 = tpu.concatenate %422, %421 in 1 : vector<1x240xf32>, vector<1x16xf32> -> vector<1x256xf32>
    %424 = arith.addf %361, %423 : vector<1x256xf32>
    %cst_130 = arith.constant 0.000000e+00 : f32
    %425 = vector.broadcast %cst_130 : f32 to vector<1x256xf32>
    %cst_131 = arith.constant 0.000000e+00 : f32
    %426 = vector.broadcast %cst_131 : f32 to vector<1x256xf32>
    %c0_132 = arith.constant 0 : index
    %c35 = arith.constant 35 : index
    %427 = memref.load %arg16[%c0_132, %c35] : memref<3x99xf32, #tpu.memory_space<smem>>
    %428 = vector.broadcast %427 : f32 to vector<1x256xf32>
    %429 = arith.mulf %46, %428 : vector<1x256xf32>
    %430 = arith.addf %425, %429 : vector<1x256xf32>
    %c0_133 = arith.constant 0 : index
    %c84 = arith.constant 84 : index
    %431 = memref.load %arg16[%c0_133, %c84] : memref<3x99xf32, #tpu.memory_space<smem>>
    %432 = vector.broadcast %431 : f32 to vector<1x256xf32>
    %433 = arith.mulf %51, %432 : vector<1x256xf32>
    %434 = arith.addf %426, %433 : vector<1x256xf32>
    %c0_134 = arith.constant 0 : index
    %c36 = arith.constant 36 : index
    %435 = memref.load %arg16[%c0_134, %c36] : memref<3x99xf32, #tpu.memory_space<smem>>
    %436 = vector.broadcast %435 : f32 to vector<1x256xf32>
    %437 = arith.mulf %58, %436 : vector<1x256xf32>
    %438 = arith.addf %430, %437 : vector<1x256xf32>
    %c0_135 = arith.constant 0 : index
    %c85 = arith.constant 85 : index
    %439 = memref.load %arg16[%c0_135, %c85] : memref<3x99xf32, #tpu.memory_space<smem>>
    %440 = vector.broadcast %439 : f32 to vector<1x256xf32>
    %441 = arith.mulf %63, %440 : vector<1x256xf32>
    %442 = arith.addf %434, %441 : vector<1x256xf32>
    %c0_136 = arith.constant 0 : index
    %c37 = arith.constant 37 : index
    %443 = memref.load %arg16[%c0_136, %c37] : memref<3x99xf32, #tpu.memory_space<smem>>
    %444 = vector.broadcast %443 : f32 to vector<1x256xf32>
    %445 = arith.mulf %70, %444 : vector<1x256xf32>
    %446 = arith.addf %438, %445 : vector<1x256xf32>
    %c0_137 = arith.constant 0 : index
    %c86 = arith.constant 86 : index
    %447 = memref.load %arg16[%c0_137, %c86] : memref<3x99xf32, #tpu.memory_space<smem>>
    %448 = vector.broadcast %447 : f32 to vector<1x256xf32>
    %449 = arith.mulf %75, %448 : vector<1x256xf32>
    %450 = arith.addf %442, %449 : vector<1x256xf32>
    %c0_138 = arith.constant 0 : index
    %c38 = arith.constant 38 : index
    %451 = memref.load %arg16[%c0_138, %c38] : memref<3x99xf32, #tpu.memory_space<smem>>
    %452 = vector.broadcast %451 : f32 to vector<1x256xf32>
    %453 = arith.mulf %34, %452 : vector<1x256xf32>
    %454 = arith.addf %446, %453 : vector<1x256xf32>
    %c0_139 = arith.constant 0 : index
    %c87 = arith.constant 87 : index
    %455 = memref.load %arg16[%c0_139, %c87] : memref<3x99xf32, #tpu.memory_space<smem>>
    %456 = vector.broadcast %455 : f32 to vector<1x256xf32>
    %457 = arith.mulf %36, %456 : vector<1x256xf32>
    %458 = arith.addf %450, %457 : vector<1x256xf32>
    %c0_140 = arith.constant 0 : index
    %c39 = arith.constant 39 : index
    %459 = memref.load %arg16[%c0_140, %c39] : memref<3x99xf32, #tpu.memory_space<smem>>
    %460 = vector.broadcast %459 : f32 to vector<1x256xf32>
    %461 = arith.mulf %82, %460 : vector<1x256xf32>
    %462 = arith.addf %454, %461 : vector<1x256xf32>
    %c0_141 = arith.constant 0 : index
    %c88 = arith.constant 88 : index
    %463 = memref.load %arg16[%c0_141, %c88] : memref<3x99xf32, #tpu.memory_space<smem>>
    %464 = vector.broadcast %463 : f32 to vector<1x256xf32>
    %465 = arith.mulf %87, %464 : vector<1x256xf32>
    %466 = arith.addf %458, %465 : vector<1x256xf32>
    %c0_142 = arith.constant 0 : index
    %c40 = arith.constant 40 : index
    %467 = memref.load %arg16[%c0_142, %c40] : memref<3x99xf32, #tpu.memory_space<smem>>
    %468 = vector.broadcast %467 : f32 to vector<1x256xf32>
    %469 = arith.mulf %94, %468 : vector<1x256xf32>
    %470 = arith.addf %462, %469 : vector<1x256xf32>
    %c0_143 = arith.constant 0 : index
    %c89 = arith.constant 89 : index
    %471 = memref.load %arg16[%c0_143, %c89] : memref<3x99xf32, #tpu.memory_space<smem>>
    %472 = vector.broadcast %471 : f32 to vector<1x256xf32>
    %473 = arith.mulf %99, %472 : vector<1x256xf32>
    %474 = arith.addf %466, %473 : vector<1x256xf32>
    %c0_144 = arith.constant 0 : index
    %c41 = arith.constant 41 : index
    %475 = memref.load %arg16[%c0_144, %c41] : memref<3x99xf32, #tpu.memory_space<smem>>
    %476 = vector.broadcast %475 : f32 to vector<1x256xf32>
    %477 = arith.mulf %106, %476 : vector<1x256xf32>
    %478 = arith.addf %470, %477 : vector<1x256xf32>
    %c0_145 = arith.constant 0 : index
    %c90 = arith.constant 90 : index
    %479 = memref.load %arg16[%c0_145, %c90] : memref<3x99xf32, #tpu.memory_space<smem>>
    %480 = vector.broadcast %479 : f32 to vector<1x256xf32>
    %481 = arith.mulf %111, %480 : vector<1x256xf32>
    %482 = arith.addf %474, %481 : vector<1x256xf32>
    %483 = arith.addf %478, %482 : vector<1x256xf32>
    %cst_146 = arith.constant 0.000000e+00 : f32
    %484 = vector.broadcast %cst_146 : f32 to vector<1x32xf32>
    %485 = vector.extract_strided_slice %483 {offsets = [0, 32], sizes = [1, 224], strides = [1, 1]} : vector<1x256xf32> to vector<1x224xf32>
    %486 = tpu.concatenate %485, %484 in 1 : vector<1x224xf32>, vector<1x32xf32> -> vector<1x256xf32>
    %487 = arith.addf %424, %486 : vector<1x256xf32>
    %cst_147 = arith.constant 0.000000e+00 : f32
    %488 = vector.broadcast %cst_147 : f32 to vector<1x256xf32>
    %cst_148 = arith.constant 0.000000e+00 : f32
    %489 = vector.broadcast %cst_148 : f32 to vector<1x256xf32>
    %c0_149 = arith.constant 0 : index
    %c42 = arith.constant 42 : index
    %490 = memref.load %arg16[%c0_149, %c42] : memref<3x99xf32, #tpu.memory_space<smem>>
    %491 = vector.broadcast %490 : f32 to vector<1x256xf32>
    %492 = arith.mulf %46, %491 : vector<1x256xf32>
    %493 = arith.addf %488, %492 : vector<1x256xf32>
    %c0_150 = arith.constant 0 : index
    %c91 = arith.constant 91 : index
    %494 = memref.load %arg16[%c0_150, %c91] : memref<3x99xf32, #tpu.memory_space<smem>>
    %495 = vector.broadcast %494 : f32 to vector<1x256xf32>
    %496 = arith.mulf %51, %495 : vector<1x256xf32>
    %497 = arith.addf %489, %496 : vector<1x256xf32>
    %c0_151 = arith.constant 0 : index
    %c43 = arith.constant 43 : index
    %498 = memref.load %arg16[%c0_151, %c43] : memref<3x99xf32, #tpu.memory_space<smem>>
    %499 = vector.broadcast %498 : f32 to vector<1x256xf32>
    %500 = arith.mulf %58, %499 : vector<1x256xf32>
    %501 = arith.addf %493, %500 : vector<1x256xf32>
    %c0_152 = arith.constant 0 : index
    %c92 = arith.constant 92 : index
    %502 = memref.load %arg16[%c0_152, %c92] : memref<3x99xf32, #tpu.memory_space<smem>>
    %503 = vector.broadcast %502 : f32 to vector<1x256xf32>
    %504 = arith.mulf %63, %503 : vector<1x256xf32>
    %505 = arith.addf %497, %504 : vector<1x256xf32>
    %c0_153 = arith.constant 0 : index
    %c44 = arith.constant 44 : index
    %506 = memref.load %arg16[%c0_153, %c44] : memref<3x99xf32, #tpu.memory_space<smem>>
    %507 = vector.broadcast %506 : f32 to vector<1x256xf32>
    %508 = arith.mulf %70, %507 : vector<1x256xf32>
    %509 = arith.addf %501, %508 : vector<1x256xf32>
    %c0_154 = arith.constant 0 : index
    %c93 = arith.constant 93 : index
    %510 = memref.load %arg16[%c0_154, %c93] : memref<3x99xf32, #tpu.memory_space<smem>>
    %511 = vector.broadcast %510 : f32 to vector<1x256xf32>
    %512 = arith.mulf %75, %511 : vector<1x256xf32>
    %513 = arith.addf %505, %512 : vector<1x256xf32>
    %c0_155 = arith.constant 0 : index
    %c45 = arith.constant 45 : index
    %514 = memref.load %arg16[%c0_155, %c45] : memref<3x99xf32, #tpu.memory_space<smem>>
    %515 = vector.broadcast %514 : f32 to vector<1x256xf32>
    %516 = arith.mulf %34, %515 : vector<1x256xf32>
    %517 = arith.addf %509, %516 : vector<1x256xf32>
    %c0_156 = arith.constant 0 : index
    %c94 = arith.constant 94 : index
    %518 = memref.load %arg16[%c0_156, %c94] : memref<3x99xf32, #tpu.memory_space<smem>>
    %519 = vector.broadcast %518 : f32 to vector<1x256xf32>
    %520 = arith.mulf %36, %519 : vector<1x256xf32>
    %521 = arith.addf %513, %520 : vector<1x256xf32>
    %c0_157 = arith.constant 0 : index
    %c46 = arith.constant 46 : index
    %522 = memref.load %arg16[%c0_157, %c46] : memref<3x99xf32, #tpu.memory_space<smem>>
    %523 = vector.broadcast %522 : f32 to vector<1x256xf32>
    %524 = arith.mulf %82, %523 : vector<1x256xf32>
    %525 = arith.addf %517, %524 : vector<1x256xf32>
    %c0_158 = arith.constant 0 : index
    %c95 = arith.constant 95 : index
    %526 = memref.load %arg16[%c0_158, %c95] : memref<3x99xf32, #tpu.memory_space<smem>>
    %527 = vector.broadcast %526 : f32 to vector<1x256xf32>
    %528 = arith.mulf %87, %527 : vector<1x256xf32>
    %529 = arith.addf %521, %528 : vector<1x256xf32>
    %c0_159 = arith.constant 0 : index
    %c47 = arith.constant 47 : index
    %530 = memref.load %arg16[%c0_159, %c47] : memref<3x99xf32, #tpu.memory_space<smem>>
    %531 = vector.broadcast %530 : f32 to vector<1x256xf32>
    %532 = arith.mulf %94, %531 : vector<1x256xf32>
    %533 = arith.addf %525, %532 : vector<1x256xf32>
    %c0_160 = arith.constant 0 : index
    %c96 = arith.constant 96 : index
    %534 = memref.load %arg16[%c0_160, %c96] : memref<3x99xf32, #tpu.memory_space<smem>>
    %535 = vector.broadcast %534 : f32 to vector<1x256xf32>
    %536 = arith.mulf %99, %535 : vector<1x256xf32>
    %537 = arith.addf %529, %536 : vector<1x256xf32>
    %c0_161 = arith.constant 0 : index
    %c48 = arith.constant 48 : index
    %538 = memref.load %arg16[%c0_161, %c48] : memref<3x99xf32, #tpu.memory_space<smem>>
    %539 = vector.broadcast %538 : f32 to vector<1x256xf32>
    %540 = arith.mulf %106, %539 : vector<1x256xf32>
    %541 = arith.addf %533, %540 : vector<1x256xf32>
    %c0_162 = arith.constant 0 : index
    %c97 = arith.constant 97 : index
    %542 = memref.load %arg16[%c0_162, %c97] : memref<3x99xf32, #tpu.memory_space<smem>>
    %543 = vector.broadcast %542 : f32 to vector<1x256xf32>
    %544 = arith.mulf %111, %543 : vector<1x256xf32>
    %545 = arith.addf %537, %544 : vector<1x256xf32>
    %546 = arith.addf %541, %545 : vector<1x256xf32>
    %cst_163 = arith.constant 0.000000e+00 : f32
    %547 = vector.broadcast %cst_163 : f32 to vector<1x48xf32>
    %548 = vector.extract_strided_slice %546 {offsets = [0, 48], sizes = [1, 208], strides = [1, 1]} : vector<1x256xf32> to vector<1x208xf32>
    %549 = tpu.concatenate %548, %547 in 1 : vector<1x208xf32>, vector<1x48xf32> -> vector<1x256xf32>
    %550 = arith.addf %487, %549 : vector<1x256xf32>
    %c0_164 = arith.constant 0 : index
    %c98 = arith.constant 98 : index
    %551 = memref.load %arg16[%c0_164, %c98] : memref<3x99xf32, #tpu.memory_space<smem>>
    %552 = vector.broadcast %551 : f32 to vector<1x256xf32>
    %553 = arith.addf %550, %552 : vector<1x256xf32>
    %554 = arith.negf %553 : vector<1x256xf32>
    %555 = math.exp %554 : vector<1x256xf32>
    %cst_165 = arith.constant 1.000000e+00 : f32
    %556 = vector.broadcast %cst_165 : f32 to vector<1x256xf32>
    %557 = arith.addf %556, %555 : vector<1x256xf32>
    %558 = arith.divf %556, %557 : vector<1x256xf32>
    %559 = vector.broadcast %558 : vector<1x256xf32> to vector<16x256xf32>
    %560 = arith.mulf %30, %559 : vector<16x256xf32>
    %cst_166 = arith.constant dense<0.000000e+00> : vector<1x16xf32>
    %561 = tpu.matmul %558, %30, %cst_166 {dimension_numbers = #tpu.dot_dimension_numbers<[1], [1], [0], [0], [0, 0, 1, 0], [], []>} : vector<1x256xf32>, vector<16x256xf32>, vector<1x16xf32> -> vector<1x16xf32>
    %cst_167 = arith.constant 3.906250e-03 : f32
    %562 = vector.broadcast %cst_167 : f32 to vector<1x16xf32>
    %563 = arith.mulf %561, %562 : vector<1x16xf32>
    %c0_168 = arith.constant 0 : index
    %c0_169 = arith.constant 0 : index
    %c0_170 = arith.constant 0 : index
    %564 = vector.load %arg21[%c0_168, %c0_169, %c0_170] : memref<1x16x256xf32, #tpu.memory_space<vmem>>, vector<1x16x256xf32>
    %565 = vector.shape_cast %564 : vector<1x16x256xf32> to vector<16x256xf32>
    %566 = vector.shape_cast %560 : vector<16x256xf32> to vector<1x16x256xf32>
    tpu.vector_store %arg21[%c0_168, %c0_169, %c0_170], %566 {strides = array<i32>} : memref<1x16x256xf32, #tpu.memory_space<vmem>>, vector<1x16x256xf32>,
    %c0_171 = arith.constant 0 : index
    %c0_172 = arith.constant 0 : index
    %c0_173 = arith.constant 0 : index
    %567 = vector.load %arg2[%c0_171, %c0_172, %c0_173] : memref<1x32x64xf32, #tpu.memory_space<vmem>>, vector<1x32x64xf32>
    %568 = vector.shape_cast %567 : vector<1x32x64xf32> to vector<32x64xf32>
    %c0_174 = arith.constant 0 : index
    %c0_175 = arith.constant 0 : index
    %569 = vector.load %arg8[%c0_174, %c0_175] : memref<8x32xf32, #tpu.memory_space<vmem>>, vector<8x32xf32>
    %c0_176 = arith.constant 0 : index
    %c0_177 = arith.constant 0 : index
    %570 = vector.load %arg9[%c0_176, %c0_177] : memref<8x1xf32, #tpu.memory_space<vmem>>, vector<8x1xf32>
    %c0_178 = arith.constant 0 : index
    %c0_179 = arith.constant 0 : index
    %571 = vector.load %arg10[%c0_178, %c0_179] : memref<32x8xf32, #tpu.memory_space<vmem>>, vector<32x8xf32>
    %c0_180 = arith.constant 0 : index
    %c0_181 = arith.constant 0 : index
    %572 = vector.load %arg11[%c0_180, %c0_181] : memref<32x1xf32, #tpu.memory_space<vmem>>, vector<32x1xf32>
    %cst_182 = arith.constant dense<0.000000e+00> : vector<32xf32>
    %573 = vector.multi_reduction <add>, %568, %cst_182 [1] : vector<32x64xf32> to vector<32xf32>
    %574 = vector.shape_cast %573 : vector<32xf32> to vector<32x1xf32>
    %cst_183 = arith.constant 1.562500e-02 : f32
    %575 = vector.broadcast %cst_183 : f32 to vector<32x1xf32>
    %576 = arith.mulf %574, %575 : vector<32x1xf32>
    %cst_184 = arith.constant dense<0xFF800000> : vector<32xf32>
    %577 = vector.multi_reduction <maximumf>, %568, %cst_184 [1] : vector<32x64xf32> to vector<32xf32>
    %578 = vector.shape_cast %577 : vector<32xf32> to vector<32x1xf32>
    %579 = tpu.concatenate %576, %578 in 1 : vector<32x1xf32>, vector<32x1xf32> -> vector<32x2xf32>
    %cst_185 = arith.constant dense<0.000000e+00> : vector<8x2xf32>
    %580 = tpu.matmul %569, %579, %cst_185 {dimension_numbers = #tpu.dot_dimension_numbers<[1], [0], [0], [1], [0, 0, 1, 1], [], []>} : vector<8x32xf32>, vector<32x2xf32>, vector<8x2xf32> -> vector<8x2xf32>
    %581 = vector.broadcast %570 : vector<8x1xf32> to vector<8x2xf32>
    %582 = arith.addf %580, %581 : vector<8x2xf32>
    %cst_186 = arith.constant 0.000000e+00 : f32
    %583 = vector.broadcast %cst_186 : f32 to vector<8x2xf32>
    %584 = arith.maximumf %582, %583 : vector<8x2xf32>
    %cst_187 = arith.constant dense<0.000000e+00> : vector<32x2xf32>
    %585 = tpu.matmul %571, %584, %cst_187 {dimension_numbers = #tpu.dot_dimension_numbers<[1], [0], [0], [1], [0, 0, 1, 1], [], []>} : vector<32x8xf32>, vector<8x2xf32>, vector<32x2xf32> -> vector<32x2xf32>
    %586 = vector.broadcast %572 : vector<32x1xf32> to vector<32x2xf32>
    %587 = arith.addf %585, %586 : vector<32x2xf32>
    %588 = vector.extract_strided_slice %587 {offsets = [0, 0], sizes = [32, 1], strides = [1, 1]} : vector<32x2xf32> to vector<32x1xf32>
    %589 = vector.extract_strided_slice %587 {offsets = [0, 1], sizes = [32, 1], strides = [1, 1]} : vector<32x2xf32> to vector<32x1xf32>
    %590 = arith.addf %588, %589 : vector<32x1xf32>
    %591 = arith.negf %590 : vector<32x1xf32>
    %592 = math.exp %591 : vector<32x1xf32>
    %cst_188 = arith.constant 1.000000e+00 : f32
    %593 = vector.broadcast %cst_188 : f32 to vector<32x1xf32>
    %594 = arith.addf %593, %592 : vector<32x1xf32>
    %595 = arith.divf %593, %594 : vector<32x1xf32>
    %596 = vector.broadcast %595 : vector<32x1xf32> to vector<32x64xf32>
    %597 = arith.mulf %568, %596 : vector<32x64xf32>
    %cst_189 = arith.constant dense<0.000000e+00> : vector<64xf32>
    %598 = vector.multi_reduction <add>, %597, %cst_189 [0] : vector<32x64xf32> to vector<64xf32>
    %599 = vector.shape_cast %598 : vector<64xf32> to vector<1x64xf32>
    %cst_190 = arith.constant 3.125000e-02 : f32
    %600 = vector.broadcast %cst_190 : f32 to vector<1x64xf32>
    %601 = arith.mulf %599, %600 : vector<1x64xf32>
    %cst_191 = arith.constant dense<0xFF800000> : vector<64xf32>
    %602 = vector.multi_reduction <maximumf>, %597, %cst_191 [0] : vector<32x64xf32> to vector<64xf32>
    %603 = vector.shape_cast %602 : vector<64xf32> to vector<1x64xf32>
    %604 = tpu.iota {dimensions = array<i32: 1>} : vector<1x64xi32>
    %c7_i32 = arith.constant 7 : i32
    %605 = vector.broadcast %c7_i32 : i32 to vector<1x64xi32>
    %606 = arith.andi %604, %605 : vector<1x64xi32>
    %c3_i32_192 = arith.constant 3 : i32
    %607 = vector.broadcast %c3_i32_192 : i32 to vector<1x64xi32>
    %608 = arith.cmpi sge, %606, %607 : vector<1x64xi32>
    %cst_193 = arith.constant 0.000000e+00 : f32
    %609 = vector.broadcast %cst_193 : f32 to vector<1x3xf32>
    %610 = vector.extract_strided_slice %601 {offsets = [0, 0], sizes = [1, 61], strides = [1, 1]} : vector<1x64xf32> to vector<1x61xf32>
    %611 = tpu.concatenate %609, %610 in 1 : vector<1x3xf32>, vector<1x61xf32> -> vector<1x64xf32>
    %cst_194 = arith.constant 0.000000e+00 : f32
    %612 = vector.broadcast %cst_194 : f32 to vector<1x64xf32>
    %613 = arith.select %608, %611, %612 : vector<1x64xi1>, vector<1x64xf32>
    %cst_195 = arith.constant 0.000000e+00 : f32
    %614 = vector.broadcast %cst_195 : f32 to vector<1x3xf32>
    %615 = vector.extract_strided_slice %603 {offsets = [0, 0], sizes = [1, 61], strides = [1, 1]} : vector<1x64xf32> to vector<1x61xf32>
    %616 = tpu.concatenate %614, %615 in 1 : vector<1x3xf32>, vector<1x61xf32> -> vector<1x64xf32>
    %cst_196 = arith.constant 0.000000e+00 : f32
    %617 = vector.broadcast %cst_196 : f32 to vector<1x64xf32>
    %618 = arith.select %608, %616, %617 : vector<1x64xi1>, vector<1x64xf32>
    %c2_i32_197 = arith.constant 2 : i32
    %619 = vector.broadcast %c2_i32_197 : i32 to vector<1x64xi32>
    %620 = arith.cmpi sge, %606, %619 : vector<1x64xi32>
    %cst_198 = arith.constant 0.000000e+00 : f32
    %621 = vector.broadcast %cst_198 : f32 to vector<1x2xf32>
    %622 = vector.extract_strided_slice %601 {offsets = [0, 0], sizes = [1, 62], strides = [1, 1]} : vector<1x64xf32> to vector<1x62xf32>
    %623 = tpu.concatenate %621, %622 in 1 : vector<1x2xf32>, vector<1x62xf32> -> vector<1x64xf32>
    %cst_199 = arith.constant 0.000000e+00 : f32
    %624 = vector.broadcast %cst_199 : f32 to vector<1x64xf32>
    %625 = arith.select %620, %623, %624 : vector<1x64xi1>, vector<1x64xf32>
    %cst_200 = arith.constant 0.000000e+00 : f32
    %626 = vector.broadcast %cst_200 : f32 to vector<1x2xf32>
    %627 = vector.extract_strided_slice %603 {offsets = [0, 0], sizes = [1, 62], strides = [1, 1]} : vector<1x64xf32> to vector<1x62xf32>
    %628 = tpu.concatenate %626, %627 in 1 : vector<1x2xf32>, vector<1x62xf32> -> vector<1x64xf32>
    %cst_201 = arith.constant 0.000000e+00 : f32
    %629 = vector.broadcast %cst_201 : f32 to vector<1x64xf32>
    %630 = arith.select %620, %628, %629 : vector<1x64xi1>, vector<1x64xf32>
    %c1_i32_202 = arith.constant 1 : i32
    %631 = vector.broadcast %c1_i32_202 : i32 to vector<1x64xi32>
    %632 = arith.cmpi sge, %606, %631 : vector<1x64xi32>
    %cst_203 = arith.constant 0.000000e+00 : f32
    %633 = vector.broadcast %cst_203 : f32 to vector<1x1xf32>
    %634 = vector.extract_strided_slice %601 {offsets = [0, 0], sizes = [1, 63], strides = [1, 1]} : vector<1x64xf32> to vector<1x63xf32>
    %635 = tpu.concatenate %633, %634 in 1 : vector<1x1xf32>, vector<1x63xf32> -> vector<1x64xf32>
    %cst_204 = arith.constant 0.000000e+00 : f32
    %636 = vector.broadcast %cst_204 : f32 to vector<1x64xf32>
    %637 = arith.select %632, %635, %636 : vector<1x64xi1>, vector<1x64xf32>
    %cst_205 = arith.constant 0.000000e+00 : f32
    %638 = vector.broadcast %cst_205 : f32 to vector<1x1xf32>
    %639 = vector.extract_strided_slice %603 {offsets = [0, 0], sizes = [1, 63], strides = [1, 1]} : vector<1x64xf32> to vector<1x63xf32>
    %640 = tpu.concatenate %638, %639 in 1 : vector<1x1xf32>, vector<1x63xf32> -> vector<1x64xf32>
    %cst_206 = arith.constant 0.000000e+00 : f32
    %641 = vector.broadcast %cst_206 : f32 to vector<1x64xf32>
    %642 = arith.select %632, %640, %641 : vector<1x64xi1>, vector<1x64xf32>
    %c7_i32_207 = arith.constant 7 : i32
    %643 = vector.broadcast %c7_i32_207 : i32 to vector<1x64xi32>
    %644 = arith.cmpi slt, %606, %643 : vector<1x64xi32>
    %cst_208 = arith.constant 0.000000e+00 : f32
    %645 = vector.broadcast %cst_208 : f32 to vector<1x1xf32>
    %646 = vector.extract_strided_slice %601 {offsets = [0, 1], sizes = [1, 63], strides = [1, 1]} : vector<1x64xf32> to vector<1x63xf32>
    %647 = tpu.concatenate %646, %645 in 1 : vector<1x63xf32>, vector<1x1xf32> -> vector<1x64xf32>
    %cst_209 = arith.constant 0.000000e+00 : f32
    %648 = vector.broadcast %cst_209 : f32 to vector<1x64xf32>
    %649 = arith.select %644, %647, %648 : vector<1x64xi1>, vector<1x64xf32>
    %cst_210 = arith.constant 0.000000e+00 : f32
    %650 = vector.broadcast %cst_210 : f32 to vector<1x1xf32>
    %651 = vector.extract_strided_slice %603 {offsets = [0, 1], sizes = [1, 63], strides = [1, 1]} : vector<1x64xf32> to vector<1x63xf32>
    %652 = tpu.concatenate %651, %650 in 1 : vector<1x63xf32>, vector<1x1xf32> -> vector<1x64xf32>
    %cst_211 = arith.constant 0.000000e+00 : f32
    %653 = vector.broadcast %cst_211 : f32 to vector<1x64xf32>
    %654 = arith.select %644, %652, %653 : vector<1x64xi1>, vector<1x64xf32>
    %c6_i32 = arith.constant 6 : i32
    %655 = vector.broadcast %c6_i32 : i32 to vector<1x64xi32>
    %656 = arith.cmpi slt, %606, %655 : vector<1x64xi32>
    %cst_212 = arith.constant 0.000000e+00 : f32
    %657 = vector.broadcast %cst_212 : f32 to vector<1x2xf32>
    %658 = vector.extract_strided_slice %601 {offsets = [0, 2], sizes = [1, 62], strides = [1, 1]} : vector<1x64xf32> to vector<1x62xf32>
    %659 = tpu.concatenate %658, %657 in 1 : vector<1x62xf32>, vector<1x2xf32> -> vector<1x64xf32>
    %cst_213 = arith.constant 0.000000e+00 : f32
    %660 = vector.broadcast %cst_213 : f32 to vector<1x64xf32>
    %661 = arith.select %656, %659, %660 : vector<1x64xi1>, vector<1x64xf32>
    %cst_214 = arith.constant 0.000000e+00 : f32
    %662 = vector.broadcast %cst_214 : f32 to vector<1x2xf32>
    %663 = vector.extract_strided_slice %603 {offsets = [0, 2], sizes = [1, 62], strides = [1, 1]} : vector<1x64xf32> to vector<1x62xf32>
    %664 = tpu.concatenate %663, %662 in 1 : vector<1x62xf32>, vector<1x2xf32> -> vector<1x64xf32>
    %cst_215 = arith.constant 0.000000e+00 : f32
    %665 = vector.broadcast %cst_215 : f32 to vector<1x64xf32>
    %666 = arith.select %656, %664, %665 : vector<1x64xi1>, vector<1x64xf32>
    %c5_i32 = arith.constant 5 : i32
    %667 = vector.broadcast %c5_i32 : i32 to vector<1x64xi32>
    %668 = arith.cmpi slt, %606, %667 : vector<1x64xi32>
    %cst_216 = arith.constant 0.000000e+00 : f32
    %669 = vector.broadcast %cst_216 : f32 to vector<1x3xf32>
    %670 = vector.extract_strided_slice %601 {offsets = [0, 3], sizes = [1, 61], strides = [1, 1]} : vector<1x64xf32> to vector<1x61xf32>
    %671 = tpu.concatenate %670, %669 in 1 : vector<1x61xf32>, vector<1x3xf32> -> vector<1x64xf32>
    %cst_217 = arith.constant 0.000000e+00 : f32
    %672 = vector.broadcast %cst_217 : f32 to vector<1x64xf32>
    %673 = arith.select %668, %671, %672 : vector<1x64xi1>, vector<1x64xf32>
    %cst_218 = arith.constant 0.000000e+00 : f32
    %674 = vector.broadcast %cst_218 : f32 to vector<1x3xf32>
    %675 = vector.extract_strided_slice %603 {offsets = [0, 3], sizes = [1, 61], strides = [1, 1]} : vector<1x64xf32> to vector<1x61xf32>
    %676 = tpu.concatenate %675, %674 in 1 : vector<1x61xf32>, vector<1x3xf32> -> vector<1x64xf32>
    %cst_219 = arith.constant 0.000000e+00 : f32
    %677 = vector.broadcast %cst_219 : f32 to vector<1x64xf32>
    %678 = arith.select %668, %676, %677 : vector<1x64xi1>, vector<1x64xf32>
    %cst_220 = arith.constant 0.000000e+00 : f32
    %679 = vector.broadcast %cst_220 : f32 to vector<1x64xf32>
    %cst_221 = arith.constant 0.000000e+00 : f32
    %680 = vector.broadcast %cst_221 : f32 to vector<1x64xf32>
    %cst_222 = arith.constant 0.000000e+00 : f32
    %681 = vector.broadcast %cst_222 : f32 to vector<1x64xf32>
    %c1_223 = arith.constant 1 : index
    %c0_224 = arith.constant 0 : index
    %682 = memref.load %arg16[%c1_223, %c0_224] : memref<3x99xf32, #tpu.memory_space<smem>>
    %683 = vector.broadcast %682 : f32 to vector<1x64xf32>
    %684 = arith.mulf %613, %683 : vector<1x64xf32>
    %685 = arith.addf %680, %684 : vector<1x64xf32>
    %c1_225 = arith.constant 1 : index
    %c49_226 = arith.constant 49 : index
    %686 = memref.load %arg16[%c1_225, %c49_226] : memref<3x99xf32, #tpu.memory_space<smem>>
    %687 = vector.broadcast %686 : f32 to vector<1x64xf32>
    %688 = arith.mulf %618, %687 : vector<1x64xf32>
    %689 = arith.addf %681, %688 : vector<1x64xf32>
    %c1_227 = arith.constant 1 : index
    %c1_228 = arith.constant 1 : index
    %690 = memref.load %arg16[%c1_227, %c1_228] : memref<3x99xf32, #tpu.memory_space<smem>>
    %691 = vector.broadcast %690 : f32 to vector<1x64xf32>
    %692 = arith.mulf %625, %691 : vector<1x64xf32>
    %693 = arith.addf %685, %692 : vector<1x64xf32>
    %c1_229 = arith.constant 1 : index
    %c50_230 = arith.constant 50 : index
    %694 = memref.load %arg16[%c1_229, %c50_230] : memref<3x99xf32, #tpu.memory_space<smem>>
    %695 = vector.broadcast %694 : f32 to vector<1x64xf32>
    %696 = arith.mulf %630, %695 : vector<1x64xf32>
    %697 = arith.addf %689, %696 : vector<1x64xf32>
    %c1_231 = arith.constant 1 : index
    %c2_232 = arith.constant 2 : index
    %698 = memref.load %arg16[%c1_231, %c2_232] : memref<3x99xf32, #tpu.memory_space<smem>>
    %699 = vector.broadcast %698 : f32 to vector<1x64xf32>
    %700 = arith.mulf %637, %699 : vector<1x64xf32>
    %701 = arith.addf %693, %700 : vector<1x64xf32>
    %c1_233 = arith.constant 1 : index
    %c51_234 = arith.constant 51 : index
    %702 = memref.load %arg16[%c1_233, %c51_234] : memref<3x99xf32, #tpu.memory_space<smem>>
    %703 = vector.broadcast %702 : f32 to vector<1x64xf32>
    %704 = arith.mulf %642, %703 : vector<1x64xf32>
    %705 = arith.addf %697, %704 : vector<1x64xf32>
    %c1_235 = arith.constant 1 : index
    %c3_236 = arith.constant 3 : index
    %706 = memref.load %arg16[%c1_235, %c3_236] : memref<3x99xf32, #tpu.memory_space<smem>>
    %707 = vector.broadcast %706 : f32 to vector<1x64xf32>
    %708 = arith.mulf %601, %707 : vector<1x64xf32>
    %709 = arith.addf %701, %708 : vector<1x64xf32>
    %c1_237 = arith.constant 1 : index
    %c52_238 = arith.constant 52 : index
    %710 = memref.load %arg16[%c1_237, %c52_238] : memref<3x99xf32, #tpu.memory_space<smem>>
    %711 = vector.broadcast %710 : f32 to vector<1x64xf32>
    %712 = arith.mulf %603, %711 : vector<1x64xf32>
    %713 = arith.addf %705, %712 : vector<1x64xf32>
    %c1_239 = arith.constant 1 : index
    %c4_240 = arith.constant 4 : index
    %714 = memref.load %arg16[%c1_239, %c4_240] : memref<3x99xf32, #tpu.memory_space<smem>>
    %715 = vector.broadcast %714 : f32 to vector<1x64xf32>
    %716 = arith.mulf %649, %715 : vector<1x64xf32>
    %717 = arith.addf %709, %716 : vector<1x64xf32>
    %c1_241 = arith.constant 1 : index
    %c53_242 = arith.constant 53 : index
    %718 = memref.load %arg16[%c1_241, %c53_242] : memref<3x99xf32, #tpu.memory_space<smem>>
    %719 = vector.broadcast %718 : f32 to vector<1x64xf32>
    %720 = arith.mulf %654, %719 : vector<1x64xf32>
    %721 = arith.addf %713, %720 : vector<1x64xf32>
    %c1_243 = arith.constant 1 : index
    %c5_244 = arith.constant 5 : index
    %722 = memref.load %arg16[%c1_243, %c5_244] : memref<3x99xf32, #tpu.memory_space<smem>>
    %723 = vector.broadcast %722 : f32 to vector<1x64xf32>
    %724 = arith.mulf %661, %723 : vector<1x64xf32>
    %725 = arith.addf %717, %724 : vector<1x64xf32>
    %c1_245 = arith.constant 1 : index
    %c54_246 = arith.constant 54 : index
    %726 = memref.load %arg16[%c1_245, %c54_246] : memref<3x99xf32, #tpu.memory_space<smem>>
    %727 = vector.broadcast %726 : f32 to vector<1x64xf32>
    %728 = arith.mulf %666, %727 : vector<1x64xf32>
    %729 = arith.addf %721, %728 : vector<1x64xf32>
    %c1_247 = arith.constant 1 : index
    %c6_248 = arith.constant 6 : index
    %730 = memref.load %arg16[%c1_247, %c6_248] : memref<3x99xf32, #tpu.memory_space<smem>>
    %731 = vector.broadcast %730 : f32 to vector<1x64xf32>
    %732 = arith.mulf %673, %731 : vector<1x64xf32>
    %733 = arith.addf %725, %732 : vector<1x64xf32>
    %c1_249 = arith.constant 1 : index
    %c55_250 = arith.constant 55 : index
    %734 = memref.load %arg16[%c1_249, %c55_250] : memref<3x99xf32, #tpu.memory_space<smem>>
    %735 = vector.broadcast %734 : f32 to vector<1x64xf32>
    %736 = arith.mulf %678, %735 : vector<1x64xf32>
    %737 = arith.addf %729, %736 : vector<1x64xf32>
    %738 = arith.addf %733, %737 : vector<1x64xf32>
    %cst_251 = arith.constant 0.000000e+00 : f32
    %739 = vector.broadcast %cst_251 : f32 to vector<1x24xf32>
    %740 = vector.extract_strided_slice %738 {offsets = [0, 0], sizes = [1, 40], strides = [1, 1]} : vector<1x64xf32> to vector<1x40xf32>
    %741 = tpu.concatenate %739, %740 in 1 : vector<1x24xf32>, vector<1x40xf32> -> vector<1x64xf32>
    %742 = arith.addf %679, %741 : vector<1x64xf32>
    %cst_252 = arith.constant 0.000000e+00 : f32
    %743 = vector.broadcast %cst_252 : f32 to vector<1x64xf32>
    %cst_253 = arith.constant 0.000000e+00 : f32
    %744 = vector.broadcast %cst_253 : f32 to vector<1x64xf32>
    %c1_254 = arith.constant 1 : index
    %c7_255 = arith.constant 7 : index
    %745 = memref.load %arg16[%c1_254, %c7_255] : memref<3x99xf32, #tpu.memory_space<smem>>
    %746 = vector.broadcast %745 : f32 to vector<1x64xf32>
    %747 = arith.mulf %613, %746 : vector<1x64xf32>
    %748 = arith.addf %743, %747 : vector<1x64xf32>
    %c1_256 = arith.constant 1 : index
    %c56_257 = arith.constant 56 : index
    %749 = memref.load %arg16[%c1_256, %c56_257] : memref<3x99xf32, #tpu.memory_space<smem>>
    %750 = vector.broadcast %749 : f32 to vector<1x64xf32>
    %751 = arith.mulf %618, %750 : vector<1x64xf32>
    %752 = arith.addf %744, %751 : vector<1x64xf32>
    %c1_258 = arith.constant 1 : index
    %c8_259 = arith.constant 8 : index
    %753 = memref.load %arg16[%c1_258, %c8_259] : memref<3x99xf32, #tpu.memory_space<smem>>
    %754 = vector.broadcast %753 : f32 to vector<1x64xf32>
    %755 = arith.mulf %625, %754 : vector<1x64xf32>
    %756 = arith.addf %748, %755 : vector<1x64xf32>
    %c1_260 = arith.constant 1 : index
    %c57_261 = arith.constant 57 : index
    %757 = memref.load %arg16[%c1_260, %c57_261] : memref<3x99xf32, #tpu.memory_space<smem>>
    %758 = vector.broadcast %757 : f32 to vector<1x64xf32>
    %759 = arith.mulf %630, %758 : vector<1x64xf32>
    %760 = arith.addf %752, %759 : vector<1x64xf32>
    %c1_262 = arith.constant 1 : index
    %c9_263 = arith.constant 9 : index
    %761 = memref.load %arg16[%c1_262, %c9_263] : memref<3x99xf32, #tpu.memory_space<smem>>
    %762 = vector.broadcast %761 : f32 to vector<1x64xf32>
    %763 = arith.mulf %637, %762 : vector<1x64xf32>
    %764 = arith.addf %756, %763 : vector<1x64xf32>
    %c1_264 = arith.constant 1 : index
    %c58_265 = arith.constant 58 : index
    %765 = memref.load %arg16[%c1_264, %c58_265] : memref<3x99xf32, #tpu.memory_space<smem>>
    %766 = vector.broadcast %765 : f32 to vector<1x64xf32>
    %767 = arith.mulf %642, %766 : vector<1x64xf32>
    %768 = arith.addf %760, %767 : vector<1x64xf32>
    %c1_266 = arith.constant 1 : index
    %c10_267 = arith.constant 10 : index
    %769 = memref.load %arg16[%c1_266, %c10_267] : memref<3x99xf32, #tpu.memory_space<smem>>
    %770 = vector.broadcast %769 : f32 to vector<1x64xf32>
    %771 = arith.mulf %601, %770 : vector<1x64xf32>
    %772 = arith.addf %764, %771 : vector<1x64xf32>
    %c1_268 = arith.constant 1 : index
    %c59_269 = arith.constant 59 : index
    %773 = memref.load %arg16[%c1_268, %c59_269] : memref<3x99xf32, #tpu.memory_space<smem>>
    %774 = vector.broadcast %773 : f32 to vector<1x64xf32>
    %775 = arith.mulf %603, %774 : vector<1x64xf32>
    %776 = arith.addf %768, %775 : vector<1x64xf32>
    %c1_270 = arith.constant 1 : index
    %c11_271 = arith.constant 11 : index
    %777 = memref.load %arg16[%c1_270, %c11_271] : memref<3x99xf32, #tpu.memory_space<smem>>
    %778 = vector.broadcast %777 : f32 to vector<1x64xf32>
    %779 = arith.mulf %649, %778 : vector<1x64xf32>
    %780 = arith.addf %772, %779 : vector<1x64xf32>
    %c1_272 = arith.constant 1 : index
    %c60_273 = arith.constant 60 : index
    %781 = memref.load %arg16[%c1_272, %c60_273] : memref<3x99xf32, #tpu.memory_space<smem>>
    %782 = vector.broadcast %781 : f32 to vector<1x64xf32>
    %783 = arith.mulf %654, %782 : vector<1x64xf32>
    %784 = arith.addf %776, %783 : vector<1x64xf32>
    %c1_274 = arith.constant 1 : index
    %c12_275 = arith.constant 12 : index
    %785 = memref.load %arg16[%c1_274, %c12_275] : memref<3x99xf32, #tpu.memory_space<smem>>
    %786 = vector.broadcast %785 : f32 to vector<1x64xf32>
    %787 = arith.mulf %661, %786 : vector<1x64xf32>
    %788 = arith.addf %780, %787 : vector<1x64xf32>
    %c1_276 = arith.constant 1 : index
    %c61_277 = arith.constant 61 : index
    %789 = memref.load %arg16[%c1_276, %c61_277] : memref<3x99xf32, #tpu.memory_space<smem>>
    %790 = vector.broadcast %789 : f32 to vector<1x64xf32>
    %791 = arith.mulf %666, %790 : vector<1x64xf32>
    %792 = arith.addf %784, %791 : vector<1x64xf32>
    %c1_278 = arith.constant 1 : index
    %c13_279 = arith.constant 13 : index
    %793 = memref.load %arg16[%c1_278, %c13_279] : memref<3x99xf32, #tpu.memory_space<smem>>
    %794 = vector.broadcast %793 : f32 to vector<1x64xf32>
    %795 = arith.mulf %673, %794 : vector<1x64xf32>
    %796 = arith.addf %788, %795 : vector<1x64xf32>
    %c1_280 = arith.constant 1 : index
    %c62_281 = arith.constant 62 : index
    %797 = memref.load %arg16[%c1_280, %c62_281] : memref<3x99xf32, #tpu.memory_space<smem>>
    %798 = vector.broadcast %797 : f32 to vector<1x64xf32>
    %799 = arith.mulf %678, %798 : vector<1x64xf32>
    %800 = arith.addf %792, %799 : vector<1x64xf32>
    %801 = arith.addf %796, %800 : vector<1x64xf32>
    %cst_282 = arith.constant 0.000000e+00 : f32
    %802 = vector.broadcast %cst_282 : f32 to vector<1x16xf32>
    %803 = vector.extract_strided_slice %801 {offsets = [0, 0], sizes = [1, 48], strides = [1, 1]} : vector<1x64xf32> to vector<1x48xf32>
    %804 = tpu.concatenate %802, %803 in 1 : vector<1x16xf32>, vector<1x48xf32> -> vector<1x64xf32>
    %805 = arith.addf %742, %804 : vector<1x64xf32>
    %cst_283 = arith.constant 0.000000e+00 : f32
    %806 = vector.broadcast %cst_283 : f32 to vector<1x64xf32>
    %cst_284 = arith.constant 0.000000e+00 : f32
    %807 = vector.broadcast %cst_284 : f32 to vector<1x64xf32>
    %c1_285 = arith.constant 1 : index
    %c14_286 = arith.constant 14 : index
    %808 = memref.load %arg16[%c1_285, %c14_286] : memref<3x99xf32, #tpu.memory_space<smem>>
    %809 = vector.broadcast %808 : f32 to vector<1x64xf32>
    %810 = arith.mulf %613, %809 : vector<1x64xf32>
    %811 = arith.addf %806, %810 : vector<1x64xf32>
    %c1_287 = arith.constant 1 : index
    %c63_288 = arith.constant 63 : index
    %812 = memref.load %arg16[%c1_287, %c63_288] : memref<3x99xf32, #tpu.memory_space<smem>>
    %813 = vector.broadcast %812 : f32 to vector<1x64xf32>
    %814 = arith.mulf %618, %813 : vector<1x64xf32>
    %815 = arith.addf %807, %814 : vector<1x64xf32>
    %c1_289 = arith.constant 1 : index
    %c15_290 = arith.constant 15 : index
    %816 = memref.load %arg16[%c1_289, %c15_290] : memref<3x99xf32, #tpu.memory_space<smem>>
    %817 = vector.broadcast %816 : f32 to vector<1x64xf32>
    %818 = arith.mulf %625, %817 : vector<1x64xf32>
    %819 = arith.addf %811, %818 : vector<1x64xf32>
    %c1_291 = arith.constant 1 : index
    %c64_292 = arith.constant 64 : index
    %820 = memref.load %arg16[%c1_291, %c64_292] : memref<3x99xf32, #tpu.memory_space<smem>>
    %821 = vector.broadcast %820 : f32 to vector<1x64xf32>
    %822 = arith.mulf %630, %821 : vector<1x64xf32>
    %823 = arith.addf %815, %822 : vector<1x64xf32>
    %c1_293 = arith.constant 1 : index
    %c16_294 = arith.constant 16 : index
    %824 = memref.load %arg16[%c1_293, %c16_294] : memref<3x99xf32, #tpu.memory_space<smem>>
    %825 = vector.broadcast %824 : f32 to vector<1x64xf32>
    %826 = arith.mulf %637, %825 : vector<1x64xf32>
    %827 = arith.addf %819, %826 : vector<1x64xf32>
    %c1_295 = arith.constant 1 : index
    %c65_296 = arith.constant 65 : index
    %828 = memref.load %arg16[%c1_295, %c65_296] : memref<3x99xf32, #tpu.memory_space<smem>>
    %829 = vector.broadcast %828 : f32 to vector<1x64xf32>
    %830 = arith.mulf %642, %829 : vector<1x64xf32>
    %831 = arith.addf %823, %830 : vector<1x64xf32>
    %c1_297 = arith.constant 1 : index
    %c17_298 = arith.constant 17 : index
    %832 = memref.load %arg16[%c1_297, %c17_298] : memref<3x99xf32, #tpu.memory_space<smem>>
    %833 = vector.broadcast %832 : f32 to vector<1x64xf32>
    %834 = arith.mulf %601, %833 : vector<1x64xf32>
    %835 = arith.addf %827, %834 : vector<1x64xf32>
    %c1_299 = arith.constant 1 : index
    %c66_300 = arith.constant 66 : index
    %836 = memref.load %arg16[%c1_299, %c66_300] : memref<3x99xf32, #tpu.memory_space<smem>>
    %837 = vector.broadcast %836 : f32 to vector<1x64xf32>
    %838 = arith.mulf %603, %837 : vector<1x64xf32>
    %839 = arith.addf %831, %838 : vector<1x64xf32>
    %c1_301 = arith.constant 1 : index
    %c18_302 = arith.constant 18 : index
    %840 = memref.load %arg16[%c1_301, %c18_302] : memref<3x99xf32, #tpu.memory_space<smem>>
    %841 = vector.broadcast %840 : f32 to vector<1x64xf32>
    %842 = arith.mulf %649, %841 : vector<1x64xf32>
    %843 = arith.addf %835, %842 : vector<1x64xf32>
    %c1_303 = arith.constant 1 : index
    %c67_304 = arith.constant 67 : index
    %844 = memref.load %arg16[%c1_303, %c67_304] : memref<3x99xf32, #tpu.memory_space<smem>>
    %845 = vector.broadcast %844 : f32 to vector<1x64xf32>
    %846 = arith.mulf %654, %845 : vector<1x64xf32>
    %847 = arith.addf %839, %846 : vector<1x64xf32>
    %c1_305 = arith.constant 1 : index
    %c19_306 = arith.constant 19 : index
    %848 = memref.load %arg16[%c1_305, %c19_306] : memref<3x99xf32, #tpu.memory_space<smem>>
    %849 = vector.broadcast %848 : f32 to vector<1x64xf32>
    %850 = arith.mulf %661, %849 : vector<1x64xf32>
    %851 = arith.addf %843, %850 : vector<1x64xf32>
    %c1_307 = arith.constant 1 : index
    %c68_308 = arith.constant 68 : index
    %852 = memref.load %arg16[%c1_307, %c68_308] : memref<3x99xf32, #tpu.memory_space<smem>>
    %853 = vector.broadcast %852 : f32 to vector<1x64xf32>
    %854 = arith.mulf %666, %853 : vector<1x64xf32>
    %855 = arith.addf %847, %854 : vector<1x64xf32>
    %c1_309 = arith.constant 1 : index
    %c20_310 = arith.constant 20 : index
    %856 = memref.load %arg16[%c1_309, %c20_310] : memref<3x99xf32, #tpu.memory_space<smem>>
    %857 = vector.broadcast %856 : f32 to vector<1x64xf32>
    %858 = arith.mulf %673, %857 : vector<1x64xf32>
    %859 = arith.addf %851, %858 : vector<1x64xf32>
    %c1_311 = arith.constant 1 : index
    %c69_312 = arith.constant 69 : index
    %860 = memref.load %arg16[%c1_311, %c69_312] : memref<3x99xf32, #tpu.memory_space<smem>>
    %861 = vector.broadcast %860 : f32 to vector<1x64xf32>
    %862 = arith.mulf %678, %861 : vector<1x64xf32>
    %863 = arith.addf %855, %862 : vector<1x64xf32>
    %864 = arith.addf %859, %863 : vector<1x64xf32>
    %cst_313 = arith.constant 0.000000e+00 : f32
    %865 = vector.broadcast %cst_313 : f32 to vector<1x8xf32>
    %866 = vector.extract_strided_slice %864 {offsets = [0, 0], sizes = [1, 56], strides = [1, 1]} : vector<1x64xf32> to vector<1x56xf32>
    %867 = tpu.concatenate %865, %866 in 1 : vector<1x8xf32>, vector<1x56xf32> -> vector<1x64xf32>
    %868 = arith.addf %805, %867 : vector<1x64xf32>
    %cst_314 = arith.constant 0.000000e+00 : f32
    %869 = vector.broadcast %cst_314 : f32 to vector<1x64xf32>
    %cst_315 = arith.constant 0.000000e+00 : f32
    %870 = vector.broadcast %cst_315 : f32 to vector<1x64xf32>
    %c1_316 = arith.constant 1 : index
    %c21_317 = arith.constant 21 : index
    %871 = memref.load %arg16[%c1_316, %c21_317] : memref<3x99xf32, #tpu.memory_space<smem>>
    %872 = vector.broadcast %871 : f32 to vector<1x64xf32>
    %873 = arith.mulf %613, %872 : vector<1x64xf32>
    %874 = arith.addf %869, %873 : vector<1x64xf32>
    %c1_318 = arith.constant 1 : index
    %c70_319 = arith.constant 70 : index
    %875 = memref.load %arg16[%c1_318, %c70_319] : memref<3x99xf32, #tpu.memory_space<smem>>
    %876 = vector.broadcast %875 : f32 to vector<1x64xf32>
    %877 = arith.mulf %618, %876 : vector<1x64xf32>
    %878 = arith.addf %870, %877 : vector<1x64xf32>
    %c1_320 = arith.constant 1 : index
    %c22_321 = arith.constant 22 : index
    %879 = memref.load %arg16[%c1_320, %c22_321] : memref<3x99xf32, #tpu.memory_space<smem>>
    %880 = vector.broadcast %879 : f32 to vector<1x64xf32>
    %881 = arith.mulf %625, %880 : vector<1x64xf32>
    %882 = arith.addf %874, %881 : vector<1x64xf32>
    %c1_322 = arith.constant 1 : index
    %c71_323 = arith.constant 71 : index
    %883 = memref.load %arg16[%c1_322, %c71_323] : memref<3x99xf32, #tpu.memory_space<smem>>
    %884 = vector.broadcast %883 : f32 to vector<1x64xf32>
    %885 = arith.mulf %630, %884 : vector<1x64xf32>
    %886 = arith.addf %878, %885 : vector<1x64xf32>
    %c1_324 = arith.constant 1 : index
    %c23_325 = arith.constant 23 : index
    %887 = memref.load %arg16[%c1_324, %c23_325] : memref<3x99xf32, #tpu.memory_space<smem>>
    %888 = vector.broadcast %887 : f32 to vector<1x64xf32>
    %889 = arith.mulf %637, %888 : vector<1x64xf32>
    %890 = arith.addf %882, %889 : vector<1x64xf32>
    %c1_326 = arith.constant 1 : index
    %c72_327 = arith.constant 72 : index
    %891 = memref.load %arg16[%c1_326, %c72_327] : memref<3x99xf32, #tpu.memory_space<smem>>
    %892 = vector.broadcast %891 : f32 to vector<1x64xf32>
    %893 = arith.mulf %642, %892 : vector<1x64xf32>
    %894 = arith.addf %886, %893 : vector<1x64xf32>
    %c1_328 = arith.constant 1 : index
    %c24_329 = arith.constant 24 : index
    %895 = memref.load %arg16[%c1_328, %c24_329] : memref<3x99xf32, #tpu.memory_space<smem>>
    %896 = vector.broadcast %895 : f32 to vector<1x64xf32>
    %897 = arith.mulf %601, %896 : vector<1x64xf32>
    %898 = arith.addf %890, %897 : vector<1x64xf32>
    %c1_330 = arith.constant 1 : index
    %c73_331 = arith.constant 73 : index
    %899 = memref.load %arg16[%c1_330, %c73_331] : memref<3x99xf32, #tpu.memory_space<smem>>
    %900 = vector.broadcast %899 : f32 to vector<1x64xf32>
    %901 = arith.mulf %603, %900 : vector<1x64xf32>
    %902 = arith.addf %894, %901 : vector<1x64xf32>
    %c1_332 = arith.constant 1 : index
    %c25_333 = arith.constant 25 : index
    %903 = memref.load %arg16[%c1_332, %c25_333] : memref<3x99xf32, #tpu.memory_space<smem>>
    %904 = vector.broadcast %903 : f32 to vector<1x64xf32>
    %905 = arith.mulf %649, %904 : vector<1x64xf32>
    %906 = arith.addf %898, %905 : vector<1x64xf32>
    %c1_334 = arith.constant 1 : index
    %c74_335 = arith.constant 74 : index
    %907 = memref.load %arg16[%c1_334, %c74_335] : memref<3x99xf32, #tpu.memory_space<smem>>
    %908 = vector.broadcast %907 : f32 to vector<1x64xf32>
    %909 = arith.mulf %654, %908 : vector<1x64xf32>
    %910 = arith.addf %902, %909 : vector<1x64xf32>
    %c1_336 = arith.constant 1 : index
    %c26_337 = arith.constant 26 : index
    %911 = memref.load %arg16[%c1_336, %c26_337] : memref<3x99xf32, #tpu.memory_space<smem>>
    %912 = vector.broadcast %911 : f32 to vector<1x64xf32>
    %913 = arith.mulf %661, %912 : vector<1x64xf32>
    %914 = arith.addf %906, %913 : vector<1x64xf32>
    %c1_338 = arith.constant 1 : index
    %c75_339 = arith.constant 75 : index
    %915 = memref.load %arg16[%c1_338, %c75_339] : memref<3x99xf32, #tpu.memory_space<smem>>
    %916 = vector.broadcast %915 : f32 to vector<1x64xf32>
    %917 = arith.mulf %666, %916 : vector<1x64xf32>
    %918 = arith.addf %910, %917 : vector<1x64xf32>
    %c1_340 = arith.constant 1 : index
    %c27_341 = arith.constant 27 : index
    %919 = memref.load %arg16[%c1_340, %c27_341] : memref<3x99xf32, #tpu.memory_space<smem>>
    %920 = vector.broadcast %919 : f32 to vector<1x64xf32>
    %921 = arith.mulf %673, %920 : vector<1x64xf32>
    %922 = arith.addf %914, %921 : vector<1x64xf32>
    %c1_342 = arith.constant 1 : index
    %c76_343 = arith.constant 76 : index
    %923 = memref.load %arg16[%c1_342, %c76_343] : memref<3x99xf32, #tpu.memory_space<smem>>
    %924 = vector.broadcast %923 : f32 to vector<1x64xf32>
    %925 = arith.mulf %678, %924 : vector<1x64xf32>
    %926 = arith.addf %918, %925 : vector<1x64xf32>
    %927 = arith.addf %922, %926 : vector<1x64xf32>
    %928 = arith.addf %868, %927 : vector<1x64xf32>
    %cst_344 = arith.constant 0.000000e+00 : f32
    %929 = vector.broadcast %cst_344 : f32 to vector<1x64xf32>
    %cst_345 = arith.constant 0.000000e+00 : f32
    %930 = vector.broadcast %cst_345 : f32 to vector<1x64xf32>
    %c1_346 = arith.constant 1 : index
    %c28_347 = arith.constant 28 : index
    %931 = memref.load %arg16[%c1_346, %c28_347] : memref<3x99xf32, #tpu.memory_space<smem>>
    %932 = vector.broadcast %931 : f32 to vector<1x64xf32>
    %933 = arith.mulf %613, %932 : vector<1x64xf32>
    %934 = arith.addf %929, %933 : vector<1x64xf32>
    %c1_348 = arith.constant 1 : index
    %c77_349 = arith.constant 77 : index
    %935 = memref.load %arg16[%c1_348, %c77_349] : memref<3x99xf32, #tpu.memory_space<smem>>
    %936 = vector.broadcast %935 : f32 to vector<1x64xf32>
    %937 = arith.mulf %618, %936 : vector<1x64xf32>
    %938 = arith.addf %930, %937 : vector<1x64xf32>
    %c1_350 = arith.constant 1 : index
    %c29_351 = arith.constant 29 : index
    %939 = memref.load %arg16[%c1_350, %c29_351] : memref<3x99xf32, #tpu.memory_space<smem>>
    %940 = vector.broadcast %939 : f32 to vector<1x64xf32>
    %941 = arith.mulf %625, %940 : vector<1x64xf32>
    %942 = arith.addf %934, %941 : vector<1x64xf32>
    %c1_352 = arith.constant 1 : index
    %c78_353 = arith.constant 78 : index
    %943 = memref.load %arg16[%c1_352, %c78_353] : memref<3x99xf32, #tpu.memory_space<smem>>
    %944 = vector.broadcast %943 : f32 to vector<1x64xf32>
    %945 = arith.mulf %630, %944 : vector<1x64xf32>
    %946 = arith.addf %938, %945 : vector<1x64xf32>
    %c1_354 = arith.constant 1 : index
    %c30_355 = arith.constant 30 : index
    %947 = memref.load %arg16[%c1_354, %c30_355] : memref<3x99xf32, #tpu.memory_space<smem>>
    %948 = vector.broadcast %947 : f32 to vector<1x64xf32>
    %949 = arith.mulf %637, %948 : vector<1x64xf32>
    %950 = arith.addf %942, %949 : vector<1x64xf32>
    %c1_356 = arith.constant 1 : index
    %c79_357 = arith.constant 79 : index
    %951 = memref.load %arg16[%c1_356, %c79_357] : memref<3x99xf32, #tpu.memory_space<smem>>
    %952 = vector.broadcast %951 : f32 to vector<1x64xf32>
    %953 = arith.mulf %642, %952 : vector<1x64xf32>
    %954 = arith.addf %946, %953 : vector<1x64xf32>
    %c1_358 = arith.constant 1 : index
    %c31_359 = arith.constant 31 : index
    %955 = memref.load %arg16[%c1_358, %c31_359] : memref<3x99xf32, #tpu.memory_space<smem>>
    %956 = vector.broadcast %955 : f32 to vector<1x64xf32>
    %957 = arith.mulf %601, %956 : vector<1x64xf32>
    %958 = arith.addf %950, %957 : vector<1x64xf32>
    %c1_360 = arith.constant 1 : index
    %c80_361 = arith.constant 80 : index
    %959 = memref.load %arg16[%c1_360, %c80_361] : memref<3x99xf32, #tpu.memory_space<smem>>
    %960 = vector.broadcast %959 : f32 to vector<1x64xf32>
    %961 = arith.mulf %603, %960 : vector<1x64xf32>
    %962 = arith.addf %954, %961 : vector<1x64xf32>
    %c1_362 = arith.constant 1 : index
    %c32_363 = arith.constant 32 : index
    %963 = memref.load %arg16[%c1_362, %c32_363] : memref<3x99xf32, #tpu.memory_space<smem>>
    %964 = vector.broadcast %963 : f32 to vector<1x64xf32>
    %965 = arith.mulf %649, %964 : vector<1x64xf32>
    %966 = arith.addf %958, %965 : vector<1x64xf32>
    %c1_364 = arith.constant 1 : index
    %c81_365 = arith.constant 81 : index
    %967 = memref.load %arg16[%c1_364, %c81_365] : memref<3x99xf32, #tpu.memory_space<smem>>
    %968 = vector.broadcast %967 : f32 to vector<1x64xf32>
    %969 = arith.mulf %654, %968 : vector<1x64xf32>
    %970 = arith.addf %962, %969 : vector<1x64xf32>
    %c1_366 = arith.constant 1 : index
    %c33_367 = arith.constant 33 : index
    %971 = memref.load %arg16[%c1_366, %c33_367] : memref<3x99xf32, #tpu.memory_space<smem>>
    %972 = vector.broadcast %971 : f32 to vector<1x64xf32>
    %973 = arith.mulf %661, %972 : vector<1x64xf32>
    %974 = arith.addf %966, %973 : vector<1x64xf32>
    %c1_368 = arith.constant 1 : index
    %c82_369 = arith.constant 82 : index
    %975 = memref.load %arg16[%c1_368, %c82_369] : memref<3x99xf32, #tpu.memory_space<smem>>
    %976 = vector.broadcast %975 : f32 to vector<1x64xf32>
    %977 = arith.mulf %666, %976 : vector<1x64xf32>
    %978 = arith.addf %970, %977 : vector<1x64xf32>
    %c1_370 = arith.constant 1 : index
    %c34_371 = arith.constant 34 : index
    %979 = memref.load %arg16[%c1_370, %c34_371] : memref<3x99xf32, #tpu.memory_space<smem>>
    %980 = vector.broadcast %979 : f32 to vector<1x64xf32>
    %981 = arith.mulf %673, %980 : vector<1x64xf32>
    %982 = arith.addf %974, %981 : vector<1x64xf32>
    %c1_372 = arith.constant 1 : index
    %c83_373 = arith.constant 83 : index
    %983 = memref.load %arg16[%c1_372, %c83_373] : memref<3x99xf32, #tpu.memory_space<smem>>
    %984 = vector.broadcast %983 : f32 to vector<1x64xf32>
    %985 = arith.mulf %678, %984 : vector<1x64xf32>
    %986 = arith.addf %978, %985 : vector<1x64xf32>
    %987 = arith.addf %982, %986 : vector<1x64xf32>
    %cst_374 = arith.constant 0.000000e+00 : f32
    %988 = vector.broadcast %cst_374 : f32 to vector<1x8xf32>
    %989 = vector.extract_strided_slice %987 {offsets = [0, 8], sizes = [1, 56], strides = [1, 1]} : vector<1x64xf32> to vector<1x56xf32>
    %990 = tpu.concatenate %989, %988 in 1 : vector<1x56xf32>, vector<1x8xf32> -> vector<1x64xf32>
    %991 = arith.addf %928, %990 : vector<1x64xf32>
    %cst_375 = arith.constant 0.000000e+00 : f32
    %992 = vector.broadcast %cst_375 : f32 to vector<1x64xf32>
    %cst_376 = arith.constant 0.000000e+00 : f32
    %993 = vector.broadcast %cst_376 : f32 to vector<1x64xf32>
    %c1_377 = arith.constant 1 : index
    %c35_378 = arith.constant 35 : index
    %994 = memref.load %arg16[%c1_377, %c35_378] : memref<3x99xf32, #tpu.memory_space<smem>>
    %995 = vector.broadcast %994 : f32 to vector<1x64xf32>
    %996 = arith.mulf %613, %995 : vector<1x64xf32>
    %997 = arith.addf %992, %996 : vector<1x64xf32>
    %c1_379 = arith.constant 1 : index
    %c84_380 = arith.constant 84 : index
    %998 = memref.load %arg16[%c1_379, %c84_380] : memref<3x99xf32, #tpu.memory_space<smem>>
    %999 = vector.broadcast %998 : f32 to vector<1x64xf32>
    %1000 = arith.mulf %618, %999 : vector<1x64xf32>
    %1001 = arith.addf %993, %1000 : vector<1x64xf32>
    %c1_381 = arith.constant 1 : index
    %c36_382 = arith.constant 36 : index
    %1002 = memref.load %arg16[%c1_381, %c36_382] : memref<3x99xf32, #tpu.memory_space<smem>>
    %1003 = vector.broadcast %1002 : f32 to vector<1x64xf32>
    %1004 = arith.mulf %625, %1003 : vector<1x64xf32>
    %1005 = arith.addf %997, %1004 : vector<1x64xf32>
    %c1_383 = arith.constant 1 : index
    %c85_384 = arith.constant 85 : index
    %1006 = memref.load %arg16[%c1_383, %c85_384] : memref<3x99xf32, #tpu.memory_space<smem>>
    %1007 = vector.broadcast %1006 : f32 to vector<1x64xf32>
    %1008 = arith.mulf %630, %1007 : vector<1x64xf32>
    %1009 = arith.addf %1001, %1008 : vector<1x64xf32>
    %c1_385 = arith.constant 1 : index
    %c37_386 = arith.constant 37 : index
    %1010 = memref.load %arg16[%c1_385, %c37_386] : memref<3x99xf32, #tpu.memory_space<smem>>
    %1011 = vector.broadcast %1010 : f32 to vector<1x64xf32>
    %1012 = arith.mulf %637, %1011 : vector<1x64xf32>
    %1013 = arith.addf %1005, %1012 : vector<1x64xf32>
    %c1_387 = arith.constant 1 : index
    %c86_388 = arith.constant 86 : index
    %1014 = memref.load %arg16[%c1_387, %c86_388] : memref<3x99xf32, #tpu.memory_space<smem>>
    %1015 = vector.broadcast %1014 : f32 to vector<1x64xf32>
    %1016 = arith.mulf %642, %1015 : vector<1x64xf32>
    %1017 = arith.addf %1009, %1016 : vector<1x64xf32>
    %c1_389 = arith.constant 1 : index
    %c38_390 = arith.constant 38 : index
    %1018 = memref.load %arg16[%c1_389, %c38_390] : memref<3x99xf32, #tpu.memory_space<smem>>
    %1019 = vector.broadcast %1018 : f32 to vector<1x64xf32>
    %1020 = arith.mulf %601, %1019 : vector<1x64xf32>
    %1021 = arith.addf %1013, %1020 : vector<1x64xf32>
    %c1_391 = arith.constant 1 : index
    %c87_392 = arith.constant 87 : index
    %1022 = memref.load %arg16[%c1_391, %c87_392] : memref<3x99xf32, #tpu.memory_space<smem>>
    %1023 = vector.broadcast %1022 : f32 to vector<1x64xf32>
    %1024 = arith.mulf %603, %1023 : vector<1x64xf32>
    %1025 = arith.addf %1017, %1024 : vector<1x64xf32>
    %c1_393 = arith.constant 1 : index
    %c39_394 = arith.constant 39 : index
    %1026 = memref.load %arg16[%c1_393, %c39_394] : memref<3x99xf32, #tpu.memory_space<smem>>
    %1027 = vector.broadcast %1026 : f32 to vector<1x64xf32>
    %1028 = arith.mulf %649, %1027 : vector<1x64xf32>
    %1029 = arith.addf %1021, %1028 : vector<1x64xf32>
    %c1_395 = arith.constant 1 : index
    %c88_396 = arith.constant 88 : index
    %1030 = memref.load %arg16[%c1_395, %c88_396] : memref<3x99xf32, #tpu.memory_space<smem>>
    %1031 = vector.broadcast %1030 : f32 to vector<1x64xf32>
    %1032 = arith.mulf %654, %1031 : vector<1x64xf32>
    %1033 = arith.addf %1025, %1032 : vector<1x64xf32>
    %c1_397 = arith.constant 1 : index
    %c40_398 = arith.constant 40 : index
    %1034 = memref.load %arg16[%c1_397, %c40_398] : memref<3x99xf32, #tpu.memory_space<smem>>
    %1035 = vector.broadcast %1034 : f32 to vector<1x64xf32>
    %1036 = arith.mulf %661, %1035 : vector<1x64xf32>
    %1037 = arith.addf %1029, %1036 : vector<1x64xf32>
    %c1_399 = arith.constant 1 : index
    %c89_400 = arith.constant 89 : index
    %1038 = memref.load %arg16[%c1_399, %c89_400] : memref<3x99xf32, #tpu.memory_space<smem>>
    %1039 = vector.broadcast %1038 : f32 to vector<1x64xf32>
    %1040 = arith.mulf %666, %1039 : vector<1x64xf32>
    %1041 = arith.addf %1033, %1040 : vector<1x64xf32>
    %c1_401 = arith.constant 1 : index
    %c41_402 = arith.constant 41 : index
    %1042 = memref.load %arg16[%c1_401, %c41_402] : memref<3x99xf32, #tpu.memory_space<smem>>
    %1043 = vector.broadcast %1042 : f32 to vector<1x64xf32>
    %1044 = arith.mulf %673, %1043 : vector<1x64xf32>
    %1045 = arith.addf %1037, %1044 : vector<1x64xf32>
    %c1_403 = arith.constant 1 : index
    %c90_404 = arith.constant 90 : index
    %1046 = memref.load %arg16[%c1_403, %c90_404] : memref<3x99xf32, #tpu.memory_space<smem>>
    %1047 = vector.broadcast %1046 : f32 to vector<1x64xf32>
    %1048 = arith.mulf %678, %1047 : vector<1x64xf32>
    %1049 = arith.addf %1041, %1048 : vector<1x64xf32>
    %1050 = arith.addf %1045, %1049 : vector<1x64xf32>
    %cst_405 = arith.constant 0.000000e+00 : f32
    %1051 = vector.broadcast %cst_405 : f32 to vector<1x16xf32>
    %1052 = vector.extract_strided_slice %1050 {offsets = [0, 16], sizes = [1, 48], strides = [1, 1]} : vector<1x64xf32> to vector<1x48xf32>
    %1053 = tpu.concatenate %1052, %1051 in 1 : vector<1x48xf32>, vector<1x16xf32> -> vector<1x64xf32>
    %1054 = arith.addf %991, %1053 : vector<1x64xf32>
    %cst_406 = arith.constant 0.000000e+00 : f32
    %1055 = vector.broadcast %cst_406 : f32 to vector<1x64xf32>
    %cst_407 = arith.constant 0.000000e+00 : f32
    %1056 = vector.broadcast %cst_407 : f32 to vector<1x64xf32>
    %c1_408 = arith.constant 1 : index
    %c42_409 = arith.constant 42 : index
    %1057 = memref.load %arg16[%c1_408, %c42_409] : memref<3x99xf32, #tpu.memory_space<smem>>
    %1058 = vector.broadcast %1057 : f32 to vector<1x64xf32>
    %1059 = arith.mulf %613, %1058 : vector<1x64xf32>
    %1060 = arith.addf %1055, %1059 : vector<1x64xf32>
    %c1_410 = arith.constant 1 : index
    %c91_411 = arith.constant 91 : index
    %1061 = memref.load %arg16[%c1_410, %c91_411] : memref<3x99xf32, #tpu.memory_space<smem>>
    %1062 = vector.broadcast %1061 : f32 to vector<1x64xf32>
    %1063 = arith.mulf %618, %1062 : vector<1x64xf32>
    %1064 = arith.addf %1056, %1063 : vector<1x64xf32>
    %c1_412 = arith.constant 1 : index
    %c43_413 = arith.constant 43 : index
    %1065 = memref.load %arg16[%c1_412, %c43_413] : memref<3x99xf32, #tpu.memory_space<smem>>
    %1066 = vector.broadcast %1065 : f32 to vector<1x64xf32>
    %1067 = arith.mulf %625, %1066 : vector<1x64xf32>
    %1068 = arith.addf %1060, %1067 : vector<1x64xf32>
    %c1_414 = arith.constant 1 : index
    %c92_415 = arith.constant 92 : index
    %1069 = memref.load %arg16[%c1_414, %c92_415] : memref<3x99xf32, #tpu.memory_space<smem>>
    %1070 = vector.broadcast %1069 : f32 to vector<1x64xf32>
    %1071 = arith.mulf %630, %1070 : vector<1x64xf32>
    %1072 = arith.addf %1064, %1071 : vector<1x64xf32>
    %c1_416 = arith.constant 1 : index
    %c44_417 = arith.constant 44 : index
    %1073 = memref.load %arg16[%c1_416, %c44_417] : memref<3x99xf32, #tpu.memory_space<smem>>
    %1074 = vector.broadcast %1073 : f32 to vector<1x64xf32>
    %1075 = arith.mulf %637, %1074 : vector<1x64xf32>
    %1076 = arith.addf %1068, %1075 : vector<1x64xf32>
    %c1_418 = arith.constant 1 : index
    %c93_419 = arith.constant 93 : index
    %1077 = memref.load %arg16[%c1_418, %c93_419] : memref<3x99xf32, #tpu.memory_space<smem>>
    %1078 = vector.broadcast %1077 : f32 to vector<1x64xf32>
    %1079 = arith.mulf %642, %1078 : vector<1x64xf32>
    %1080 = arith.addf %1072, %1079 : vector<1x64xf32>
    %c1_420 = arith.constant 1 : index
    %c45_421 = arith.constant 45 : index
    %1081 = memref.load %arg16[%c1_420, %c45_421] : memref<3x99xf32, #tpu.memory_space<smem>>
    %1082 = vector.broadcast %1081 : f32 to vector<1x64xf32>
    %1083 = arith.mulf %601, %1082 : vector<1x64xf32>
    %1084 = arith.addf %1076, %1083 : vector<1x64xf32>
    %c1_422 = arith.constant 1 : index
    %c94_423 = arith.constant 94 : index
    %1085 = memref.load %arg16[%c1_422, %c94_423] : memref<3x99xf32, #tpu.memory_space<smem>>
    %1086 = vector.broadcast %1085 : f32 to vector<1x64xf32>
    %1087 = arith.mulf %603, %1086 : vector<1x64xf32>
    %1088 = arith.addf %1080, %1087 : vector<1x64xf32>
    %c1_424 = arith.constant 1 : index
    %c46_425 = arith.constant 46 : index
    %1089 = memref.load %arg16[%c1_424, %c46_425] : memref<3x99xf32, #tpu.memory_space<smem>>
    %1090 = vector.broadcast %1089 : f32 to vector<1x64xf32>
    %1091 = arith.mulf %649, %1090 : vector<1x64xf32>
    %1092 = arith.addf %1084, %1091 : vector<1x64xf32>
    %c1_426 = arith.constant 1 : index
    %c95_427 = arith.constant 95 : index
    %1093 = memref.load %arg16[%c1_426, %c95_427] : memref<3x99xf32, #tpu.memory_space<smem>>
    %1094 = vector.broadcast %1093 : f32 to vector<1x64xf32>
    %1095 = arith.mulf %654, %1094 : vector<1x64xf32>
    %1096 = arith.addf %1088, %1095 : vector<1x64xf32>
    %c1_428 = arith.constant 1 : index
    %c47_429 = arith.constant 47 : index
    %1097 = memref.load %arg16[%c1_428, %c47_429] : memref<3x99xf32, #tpu.memory_space<smem>>
    %1098 = vector.broadcast %1097 : f32 to vector<1x64xf32>
    %1099 = arith.mulf %661, %1098 : vector<1x64xf32>
    %1100 = arith.addf %1092, %1099 : vector<1x64xf32>
    %c1_430 = arith.constant 1 : index
    %c96_431 = arith.constant 96 : index
    %1101 = memref.load %arg16[%c1_430, %c96_431] : memref<3x99xf32, #tpu.memory_space<smem>>
    %1102 = vector.broadcast %1101 : f32 to vector<1x64xf32>
    %1103 = arith.mulf %666, %1102 : vector<1x64xf32>
    %1104 = arith.addf %1096, %1103 : vector<1x64xf32>
    %c1_432 = arith.constant 1 : index
    %c48_433 = arith.constant 48 : index
    %1105 = memref.load %arg16[%c1_432, %c48_433] : memref<3x99xf32, #tpu.memory_space<smem>>
    %1106 = vector.broadcast %1105 : f32 to vector<1x64xf32>
    %1107 = arith.mulf %673, %1106 : vector<1x64xf32>
    %1108 = arith.addf %1100, %1107 : vector<1x64xf32>
    %c1_434 = arith.constant 1 : index
    %c97_435 = arith.constant 97 : index
    %1109 = memref.load %arg16[%c1_434, %c97_435] : memref<3x99xf32, #tpu.memory_space<smem>>
    %1110 = vector.broadcast %1109 : f32 to vector<1x64xf32>
    %1111 = arith.mulf %678, %1110 : vector<1x64xf32>
    %1112 = arith.addf %1104, %1111 : vector<1x64xf32>
    %1113 = arith.addf %1108, %1112 : vector<1x64xf32>
    %cst_436 = arith.constant 0.000000e+00 : f32
    %1114 = vector.broadcast %cst_436 : f32 to vector<1x24xf32>
    %1115 = vector.extract_strided_slice %1113 {offsets = [0, 24], sizes = [1, 40], strides = [1, 1]} : vector<1x64xf32> to vector<1x40xf32>
    %1116 = tpu.concatenate %1115, %1114 in 1 : vector<1x40xf32>, vector<1x24xf32> -> vector<1x64xf32>
    %1117 = arith.addf %1054, %1116 : vector<1x64xf32>
    %c1_437 = arith.constant 1 : index
    %c98_438 = arith.constant 98 : index
    %1118 = memref.load %arg16[%c1_437, %c98_438] : memref<3x99xf32, #tpu.memory_space<smem>>
    %1119 = vector.broadcast %1118 : f32 to vector<1x64xf32>
    %1120 = arith.addf %1117, %1119 : vector<1x64xf32>
    %1121 = arith.negf %1120 : vector<1x64xf32>
    %1122 = math.exp %1121 : vector<1x64xf32>
    %cst_439 = arith.constant 1.000000e+00 : f32
    %1123 = vector.broadcast %cst_439 : f32 to vector<1x64xf32>
    %1124 = arith.addf %1123, %1122 : vector<1x64xf32>
    %1125 = arith.divf %1123, %1124 : vector<1x64xf32>
    %1126 = vector.broadcast %1125 : vector<1x64xf32> to vector<32x64xf32>
    %1127 = arith.mulf %597, %1126 : vector<32x64xf32>
    %cst_440 = arith.constant dense<0.000000e+00> : vector<1x32xf32>
    %1128 = tpu.matmul %1125, %597, %cst_440 {dimension_numbers = #tpu.dot_dimension_numbers<[1], [1], [0], [0], [0, 0, 1, 0], [], []>} : vector<1x64xf32>, vector<32x64xf32>, vector<1x32xf32> -> vector<1x32xf32>
    %cst_441 = arith.constant 1.562500e-02 : f32
    %1129 = vector.broadcast %cst_441 : f32 to vector<1x32xf32>
    %1130 = arith.mulf %1128, %1129 : vector<1x32xf32>
    %c0_442 = arith.constant 0 : index
    %c0_443 = arith.constant 0 : index
    %c0_444 = arith.constant 0 : index
    %1131 = vector.load %arg22[%c0_442, %c0_443, %c0_444] : memref<1x32x64xf32, #tpu.memory_space<vmem>>, vector<1x32x64xf32>
    %1132 = vector.shape_cast %1131 : vector<1x32x64xf32> to vector<32x64xf32>
    %1133 = vector.shape_cast %1127 : vector<32x64xf32> to vector<1x32x64xf32>
    tpu.vector_store %arg22[%c0_442, %c0_443, %c0_444], %1133 {strides = array<i32>} : memref<1x32x64xf32, #tpu.memory_space<vmem>>, vector<1x32x64xf32>,
    %c0_445 = arith.constant 0 : index
    %c0_446 = arith.constant 0 : index
    %c0_447 = arith.constant 0 : index
    %1134 = vector.load %arg3[%c0_445, %c0_446, %c0_447] : memref<1x64x16xf32, #tpu.memory_space<vmem>>, vector<1x64x16xf32>
    %1135 = vector.shape_cast %1134 : vector<1x64x16xf32> to vector<64x16xf32>
    %c0_448 = arith.constant 0 : index
    %c0_449 = arith.constant 0 : index
    %1136 = vector.load %arg12[%c0_448, %c0_449] : memref<8x64xf32, #tpu.memory_space<vmem>>, vector<8x64xf32>
    %c0_450 = arith.constant 0 : index
    %c0_451 = arith.constant 0 : index
    %1137 = vector.load %arg13[%c0_450, %c0_451] : memref<8x1xf32, #tpu.memory_space<vmem>>, vector<8x1xf32>
    %c0_452 = arith.constant 0 : index
    %c0_453 = arith.constant 0 : index
    %1138 = vector.load %arg14[%c0_452, %c0_453] : memref<64x8xf32, #tpu.memory_space<vmem>>, vector<64x8xf32>
    %c0_454 = arith.constant 0 : index
    %c0_455 = arith.constant 0 : index
    %1139 = vector.load %arg15[%c0_454, %c0_455] : memref<64x1xf32, #tpu.memory_space<vmem>>, vector<64x1xf32>
    %cst_456 = arith.constant dense<0.000000e+00> : vector<64xf32>
    %1140 = vector.multi_reduction <add>, %1135, %cst_456 [1] : vector<64x16xf32> to vector<64xf32>
    %1141 = vector.shape_cast %1140 : vector<64xf32> to vector<64x1xf32>
    %cst_457 = arith.constant 6.250000e-02 : f32
    %1142 = vector.broadcast %cst_457 : f32 to vector<64x1xf32>
    %1143 = arith.mulf %1141, %1142 : vector<64x1xf32>
    %cst_458 = arith.constant dense<0xFF800000> : vector<64xf32>
    %1144 = vector.multi_reduction <maximumf>, %1135, %cst_458 [1] : vector<64x16xf32> to vector<64xf32>
    %1145 = vector.shape_cast %1144 : vector<64xf32> to vector<64x1xf32>
    %1146 = tpu.concatenate %1143, %1145 in 1 : vector<64x1xf32>, vector<64x1xf32> -> vector<64x2xf32>
    %cst_459 = arith.constant dense<0.000000e+00> : vector<8x2xf32>
    %1147 = tpu.matmul %1136, %1146, %cst_459 {dimension_numbers = #tpu.dot_dimension_numbers<[1], [0], [0], [1], [0, 0, 1, 1], [], []>} : vector<8x64xf32>, vector<64x2xf32>, vector<8x2xf32> -> vector<8x2xf32>
    %1148 = vector.broadcast %1137 : vector<8x1xf32> to vector<8x2xf32>
    %1149 = arith.addf %1147, %1148 : vector<8x2xf32>
    %cst_460 = arith.constant 0.000000e+00 : f32
    %1150 = vector.broadcast %cst_460 : f32 to vector<8x2xf32>
    %1151 = arith.maximumf %1149, %1150 : vector<8x2xf32>
    %cst_461 = arith.constant dense<0.000000e+00> : vector<64x2xf32>
    %1152 = tpu.matmul %1138, %1151, %cst_461 {dimension_numbers = #tpu.dot_dimension_numbers<[1], [0], [0], [1], [0, 0, 1, 1], [], []>} : vector<64x8xf32>, vector<8x2xf32>, vector<64x2xf32> -> vector<64x2xf32>
    %1153 = vector.broadcast %1139 : vector<64x1xf32> to vector<64x2xf32>
    %1154 = arith.addf %1152, %1153 : vector<64x2xf32>
    %1155 = vector.extract_strided_slice %1154 {offsets = [0, 0], sizes = [64, 1], strides = [1, 1]} : vector<64x2xf32> to vector<64x1xf32>
    %1156 = vector.extract_strided_slice %1154 {offsets = [0, 1], sizes = [64, 1], strides = [1, 1]} : vector<64x2xf32> to vector<64x1xf32>
    %1157 = arith.addf %1155, %1156 : vector<64x1xf32>
    %1158 = arith.negf %1157 : vector<64x1xf32>
    %1159 = math.exp %1158 : vector<64x1xf32>
    %cst_462 = arith.constant 1.000000e+00 : f32
    %1160 = vector.broadcast %cst_462 : f32 to vector<64x1xf32>
    %1161 = arith.addf %1160, %1159 : vector<64x1xf32>
    %1162 = arith.divf %1160, %1161 : vector<64x1xf32>
    %1163 = vector.broadcast %1162 : vector<64x1xf32> to vector<64x16xf32>
    %1164 = arith.mulf %1135, %1163 : vector<64x16xf32>
    %cst_463 = arith.constant dense<0.000000e+00> : vector<16xf32>
    %1165 = vector.multi_reduction <add>, %1164, %cst_463 [0] : vector<64x16xf32> to vector<16xf32>
    %1166 = vector.shape_cast %1165 : vector<16xf32> to vector<1x16xf32>
    %cst_464 = arith.constant 1.562500e-02 : f32
    %1167 = vector.broadcast %cst_464 : f32 to vector<1x16xf32>
    %1168 = arith.mulf %1166, %1167 : vector<1x16xf32>
    %cst_465 = arith.constant dense<0xFF800000> : vector<16xf32>
    %1169 = vector.multi_reduction <maximumf>, %1164, %cst_465 [0] : vector<64x16xf32> to vector<16xf32>
    %1170 = vector.shape_cast %1169 : vector<16xf32> to vector<1x16xf32>
    %1171 = tpu.iota {dimensions = array<i32: 1>} : vector<1x16xi32>
    %c3_i32_466 = arith.constant 3 : i32
    %1172 = vector.broadcast %c3_i32_466 : i32 to vector<1x16xi32>
    %1173 = arith.andi %1171, %1172 : vector<1x16xi32>
    %c3_i32_467 = arith.constant 3 : i32
    %1174 = vector.broadcast %c3_i32_467 : i32 to vector<1x16xi32>
    %1175 = arith.cmpi sge, %1173, %1174 : vector<1x16xi32>
    %cst_468 = arith.constant 0.000000e+00 : f32
    %1176 = vector.broadcast %cst_468 : f32 to vector<1x3xf32>
    %1177 = vector.extract_strided_slice %1168 {offsets = [0, 0], sizes = [1, 13], strides = [1, 1]} : vector<1x16xf32> to vector<1x13xf32>
    %1178 = tpu.concatenate %1176, %1177 in 1 : vector<1x3xf32>, vector<1x13xf32> -> vector<1x16xf32>
    %cst_469 = arith.constant 0.000000e+00 : f32
    %1179 = vector.broadcast %cst_469 : f32 to vector<1x16xf32>
    %1180 = arith.select %1175, %1178, %1179 : vector<1x16xi1>, vector<1x16xf32>
    %cst_470 = arith.constant 0.000000e+00 : f32
    %1181 = vector.broadcast %cst_470 : f32 to vector<1x3xf32>
    %1182 = vector.extract_strided_slice %1170 {offsets = [0, 0], sizes = [1, 13], strides = [1, 1]} : vector<1x16xf32> to vector<1x13xf32>
    %1183 = tpu.concatenate %1181, %1182 in 1 : vector<1x3xf32>, vector<1x13xf32> -> vector<1x16xf32>
    %cst_471 = arith.constant 0.000000e+00 : f32
    %1184 = vector.broadcast %cst_471 : f32 to vector<1x16xf32>
    %1185 = arith.select %1175, %1183, %1184 : vector<1x16xi1>, vector<1x16xf32>
    %c2_i32_472 = arith.constant 2 : i32
    %1186 = vector.broadcast %c2_i32_472 : i32 to vector<1x16xi32>
    %1187 = arith.cmpi sge, %1173, %1186 : vector<1x16xi32>
    %cst_473 = arith.constant 0.000000e+00 : f32
    %1188 = vector.broadcast %cst_473 : f32 to vector<1x2xf32>
    %1189 = vector.extract_strided_slice %1168 {offsets = [0, 0], sizes = [1, 14], strides = [1, 1]} : vector<1x16xf32> to vector<1x14xf32>
    %1190 = tpu.concatenate %1188, %1189 in 1 : vector<1x2xf32>, vector<1x14xf32> -> vector<1x16xf32>
    %cst_474 = arith.constant 0.000000e+00 : f32
    %1191 = vector.broadcast %cst_474 : f32 to vector<1x16xf32>
    %1192 = arith.select %1187, %1190, %1191 : vector<1x16xi1>, vector<1x16xf32>
    %cst_475 = arith.constant 0.000000e+00 : f32
    %1193 = vector.broadcast %cst_475 : f32 to vector<1x2xf32>
    %1194 = vector.extract_strided_slice %1170 {offsets = [0, 0], sizes = [1, 14], strides = [1, 1]} : vector<1x16xf32> to vector<1x14xf32>
    %1195 = tpu.concatenate %1193, %1194 in 1 : vector<1x2xf32>, vector<1x14xf32> -> vector<1x16xf32>
    %cst_476 = arith.constant 0.000000e+00 : f32
    %1196 = vector.broadcast %cst_476 : f32 to vector<1x16xf32>
    %1197 = arith.select %1187, %1195, %1196 : vector<1x16xi1>, vector<1x16xf32>
    %c1_i32_477 = arith.constant 1 : i32
    %1198 = vector.broadcast %c1_i32_477 : i32 to vector<1x16xi32>
    %1199 = arith.cmpi sge, %1173, %1198 : vector<1x16xi32>
    %cst_478 = arith.constant 0.000000e+00 : f32
    %1200 = vector.broadcast %cst_478 : f32 to vector<1x1xf32>
    %1201 = vector.extract_strided_slice %1168 {offsets = [0, 0], sizes = [1, 15], strides = [1, 1]} : vector<1x16xf32> to vector<1x15xf32>
    %1202 = tpu.concatenate %1200, %1201 in 1 : vector<1x1xf32>, vector<1x15xf32> -> vector<1x16xf32>
    %cst_479 = arith.constant 0.000000e+00 : f32
    %1203 = vector.broadcast %cst_479 : f32 to vector<1x16xf32>
    %1204 = arith.select %1199, %1202, %1203 : vector<1x16xi1>, vector<1x16xf32>
    %cst_480 = arith.constant 0.000000e+00 : f32
    %1205 = vector.broadcast %cst_480 : f32 to vector<1x1xf32>
    %1206 = vector.extract_strided_slice %1170 {offsets = [0, 0], sizes = [1, 15], strides = [1, 1]} : vector<1x16xf32> to vector<1x15xf32>
    %1207 = tpu.concatenate %1205, %1206 in 1 : vector<1x1xf32>, vector<1x15xf32> -> vector<1x16xf32>
    %cst_481 = arith.constant 0.000000e+00 : f32
    %1208 = vector.broadcast %cst_481 : f32 to vector<1x16xf32>
    %1209 = arith.select %1199, %1207, %1208 : vector<1x16xi1>, vector<1x16xf32>
    %c3_i32_482 = arith.constant 3 : i32
    %1210 = vector.broadcast %c3_i32_482 : i32 to vector<1x16xi32>
    %1211 = arith.cmpi slt, %1173, %1210 : vector<1x16xi32>
    %cst_483 = arith.constant 0.000000e+00 : f32
    %1212 = vector.broadcast %cst_483 : f32 to vector<1x1xf32>
    %1213 = vector.extract_strided_slice %1168 {offsets = [0, 1], sizes = [1, 15], strides = [1, 1]} : vector<1x16xf32> to vector<1x15xf32>
    %1214 = tpu.concatenate %1213, %1212 in 1 : vector<1x15xf32>, vector<1x1xf32> -> vector<1x16xf32>
    %cst_484 = arith.constant 0.000000e+00 : f32
    %1215 = vector.broadcast %cst_484 : f32 to vector<1x16xf32>
    %1216 = arith.select %1211, %1214, %1215 : vector<1x16xi1>, vector<1x16xf32>
    %cst_485 = arith.constant 0.000000e+00 : f32
    %1217 = vector.broadcast %cst_485 : f32 to vector<1x1xf32>
    %1218 = vector.extract_strided_slice %1170 {offsets = [0, 1], sizes = [1, 15], strides = [1, 1]} : vector<1x16xf32> to vector<1x15xf32>
    %1219 = tpu.concatenate %1218, %1217 in 1 : vector<1x15xf32>, vector<1x1xf32> -> vector<1x16xf32>
    %cst_486 = arith.constant 0.000000e+00 : f32
    %1220 = vector.broadcast %cst_486 : f32 to vector<1x16xf32>
    %1221 = arith.select %1211, %1219, %1220 : vector<1x16xi1>, vector<1x16xf32>
    %c2_i32_487 = arith.constant 2 : i32
    %1222 = vector.broadcast %c2_i32_487 : i32 to vector<1x16xi32>
    %1223 = arith.cmpi slt, %1173, %1222 : vector<1x16xi32>
    %cst_488 = arith.constant 0.000000e+00 : f32
    %1224 = vector.broadcast %cst_488 : f32 to vector<1x2xf32>
    %1225 = vector.extract_strided_slice %1168 {offsets = [0, 2], sizes = [1, 14], strides = [1, 1]} : vector<1x16xf32> to vector<1x14xf32>
    %1226 = tpu.concatenate %1225, %1224 in 1 : vector<1x14xf32>, vector<1x2xf32> -> vector<1x16xf32>
    %cst_489 = arith.constant 0.000000e+00 : f32
    %1227 = vector.broadcast %cst_489 : f32 to vector<1x16xf32>
    %1228 = arith.select %1223, %1226, %1227 : vector<1x16xi1>, vector<1x16xf32>
    %cst_490 = arith.constant 0.000000e+00 : f32
    %1229 = vector.broadcast %cst_490 : f32 to vector<1x2xf32>
    %1230 = vector.extract_strided_slice %1170 {offsets = [0, 2], sizes = [1, 14], strides = [1, 1]} : vector<1x16xf32> to vector<1x14xf32>
    %1231 = tpu.concatenate %1230, %1229 in 1 : vector<1x14xf32>, vector<1x2xf32> -> vector<1x16xf32>
    %cst_491 = arith.constant 0.000000e+00 : f32
    %1232 = vector.broadcast %cst_491 : f32 to vector<1x16xf32>
    %1233 = arith.select %1223, %1231, %1232 : vector<1x16xi1>, vector<1x16xf32>
    %c1_i32_492 = arith.constant 1 : i32
    %1234 = vector.broadcast %c1_i32_492 : i32 to vector<1x16xi32>
    %1235 = arith.cmpi slt, %1173, %1234 : vector<1x16xi32>
    %cst_493 = arith.constant 0.000000e+00 : f32
    %1236 = vector.broadcast %cst_493 : f32 to vector<1x3xf32>
    %1237 = vector.extract_strided_slice %1168 {offsets = [0, 3], sizes = [1, 13], strides = [1, 1]} : vector<1x16xf32> to vector<1x13xf32>
    %1238 = tpu.concatenate %1237, %1236 in 1 : vector<1x13xf32>, vector<1x3xf32> -> vector<1x16xf32>
    %cst_494 = arith.constant 0.000000e+00 : f32
    %1239 = vector.broadcast %cst_494 : f32 to vector<1x16xf32>
    %1240 = arith.select %1235, %1238, %1239 : vector<1x16xi1>, vector<1x16xf32>
    %cst_495 = arith.constant 0.000000e+00 : f32
    %1241 = vector.broadcast %cst_495 : f32 to vector<1x3xf32>
    %1242 = vector.extract_strided_slice %1170 {offsets = [0, 3], sizes = [1, 13], strides = [1, 1]} : vector<1x16xf32> to vector<1x13xf32>
    %1243 = tpu.concatenate %1242, %1241 in 1 : vector<1x13xf32>, vector<1x3xf32> -> vector<1x16xf32>
    %cst_496 = arith.constant 0.000000e+00 : f32
    %1244 = vector.broadcast %cst_496 : f32 to vector<1x16xf32>
    %1245 = arith.select %1235, %1243, %1244 : vector<1x16xi1>, vector<1x16xf32>
    %cst_497 = arith.constant 0.000000e+00 : f32
    %1246 = vector.broadcast %cst_497 : f32 to vector<1x16xf32>
    %cst_498 = arith.constant 0.000000e+00 : f32
    %1247 = vector.broadcast %cst_498 : f32 to vector<1x16xf32>
    %cst_499 = arith.constant 0.000000e+00 : f32
    %1248 = vector.broadcast %cst_499 : f32 to vector<1x16xf32>
    %c2_500 = arith.constant 2 : index
    %c0_501 = arith.constant 0 : index
    %1249 = memref.load %arg16[%c2_500, %c0_501] : memref<3x99xf32, #tpu.memory_space<smem>>
    %1250 = vector.broadcast %1249 : f32 to vector<1x16xf32>
    %1251 = arith.mulf %1180, %1250 : vector<1x16xf32>
    %1252 = arith.addf %1247, %1251 : vector<1x16xf32>
    %c2_502 = arith.constant 2 : index
    %c49_503 = arith.constant 49 : index
    %1253 = memref.load %arg16[%c2_502, %c49_503] : memref<3x99xf32, #tpu.memory_space<smem>>
    %1254 = vector.broadcast %1253 : f32 to vector<1x16xf32>
    %1255 = arith.mulf %1185, %1254 : vector<1x16xf32>
    %1256 = arith.addf %1248, %1255 : vector<1x16xf32>
    %c2_504 = arith.constant 2 : index
    %c1_505 = arith.constant 1 : index
    %1257 = memref.load %arg16[%c2_504, %c1_505] : memref<3x99xf32, #tpu.memory_space<smem>>
    %1258 = vector.broadcast %1257 : f32 to vector<1x16xf32>
    %1259 = arith.mulf %1192, %1258 : vector<1x16xf32>
    %1260 = arith.addf %1252, %1259 : vector<1x16xf32>
    %c2_506 = arith.constant 2 : index
    %c50_507 = arith.constant 50 : index
    %1261 = memref.load %arg16[%c2_506, %c50_507] : memref<3x99xf32, #tpu.memory_space<smem>>
    %1262 = vector.broadcast %1261 : f32 to vector<1x16xf32>
    %1263 = arith.mulf %1197, %1262 : vector<1x16xf32>
    %1264 = arith.addf %1256, %1263 : vector<1x16xf32>
    %c2_508 = arith.constant 2 : index
    %c2_509 = arith.constant 2 : index
    %1265 = memref.load %arg16[%c2_508, %c2_509] : memref<3x99xf32, #tpu.memory_space<smem>>
    %1266 = vector.broadcast %1265 : f32 to vector<1x16xf32>
    %1267 = arith.mulf %1204, %1266 : vector<1x16xf32>
    %1268 = arith.addf %1260, %1267 : vector<1x16xf32>
    %c2_510 = arith.constant 2 : index
    %c51_511 = arith.constant 51 : index
    %1269 = memref.load %arg16[%c2_510, %c51_511] : memref<3x99xf32, #tpu.memory_space<smem>>
    %1270 = vector.broadcast %1269 : f32 to vector<1x16xf32>
    %1271 = arith.mulf %1209, %1270 : vector<1x16xf32>
    %1272 = arith.addf %1264, %1271 : vector<1x16xf32>
    %c2_512 = arith.constant 2 : index
    %c3_513 = arith.constant 3 : index
    %1273 = memref.load %arg16[%c2_512, %c3_513] : memref<3x99xf32, #tpu.memory_space<smem>>
    %1274 = vector.broadcast %1273 : f32 to vector<1x16xf32>
    %1275 = arith.mulf %1168, %1274 : vector<1x16xf32>
    %1276 = arith.addf %1268, %1275 : vector<1x16xf32>
    %c2_514 = arith.constant 2 : index
    %c52_515 = arith.constant 52 : index
    %1277 = memref.load %arg16[%c2_514, %c52_515] : memref<3x99xf32, #tpu.memory_space<smem>>
    %1278 = vector.broadcast %1277 : f32 to vector<1x16xf32>
    %1279 = arith.mulf %1170, %1278 : vector<1x16xf32>
    %1280 = arith.addf %1272, %1279 : vector<1x16xf32>
    %c2_516 = arith.constant 2 : index
    %c4_517 = arith.constant 4 : index
    %1281 = memref.load %arg16[%c2_516, %c4_517] : memref<3x99xf32, #tpu.memory_space<smem>>
    %1282 = vector.broadcast %1281 : f32 to vector<1x16xf32>
    %1283 = arith.mulf %1216, %1282 : vector<1x16xf32>
    %1284 = arith.addf %1276, %1283 : vector<1x16xf32>
    %c2_518 = arith.constant 2 : index
    %c53_519 = arith.constant 53 : index
    %1285 = memref.load %arg16[%c2_518, %c53_519] : memref<3x99xf32, #tpu.memory_space<smem>>
    %1286 = vector.broadcast %1285 : f32 to vector<1x16xf32>
    %1287 = arith.mulf %1221, %1286 : vector<1x16xf32>
    %1288 = arith.addf %1280, %1287 : vector<1x16xf32>
    %c2_520 = arith.constant 2 : index
    %c5_521 = arith.constant 5 : index
    %1289 = memref.load %arg16[%c2_520, %c5_521] : memref<3x99xf32, #tpu.memory_space<smem>>
    %1290 = vector.broadcast %1289 : f32 to vector<1x16xf32>
    %1291 = arith.mulf %1228, %1290 : vector<1x16xf32>
    %1292 = arith.addf %1284, %1291 : vector<1x16xf32>
    %c2_522 = arith.constant 2 : index
    %c54_523 = arith.constant 54 : index
    %1293 = memref.load %arg16[%c2_522, %c54_523] : memref<3x99xf32, #tpu.memory_space<smem>>
    %1294 = vector.broadcast %1293 : f32 to vector<1x16xf32>
    %1295 = arith.mulf %1233, %1294 : vector<1x16xf32>
    %1296 = arith.addf %1288, %1295 : vector<1x16xf32>
    %c2_524 = arith.constant 2 : index
    %c6_525 = arith.constant 6 : index
    %1297 = memref.load %arg16[%c2_524, %c6_525] : memref<3x99xf32, #tpu.memory_space<smem>>
    %1298 = vector.broadcast %1297 : f32 to vector<1x16xf32>
    %1299 = arith.mulf %1240, %1298 : vector<1x16xf32>
    %1300 = arith.addf %1292, %1299 : vector<1x16xf32>
    %c2_526 = arith.constant 2 : index
    %c55_527 = arith.constant 55 : index
    %1301 = memref.load %arg16[%c2_526, %c55_527] : memref<3x99xf32, #tpu.memory_space<smem>>
    %1302 = vector.broadcast %1301 : f32 to vector<1x16xf32>
    %1303 = arith.mulf %1245, %1302 : vector<1x16xf32>
    %1304 = arith.addf %1296, %1303 : vector<1x16xf32>
    %1305 = arith.addf %1300, %1304 : vector<1x16xf32>
    %cst_528 = arith.constant 0.000000e+00 : f32
    %1306 = vector.broadcast %cst_528 : f32 to vector<1x12xf32>
    %1307 = vector.extract_strided_slice %1305 {offsets = [0, 0], sizes = [1, 4], strides = [1, 1]} : vector<1x16xf32> to vector<1x4xf32>
    %1308 = tpu.concatenate %1306, %1307 in 1 : vector<1x12xf32>, vector<1x4xf32> -> vector<1x16xf32>
    %1309 = arith.addf %1246, %1308 : vector<1x16xf32>
    %cst_529 = arith.constant 0.000000e+00 : f32
    %1310 = vector.broadcast %cst_529 : f32 to vector<1x16xf32>
    %cst_530 = arith.constant 0.000000e+00 : f32
    %1311 = vector.broadcast %cst_530 : f32 to vector<1x16xf32>
    %c2_531 = arith.constant 2 : index
    %c7_532 = arith.constant 7 : index
    %1312 = memref.load %arg16[%c2_531, %c7_532] : memref<3x99xf32, #tpu.memory_space<smem>>
    %1313 = vector.broadcast %1312 : f32 to vector<1x16xf32>
    %1314 = arith.mulf %1180, %1313 : vector<1x16xf32>
    %1315 = arith.addf %1310, %1314 : vector<1x16xf32>
    %c2_533 = arith.constant 2 : index
    %c56_534 = arith.constant 56 : index
    %1316 = memref.load %arg16[%c2_533, %c56_534] : memref<3x99xf32, #tpu.memory_space<smem>>
    %1317 = vector.broadcast %1316 : f32 to vector<1x16xf32>
    %1318 = arith.mulf %1185, %1317 : vector<1x16xf32>
    %1319 = arith.addf %1311, %1318 : vector<1x16xf32>
    %c2_535 = arith.constant 2 : index
    %c8_536 = arith.constant 8 : index
    %1320 = memref.load %arg16[%c2_535, %c8_536] : memref<3x99xf32, #tpu.memory_space<smem>>
    %1321 = vector.broadcast %1320 : f32 to vector<1x16xf32>
    %1322 = arith.mulf %1192, %1321 : vector<1x16xf32>
    %1323 = arith.addf %1315, %1322 : vector<1x16xf32>
    %c2_537 = arith.constant 2 : index
    %c57_538 = arith.constant 57 : index
    %1324 = memref.load %arg16[%c2_537, %c57_538] : memref<3x99xf32, #tpu.memory_space<smem>>
    %1325 = vector.broadcast %1324 : f32 to vector<1x16xf32>
    %1326 = arith.mulf %1197, %1325 : vector<1x16xf32>
    %1327 = arith.addf %1319, %1326 : vector<1x16xf32>
    %c2_539 = arith.constant 2 : index
    %c9_540 = arith.constant 9 : index
    %1328 = memref.load %arg16[%c2_539, %c9_540] : memref<3x99xf32, #tpu.memory_space<smem>>
    %1329 = vector.broadcast %1328 : f32 to vector<1x16xf32>
    %1330 = arith.mulf %1204, %1329 : vector<1x16xf32>
    %1331 = arith.addf %1323, %1330 : vector<1x16xf32>
    %c2_541 = arith.constant 2 : index
    %c58_542 = arith.constant 58 : index
    %1332 = memref.load %arg16[%c2_541, %c58_542] : memref<3x99xf32, #tpu.memory_space<smem>>
    %1333 = vector.broadcast %1332 : f32 to vector<1x16xf32>
    %1334 = arith.mulf %1209, %1333 : vector<1x16xf32>
    %1335 = arith.addf %1327, %1334 : vector<1x16xf32>
    %c2_543 = arith.constant 2 : index
    %c10_544 = arith.constant 10 : index
    %1336 = memref.load %arg16[%c2_543, %c10_544] : memref<3x99xf32, #tpu.memory_space<smem>>
    %1337 = vector.broadcast %1336 : f32 to vector<1x16xf32>
    %1338 = arith.mulf %1168, %1337 : vector<1x16xf32>
    %1339 = arith.addf %1331, %1338 : vector<1x16xf32>
    %c2_545 = arith.constant 2 : index
    %c59_546 = arith.constant 59 : index
    %1340 = memref.load %arg16[%c2_545, %c59_546] : memref<3x99xf32, #tpu.memory_space<smem>>
    %1341 = vector.broadcast %1340 : f32 to vector<1x16xf32>
    %1342 = arith.mulf %1170, %1341 : vector<1x16xf32>
    %1343 = arith.addf %1335, %1342 : vector<1x16xf32>
    %c2_547 = arith.constant 2 : index
    %c11_548 = arith.constant 11 : index
    %1344 = memref.load %arg16[%c2_547, %c11_548] : memref<3x99xf32, #tpu.memory_space<smem>>
    %1345 = vector.broadcast %1344 : f32 to vector<1x16xf32>
    %1346 = arith.mulf %1216, %1345 : vector<1x16xf32>
    %1347 = arith.addf %1339, %1346 : vector<1x16xf32>
    %c2_549 = arith.constant 2 : index
    %c60_550 = arith.constant 60 : index
    %1348 = memref.load %arg16[%c2_549, %c60_550] : memref<3x99xf32, #tpu.memory_space<smem>>
    %1349 = vector.broadcast %1348 : f32 to vector<1x16xf32>
    %1350 = arith.mulf %1221, %1349 : vector<1x16xf32>
    %1351 = arith.addf %1343, %1350 : vector<1x16xf32>
    %c2_551 = arith.constant 2 : index
    %c12_552 = arith.constant 12 : index
    %1352 = memref.load %arg16[%c2_551, %c12_552] : memref<3x99xf32, #tpu.memory_space<smem>>
    %1353 = vector.broadcast %1352 : f32 to vector<1x16xf32>
    %1354 = arith.mulf %1228, %1353 : vector<1x16xf32>
    %1355 = arith.addf %1347, %1354 : vector<1x16xf32>
    %c2_553 = arith.constant 2 : index
    %c61_554 = arith.constant 61 : index
    %1356 = memref.load %arg16[%c2_553, %c61_554] : memref<3x99xf32, #tpu.memory_space<smem>>
    %1357 = vector.broadcast %1356 : f32 to vector<1x16xf32>
    %1358 = arith.mulf %1233, %1357 : vector<1x16xf32>
    %1359 = arith.addf %1351, %1358 : vector<1x16xf32>
    %c2_555 = arith.constant 2 : index
    %c13_556 = arith.constant 13 : index
    %1360 = memref.load %arg16[%c2_555, %c13_556] : memref<3x99xf32, #tpu.memory_space<smem>>
    %1361 = vector.broadcast %1360 : f32 to vector<1x16xf32>
    %1362 = arith.mulf %1240, %1361 : vector<1x16xf32>
    %1363 = arith.addf %1355, %1362 : vector<1x16xf32>
    %c2_557 = arith.constant 2 : index
    %c62_558 = arith.constant 62 : index
    %1364 = memref.load %arg16[%c2_557, %c62_558] : memref<3x99xf32, #tpu.memory_space<smem>>
    %1365 = vector.broadcast %1364 : f32 to vector<1x16xf32>
    %1366 = arith.mulf %1245, %1365 : vector<1x16xf32>
    %1367 = arith.addf %1359, %1366 : vector<1x16xf32>
    %1368 = arith.addf %1363, %1367 : vector<1x16xf32>
    %cst_559 = arith.constant 0.000000e+00 : f32
    %1369 = vector.broadcast %cst_559 : f32 to vector<1x8xf32>
    %1370 = vector.extract_strided_slice %1368 {offsets = [0, 0], sizes = [1, 8], strides = [1, 1]} : vector<1x16xf32> to vector<1x8xf32>
    %1371 = tpu.concatenate %1369, %1370 in 1 : vector<1x8xf32>, vector<1x8xf32> -> vector<1x16xf32>
    %1372 = arith.addf %1309, %1371 : vector<1x16xf32>
    %cst_560 = arith.constant 0.000000e+00 : f32
    %1373 = vector.broadcast %cst_560 : f32 to vector<1x16xf32>
    %cst_561 = arith.constant 0.000000e+00 : f32
    %1374 = vector.broadcast %cst_561 : f32 to vector<1x16xf32>
    %c2_562 = arith.constant 2 : index
    %c14_563 = arith.constant 14 : index
    %1375 = memref.load %arg16[%c2_562, %c14_563] : memref<3x99xf32, #tpu.memory_space<smem>>
    %1376 = vector.broadcast %1375 : f32 to vector<1x16xf32>
    %1377 = arith.mulf %1180, %1376 : vector<1x16xf32>
    %1378 = arith.addf %1373, %1377 : vector<1x16xf32>
    %c2_564 = arith.constant 2 : index
    %c63_565 = arith.constant 63 : index
    %1379 = memref.load %arg16[%c2_564, %c63_565] : memref<3x99xf32, #tpu.memory_space<smem>>
    %1380 = vector.broadcast %1379 : f32 to vector<1x16xf32>
    %1381 = arith.mulf %1185, %1380 : vector<1x16xf32>
    %1382 = arith.addf %1374, %1381 : vector<1x16xf32>
    %c2_566 = arith.constant 2 : index
    %c15_567 = arith.constant 15 : index
    %1383 = memref.load %arg16[%c2_566, %c15_567] : memref<3x99xf32, #tpu.memory_space<smem>>
    %1384 = vector.broadcast %1383 : f32 to vector<1x16xf32>
    %1385 = arith.mulf %1192, %1384 : vector<1x16xf32>
    %1386 = arith.addf %1378, %1385 : vector<1x16xf32>
    %c2_568 = arith.constant 2 : index
    %c64_569 = arith.constant 64 : index
    %1387 = memref.load %arg16[%c2_568, %c64_569] : memref<3x99xf32, #tpu.memory_space<smem>>
    %1388 = vector.broadcast %1387 : f32 to vector<1x16xf32>
    %1389 = arith.mulf %1197, %1388 : vector<1x16xf32>
    %1390 = arith.addf %1382, %1389 : vector<1x16xf32>
    %c2_570 = arith.constant 2 : index
    %c16_571 = arith.constant 16 : index
    %1391 = memref.load %arg16[%c2_570, %c16_571] : memref<3x99xf32, #tpu.memory_space<smem>>
    %1392 = vector.broadcast %1391 : f32 to vector<1x16xf32>
    %1393 = arith.mulf %1204, %1392 : vector<1x16xf32>
    %1394 = arith.addf %1386, %1393 : vector<1x16xf32>
    %c2_572 = arith.constant 2 : index
    %c65_573 = arith.constant 65 : index
    %1395 = memref.load %arg16[%c2_572, %c65_573] : memref<3x99xf32, #tpu.memory_space<smem>>
    %1396 = vector.broadcast %1395 : f32 to vector<1x16xf32>
    %1397 = arith.mulf %1209, %1396 : vector<1x16xf32>
    %1398 = arith.addf %1390, %1397 : vector<1x16xf32>
    %c2_574 = arith.constant 2 : index
    %c17_575 = arith.constant 17 : index
    %1399 = memref.load %arg16[%c2_574, %c17_575] : memref<3x99xf32, #tpu.memory_space<smem>>
    %1400 = vector.broadcast %1399 : f32 to vector<1x16xf32>
    %1401 = arith.mulf %1168, %1400 : vector<1x16xf32>
    %1402 = arith.addf %1394, %1401 : vector<1x16xf32>
    %c2_576 = arith.constant 2 : index
    %c66_577 = arith.constant 66 : index
    %1403 = memref.load %arg16[%c2_576, %c66_577] : memref<3x99xf32, #tpu.memory_space<smem>>
    %1404 = vector.broadcast %1403 : f32 to vector<1x16xf32>
    %1405 = arith.mulf %1170, %1404 : vector<1x16xf32>
    %1406 = arith.addf %1398, %1405 : vector<1x16xf32>
    %c2_578 = arith.constant 2 : index
    %c18_579 = arith.constant 18 : index
    %1407 = memref.load %arg16[%c2_578, %c18_579] : memref<3x99xf32, #tpu.memory_space<smem>>
    %1408 = vector.broadcast %1407 : f32 to vector<1x16xf32>
    %1409 = arith.mulf %1216, %1408 : vector<1x16xf32>
    %1410 = arith.addf %1402, %1409 : vector<1x16xf32>
    %c2_580 = arith.constant 2 : index
    %c67_581 = arith.constant 67 : index
    %1411 = memref.load %arg16[%c2_580, %c67_581] : memref<3x99xf32, #tpu.memory_space<smem>>
    %1412 = vector.broadcast %1411 : f32 to vector<1x16xf32>
    %1413 = arith.mulf %1221, %1412 : vector<1x16xf32>
    %1414 = arith.addf %1406, %1413 : vector<1x16xf32>
    %c2_582 = arith.constant 2 : index
    %c19_583 = arith.constant 19 : index
    %1415 = memref.load %arg16[%c2_582, %c19_583] : memref<3x99xf32, #tpu.memory_space<smem>>
    %1416 = vector.broadcast %1415 : f32 to vector<1x16xf32>
    %1417 = arith.mulf %1228, %1416 : vector<1x16xf32>
    %1418 = arith.addf %1410, %1417 : vector<1x16xf32>
    %c2_584 = arith.constant 2 : index
    %c68_585 = arith.constant 68 : index
    %1419 = memref.load %arg16[%c2_584, %c68_585] : memref<3x99xf32, #tpu.memory_space<smem>>
    %1420 = vector.broadcast %1419 : f32 to vector<1x16xf32>
    %1421 = arith.mulf %1233, %1420 : vector<1x16xf32>
    %1422 = arith.addf %1414, %1421 : vector<1x16xf32>
    %c2_586 = arith.constant 2 : index
    %c20_587 = arith.constant 20 : index
    %1423 = memref.load %arg16[%c2_586, %c20_587] : memref<3x99xf32, #tpu.memory_space<smem>>
    %1424 = vector.broadcast %1423 : f32 to vector<1x16xf32>
    %1425 = arith.mulf %1240, %1424 : vector<1x16xf32>
    %1426 = arith.addf %1418, %1425 : vector<1x16xf32>
    %c2_588 = arith.constant 2 : index
    %c69_589 = arith.constant 69 : index
    %1427 = memref.load %arg16[%c2_588, %c69_589] : memref<3x99xf32, #tpu.memory_space<smem>>
    %1428 = vector.broadcast %1427 : f32 to vector<1x16xf32>
    %1429 = arith.mulf %1245, %1428 : vector<1x16xf32>
    %1430 = arith.addf %1422, %1429 : vector<1x16xf32>
    %1431 = arith.addf %1426, %1430 : vector<1x16xf32>
    %cst_590 = arith.constant 0.000000e+00 : f32
    %1432 = vector.broadcast %cst_590 : f32 to vector<1x4xf32>
    %1433 = vector.extract_strided_slice %1431 {offsets = [0, 0], sizes = [1, 12], strides = [1, 1]} : vector<1x16xf32> to vector<1x12xf32>
    %1434 = tpu.concatenate %1432, %1433 in 1 : vector<1x4xf32>, vector<1x12xf32> -> vector<1x16xf32>
    %1435 = arith.addf %1372, %1434 : vector<1x16xf32>
    %cst_591 = arith.constant 0.000000e+00 : f32
    %1436 = vector.broadcast %cst_591 : f32 to vector<1x16xf32>
    %cst_592 = arith.constant 0.000000e+00 : f32
    %1437 = vector.broadcast %cst_592 : f32 to vector<1x16xf32>
    %c2_593 = arith.constant 2 : index
    %c21_594 = arith.constant 21 : index
    %1438 = memref.load %arg16[%c2_593, %c21_594] : memref<3x99xf32, #tpu.memory_space<smem>>
    %1439 = vector.broadcast %1438 : f32 to vector<1x16xf32>
    %1440 = arith.mulf %1180, %1439 : vector<1x16xf32>
    %1441 = arith.addf %1436, %1440 : vector<1x16xf32>
    %c2_595 = arith.constant 2 : index
    %c70_596 = arith.constant 70 : index
    %1442 = memref.load %arg16[%c2_595, %c70_596] : memref<3x99xf32, #tpu.memory_space<smem>>
    %1443 = vector.broadcast %1442 : f32 to vector<1x16xf32>
    %1444 = arith.mulf %1185, %1443 : vector<1x16xf32>
    %1445 = arith.addf %1437, %1444 : vector<1x16xf32>
    %c2_597 = arith.constant 2 : index
    %c22_598 = arith.constant 22 : index
    %1446 = memref.load %arg16[%c2_597, %c22_598] : memref<3x99xf32, #tpu.memory_space<smem>>
    %1447 = vector.broadcast %1446 : f32 to vector<1x16xf32>
    %1448 = arith.mulf %1192, %1447 : vector<1x16xf32>
    %1449 = arith.addf %1441, %1448 : vector<1x16xf32>
    %c2_599 = arith.constant 2 : index
    %c71_600 = arith.constant 71 : index
    %1450 = memref.load %arg16[%c2_599, %c71_600] : memref<3x99xf32, #tpu.memory_space<smem>>
    %1451 = vector.broadcast %1450 : f32 to vector<1x16xf32>
    %1452 = arith.mulf %1197, %1451 : vector<1x16xf32>
    %1453 = arith.addf %1445, %1452 : vector<1x16xf32>
    %c2_601 = arith.constant 2 : index
    %c23_602 = arith.constant 23 : index
    %1454 = memref.load %arg16[%c2_601, %c23_602] : memref<3x99xf32, #tpu.memory_space<smem>>
    %1455 = vector.broadcast %1454 : f32 to vector<1x16xf32>
    %1456 = arith.mulf %1204, %1455 : vector<1x16xf32>
    %1457 = arith.addf %1449, %1456 : vector<1x16xf32>
    %c2_603 = arith.constant 2 : index
    %c72_604 = arith.constant 72 : index
    %1458 = memref.load %arg16[%c2_603, %c72_604] : memref<3x99xf32, #tpu.memory_space<smem>>
    %1459 = vector.broadcast %1458 : f32 to vector<1x16xf32>
    %1460 = arith.mulf %1209, %1459 : vector<1x16xf32>
    %1461 = arith.addf %1453, %1460 : vector<1x16xf32>
    %c2_605 = arith.constant 2 : index
    %c24_606 = arith.constant 24 : index
    %1462 = memref.load %arg16[%c2_605, %c24_606] : memref<3x99xf32, #tpu.memory_space<smem>>
    %1463 = vector.broadcast %1462 : f32 to vector<1x16xf32>
    %1464 = arith.mulf %1168, %1463 : vector<1x16xf32>
    %1465 = arith.addf %1457, %1464 : vector<1x16xf32>
    %c2_607 = arith.constant 2 : index
    %c73_608 = arith.constant 73 : index
    %1466 = memref.load %arg16[%c2_607, %c73_608] : memref<3x99xf32, #tpu.memory_space<smem>>
    %1467 = vector.broadcast %1466 : f32 to vector<1x16xf32>
    %1468 = arith.mulf %1170, %1467 : vector<1x16xf32>
    %1469 = arith.addf %1461, %1468 : vector<1x16xf32>
    %c2_609 = arith.constant 2 : index
    %c25_610 = arith.constant 25 : index
    %1470 = memref.load %arg16[%c2_609, %c25_610] : memref<3x99xf32, #tpu.memory_space<smem>>
    %1471 = vector.broadcast %1470 : f32 to vector<1x16xf32>
    %1472 = arith.mulf %1216, %1471 : vector<1x16xf32>
    %1473 = arith.addf %1465, %1472 : vector<1x16xf32>
    %c2_611 = arith.constant 2 : index
    %c74_612 = arith.constant 74 : index
    %1474 = memref.load %arg16[%c2_611, %c74_612] : memref<3x99xf32, #tpu.memory_space<smem>>
    %1475 = vector.broadcast %1474 : f32 to vector<1x16xf32>
    %1476 = arith.mulf %1221, %1475 : vector<1x16xf32>
    %1477 = arith.addf %1469, %1476 : vector<1x16xf32>
    %c2_613 = arith.constant 2 : index
    %c26_614 = arith.constant 26 : index
    %1478 = memref.load %arg16[%c2_613, %c26_614] : memref<3x99xf32, #tpu.memory_space<smem>>
    %1479 = vector.broadcast %1478 : f32 to vector<1x16xf32>
    %1480 = arith.mulf %1228, %1479 : vector<1x16xf32>
    %1481 = arith.addf %1473, %1480 : vector<1x16xf32>
    %c2_615 = arith.constant 2 : index
    %c75_616 = arith.constant 75 : index
    %1482 = memref.load %arg16[%c2_615, %c75_616] : memref<3x99xf32, #tpu.memory_space<smem>>
    %1483 = vector.broadcast %1482 : f32 to vector<1x16xf32>
    %1484 = arith.mulf %1233, %1483 : vector<1x16xf32>
    %1485 = arith.addf %1477, %1484 : vector<1x16xf32>
    %c2_617 = arith.constant 2 : index
    %c27_618 = arith.constant 27 : index
    %1486 = memref.load %arg16[%c2_617, %c27_618] : memref<3x99xf32, #tpu.memory_space<smem>>
    %1487 = vector.broadcast %1486 : f32 to vector<1x16xf32>
    %1488 = arith.mulf %1240, %1487 : vector<1x16xf32>
    %1489 = arith.addf %1481, %1488 : vector<1x16xf32>
    %c2_619 = arith.constant 2 : index
    %c76_620 = arith.constant 76 : index
    %1490 = memref.load %arg16[%c2_619, %c76_620] : memref<3x99xf32, #tpu.memory_space<smem>>
    %1491 = vector.broadcast %1490 : f32 to vector<1x16xf32>
    %1492 = arith.mulf %1245, %1491 : vector<1x16xf32>
    %1493 = arith.addf %1485, %1492 : vector<1x16xf32>
    %1494 = arith.addf %1489, %1493 : vector<1x16xf32>
    %1495 = arith.addf %1435, %1494 : vector<1x16xf32>
    %cst_621 = arith.constant 0.000000e+00 : f32
    %1496 = vector.broadcast %cst_621 : f32 to vector<1x16xf32>
    %cst_622 = arith.constant 0.000000e+00 : f32
    %1497 = vector.broadcast %cst_622 : f32 to vector<1x16xf32>
    %c2_623 = arith.constant 2 : index
    %c28_624 = arith.constant 28 : index
    %1498 = memref.load %arg16[%c2_623, %c28_624] : memref<3x99xf32, #tpu.memory_space<smem>>
    %1499 = vector.broadcast %1498 : f32 to vector<1x16xf32>
    %1500 = arith.mulf %1180, %1499 : vector<1x16xf32>
    %1501 = arith.addf %1496, %1500 : vector<1x16xf32>
    %c2_625 = arith.constant 2 : index
    %c77_626 = arith.constant 77 : index
    %1502 = memref.load %arg16[%c2_625, %c77_626] : memref<3x99xf32, #tpu.memory_space<smem>>
    %1503 = vector.broadcast %1502 : f32 to vector<1x16xf32>
    %1504 = arith.mulf %1185, %1503 : vector<1x16xf32>
    %1505 = arith.addf %1497, %1504 : vector<1x16xf32>
    %c2_627 = arith.constant 2 : index
    %c29_628 = arith.constant 29 : index
    %1506 = memref.load %arg16[%c2_627, %c29_628] : memref<3x99xf32, #tpu.memory_space<smem>>
    %1507 = vector.broadcast %1506 : f32 to vector<1x16xf32>
    %1508 = arith.mulf %1192, %1507 : vector<1x16xf32>
    %1509 = arith.addf %1501, %1508 : vector<1x16xf32>
    %c2_629 = arith.constant 2 : index
    %c78_630 = arith.constant 78 : index
    %1510 = memref.load %arg16[%c2_629, %c78_630] : memref<3x99xf32, #tpu.memory_space<smem>>
    %1511 = vector.broadcast %1510 : f32 to vector<1x16xf32>
    %1512 = arith.mulf %1197, %1511 : vector<1x16xf32>
    %1513 = arith.addf %1505, %1512 : vector<1x16xf32>
    %c2_631 = arith.constant 2 : index
    %c30_632 = arith.constant 30 : index
    %1514 = memref.load %arg16[%c2_631, %c30_632] : memref<3x99xf32, #tpu.memory_space<smem>>
    %1515 = vector.broadcast %1514 : f32 to vector<1x16xf32>
    %1516 = arith.mulf %1204, %1515 : vector<1x16xf32>
    %1517 = arith.addf %1509, %1516 : vector<1x16xf32>
    %c2_633 = arith.constant 2 : index
    %c79_634 = arith.constant 79 : index
    %1518 = memref.load %arg16[%c2_633, %c79_634] : memref<3x99xf32, #tpu.memory_space<smem>>
    %1519 = vector.broadcast %1518 : f32 to vector<1x16xf32>
    %1520 = arith.mulf %1209, %1519 : vector<1x16xf32>
    %1521 = arith.addf %1513, %1520 : vector<1x16xf32>
    %c2_635 = arith.constant 2 : index
    %c31_636 = arith.constant 31 : index
    %1522 = memref.load %arg16[%c2_635, %c31_636] : memref<3x99xf32, #tpu.memory_space<smem>>
    %1523 = vector.broadcast %1522 : f32 to vector<1x16xf32>
    %1524 = arith.mulf %1168, %1523 : vector<1x16xf32>
    %1525 = arith.addf %1517, %1524 : vector<1x16xf32>
    %c2_637 = arith.constant 2 : index
    %c80_638 = arith.constant 80 : index
    %1526 = memref.load %arg16[%c2_637, %c80_638] : memref<3x99xf32, #tpu.memory_space<smem>>
    %1527 = vector.broadcast %1526 : f32 to vector<1x16xf32>
    %1528 = arith.mulf %1170, %1527 : vector<1x16xf32>
    %1529 = arith.addf %1521, %1528 : vector<1x16xf32>
    %c2_639 = arith.constant 2 : index
    %c32_640 = arith.constant 32 : index
    %1530 = memref.load %arg16[%c2_639, %c32_640] : memref<3x99xf32, #tpu.memory_space<smem>>
    %1531 = vector.broadcast %1530 : f32 to vector<1x16xf32>
    %1532 = arith.mulf %1216, %1531 : vector<1x16xf32>
    %1533 = arith.addf %1525, %1532 : vector<1x16xf32>
    %c2_641 = arith.constant 2 : index
    %c81_642 = arith.constant 81 : index
    %1534 = memref.load %arg16[%c2_641, %c81_642] : memref<3x99xf32, #tpu.memory_space<smem>>
    %1535 = vector.broadcast %1534 : f32 to vector<1x16xf32>
    %1536 = arith.mulf %1221, %1535 : vector<1x16xf32>
    %1537 = arith.addf %1529, %1536 : vector<1x16xf32>
    %c2_643 = arith.constant 2 : index
    %c33_644 = arith.constant 33 : index
    %1538 = memref.load %arg16[%c2_643, %c33_644] : memref<3x99xf32, #tpu.memory_space<smem>>
    %1539 = vector.broadcast %1538 : f32 to vector<1x16xf32>
    %1540 = arith.mulf %1228, %1539 : vector<1x16xf32>
    %1541 = arith.addf %1533, %1540 : vector<1x16xf32>
    %c2_645 = arith.constant 2 : index
    %c82_646 = arith.constant 82 : index
    %1542 = memref.load %arg16[%c2_645, %c82_646] : memref<3x99xf32, #tpu.memory_space<smem>>
    %1543 = vector.broadcast %1542 : f32 to vector<1x16xf32>
    %1544 = arith.mulf %1233, %1543 : vector<1x16xf32>
    %1545 = arith.addf %1537, %1544 : vector<1x16xf32>
    %c2_647 = arith.constant 2 : index
    %c34_648 = arith.constant 34 : index
    %1546 = memref.load %arg16[%c2_647, %c34_648] : memref<3x99xf32, #tpu.memory_space<smem>>
    %1547 = vector.broadcast %1546 : f32 to vector<1x16xf32>
    %1548 = arith.mulf %1240, %1547 : vector<1x16xf32>
    %1549 = arith.addf %1541, %1548 : vector<1x16xf32>
    %c2_649 = arith.constant 2 : index
    %c83_650 = arith.constant 83 : index
    %1550 = memref.load %arg16[%c2_649, %c83_650] : memref<3x99xf32, #tpu.memory_space<smem>>
    %1551 = vector.broadcast %1550 : f32 to vector<1x16xf32>
    %1552 = arith.mulf %1245, %1551 : vector<1x16xf32>
    %1553 = arith.addf %1545, %1552 : vector<1x16xf32>
    %1554 = arith.addf %1549, %1553 : vector<1x16xf32>
    %cst_651 = arith.constant 0.000000e+00 : f32
    %1555 = vector.broadcast %cst_651 : f32 to vector<1x4xf32>
    %1556 = vector.extract_strided_slice %1554 {offsets = [0, 4], sizes = [1, 12], strides = [1, 1]} : vector<1x16xf32> to vector<1x12xf32>
    %1557 = tpu.concatenate %1556, %1555 in 1 : vector<1x12xf32>, vector<1x4xf32> -> vector<1x16xf32>
    %1558 = arith.addf %1495, %1557 : vector<1x16xf32>
    %cst_652 = arith.constant 0.000000e+00 : f32
    %1559 = vector.broadcast %cst_652 : f32 to vector<1x16xf32>
    %cst_653 = arith.constant 0.000000e+00 : f32
    %1560 = vector.broadcast %cst_653 : f32 to vector<1x16xf32>
    %c2_654 = arith.constant 2 : index
    %c35_655 = arith.constant 35 : index
    %1561 = memref.load %arg16[%c2_654, %c35_655] : memref<3x99xf32, #tpu.memory_space<smem>>
    %1562 = vector.broadcast %1561 : f32 to vector<1x16xf32>
    %1563 = arith.mulf %1180, %1562 : vector<1x16xf32>
    %1564 = arith.addf %1559, %1563 : vector<1x16xf32>
    %c2_656 = arith.constant 2 : index
    %c84_657 = arith.constant 84 : index
    %1565 = memref.load %arg16[%c2_656, %c84_657] : memref<3x99xf32, #tpu.memory_space<smem>>
    %1566 = vector.broadcast %1565 : f32 to vector<1x16xf32>
    %1567 = arith.mulf %1185, %1566 : vector<1x16xf32>
    %1568 = arith.addf %1560, %1567 : vector<1x16xf32>
    %c2_658 = arith.constant 2 : index
    %c36_659 = arith.constant 36 : index
    %1569 = memref.load %arg16[%c2_658, %c36_659] : memref<3x99xf32, #tpu.memory_space<smem>>
    %1570 = vector.broadcast %1569 : f32 to vector<1x16xf32>
    %1571 = arith.mulf %1192, %1570 : vector<1x16xf32>
    %1572 = arith.addf %1564, %1571 : vector<1x16xf32>
    %c2_660 = arith.constant 2 : index
    %c85_661 = arith.constant 85 : index
    %1573 = memref.load %arg16[%c2_660, %c85_661] : memref<3x99xf32, #tpu.memory_space<smem>>
    %1574 = vector.broadcast %1573 : f32 to vector<1x16xf32>
    %1575 = arith.mulf %1197, %1574 : vector<1x16xf32>
    %1576 = arith.addf %1568, %1575 : vector<1x16xf32>
    %c2_662 = arith.constant 2 : index
    %c37_663 = arith.constant 37 : index
    %1577 = memref.load %arg16[%c2_662, %c37_663] : memref<3x99xf32, #tpu.memory_space<smem>>
    %1578 = vector.broadcast %1577 : f32 to vector<1x16xf32>
    %1579 = arith.mulf %1204, %1578 : vector<1x16xf32>
    %1580 = arith.addf %1572, %1579 : vector<1x16xf32>
    %c2_664 = arith.constant 2 : index
    %c86_665 = arith.constant 86 : index
    %1581 = memref.load %arg16[%c2_664, %c86_665] : memref<3x99xf32, #tpu.memory_space<smem>>
    %1582 = vector.broadcast %1581 : f32 to vector<1x16xf32>
    %1583 = arith.mulf %1209, %1582 : vector<1x16xf32>
    %1584 = arith.addf %1576, %1583 : vector<1x16xf32>
    %c2_666 = arith.constant 2 : index
    %c38_667 = arith.constant 38 : index
    %1585 = memref.load %arg16[%c2_666, %c38_667] : memref<3x99xf32, #tpu.memory_space<smem>>
    %1586 = vector.broadcast %1585 : f32 to vector<1x16xf32>
    %1587 = arith.mulf %1168, %1586 : vector<1x16xf32>
    %1588 = arith.addf %1580, %1587 : vector<1x16xf32>
    %c2_668 = arith.constant 2 : index
    %c87_669 = arith.constant 87 : index
    %1589 = memref.load %arg16[%c2_668, %c87_669] : memref<3x99xf32, #tpu.memory_space<smem>>
    %1590 = vector.broadcast %1589 : f32 to vector<1x16xf32>
    %1591 = arith.mulf %1170, %1590 : vector<1x16xf32>
    %1592 = arith.addf %1584, %1591 : vector<1x16xf32>
    %c2_670 = arith.constant 2 : index
    %c39_671 = arith.constant 39 : index
    %1593 = memref.load %arg16[%c2_670, %c39_671] : memref<3x99xf32, #tpu.memory_space<smem>>
    %1594 = vector.broadcast %1593 : f32 to vector<1x16xf32>
    %1595 = arith.mulf %1216, %1594 : vector<1x16xf32>
    %1596 = arith.addf %1588, %1595 : vector<1x16xf32>
    %c2_672 = arith.constant 2 : index
    %c88_673 = arith.constant 88 : index
    %1597 = memref.load %arg16[%c2_672, %c88_673] : memref<3x99xf32, #tpu.memory_space<smem>>
    %1598 = vector.broadcast %1597 : f32 to vector<1x16xf32>
    %1599 = arith.mulf %1221, %1598 : vector<1x16xf32>
    %1600 = arith.addf %1592, %1599 : vector<1x16xf32>
    %c2_674 = arith.constant 2 : index
    %c40_675 = arith.constant 40 : index
    %1601 = memref.load %arg16[%c2_674, %c40_675] : memref<3x99xf32, #tpu.memory_space<smem>>
    %1602 = vector.broadcast %1601 : f32 to vector<1x16xf32>
    %1603 = arith.mulf %1228, %1602 : vector<1x16xf32>
    %1604 = arith.addf %1596, %1603 : vector<1x16xf32>
    %c2_676 = arith.constant 2 : index
    %c89_677 = arith.constant 89 : index
    %1605 = memref.load %arg16[%c2_676, %c89_677] : memref<3x99xf32, #tpu.memory_space<smem>>
    %1606 = vector.broadcast %1605 : f32 to vector<1x16xf32>
    %1607 = arith.mulf %1233, %1606 : vector<1x16xf32>
    %1608 = arith.addf %1600, %1607 : vector<1x16xf32>
    %c2_678 = arith.constant 2 : index
    %c41_679 = arith.constant 41 : index
    %1609 = memref.load %arg16[%c2_678, %c41_679] : memref<3x99xf32, #tpu.memory_space<smem>>
    %1610 = vector.broadcast %1609 : f32 to vector<1x16xf32>
    %1611 = arith.mulf %1240, %1610 : vector<1x16xf32>
    %1612 = arith.addf %1604, %1611 : vector<1x16xf32>
    %c2_680 = arith.constant 2 : index
    %c90_681 = arith.constant 90 : index
    %1613 = memref.load %arg16[%c2_680, %c90_681] : memref<3x99xf32, #tpu.memory_space<smem>>
    %1614 = vector.broadcast %1613 : f32 to vector<1x16xf32>
    %1615 = arith.mulf %1245, %1614 : vector<1x16xf32>
    %1616 = arith.addf %1608, %1615 : vector<1x16xf32>
    %1617 = arith.addf %1612, %1616 : vector<1x16xf32>
    %cst_682 = arith.constant 0.000000e+00 : f32
    %1618 = vector.broadcast %cst_682 : f32 to vector<1x8xf32>
    %1619 = vector.extract_strided_slice %1617 {offsets = [0, 8], sizes = [1, 8], strides = [1, 1]} : vector<1x16xf32> to vector<1x8xf32>
    %1620 = tpu.concatenate %1619, %1618 in 1 : vector<1x8xf32>, vector<1x8xf32> -> vector<1x16xf32>
    %1621 = arith.addf %1558, %1620 : vector<1x16xf32>
    %cst_683 = arith.constant 0.000000e+00 : f32
    %1622 = vector.broadcast %cst_683 : f32 to vector<1x16xf32>
    %cst_684 = arith.constant 0.000000e+00 : f32
    %1623 = vector.broadcast %cst_684 : f32 to vector<1x16xf32>
    %c2_685 = arith.constant 2 : index
    %c42_686 = arith.constant 42 : index
    %1624 = memref.load %arg16[%c2_685, %c42_686] : memref<3x99xf32, #tpu.memory_space<smem>>
    %1625 = vector.broadcast %1624 : f32 to vector<1x16xf32>
    %1626 = arith.mulf %1180, %1625 : vector<1x16xf32>
    %1627 = arith.addf %1622, %1626 : vector<1x16xf32>
    %c2_687 = arith.constant 2 : index
    %c91_688 = arith.constant 91 : index
    %1628 = memref.load %arg16[%c2_687, %c91_688] : memref<3x99xf32, #tpu.memory_space<smem>>
    %1629 = vector.broadcast %1628 : f32 to vector<1x16xf32>
    %1630 = arith.mulf %1185, %1629 : vector<1x16xf32>
    %1631 = arith.addf %1623, %1630 : vector<1x16xf32>
    %c2_689 = arith.constant 2 : index
    %c43_690 = arith.constant 43 : index
    %1632 = memref.load %arg16[%c2_689, %c43_690] : memref<3x99xf32, #tpu.memory_space<smem>>
    %1633 = vector.broadcast %1632 : f32 to vector<1x16xf32>
    %1634 = arith.mulf %1192, %1633 : vector<1x16xf32>
    %1635 = arith.addf %1627, %1634 : vector<1x16xf32>
    %c2_691 = arith.constant 2 : index
    %c92_692 = arith.constant 92 : index
    %1636 = memref.load %arg16[%c2_691, %c92_692] : memref<3x99xf32, #tpu.memory_space<smem>>
    %1637 = vector.broadcast %1636 : f32 to vector<1x16xf32>
    %1638 = arith.mulf %1197, %1637 : vector<1x16xf32>
    %1639 = arith.addf %1631, %1638 : vector<1x16xf32>
    %c2_693 = arith.constant 2 : index
    %c44_694 = arith.constant 44 : index
    %1640 = memref.load %arg16[%c2_693, %c44_694] : memref<3x99xf32, #tpu.memory_space<smem>>
    %1641 = vector.broadcast %1640 : f32 to vector<1x16xf32>
    %1642 = arith.mulf %1204, %1641 : vector<1x16xf32>
    %1643 = arith.addf %1635, %1642 : vector<1x16xf32>
    %c2_695 = arith.constant 2 : index
    %c93_696 = arith.constant 93 : index
    %1644 = memref.load %arg16[%c2_695, %c93_696] : memref<3x99xf32, #tpu.memory_space<smem>>
    %1645 = vector.broadcast %1644 : f32 to vector<1x16xf32>
    %1646 = arith.mulf %1209, %1645 : vector<1x16xf32>
    %1647 = arith.addf %1639, %1646 : vector<1x16xf32>
    %c2_697 = arith.constant 2 : index
    %c45_698 = arith.constant 45 : index
    %1648 = memref.load %arg16[%c2_697, %c45_698] : memref<3x99xf32, #tpu.memory_space<smem>>
    %1649 = vector.broadcast %1648 : f32 to vector<1x16xf32>
    %1650 = arith.mulf %1168, %1649 : vector<1x16xf32>
    %1651 = arith.addf %1643, %1650 : vector<1x16xf32>
    %c2_699 = arith.constant 2 : index
    %c94_700 = arith.constant 94 : index
    %1652 = memref.load %arg16[%c2_699, %c94_700] : memref<3x99xf32, #tpu.memory_space<smem>>
    %1653 = vector.broadcast %1652 : f32 to vector<1x16xf32>
    %1654 = arith.mulf %1170, %1653 : vector<1x16xf32>
    %1655 = arith.addf %1647, %1654 : vector<1x16xf32>
    %c2_701 = arith.constant 2 : index
    %c46_702 = arith.constant 46 : index
    %1656 = memref.load %arg16[%c2_701, %c46_702] : memref<3x99xf32, #tpu.memory_space<smem>>
    %1657 = vector.broadcast %1656 : f32 to vector<1x16xf32>
    %1658 = arith.mulf %1216, %1657 : vector<1x16xf32>
    %1659 = arith.addf %1651, %1658 : vector<1x16xf32>
    %c2_703 = arith.constant 2 : index
    %c95_704 = arith.constant 95 : index
    %1660 = memref.load %arg16[%c2_703, %c95_704] : memref<3x99xf32, #tpu.memory_space<smem>>
    %1661 = vector.broadcast %1660 : f32 to vector<1x16xf32>
    %1662 = arith.mulf %1221, %1661 : vector<1x16xf32>
    %1663 = arith.addf %1655, %1662 : vector<1x16xf32>
    %c2_705 = arith.constant 2 : index
    %c47_706 = arith.constant 47 : index
    %1664 = memref.load %arg16[%c2_705, %c47_706] : memref<3x99xf32, #tpu.memory_space<smem>>
    %1665 = vector.broadcast %1664 : f32 to vector<1x16xf32>
    %1666 = arith.mulf %1228, %1665 : vector<1x16xf32>
    %1667 = arith.addf %1659, %1666 : vector<1x16xf32>
    %c2_707 = arith.constant 2 : index
    %c96_708 = arith.constant 96 : index
    %1668 = memref.load %arg16[%c2_707, %c96_708] : memref<3x99xf32, #tpu.memory_space<smem>>
    %1669 = vector.broadcast %1668 : f32 to vector<1x16xf32>
    %1670 = arith.mulf %1233, %1669 : vector<1x16xf32>
    %1671 = arith.addf %1663, %1670 : vector<1x16xf32>
    %c2_709 = arith.constant 2 : index
    %c48_710 = arith.constant 48 : index
    %1672 = memref.load %arg16[%c2_709, %c48_710] : memref<3x99xf32, #tpu.memory_space<smem>>
    %1673 = vector.broadcast %1672 : f32 to vector<1x16xf32>
    %1674 = arith.mulf %1240, %1673 : vector<1x16xf32>
    %1675 = arith.addf %1667, %1674 : vector<1x16xf32>
    %c2_711 = arith.constant 2 : index
    %c97_712 = arith.constant 97 : index
    %1676 = memref.load %arg16[%c2_711, %c97_712] : memref<3x99xf32, #tpu.memory_space<smem>>
    %1677 = vector.broadcast %1676 : f32 to vector<1x16xf32>
    %1678 = arith.mulf %1245, %1677 : vector<1x16xf32>
    %1679 = arith.addf %1671, %1678 : vector<1x16xf32>
    %1680 = arith.addf %1675, %1679 : vector<1x16xf32>
    %cst_713 = arith.constant 0.000000e+00 : f32
    %1681 = vector.broadcast %cst_713 : f32 to vector<1x12xf32>
    %1682 = vector.extract_strided_slice %1680 {offsets = [0, 12], sizes = [1, 4], strides = [1, 1]} : vector<1x16xf32> to vector<1x4xf32>
    %1683 = tpu.concatenate %1682, %1681 in 1 : vector<1x4xf32>, vector<1x12xf32> -> vector<1x16xf32>
    %1684 = arith.addf %1621, %1683 : vector<1x16xf32>
    %c2_714 = arith.constant 2 : index
    %c98_715 = arith.constant 98 : index
    %1685 = memref.load %arg16[%c2_714, %c98_715] : memref<3x99xf32, #tpu.memory_space<smem>>
    %1686 = vector.broadcast %1685 : f32 to vector<1x16xf32>
    %1687 = arith.addf %1684, %1686 : vector<1x16xf32>
    %1688 = arith.negf %1687 : vector<1x16xf32>
    %1689 = math.exp %1688 : vector<1x16xf32>
    %cst_716 = arith.constant 1.000000e+00 : f32
    %1690 = vector.broadcast %cst_716 : f32 to vector<1x16xf32>
    %1691 = arith.addf %1690, %1689 : vector<1x16xf32>
    %1692 = arith.divf %1690, %1691 : vector<1x16xf32>
    %1693 = vector.broadcast %1692 : vector<1x16xf32> to vector<64x16xf32>
    %1694 = arith.mulf %1164, %1693 : vector<64x16xf32>
    %cst_717 = arith.constant dense<0.000000e+00> : vector<1x64xf32>
    %1695 = tpu.matmul %1692, %1164, %cst_717 {dimension_numbers = #tpu.dot_dimension_numbers<[1], [1], [0], [0], [0, 0, 1, 0], [], []>} : vector<1x16xf32>, vector<64x16xf32>, vector<1x64xf32> -> vector<1x64xf32>
    %cst_718 = arith.constant 6.250000e-02 : f32
    %1696 = vector.broadcast %cst_718 : f32 to vector<1x64xf32>
    %1697 = arith.mulf %1695, %1696 : vector<1x64xf32>
    %c0_719 = arith.constant 0 : index
    %c0_720 = arith.constant 0 : index
    %c0_721 = arith.constant 0 : index
    %1698 = vector.load %arg23[%c0_719, %c0_720, %c0_721] : memref<1x64x16xf32, #tpu.memory_space<vmem>>, vector<1x64x16xf32>
    %1699 = vector.shape_cast %1698 : vector<1x64x16xf32> to vector<64x16xf32>
    %1700 = vector.shape_cast %1694 : vector<64x16xf32> to vector<1x64x16xf32>
    tpu.vector_store %arg23[%c0_719, %c0_720, %c0_721], %1700 {strides = array<i32>} : memref<1x64x16xf32, #tpu.memory_space<vmem>>, vector<1x64x16xf32>,
    %cst_722 = arith.constant 0.000000e+00 : f32
    %1701 = vector.broadcast %cst_722 : f32 to vector<1x16xf32>
    %1702 = tpu.concatenate %563, %1130, %1697, %1701 in 1 : vector<1x16xf32>, vector<1x32xf32>, vector<1x64xf32>, vector<1x16xf32> -> vector<1x128xf32>
    %1703 = arith.truncf %1702 : vector<1x128xf32> to vector<1x128xbf16>
    %c0_723 = arith.constant 0 : index
    %c0_724 = arith.constant 0 : index
    %1704 = vector.load %arg17[%c0_723, %c0_724] : memref<128x1024xbf16, #tpu.memory_space<vmem>>, vector<128x1024xbf16>
    %cst_725 = arith.constant dense<0.000000e+00> : vector<1x1024xf32>
    %1705 = tpu.matmul %1703, %1704, %cst_725 {dimension_numbers = #tpu.dot_dimension_numbers<[1], [0], [0], [1], [0, 0, 1, 1], [], []>} : vector<1x128xbf16>, vector<128x1024xbf16>, vector<1x1024xf32> -> vector<1x1024xf32>
    %c0_726 = arith.constant 0 : index
    %c0_727 = arith.constant 0 : index
    %1706 = vector.load %arg18[%c0_726, %c0_727] : memref<1x1024xf32, #tpu.memory_space<vmem>>, vector<1x1024xf32>
    %1707 = arith.addf %1705, %1706 : vector<1x1024xf32>
    %cst_728 = arith.constant 0.000000e+00 : f32
    %1708 = vector.broadcast %cst_728 : f32 to vector<1x1024xf32>
    %1709 = arith.maximumf %1707, %1708 : vector<1x1024xf32>
    %1710 = arith.truncf %1709 : vector<1x1024xf32> to vector<1x1024xbf16>
    %c0_729 = arith.constant 0 : index
    %c0_730 = arith.constant 0 : index
    %1711 = vector.load %arg19[%c0_729, %c0_730] : memref<1024x128xbf16, #tpu.memory_space<vmem>>, vector<1024x128xbf16>
    %cst_731 = arith.constant dense<0.000000e+00> : vector<1x128xf32>
    %1712 = tpu.matmul %1710, %1711, %cst_731 {dimension_numbers = #tpu.dot_dimension_numbers<[1], [0], [0], [1], [0, 0, 1, 1], [], []>} : vector<1x1024xbf16>, vector<1024x128xbf16>, vector<1x128xf32> -> vector<1x128xf32>
    %c0_732 = arith.constant 0 : index
    %c0_733 = arith.constant 0 : index
    %1713 = vector.load %arg20[%c0_732, %c0_733] : memref<1x128xf32, #tpu.memory_space<vmem>>, vector<1x128xf32>
    %1714 = arith.addf %1712, %1713 : vector<1x128xf32>
    %1715 = arith.mulf %1714, %1714 : vector<1x128xf32>
    %cst_734 = arith.constant dense<0.000000e+00> : vector<1xf32>
    %1716 = vector.multi_reduction <add>, %1715, %cst_734 [1] : vector<1x128xf32> to vector<1xf32>
    %1717 = vector.shape_cast %1716 : vector<1xf32> to vector<1x1xf32>
    %1718 = math.sqrt %1717 : vector<1x1xf32>
    %cst_735 = arith.constant 9.99999996E-13 : f32
    %1719 = vector.broadcast %cst_735 : f32 to vector<1x1xf32>
    %1720 = arith.maximumf %1718, %1719 : vector<1x1xf32>
    %1721 = vector.broadcast %1720 : vector<1x1xf32> to vector<1x128xf32>
    %1722 = arith.divf %1714, %1721 : vector<1x128xf32>
    %c0_736 = arith.constant 0 : index
    %c0_737 = arith.constant 0 : index
    %c0_738 = arith.constant 0 : index
    %1723 = vector.load %arg24[%c0_736, %c0_737, %c0_738] : memref<1x1x128xf32, #tpu.memory_space<vmem>>, vector<1x1x128xf32>
    %1724 = vector.shape_cast %1723 : vector<1x1x128xf32> to vector<1x128xf32>
    %1725 = vector.shape_cast %1722 : vector<1x128xf32> to vector<1x1x128xf32>
    tpu.vector_store %arg24[%c0_736, %c0_737, %c0_738], %1725 {strides = array<i32>} : memref<1x1x128xf32, #tpu.memory_space<vmem>>, vector<1x1x128xf32>,
    return
  }
  func.func @transform_0(%arg0: i32) -> (i32, i32, i32) {
    %c0_i32 = arith.constant 0 : i32
    %c0_i32_0 = arith.constant 0 : i32
    %c0_i32_1 = arith.constant 0 : i32
    return %arg0, %c0_i32, %c0_i32_0 : i32, i32, i32
  }
  func.func @transform_1(%arg0: i32) -> (i32, i32, i32) {
    %c0_i32 = arith.constant 0 : i32
    %c0_i32_0 = arith.constant 0 : i32
    %c0_i32_1 = arith.constant 0 : i32
    return %arg0, %c0_i32, %c0_i32_0 : i32, i32, i32
  }
  func.func @transform_2(%arg0: i32) -> (i32, i32, i32) {
    %c0_i32 = arith.constant 0 : i32
    %c0_i32_0 = arith.constant 0 : i32
    %c0_i32_1 = arith.constant 0 : i32
    return %arg0, %c0_i32, %c0_i32_0 : i32, i32, i32
  }
  func.func @transform_3(%arg0: i32) -> (i32, i32) {
    %c0_i32 = arith.constant 0 : i32
    %c0_i32_0 = arith.constant 0 : i32
    %c0_i32_1 = arith.constant 0 : i32
    return %c0_i32, %c0_i32_0 : i32, i32
  }
  func.func @transform_4(%arg0: i32) -> (i32, i32) {
    %c0_i32 = arith.constant 0 : i32
    %c0_i32_0 = arith.constant 0 : i32
    %c0_i32_1 = arith.constant 0 : i32
    return %c0_i32, %c0_i32_0 : i32, i32
  }
  func.func @transform_5(%arg0: i32) -> (i32, i32) {
    %c0_i32 = arith.constant 0 : i32
    %c0_i32_0 = arith.constant 0 : i32
    %c0_i32_1 = arith.constant 0 : i32
    return %c0_i32, %c0_i32_0 : i32, i32
  }
  func.func @transform_6(%arg0: i32) -> (i32, i32) {
    %c0_i32 = arith.constant 0 : i32
    %c0_i32_0 = arith.constant 0 : i32
    %c0_i32_1 = arith.constant 0 : i32
    return %c0_i32, %c0_i32_0 : i32, i32
  }
  func.func @transform_7(%arg0: i32) -> (i32, i32) {
    %c0_i32 = arith.constant 0 : i32
    %c0_i32_0 = arith.constant 0 : i32
    %c0_i32_1 = arith.constant 0 : i32
    return %c0_i32, %c0_i32_0 : i32, i32
  }
  func.func @transform_8(%arg0: i32) -> (i32, i32) {
    %c0_i32 = arith.constant 0 : i32
    %c0_i32_0 = arith.constant 0 : i32
    %c0_i32_1 = arith.constant 0 : i32
    return %c0_i32, %c0_i32_0 : i32, i32
  }
  func.func @transform_9(%arg0: i32) -> (i32, i32) {
    %c0_i32 = arith.constant 0 : i32
    %c0_i32_0 = arith.constant 0 : i32
    %c0_i32_1 = arith.constant 0 : i32
    return %c0_i32, %c0_i32_0 : i32, i32
  }
  func.func @transform_10(%arg0: i32) -> (i32, i32) {
    %c0_i32 = arith.constant 0 : i32
    %c0_i32_0 = arith.constant 0 : i32
    %c0_i32_1 = arith.constant 0 : i32
    return %c0_i32, %c0_i32_0 : i32, i32
  }
  func.func @transform_11(%arg0: i32) -> (i32, i32) {
    %c0_i32 = arith.constant 0 : i32
    %c0_i32_0 = arith.constant 0 : i32
    %c0_i32_1 = arith.constant 0 : i32
    return %c0_i32, %c0_i32_0 : i32, i32
  }
  func.func @transform_12(%arg0: i32) -> (i32, i32) {
    %c0_i32 = arith.constant 0 : i32
    %c0_i32_0 = arith.constant 0 : i32
    %c0_i32_1 = arith.constant 0 : i32
    return %c0_i32, %c0_i32_0 : i32, i32
  }
  func.func @transform_13(%arg0: i32) -> (i32, i32) {
    %c0_i32 = arith.constant 0 : i32
    %c0_i32_0 = arith.constant 0 : i32
    %c0_i32_1 = arith.constant 0 : i32
    return %c0_i32, %c0_i32_0 : i32, i32
  }
  func.func @transform_14(%arg0: i32) -> (i32, i32) {
    %c0_i32 = arith.constant 0 : i32
    %c0_i32_0 = arith.constant 0 : i32
    %c0_i32_1 = arith.constant 0 : i32
    return %c0_i32, %c0_i32_0 : i32, i32
  }
  func.func @transform_15(%arg0: i32) -> (i32, i32) {
    %c0_i32 = arith.constant 0 : i32
    %c0_i32_0 = arith.constant 0 : i32
    %c0_i32_1 = arith.constant 0 : i32
    return %c0_i32, %c0_i32_0 : i32, i32
  }
  func.func @transform_16(%arg0: i32) -> (i32, i32) {
    %c0_i32 = arith.constant 0 : i32
    %c0_i32_0 = arith.constant 0 : i32
    %c0_i32_1 = arith.constant 0 : i32
    return %c0_i32, %c0_i32_0 : i32, i32
  }
  func.func @transform_17(%arg0: i32) -> (i32, i32) {
    %c0_i32 = arith.constant 0 : i32
    %c0_i32_0 = arith.constant 0 : i32
    %c0_i32_1 = arith.constant 0 : i32
    return %c0_i32, %c0_i32_0 : i32, i32
  }
  func.func @transform_18(%arg0: i32) -> (i32, i32) {
    %c0_i32 = arith.constant 0 : i32
    %c0_i32_0 = arith.constant 0 : i32
    %c0_i32_1 = arith.constant 0 : i32
    return %c0_i32, %c0_i32_0 : i32, i32
  }
  func.func @transform_19(%arg0: i32) -> (i32, i32) {
    %c0_i32 = arith.constant 0 : i32
    %c0_i32_0 = arith.constant 0 : i32
    %c0_i32_1 = arith.constant 0 : i32
    return %c0_i32, %c0_i32_0 : i32, i32
  }
  func.func @transform_20(%arg0: i32) -> (i32, i32, i32) {
    %c0_i32 = arith.constant 0 : i32
    %c0_i32_0 = arith.constant 0 : i32
    %c0_i32_1 = arith.constant 0 : i32
    return %arg0, %c0_i32, %c0_i32_0 : i32, i32, i32
  }
  func.func @transform_21(%arg0: i32) -> (i32, i32, i32) {
    %c0_i32 = arith.constant 0 : i32
    %c0_i32_0 = arith.constant 0 : i32
    %c0_i32_1 = arith.constant 0 : i32
    return %arg0, %c0_i32, %c0_i32_0 : i32, i32, i32
  }
  func.func @transform_22(%arg0: i32) -> (i32, i32, i32) {
    %c0_i32 = arith.constant 0 : i32
    %c0_i32_0 = arith.constant 0 : i32
    %c0_i32_1 = arith.constant 0 : i32
    return %arg0, %c0_i32, %c0_i32_0 : i32, i32, i32
  }
  func.func @transform_23(%arg0: i32) -> (i32, i32, i32) {
    %c0_i32 = arith.constant 0 : i32
    %c0_i32_0 = arith.constant 0 : i32
    %c0_i32_1 = arith.constant 0 : i32
    return %arg0, %c0_i32, %c0_i32_0 : i32, i32, i32
  }
}

</mosaic_0001>

<bundles_post_ra>
// kernel: iris_encoder_forward.1
= control target key start
LH: loop header
LB: loop body
LE: loop exit
PB: predicated region body
PF: predicated region fallthrough
CT: control target
= control target key end

     0   :  { %s10530_s0 = inlined_call_operand.vmem [shape: f32[2,16,256], index: 0, kind: input, shape index: {}]   ;;  %s10531_s1 = inlined_call_operand.vmem [shape: f32[2,32,64], index: 1, kind: input, shape index: {}]   ;;  %s10532_s2 = inlined_call_operand.vmem [shape: f32[2,64,16], index: 2, kind: input, shape index: {}]   ;;  %s10533_s3 = inlined_call_operand.vmem [shape: f32[8,16], index: 3, kind: input, shape index: {}]   ;;  %s10534_s4 = inlined_call_operand.vmem [shape: f32[8,1], index: 4, kind: input, shape index: {}]   ;;  %s10535_s5 = inlined_call_operand.vmem [shape: f32[16,8], index: 5, kind: input, shape index: {}]   ;;  %s10536_s6 = inlined_call_operand.vmem [shape: f32[16,1], index: 6, kind: input, shape index: {}]   ;;  %s10537_s7 = inlined_call_operand.vmem [shape: f32[8,32], index: 7, kind: input, shape index: {}]   ;;  %s10538_s8 = inlined_call_operand.vmem [shape: f32[8,1], index: 8, kind: input, shape index: {}]   ;;  %s10539_s9 = inlined_call_operand.vmem [shape: f32[32,8], index: 9, kind: input, shape index: {}]   ;;  %s10540_s10 = inlined_call_operand.vmem [shape: f32[32,1], index: 10, kind: input, shape index: {}]   ;;  %s10541_s11 = inlined_call_operand.vmem [shape: f32[8,64], index: 11, kind: input, shape index: {}]   ;;  %s10542_s12 = inlined_call_operand.vmem [shape: f32[8,1], index: 12, kind: input, shape index: {}]   ;;  %s10543_s13 = inlined_call_operand.vmem [shape: f32[64,8], index: 13, kind: input, shape index: {}]   ;;  %s10544_s14 = inlined_call_operand.vmem [shape: f32[64,1], index: 14, kind: input, shape index: {}]   ;;  %s10545_s15 = inlined_call_operand.vmem [shape: f32[3,99], index: 15, kind: input, shape index: {}]   ;;  %s10546_s16 = inlined_call_operand.vmem [shape: bf16[128,1024], index: 16, kind: input, shape index: {}]   ;;  %s10547_s17 = inlined_call_operand.vmem [shape: f32[1,1024], index: 17, kind: input, shape index: {}]   ;;  %s10548_s18 = inlined_call_operand.vmem [shape: bf16[1024,128], index: 18, kind: input, shape index: {}]   ;;  %s10549_s19 = inlined_call_operand.vmem [shape: f32[1,128], index: 19, kind: input, shape index: {}]   ;;  %s10550_s20 = inlined_call_operand.vmem [shape: f32[2,16,256], index: 20, kind: output, shape index: {0}]   ;;  %s10551_s21 = inlined_call_operand.vmem [shape: f32[2,32,64], index: 21, kind: output, shape index: {1}]   ;;  %s10552_s22 = inlined_call_operand.vmem [shape: f32[2,64,16], index: 22, kind: output, shape index: {2}]   ;;  %s10553_s23 = inlined_call_operand.hbm [shape: f32[2,1,128], index: 23, kind: output, shape index: {3}]  }
   0x1   :  { %10911 = sst [smem:[#allocation136_spill]] %s10530_s0 }
   0x2   :  { %10912 = sst [smem:[#allocation137_spill]] %s10531_s1 }
   0x3   :  { %10913 = sst [smem:[#allocation138_spill]] %s10532_s2 }
   0x4   :  { %10914 = sst [smem:[#allocation139_spill]] %s10533_s3 }
   0x5   :  { %10915 = sst [smem:[#allocation140_spill]] %s10534_s4 }
   0x6   :  { %10916 = sst [smem:[#allocation141_spill]] %s10535_s5 }
   0x7   :  { %10917 = sst [smem:[#allocation142_spill]] %s10536_s6 }
   0x8   :  { %10918 = sst [smem:[#allocation143_spill]] %s10537_s7 }
   0x9   :  { %10919 = sst [smem:[#allocation144_spill]] %s10538_s8 }
   0xa   :  { %10920 = sst [smem:[#allocation145_spill]] %s10539_s9 }
   0xb   :  { %10921 = sst [smem:[#allocation146_spill]] %s10540_s10 }
   0xc   :  { %10922 = sst [smem:[#allocation147_spill]] %s10541_s11 }
   0xd   :  { %10923 = sst [smem:[#allocation148_spill]] %s10542_s12 }
   0xe   :  { %10924 = sst [smem:[#allocation149_spill]] %s10543_s13 }
   0xf   :  { %10925 = sst [smem:[#allocation150_spill]] %s10544_s14 }
  0x10   :  { %10926 = sst [smem:[#allocation151_spill]] %s10545_s15 }
  0x11   :  { %10927 = sst [smem:[#allocation152_spill]] %s10546_s16 }
  0x12   :  { %10928 = sst [smem:[#allocation153_spill]] %s10547_s17 }
  0x13   :  { %10929 = sst [smem:[#allocation154_spill]] %s10548_s18 }
  0x14   :  { %10930 = sst [smem:[#allocation155_spill]] %s10549_s19 }
  0x15   :  { %10931 = sst [smem:[#allocation156_spill]] %s10550_s20 }
  0x16   :  { %10932 = sst [smem:[#allocation157_spill]] %s10551_s21 }
  0x17   :  { %10933 = sst [smem:[#allocation158_spill]] %s10552_s22 }
  0x18   :  { %10934 = sst [smem:[#allocation159_spill]] %s10553_s23 }
  0x19   :  { %29 = vsyncpa [#allocation4], 0 }
  0x1a   :  { %30 = vsyncpa [#allocation3], 0 }
  0x1b   :  { %32 = vsyncpa [#allocation3 + $0x1], 0  ;;  %s6859_s4 = smov 0   ;;  %s6861_s30 = smov 0  }
  0x1c   :  { %s6863_s24 = smov 0   ;;  %s6865_s25 = smov 0  }
  0x1d LB: > { %10935 = sst [smem:[#allocation8_spill]] %s6699_s4  ;;  %s6880_s5 = sadd.s32 4294967295, %s6711_s25   ;;  %s6711_s25 = sphi %s6865_s25, %s12038_s25   ;;  %s6707_s24 = sphi %s6863_s24, %s12041_s24   ;;  %s6703_s30 = sphi %s6861_s30, %s12040_s30   ;;  %s6699_s4 = sphi %s6859_s4, %s12039_s4  }
  0x1e   : > { %10936 = sst [smem:[#allocation9_spill]] %s6703_s30  ;;  %s5615_s1 = sadd.s32 4294967294, %s6711_s25  }
  0x1f   : > { %10937 = sst [smem:[#allocation10_spill]] %s6707_s24  ;;  %s6884_s26 = sadd.s32 1, %s6711_s25  }
  0x20   : > { %10938 = sst [smem:[#allocation11_spill]] %s6711_s25  ;;  %s558_s2 = sadd.s32 1, %s6707_s24 }
  0x21   : > { %10939 = sst [smem:[#allocation12_spill]] %s6880_s5  ;;  %s555_s6 = ssub.s32 %s6711_s25, %s6884_s26 }
  0x22   : > { %10940 = sst [smem:[#allocation13_spill]] %s6884_s26  ;;  %p568_p0 = scmp.ne.s32.totalorder %s6707_s24, %s6703_s30 }
  0x23   : > { %p556_p1 = scmp.eq.s32.totalorder %s555_s6, 0  ;;  %p569_p2 = scmp.eq.s32.totalorder %s6880_s5, 1 }
  0x24   : > { %p574_p3 = scmp.ne.s32.totalorder %s6703_s30, %s6699_s4  ;;  %p575_p4 = scmp.eq.s32.totalorder %s5615_s1, 1 }
  0x25   : > { %s6895_s27 = scalar_select %p556_p1, %s6707_s24, %s558_s2  }
  0x26   : > { %p6897_p5 = por %p569_p2, %p568_p0  ;;  %p6901_p6 = por %p575_p4, %p574_p3 }
  0x27   : > { %10941 = sst [smem:[#allocation14_spill]] %s6895_s27  ;;  %p5616_p7 = scmp.ge.s32.totalorder %s6711_s25, 1 }
  0x28   : > { %s10942_s7 = scalar_select %p6897_p5, 1, 0 }
  0x29   : > { %s10944_s28 = scalar_select %p6901_p6, 1, 0 }
  0x2a   : > { %10943 = sst [smem:[#allocation15_spill]] %s10942_s7  ;;  %p582_p8 = scmp.lt.s32.totalorder %s6711_s25, 3 }
  0x2b   : > { %10945 = sst [smem:[#allocation16_spill]] %s10944_s28  ;;  %p6420_p9 = scmp.eq.s32.totalorder %s6880_s5, 0 }
  0x2c   : > { %p6908_p10 = pnand %p5616_p7, %p582_p8  ;;  %s10947_s15 = sld [smem:[#allocation151_spill]] }
  0x2e   : > { %p6412_p11 = pneg %p6908_p10 }
  0x30   : > { %p6413_p12 = pnand %p6420_p9, %p6412_p11 }
  0x32   : > { %s631_s1 = sshll.u32 %s10947_s15, 4  ;;  %p6632_p0 = pneg %p6413_p12  ;;  %s632_s1 = int_to_ptr.vmem [resolvable:$true] %s631_s1 }
  0x33   : > { %s6630_s2 = scalar_lea.vmem %s632_s1, 64  ;;  %p6638_p3 = scmp.lt.s32.totalorder %s632_s1, %s632_s1 }
  0x34   : > { %p6631_p13 = scmp.ne.s32.totalorder %s632_s1, %s6630_s2  ;;  %p6639_p4 = scmp.lt.s32.totalorder %s6630_s2, %s6630_s2 }
  0x36   : > { %p6633_p1 = pnand %p6632_p0, %p6631_p13  ;;  %p6640_p7 = por %p6639_p4, %p6638_p3 }
  0x38   : > { %p6634_p2 = pneg %p6633_p1 }
  0x3a   : > { %p6641_p8 = pnand %p6640_p7, %p6634_p2 }
  0x3c   : > { %6644 = shalt.err (!%p6641_p8)
}
  0x3d   : > { %s6713_s6 = smov [#allocation2]   ;;  %680 = sbr.rel (%p6908_p10) target bundleno = 4375 (0x1117), region = 100 }
  0x3e   : > { %6415 = dma.vmem_to_smem (!%p6413_p12), %s632_s1, 64, %s6713_s6, [#allocation4]  }
  0x44   : > { %6690 = dma.done.wait (%p6420_p9), [#allocation4], 64  }
  0x45   : > { %6692 = vsyncadd (%p6420_p9), [#allocation4], 4294967232 }
  0x46   : > { %686 = sfence }
  0x47   : > { %p769_p11 = scmp.lt.s32.totalorder %s6880_s5, 1  ;;  %s10950_s29 = sld [smem:[#allocation136_spill]]  ;;  %v10652_v8 = vmov 0.0|0.0   ;;  %vm10709_vm0 = vmmov 0   ;;  %v10650_v9 = vmov 0.0   ;;  %v10646_v11 = vmov 0  }
  0x48   : > { %6357 = vmatprep.subr.bf16.mxu0 %v10652_v8  ;;  %6267 = vmatprep.mubr.msk.f32.mxu0 %vm10709_vm0, %v10650_v9  ;;  %vm824_vm1 = vcmask 7168   ;;  %s10952_s2 = sld [smem:[#allocation139_spill]]  ;;  %vm10713_vm2 = vcmask 130048   ;;  %s10953_s27 = sld [smem:[#allocation141_spill]]  ;;  %vm10712_vm3 = vcmask 64512   ;;  %vm10696_vm4 = vcmask 523264  }
  0x49   : > { %s6927_s3 = scalar_select %p769_p11, %s6880_s5, 1  ;;  %6480 = vset.pattern.permute.xlu0 %v10646_v11  ;;  %6481 = vset.pattern.permute.xlu1 %v10646_v11  ;;  %vm1402_vm5 = vcmask 261120   ;;  %vm1078_vm6 = vcmask 23552   ;;  %vm1103_vm9 = vcmask 15360   ;;  %vm1148_vm14 = vcmask 1039360  }
  0x4a   : > { %s10955_s28 = sld [smem:[#allocation137_spill]]  ;;  %s10957_s15 = sld [smem:[#allocation143_spill]] }
  0x4b   : > { %10948 = sst [smem:[#allocation17_spill]] %s6927_s3  ;;  %s6930_s0 = sshll.u32 %s6927_s3, 5 }
  0x4c   : > { %10949 = sst [smem:[#allocation18_spill]] %s6930_s0  ;;  %s10563_s24 = smov 2  }
  0x4d   : > { %s773_s6 = scalar_lea.vmem %s10950_s29, %s6930_s0  ;;  %s10951_s29 = sld [smem:[#allocation140_spill]] }
  0x4e   : > { %v6936_v0 = vld [vmem:[%s773_s6] sm:$0xff]  ;;  %v6938_v1 = vld [vmem:[%s773_s6 + $0x8] sm:$0xff]  ;;  %v6940_v2 = vld [vmem:[%s773_s6 + $0x10] sm:$0xff]  ;;  %s10561_s26 = smov 1   ;;  %s10571_s1 = smov 126  }
  0x4f   : > { %v810_v3 = vadd.f32 %v6938_v1, %v6936_v0  ;;  %v818_v4 = vmax.f32 %v6936_v0, %v6938_v1  ;;  %v6946_v5 = vld [vmem:[%s773_s6 + $0x18] sm:$0xff]  ;;  %v804_v21 = vld [vmem:[%s10952_s2] sm:$0xff]  ;;  %s10954_s6 = sld [smem:[#allocation142_spill]]  ;;  %v807_v30 = vld [vmem:[%s10953_s27 + $0x8] sm:$0xff]  ;;  %s10575_s2 = smov 125  }
  0x50   : > { %v813_v6 = vadd.f32 %v6946_v5, %v6940_v2  ;;  %v821_v7 = vmax.f32 %v6940_v2, %v6946_v5  ;;  %v806_v22 = vld [vmem:[%s10953_s27] sm:$0xff]  ;;  %s6987_s4 = scalar_lea.vmem %s10955_s28, %s6930_s0  ;;  %s10567_s28 = smov 127  }
  0x51   : > { %811 = vadd.xlane.f32.xlu0 %v810_v3  ;;  %819 = vmax.xlane.f32.xlu1 %v818_v4  ;;  %10956 = sst [smem:[#allocation19_spill]] %s6987_s4  ;;  %v1996_v31 = vld [vmem:[%s6987_s4 + $0x8] sm:$0xff]  ;;  %v1998_v33 = vld [vmem:[%s6987_s4 + $0x18] sm:$0xff]  ;;  %v1995_v42 = vld [vmem:[%s6987_s4] sm:$0xff]  ;;  %s7107_s27 = sld [smem:[#allocation2 + $0x1f]] }
  0x52   : > { %6272 = vmatprep.mubr.msk.f32.mxu1 %vm10712_vm3, %v806_v22  ;;  %v2013_v32 = vsel %vm10696_vm4, %v1996_v31, 0.0  ;;  %v2019_v34 = vsel %vm10696_vm4, %v1998_v33, 0.0  ;;  %v2035_v36 = vsel %vm10696_vm4, %v1998_v33, -inf  ;;  %v2010_v43 = vsel %vm10696_vm4, %v1995_v42, 0.0  ;;  %v1997_v46 = vld [vmem:[%s6987_s4 + $0x10] sm:$0xff]  ;;  %v1999_v22 = vld [vmem:[%s10957_s15] sm:$0xff] }
  0x53   : > { %v805_v10 = vld [vmem:[%s10951_s29] sm:$0xff]  ;;  %v2026_v44 = vsel %vm10696_vm4, %v1995_v42, -inf  ;;  %v2029_v45 = vsel %vm10696_vm4, %v1996_v31, -inf  ;;  %v2016_v47 = vsel %vm10696_vm4, %v1997_v46, 0.0  ;;  %v2032_v48 = vsel %vm10696_vm4, %v1997_v46, -inf  ;;  %s10565_s29 = smov 3  }
  0x54   : > { %s7095_s15 = sld [smem:[#allocation2 + $0x34]]  ;;  %s7111_s25 = sld [smem:[#allocation2 + $0x26]] }
  0x55   : > { %814 = vadd.xlane.f32.xlu0 %v813_v6  ;;  %822 = vmax.xlane.f32.xlu1 %v821_v7  ;;  %v808_v23 = vld [vmem:[%s10954_s6] sm:$0xff]  ;;  %v809_v24 = vld [vmem:[%s10954_s6 + $0x8] sm:$0xff]  ;;  %s7105_s6 = sld [smem:[#allocation2 + $0x42]]  ;;  %s7113_s23 = sld [smem:[#allocation2 + $0x57]] }
  0x56   : > { %s7117_s7 = sld [smem:[#allocation2 + $0x5e]]  ;;  %s7119_s5 = sld [smem:[#allocation2 + $0x18]] }
  0x57   : > { %s7121_s30 = sld [smem:[#allocation2 + $0x49]]  ;;  %s7125_s17 = sld [smem:[#allocation2 + $0x38]] }
  0x58   : > { %s7123_s19 = sld [smem:[#allocation2 + $0x31]]  ;;  %s7127_s18 = sld [smem:[#allocation2 + $0x3f]] }
  0x59   : > { %s7129_s16 = sld [smem:[#allocation2 + $0x46]]  ;;  %s7131_s22 = sld [smem:[#allocation2 + $0x4d]] }
  0x5a   : > { %s7133_s13 = sld [smem:[#allocation2 + $0x54]]  ;;  %s7135_s11 = sld [smem:[#allocation2 + $0x5b]] }
  0x5b   : > { %s7137_s21 = sld [smem:[#allocation2 + $0x32]]  ;;  %s7139_s12 = sld [smem:[#allocation2 + $0x39]] }
  0x5c   : > { %s7141_s14 = sld [smem:[#allocation2 + $0x40]]  ;;  %s7143_s4 = sld [smem:[#allocation2 + $0x47]] }
  0x5d   : > { %10962 = sst [smem:[#allocation24_spill]] %s7121_s30  ;;  %s7145_s3 = sld [smem:[#allocation2 + $0x4e]] }
  0x5e   : > { %10963 = sst [smem:[#allocation25_spill]] %s7123_s19  ;;  %s7149_s9 = sld [smem:[#allocation2 + $0x5c]] }
  0x5f   : > { %10964 = sst [smem:[#allocation26_spill]] %s7125_s17  ;;  %s7147_s20 = sld [smem:[#allocation2 + $0x55]] }
  0x60   : > { %10965 = sst [smem:[#allocation27_spill]] %s7127_s18  ;;  %s7151_s0 = sld [smem:[#allocation2 + $0x48]] }
  0x61   : > { %10966 = sst [smem:[#allocation28_spill]] %s7129_s16  ;;  %s7153_s8 = sld [smem:[#allocation2 + $0x4a]] }
  0x62   : > { %10967 = sst [smem:[#allocation29_spill]] %s7131_s22  ;;  %s7155_s10 = sld [smem:[#allocation2 + $0x33]] }
  0x63   : > { %10968 = sst [smem:[#allocation30_spill]] %s7133_s13 }
  0x64   : > { %10969 = sst [smem:[#allocation31_spill]] %s7135_s11  ;;  %s7157_s11 = sld [smem:[#allocation2 + $0x3a]] }
  0x65   : > { %10970 = sst [smem:[#allocation32_spill]] %s7137_s21  ;;  %s7159_s21 = sld [smem:[#allocation2 + $0x35]] }
  0x66   : > { %909 = vperm.xlu1 %6481, %v808_v23   ;;  %10971 = sst [smem:[#allocation33_spill]] %s7139_s12  ;;  %s7161_s12 = sld [smem:[#allocation2 + $0x3c]] }
  0x67   : > { %10972 = sst [smem:[#allocation34_spill]] %s7141_s14  ;;  %s7163_s14 = sld [smem:[#allocation2]] }
  0x68   : > { %10973 = sst [smem:[#allocation35_spill]] %s7143_s4 }
  0x69   : > { %10974 = sst [smem:[#allocation36_spill]] %s7145_s3  ;;  %s7165_s3 = sld [smem:[#allocation2 + $0x7]] }
  0x6a   : > { %914 = vperm.xlu1 %6481, %v809_v24   ;;  %10975 = sst [smem:[#allocation37_spill]] %s7147_s20 }
  0x6b   : > { %829 = vperm.xlu0 %6480, %v805_v10   ;;  %10976 = sst [smem:[#allocation38_spill]] %s7149_s9  ;;  %s7167_s9 = sld [smem:[#allocation2 + $0xe]] }
  0x6c   : > { %10977 = sst [smem:[#allocation39_spill]] %s7151_s0  ;;  %s7169_s0 = sld [smem:[#allocation2 + $0x15]] }
  0x6d   : > { %10978 = sst [smem:[#allocation40_spill]] %s7153_s8 }
  0x6e   : > { %10979 = sst [smem:[#allocation41_spill]] %s7155_s10  ;;  %s7171_s10 = sld [smem:[#allocation2 + $0x1c]] }
  0x6f   : > { %10980 = sst [smem:[#allocation42_spill]] %s7157_s11  ;;  %s7173_s11 = sld [smem:[#allocation2 + $0x23]] }
  0x70   : > { %10981 = sst [smem:[#allocation43_spill]] %s7159_s21  ;;  %s7175_s21 = sld [smem:[#allocation2 + $0x2a]] }
  0x71   : > { %10982 = sst [smem:[#allocation44_spill]] %s7161_s12  ;;  %s7332_s8 = sld [smem:[#allocation2 + $0x14]] }
  0x72   : > { %10983 = sst [smem:[#allocation45_spill]] %s7163_s14  ;;  %s7177_s14 = sld [smem:[#allocation2 + $0x36]] }
  0x73   : > { %10984 = sst [smem:[#allocation46_spill]] %s7165_s3  ;;  %s7179_s3 = sld [smem:[#allocation2 + $0x1]] }
  0x74   : > { %10985 = sst [smem:[#allocation47_spill]] %s7167_s9  ;;  %s7181_s12 = sld [smem:[#allocation2 + $0x8]] }
  0x75   : > { %10986 = sst [smem:[#allocation48_spill]] %s7169_s0  ;;  %s7186_s0 = sld [smem:[#allocation2 + $0xf]] }
  0x76   : > { %10987 = sst [smem:[#allocation49_spill]] %s7171_s10  ;;  %s7188_s10 = sld [smem:[#allocation2 + $0x16]] }
  0x77   : > { %10988 = sst [smem:[#allocation50_spill]] %s7173_s11  ;;  %s7190_s11 = sld [smem:[#allocation2 + $0x1d]] }
  0x78   : > { %10989 = sst [smem:[#allocation51_spill]] %s7175_s21  ;;  %s7192_s21 = sld [smem:[#allocation2 + $0x24]] }
  0x79   : > { %10990 = sst [smem:[#allocation52_spill]] %s7177_s14  ;;  %s7392_s9 = sld [smem:[#allocation2 + $0x22]] }
  0x7a   : > { %10991 = sst [smem:[#allocation53_spill]] %s7179_s3  ;;  %s7200_s3 = sld [smem:[#allocation2 + $0x3d]] }
  0x7b   : > { %10992 = sst [smem:[#allocation54_spill]] %s7181_s12  ;;  %s7197_s12 = sld [smem:[#allocation2 + $0x2b]] }
  0x7c   : > { %10994 = sst [smem:[#allocation56_spill]] %s7186_s0  ;;  %s7278_s0 = sld [smem:[#allocation2 + $0x44]] }
  0x7d   : > { %10995 = sst [smem:[#allocation57_spill]] %s7188_s10  ;;  %s7424_s14 = sld [smem:[#allocation2 + $0x5d]] }
  0x7e   : > { %10996 = sst [smem:[#allocation58_spill]] %s7190_s11  ;;  %s7205_s11 = sld [smem:[#allocation2 + $0x2]] }
  0x7f   : > { %10997 = sst [smem:[#allocation59_spill]] %s7192_s21  ;;  %s7207_s21 = sld [smem:[#allocation2 + $0x9]] }
  0x80   : > { %10999 = sst [smem:[#allocation61_spill]] %s7200_s3  ;;  %s11007_s3 = sld [smem:[#allocation34_spill]] }
  0x81   : > { %10998 = sst [smem:[#allocation60_spill]] %s7197_s12  ;;  %s7229_s12 = sld [smem:[#allocation2 + $0x25]] }
  0x82   : > { %s7235_s10 = sld [smem:[#allocation2 + $0x2c]]  ;;  %11034 = sst [smem:[#allocation82_spill]] %s7332_s8 }
  0x83   : > { %11056 = sst [smem:[#allocation96_spill]] %s7392_s9  ;;  %s7466_s9 = sld [smem:[#allocation2 + $0x2f]] }
  0x84   : > { %11000 = sst [smem:[#allocation62_spill]] %s7205_s11  ;;  %s7227_s11 = sld [smem:[#allocation2 + $0x1e]] }
  0x85   : > { %11001 = sst [smem:[#allocation63_spill]] %s7207_s21  ;;  %s11008_s21 = sld [smem:[#allocation36_spill]] }
  0x86   : > { %11070 = sst [smem:[#allocation103_spill]] %s7424_s14  ;;  %s11117_s14 = sld [smem:[#allocation39_spill]] }
  0x87   : > { %11011 = sst [smem:[#allocation67_spill]] %s7229_s12 }
  0x88   : > { %11013 = sst [smem:[#allocation68_spill]] %s7235_s10 }
  0x89   : > { %11080 = sst [smem:[#allocation111_spill]] %s7466_s9 }
  0x8a   : > { %2014 = vadd.xlane.f32.xlu0 %v2013_v32  ;;  %11009 = sst [smem:[#allocation66_spill]] %s7227_s11  ;;  %s11114_s9 = sld [smem:[#allocation38_spill]] }
  0x8e   : > { %2020 = vadd.xlane.f32.xlu0 %v2019_v34 }
  0x92   : > { %2036 = vmax.xlane.f32.xlu0 %v2035_v36 }
  0xde   : > { %v812_v12 = vpop.xlane.xlu0 %811  ;;  %v820_v13 = vpop.xlane.xlu1 %819 }
  0xdf   : > { %v816_v14 = vmul.f32 0.00390625, %v812_v12 }
  0xe1   : > { %v825_v18 = vsel %vm824_vm1, %v816_v14, %v820_v13 }
  0xe2   : > { %v815_v15 = vpop.xlane.xlu0 %814  ;;  %v823_v16 = vpop.xlane.xlu1 %822 }
  0xe3   : > { %v817_v17 = vmul.f32 0.00390625, %v815_v15 }
  0xe5   : > { %v826_v19 = vsel %vm824_vm1, %v817_v17, %v823_v16 }
  0xe6   : > { %v6358_v20 = vpack.c.bf16 %v826_v19, %v825_v18  ;;  %v910_v35 = vpop.permute.xlu1 %909 }
  0xe8   : > { %6359 = vmatpush3.bf16.msra.mxu0 %v6358_v20 }
  0xe9   : > { %6364 = vmatprep.subr.bf16.mxu0 %v10652_v8 }
  0xea   : > { %v830_v25 = vpop.permute.xlu0 %829  ;;  %v915_v40 = vpop.permute.xlu1 %914 }
  0xeb   : > { %6268 = vmatmul.mubr.msk.f32.vlgmr.msra.gmra.mrb[0].mxu0 %vm10713_vm2, %v804_v21 }
  0xec   : > { %6283 = vmatprep.mubr.msk.f32.mxu0 %vm10709_vm0, %v10650_v9 }
 0x117   : > { %v2015_v62 = vpop.xlane.xlu0 %2014 }
 0x118   : > { %v2023_v4 = vmul.f32 0.015625, %v2015_v62 }
 0x11b   : > { %v2021_v6 = vpop.xlane.xlu0 %2020 }
 0x11c   : > { %v2025_v14 = vmul.f32 0.015625, %v2021_v6  ;;  %v1632_v6 = vstv %s7107_s27  ;;  %s7358_s27 = sld [smem:[#allocation2 + $0x52]] }
 0x11f   : > { %v2037_v16 = vpop.xlane.xlu0 %2036 }
 0x120   : > { %v2041_v18 = vsel %vm824_vm1, %v2025_v14, %v2037_v16  ;;  %v1550_v16 = vstv %s7121_s30  ;;  %s7237_s30 = sld [smem:[#allocation2 + $0x4]] }
 0x122   : > { %11042 = sst [smem:[#allocation88_spill]] %s7358_s27  ;;  %s7376_s27 = sld [smem:[#allocation2 + $0x58]] }
 0x123   : > { %s11088_s10 = sld [smem:[#allocation88_spill]] }
 0x126   : > { %11015 = sst [smem:[#allocation69_spill]] %s7237_s30  ;;  %s7476_s30 = sld [smem:[#allocation2 + $0x4b]] }
 0x128   : > { %11049 = sst [smem:[#allocation93_spill]] %s7376_s27  ;;  %s7450_s27 = sld [smem:[#allocation2 + $0x5f]] }
 0x12e   : > { %11077 = sst [smem:[#allocation108_spill]] %s7450_s27  ;;  %s11105_s27 = sld [smem:[#allocation31_spill]] }
 0x1be   : > { %v902_v26 = vpop.f32.mrb[0].mxu0 }
 0x1bf   : > { %v903_v27 = vadd.f32 %v902_v26, %v830_v25  ;;  %v6269_v28 = vpop.f32.mrb[1].mxu0 }
 0x1c1   : > { %v906_v29 = vmax.f32 %v903_v27, 0.0 }
 0x1c3   : > { %6270 = vmatprep.subr.mxu1 %v906_v29 }
 0x1c4   : > { %6271 = vmatpush3.msra.mxu1 %v906_v29 }
 0x1c5   : > { %6273 = vmatmul.mubr.msk.f32.vlgmr.msra.gmra.mrb[0].mxu1 %vm10712_vm3, %v807_v30 }
 0x298   : > { %v6274_v37 = vpop.f32.mrb[0].mxu1 }
 0x299   : > { %v990_v38 = vpop.f32.mrb[1].mxu1  ;;  %v996_v41 = vadd.f32 %v6274_v37, %v915_v40 }
 0x29a   : > { %v991_v39 = vadd.f32 %v990_v38, %v910_v35 }
 0x29c   : > { %1001 = vrot.lane.b32.xlu1 %v991_v39, %s10567_s28 }
 0x2a0   : > { %1003 = vrot.lane.b32.xlu1 %v996_v41, %s10567_s28 }
 0x2c4   : > { %2011 = vadd.xlane.f32.xlu1 %v2010_v43 }
 0x2c8   : > { %2027 = vmax.xlane.f32.xlu1 %v2026_v44 }
 0x2cc   : > { %2030 = vmax.xlane.f32.xlu1 %v2029_v45 }
 0x2d0   : > { %2017 = vadd.xlane.f32.xlu1 %v2016_v47 }
 0x2d4   : > { %2033 = vmax.xlane.f32.xlu1 %v2032_v48 }
 0x30e   : > { %v1002_v49 = vpop.permute.xlu1 %1001 }
 0x30f   : > { %v1007_v50 = vadd.f32 %v1002_v49, %v991_v39 }
 0x311   : > { %v5636_v51 = vmul.f32 -1.442695, %v1007_v50 }
 0x312   : > { %v1004_v52 = vpop.permute.xlu1 %1003 }
 0x313   : > { %6546 = vpow2.f32 %v5636_v51  ;;  %v1008_v53 = vadd.f32 %v1004_v52, %v996_v41 }
 0x315   : > { %v5637_v54 = vmul.f32 -1.442695, %v1008_v53 }
 0x317   : > { %6548 = vpow2.f32 %v5637_v54 }
 0x31d   : > { %v6547_v55 = vpop.eup %6546 }
 0x31e   : > { %v1015_v56 = vadd.f32 1.0, %v6547_v55 }
 0x320   : > { %6550 = vrcp.f32 %v1015_v56 }
 0x321   : > { %v6549_v57 = vpop.eup %6548 }
 0x322   : > { %v1016_v58 = vadd.f32 1.0, %v6549_v57  ;;  %v10657_v57 = vlaneseq }
 0x324   : > { %6552 = vrcp.f32 %v1016_v58  ;;  %v7184_v58 = vand.u32 127, %v10657_v57 }
 0x326   : > { %10993 = vst [vmem:[#allocation55_spill] sm:$0xff] %v7184_v58 }
 0x32a   : > { %v6551_v59 = vpop.eup %6550 }
 0x32b   : > { %1023 = vperm.xlu1 %6481, %v6551_v59  }
 0x32e   : > { %v6553_v60 = vpop.eup %6552 }
 0x32f   : > { %1028 = vperm.xlu0 %6480, %v6553_v60   ;;  %v1254_v60 = vstv %s7095_s15  ;;  %s11006_s15 = sld [smem:[#allocation33_spill]] }
 0x351   : > { %v2012_v61 = vpop.xlane.xlu1 %2011 }
 0x352   : > { %v2022_v63 = vmul.f32 0.015625, %v2012_v61 }
 0x355   : > { %v2028_v3 = vpop.xlane.xlu1 %2027 }
 0x356   : > { %v2038_v7 = vsel %vm824_vm1, %v2022_v63, %v2028_v3  ;;  %v1452_v3 = vstv %s7105_s6  ;;  %s7408_s6 = sld [smem:[#allocation2 + $0x59]] }
 0x359   : > { %v2031_v10 = vpop.xlane.xlu1 %2030 }
 0x35a   : > { %v2039_v12 = vsel %vm824_vm1, %v2023_v4, %v2031_v10  ;;  %v1737_v10 = vstv %s7113_s23  ;;  %s7448_s23 = sld [smem:[#allocation2 + $0x5a]] }
 0x35b   : > { %v6365_v13 = vpack.c.bf16 %v2039_v12, %v2038_v7  ;;  %v1731_v7 = vstv %s7111_s25  ;;  %v1836_v12 = vstv %s7117_s7  ;;  %s7390_s25 = sld [smem:[#allocation2 + $0x21]]  ;;  %s7460_s7 = sld [smem:[#allocation2 + $0x60]] }
 0x35c   : > { %11062 = sst [smem:[#allocation99_spill]] %s7408_s6 }
 0x35d   : > { %v2018_v15 = vpop.xlane.xlu1 %2017  ;;  %6366 = vmatpush3.bf16.msra.mxu0 %v6365_v13  ;;  %v1067_v13 = vadd.s32 128, %v7184_v58 }
 0x35e   : > { %v2024_v17 = vmul.f32 0.015625, %v2018_v15  ;;  %6367 = vmatprep.subr.bf16.mxu0 %v10652_v8  ;;  %v1544_v15 = vstv %s7119_s5  ;;  %s11085_s5 = sld [smem:[#allocation82_spill]] }
 0x360   : > { %11076 = sst [smem:[#allocation107_spill]] %s7448_s23 }
 0x361   : > { %v2034_v19 = vpop.xlane.xlu1 %2033  ;;  %11054 = sst [smem:[#allocation24_spill]] %s7390_s25  ;;  %s11164_s23 = sld [smem:[#allocation50_spill]] }
 0x362   : > { %v2040_v20 = vsel %vm824_vm1, %v2024_v17, %v2034_v19  ;;  %v7222_v17 = vand.u32 15, %v7184_v58  ;;  %v1317_v19 = vstv %s7125_s17  ;;  %s7245_s17 = sld [smem:[#allocation2 + $0x41]]  ;;  %s11092_s25 = sld [smem:[#allocation24_spill]] }
 0x363   : > { %v6368_v21 = vpack.c.bf16 %v2041_v18, %v2040_v20  ;;  %v1218_v18 = vstv %s7123_s19  ;;  %v1416_v20 = vstv %s7127_s18  ;;  %s7243_s18 = sld [smem:[#allocation2 + $0xb]]  ;;  %s7294_s19 = sld [smem:[#allocation2 + $0x4f]] }
 0x364   : > { %vm1070_vm7 = vcmp.ge.s32.totalorder %v7222_v17, 3  ;;  %11079 = sst [smem:[#allocation110_spill]] %s7460_s7  ;;  %vm1097_vm10 = vcmp.ge.s32.totalorder %v7222_v17, 2  ;;  %vm1120_vm12 = vcmp.ge.s32.totalorder %v7222_v17, 1  ;;  %vm1142_vm4 = vcmp.lt.s32.totalorder %v7222_v17, 15 }
 0x365   : > { %6369 = vmatpush3.bf16.msra.mxu0 %v6368_v21  ;;  %v1514_v21 = vstv %s7129_s16  ;;  %s7315_s16 = sld [smem:[#allocation2 + $0x13]]  ;;  %s11113_s7 = sld [smem:[#allocation37_spill]]  ;;  %vm1165_vm2 = vcmp.lt.s32.totalorder %v7222_v17, 14 }
 0x366   : > { %6370 = vmatprep.subr.bf16.mxu0 %v10652_v8 }
 0x368   : > { %6284 = vmatmul.mubr.msk.f32.vlgmr.msra.gmra.mrb[2].mxu0 %vm1402_vm5, %v1999_v22  ;;  %v1602_v22 = vstv %s7131_s22  ;;  %11017 = sst [smem:[#allocation71_spill]] %s7245_s17  ;;  %s7310_s22 = sld [smem:[#allocation2 + $0x51]] }
 0x369   : > { %6302 = vmatprep.mubr.msk.f32.mxu0 %vm10709_vm0, %v10650_v9  ;;  %11016 = sst [smem:[#allocation70_spill]] %s7243_s18  ;;  %vm1171_vm0 = vcmask 1031168   ;;  %s11130_s17 = sld [smem:[#allocation41_spill]] }
 0x36a   : > { %11025 = sst [smem:[#allocation76_spill]] %s7294_s19  ;;  %s11112_s19 = sld [smem:[#allocation36_spill]] }
 0x36b   : > { %11030 = sst [smem:[#allocation79_spill]] %s7315_s16  ;;  %s7406_s16 = sld [smem:[#allocation2 + $0x53]] }
 0x36c   : > { %s11083_s12 = sld [smem:[#allocation79_spill]] }
 0x36e   : > { %11029 = sst [smem:[#allocation78_spill]] %s7310_s22  ;;  %s7334_s22 = sld [smem:[#allocation2 + $0x45]] }
 0x36f   : > { %s11084_s11 = sld [smem:[#allocation78_spill]] }
 0x370   : > { %11089 = sst [smem:[#allocation78_spill]] %s7476_s30  ;;  %s11106_s30 = sld [smem:[#allocation32_spill]] }
 0x374   : > { %11035 = sst [smem:[#allocation83_spill]] %s7334_s22  ;;  %s7422_s22 = sld [smem:[#allocation2 + $0x27]] }
 0x375   : > { %s11086_s6 = sld [smem:[#allocation83_spill]] }
 0x37a   : > { %11069 = sst [smem:[#allocation102_spill]] %s7422_s22  ;;  %s11134_s22 = sld [smem:[#allocation40_spill]] }
 0x3aa   : > { %v1024_v23 = vpop.permute.xlu1 %1023 }
 0x3ab   : > { %v7016_v25 = vmul.f32 %v1024_v23, %v6936_v0  ;;  %v7019_v26 = vmul.f32 %v1024_v23, %v6938_v1  ;;  %v1701_v23 = vstv %s7133_s13  ;;  %s7253_s13 = sld [smem:[#allocation2 + $0x43]] }
 0x3ad   : > { %10958 = vst [vmem:[#allocation20_spill] sm:$0xff] %v7016_v25  ;;  %10959 = vst [vmem:[#allocation21_spill] sm:$0xff] %v7019_v26 }
 0x3ae   : > { %v1029_v24 = vpop.permute.xlu0 %1028 }
 0x3af   : > { %v7022_v27 = vmul.f32 %v1029_v24, %v6940_v2  ;;  %v7025_v28 = vmul.f32 %v1029_v24, %v6946_v5 }
 0x3b1   : > { %10960 = vst [vmem:[#allocation22_spill] sm:$0xff] %v7022_v27  ;;  %10961 = vst [vmem:[#allocation23_spill] sm:$0xff] %v7025_v28  ;;  %v1051_v29 = vmax.f32 %v7016_v25, %v7022_v27  ;;  %v1058_v30 = vmax.f32 %v7019_v26, %v7025_v28  ;;  %v6360_v31 = vpack.c.bf16 %v7025_v28, %v7019_v26  ;;  %11020 = sst [smem:[#allocation73_spill]] %s7253_s13  ;;  %s7484_s13 = sld [smem:[#allocation2 + $0x1a]] }
 0x3b2   : > { %v6362_v0 = vpack.c.bf16 %v7022_v27, %v7016_v25  ;;  %v1035_v2 = vadd.f32 %v7022_v27, %v7016_v25  ;;  %v1042_v37 = vadd.f32 %v7025_v28, %v7019_v26 }
 0x3b3   : > { %v1052_v1 = vrot.slane %v1051_v29, 4  ;;  %v1059_v32 = vrot.slane %v1058_v30, 4  ;;  %6361 = vmatprep.subr.bf16.mxu1 %v6360_v31  ;;  %v10714_v31 = vstv %s11007_s3  ;;  %s7313_s3 = sld [smem:[#allocation2 + $0x12]] }
 0x3b4   : > { %6363 = vmatpush1.bf16.xpose.msra.mxu1 %v6362_v0  ;;  %v1036_v36 = vrot.slane %v1035_v2, 4  ;;  %v1043_v43 = vrot.slane %v1042_v37, 4  ;;  %v10716_v0 = vstv %s7143_s4  ;;  %s7262_s4 = sld [smem:[#allocation2 + $0x6]] }
 0x3b5   : > { %v1053_v5 = vmax.f32 %v1051_v29, %v1052_v1  ;;  %v1060_v33 = vmax.f32 %v1058_v30, %v1059_v32  ;;  %v10715_v30 = vstv %s11006_s15  ;;  %v10722_v1 = vstv %s11008_s21  ;;  %s7264_s15 = sld [smem:[#allocation2 + $0xc]]  ;;  %s7442_s21 = sld [smem:[#allocation2 + $0x29]] }
 0x3b6   : > { %v1037_v42 = vadd.f32 %v1036_v36, %v1035_v2  ;;  %v1044_v47 = vadd.f32 %v1043_v43, %v1042_v37  ;;  %v10723_v32 = vstv %s7147_s20  ;;  %s7297_s20 = sld [smem:[#allocation2 + $0x3e]] }
 0x3b7   : > { %v1054_v34 = vrot.slane %v1053_v5, 2  ;;  %v1061_v35 = vrot.slane %v1060_v33, 2  ;;  %11096 = sst [smem:[#allocation83_spill]] %s7484_s13  ;;  %s11107_s13 = sld [smem:[#allocation33_spill]] }
 0x3b8   : > { %v1038_v46 = vrot.slane %v1037_v42, 2  ;;  %v1045_v49 = vrot.slane %v1044_v47, 2 }
 0x3b9   : > { %v1055_v38 = vmax.f32 %v1053_v5, %v1054_v34  ;;  %v1062_v39 = vmax.f32 %v1060_v33, %v1061_v35  ;;  %v7255_v33 = vand.u32 15, %v1067_v13 }
 0x3ba   : > { %v1039_v48 = vadd.f32 %v1038_v46, %v1037_v42  ;;  %v1046_v51 = vadd.f32 %v1045_v49, %v1044_v47  ;;  %11022 = sst [smem:[#allocation74_spill]] %s7262_s4  ;;  %s7482_s4 = sld [smem:[#allocation2 + $0x19]] }
 0x3bb   : > { %v1056_v40 = vrot.slane %v1055_v38, 1  ;;  %v1063_v41 = vrot.slane %v1062_v39, 1  ;;  %11023 = sst [smem:[#allocation75_spill]] %s7264_s15  ;;  %vm1071_vm8 = vcmp.ge.s32.totalorder %v7255_v33, 3  ;;  %s11097_s15 = sld [smem:[#allocation99_spill]]  ;;  %vm1098_vm11 = vcmp.ge.s32.totalorder %v7255_v33, 2 }
 0x3bc   : > { %v1040_v50 = vrot.slane %v1039_v48, 1  ;;  %v1047_v53 = vrot.slane %v1046_v51, 1  ;;  %11026 = sst [smem:[#allocation77_spill]] %s7297_s20  ;;  %s7474_s20 = sld [smem:[#allocation2 + $0x61]]  ;;  %vm1121_vm13 = vcmp.ge.s32.totalorder %v7255_v33, 1  ;;  %vm1143_vm15 = vcmp.lt.s32.totalorder %v7255_v33, 15 }
 0x3bd   : > { %v7039_v44 = vmax.f32 %v1055_v38, %v1056_v40  ;;  %v7041_v45 = vmax.f32 %v1062_v39, %v1063_v41  ;;  %11075 = sst [smem:[#allocation106_spill]] %s7442_s21  ;;  %s11081_s8 = sld [smem:[#allocation77_spill]]  ;;  %vm1166_vm3 = vcmp.lt.s32.totalorder %v7255_v33, 14  ;;  %v11125_v25 = vstv %s11107_s13 }
 0x3be   : > { %v1041_v52 = vadd.f32 %v1040_v50, %v1039_v48  ;;  %v1048_v54 = vadd.f32 %v1047_v53, %v1046_v51  ;;  %s11136_s13 = sld [smem:[#allocation43_spill]]  ;;  %s11190_s21 = sld [smem:[#allocation62_spill]] }
 0x3bf   : > { %1089 = vrot.lane.b32.xlu1 %v7041_v45, %s10565_s29  ;;  %1087 = vrot.lane.b32.xlu0 %v7039_v44, %s10565_s29  ;;  %v7260_v36 = vmul.f32 %v1254_v60, %v7041_v45  ;;  %v7275_v39 = vmul.f32 %v1254_v60, %v7039_v44  ;;  %v7305_v49 = vmul.f32 %v1452_v3, %v7041_v45 }
 0x3c0   : > { %v7063_v55 = vmul.f32 0.0625, %v1041_v52  ;;  %v7069_v56 = vmul.f32 0.0625, %v1048_v54  ;;  %v7320_v52 = vmul.f32 %v1452_v3, %v7039_v44  ;;  %v7402_v11 = vmul.f32 %v1836_v12, %v7041_v45  ;;  %11095 = sst [smem:[#allocation82_spill]] %s7482_s4  ;;  %s11109_s4 = sld [smem:[#allocation34_spill]] }
 0x3c2   : > { %v7325_v53 = vmul.f32 %v1632_v6, %v7063_v55  ;;  %11060 = vst [vmem:[#allocation98_spill] sm:$0xff] %v7402_v11  ;;  %v7413_v8 = vmul.f32 %v1544_v15, %v7063_v55  ;;  %11087 = sst [smem:[#allocation79_spill]] %s7474_s20  ;;  %s11111_s20 = sld [smem:[#allocation35_spill]]  ;;  %v11142_v11 = vstv %s11117_s14 }
 0x3c3   : > { %1112 = vrot.lane.b32.xlu1 %v7041_v45, %s10563_s24  ;;  %1110 = vrot.lane.b32.xlu0 %v7039_v44, %s10563_s24 }
 0x3c4   : > { %11032 = vst [vmem:[#allocation80_spill] sm:$0xff] %v7325_v53  ;;  %11064 = vst [vmem:[#allocation100_spill] sm:$0xff] %v7413_v8 }
 0x3c7   : > { %1134 = vrot.lane.b32.xlu1 %v7041_v45, %s10561_s26  ;;  %1132 = vrot.lane.b32.xlu0 %v7039_v44, %s10561_s26 }
 0x3cb   : > { %1157 = vrot.lane.b32.xlu1 %v7041_v45, %s10567_s28  ;;  %1155 = vrot.lane.b32.xlu0 %v7039_v44, %s10567_s28 }
 0x3cf   : > { %1180 = vrot.lane.b32.xlu1 %v7041_v45, %s10571_s1  ;;  %1178 = vrot.lane.b32.xlu0 %v7039_v44, %s10571_s1 }
 0x3d3   : > { %1099 = vrot.lane.b32.xlu0 %v7063_v55, %s10563_s24  ;;  %1074 = vrot.lane.b32.xlu1 %v7063_v55, %s10565_s29 }
 0x3d7   : > { %1122 = vrot.lane.b32.xlu0 %v7063_v55, %s10561_s26  ;;  %1076 = vrot.lane.b32.xlu1 %v7069_v56, %s10565_s29  ;;  %s7101_s29 = sld [smem:[#allocation2 + $0xa]] }
 0x3db   : > { %1144 = vrot.lane.b32.xlu0 %v7063_v55, %s10567_s28  ;;  %1101 = vrot.lane.b32.xlu1 %v7069_v56, %s10563_s24  ;;  %s7099_s24 = sld [smem:[#allocation2 + $0x3]] }
 0x3dd   : > { %v1347_v62 = vstv %s7101_s29  ;;  %s11002_s29 = sld [smem:[#allocation31_spill]] }
 0x3de   : > { %v7281_v41 = vmul.f32 %v1347_v62, %v7069_v56  ;;  %v7289_v43 = vmul.f32 %v1347_v62, %v7063_v55  ;;  %v7354_v62 = vmul.f32 %v1737_v10, %v7039_v44 }
 0x3df   : > { %1167 = vrot.lane.b32.xlu0 %v7063_v55, %s10571_s1  ;;  %1124 = vrot.lane.b32.xlu1 %v7069_v56, %s10561_s26  ;;  %s7097_s26 = sld [smem:[#allocation2 + $0x3b]] }
 0x3e0   : > { %11041 = vst [vmem:[#allocation87_spill] sm:$0xff] %v7354_v62 }
 0x3e1   : > { %v1248_v59 = vstv %s7099_s24  ;;  %s7216_s24 = sld [smem:[#allocation2 + $0x17]] }
 0x3e2   : > { %v7267_v37 = vmul.f32 %v1248_v59, %v7069_v56  ;;  %v7272_v38 = vmul.f32 %v1248_v59, %v7063_v55  ;;  %v7339_v59 = vmul.f32 %v1632_v6, %v7069_v56  ;;  %v7370_v6 = vmul.f32 %v1737_v10, %v7041_v45 }
 0x3e3   : > { %1190 = vrot.lane.b32.xlu0 %v7063_v55, %s10575_s2  ;;  %1146 = vrot.lane.b32.xlu1 %v7069_v56, %s10567_s28  ;;  %s7103_s28 = sld [smem:[#allocation2 + $0x11]]  ;;  %v10711_v24 = vstv %s11002_s29  ;;  %s7251_s29 = sld [smem:[#allocation2 + $0x5]]  ;;  %v7429_v10 = vmul.f32 %v1550_v16, %v7039_v44 }
 0x3e4   : > { %11036 = vst [vmem:[#allocation84_spill] sm:$0xff] %v7339_v59  ;;  %11046 = vst [vmem:[#allocation91_spill] sm:$0xff] %v7370_v6 }
 0x3e5   : > { %v1353_v61 = vstv %s7097_s26  ;;  %s11005_s26 = sld [smem:[#allocation32_spill]]  ;;  %11071 = vst [vmem:[#allocation104_spill] sm:$0xff] %v7429_v10 }
 0x3e6   : > { %v7284_v42 = vmul.f32 %v1353_v61, %v7041_v45  ;;  %v7292_v46 = vmul.f32 %v1353_v61, %v7039_v44  ;;  %v7349_v61 = vmul.f32 %v1731_v7, %v7063_v55 }
 0x3e7   : > { %1201 = vrot.lane.b32.xlu0 %v7039_v44, %s10575_s2  ;;  %1169 = vrot.lane.b32.xlu1 %v7069_v56, %s10571_s1  ;;  %s7109_s1 = sld [smem:[#allocation2 + $0x50]]  ;;  %11004 = sst [smem:[#allocation65_spill]] %s7216_s24 }
 0x3e8   : > { %s7269_s24 = sld [smem:[#allocation2 + $0x37]]  ;;  %11040 = vst [vmem:[#allocation86_spill] sm:$0xff] %v7349_v61 }
 0x3e9   : > { %v1446_v63 = vstv %s7103_s28  ;;  %s7214_s28 = sld [smem:[#allocation2 + $0x10]]  ;;  %11019 = sst [smem:[#allocation72_spill]] %s7251_s29 }
 0x3ea   : > { %v7300_v48 = vmul.f32 %v1446_v63, %v7069_v56  ;;  %v7308_v50 = vmul.f32 %v1446_v63, %v7063_v55  ;;  %s11159_s29 = sld [smem:[#allocation46_spill]] }
 0x3eb   : > { %1192 = vrot.lane.b32.xlu1 %v7069_v56, %s10575_s2  ;;  %v10717_v29 = vstv %s11005_s26  ;;  %s7374_s26 = sld [smem:[#allocation2 + $0x20]] }
 0x3ed   : > { %v1638_v4 = vstv %s7109_s1  ;;  %s7360_s1 = sld [smem:[#allocation2 + $0x56]] }
 0x3ee   : > { %v7330_v54 = vmul.f32 %v1638_v4, %v7039_v44  ;;  %v7344_v60 = vmul.f32 %v1638_v4, %v7041_v45  ;;  %v7365_v4 = vmul.f32 %v1731_v7, %v7069_v56  ;;  %v7386_v7 = vmul.f32 %v1836_v12, %v7039_v44 }
 0x3ef   : > { %1203 = vrot.lane.b32.xlu1 %v7041_v45, %s10575_s2  ;;  %s7115_s2 = sld [smem:[#allocation2 + $0x2d]]  ;;  %11003 = sst [smem:[#allocation64_spill]] %s7214_s28 }
 0x3f0   : > { %s7286_s28 = sld [smem:[#allocation2 + $0xd]]  ;;  %11033 = vst [vmem:[#allocation81_spill] sm:$0xff] %v7330_v54  ;;  %11038 = vst [vmem:[#allocation85_spill] sm:$0xff] %v7344_v60 }
 0x3f1   : > { %11045 = vst [vmem:[#allocation90_spill] sm:$0xff] %v7365_v4  ;;  %11047 = sst [smem:[#allocation92_spill]] %s7374_s26  ;;  %11052 = vst [vmem:[#allocation95_spill] sm:$0xff] %v7386_v7  ;;  %s7468_s26 = sld [smem:[#allocation2 + $0x30]]  ;;  %v11170_v7 = vstv %s11159_s29 }
 0x3f2   : > { %s11091_s18 = sld [smem:[#allocation92_spill]] }
 0x3f3   : > { %11044 = sst [smem:[#allocation89_spill]] %s7360_s1  ;;  %s7440_s1 = sld [smem:[#allocation2 + $0x28]] }
 0x3f5   : > { %v1830_v14 = vstv %s7115_s2  ;;  %s7458_s2 = sld [smem:[#allocation2 + $0x2e]] }
 0x3f6   : > { %v7381_v9 = vmul.f32 %v1830_v14, %v7063_v55  ;;  %v7397_v57 = vmul.f32 %v1830_v14, %v7069_v56  ;;  %v7418_v14 = vmul.f32 %v1544_v15, %v7069_v56  ;;  %v7434_v55 = vmul.f32 %v1550_v16, %v7041_v45 }
 0x3f7   : > { %11082 = sst [smem:[#allocation77_spill]] %s7468_s26  ;;  %s11160_s26 = sld [smem:[#allocation47_spill]] }
 0x3f8   : > { %11051 = vst [vmem:[#allocation94_spill] sm:$0xff] %v7381_v9  ;;  %11058 = vst [vmem:[#allocation97_spill] sm:$0xff] %v7397_v57 }
 0x3f9   : > { %11066 = vst [vmem:[#allocation101_spill] sm:$0xff] %v7418_v14  ;;  %11072 = vst [vmem:[#allocation105_spill] sm:$0xff] %v7434_v55  ;;  %v11137_v14 = vstv %s11114_s9 }
 0x3fb   : > { %11078 = sst [smem:[#allocation109_spill]] %s7458_s2  ;;  %s11185_s2 = sld [smem:[#allocation65_spill]] }
 0x431   : > { %v1090_v40 = vpop.permute.xlu1 %1089  ;;  %v1088_v47 = vpop.permute.xlu0 %1087 }
 0x432   : > { %v1091_v63 = vsel %vm1078_vm6, %v1088_v47, %v1090_v40  ;;  %v1094_v56 = vsel %vm1078_vm6, 0.0, %v1088_v47 }
 0x433   : > { %v1095_v45 = vsel %vm1070_vm7, %v1094_v56, 0.0  ;;  %v1096_v16 = vsel %vm1071_vm8, %v1091_v63, 0.0 }
 0x434   : > { %v1219_v47 = vmul.f32 %v1218_v18, %v1095_v45  ;;  %v7528_v12 = vmul.f32 %v1317_v19, %v1095_v45  ;;  %v7532_v51 = vmul.f32 %v1416_v20, %v1095_v45  ;;  %v1515_v56 = vmul.f32 %v1514_v21, %v1095_v45 }
 0x435   : > { %v7540_v63 = vmul.f32 %v1602_v22, %v1095_v45  ;;  %v7544_v13 = vmul.f32 %v1701_v23, %v1095_v45  ;;  %v7548_v40 = vmul.f32 %v10711_v24, %v1095_v45  ;;  %v1113_v15 = vpop.permute.xlu1 %1112  ;;  %v1111_v44 = vpop.permute.xlu0 %1110  ;;  %v1220_v3 = vmul.f32 %v1218_v18, %v1096_v16 }
 0x436   : > { %v1114_v34 = vsel %vm1103_vm9, %v1111_v44, %v1113_v15  ;;  %v1117_v35 = vsel %vm1103_vm9, 0.0, %v1111_v44  ;;  %v1319_v5 = vmul.f32 %v1317_v19, %v1096_v16  ;;  %v7558_v2 = vmul.f32 %v1416_v20, %v1096_v16 }
 0x437   : > { %11108 = vst [vmem:[#allocation112_spill] sm:$0xff] %v7544_v13  ;;  %11110 = vst [vmem:[#allocation113_spill] sm:$0xff] %v7548_v40  ;;  %v1118_v45 = vsel %vm1097_vm10, %v1117_v35, 0.0  ;;  %v1516_v24 = vmul.f32 %v1514_v21, %v1096_v16  ;;  %v7566_v18 = vmul.f32 %v1602_v22, %v1096_v16  ;;  %v7570_v15 = vmul.f32 %v1701_v23, %v1096_v16 }
 0x438   : > { %v1231_v44 = vmul.f32 %v10717_v29, %v1118_v45  ;;  %v1330_v19 = vmul.f32 %v10715_v30, %v1118_v45  ;;  %v7578_v20 = vmul.f32 %v10714_v31, %v1118_v45  ;;  %v1527_v35 = vmul.f32 %v10716_v0, %v1118_v45 }
 0x439   : > { %11115 = vst [vmem:[#allocation114_spill] sm:$0xff] %v7566_v18  ;;  %11116 = vst [vmem:[#allocation115_spill] sm:$0xff] %v7570_v15  ;;  %v7586_v21 = vmul.f32 %v10722_v1, %v1118_v45  ;;  %v7590_v22 = vmul.f32 %v10723_v32, %v1118_v45  ;;  %v11119_v23 = vstv %s11114_s9  ;;  %v1135_v30 = vpop.permute.xlu1 %1134  ;;  %v1133_v0 = vpop.permute.xlu0 %1132  ;;  %v11121_v29 = vstv %s11105_s27  ;;  %s11150_s9 = sld [smem:[#allocation52_spill]]  ;;  %s11161_s27 = sld [smem:[#allocation48_spill]] }
 0x43a   : > { %v7594_v31 = vmul.f32 %v11119_v23, %v1118_v45  ;;  %v7598_v58 = vmul.f32 %v11121_v29, %v1096_v16  ;;  %v7600_v28 = vadd.f32 %v1527_v35, %v1515_v56  ;;  %v1136_v26 = vsel %vm824_vm1, %v1133_v0, %v1135_v30 }
 0x43b   : > { %11118 = vst [vmem:[#allocation116_spill] sm:$0xff] %v7590_v22  ;;  %v1139_v1 = vsel %vm824_vm1, 0.0, %v1133_v0  ;;  %v1119_v32 = vsel %vm1098_vm11, %v1114_v34, 0.0  ;;  %v11124_v45 = vstv %s11106_s30  ;;  %v11126_v29 = vstv %s11109_s4  ;;  %s11151_s4 = sld [smem:[#allocation61_spill]]  ;;  %s11158_s30 = sld [smem:[#allocation45_spill]] }
 0x43c   : > { %11120 = vst [vmem:[#allocation117_spill] sm:$0xff] %v7594_v31  ;;  %11122 = vst [vmem:[#allocation118_spill] sm:$0xff] %v7598_v58  ;;  %v7608_v27 = vsel %vm1120_vm12, %v1139_v1, 0.0  ;;  %v1232_v23 = vmul.f32 %v11124_v45, %v1119_v32  ;;  %v1331_v55 = vmul.f32 %v11125_v25, %v1119_v32  ;;  %v7616_v16 = vmul.f32 %v11126_v29, %v1119_v32 }
 0x43d   : > { %11123 = vst [vmem:[#allocation119_spill] sm:$0xff] %v7600_v28  ;;  %v11127_v56 = vstv %s11117_s14  ;;  %v11129_v0 = vstv %s11111_s20  ;;  %v11131_v34 = vstv %s11112_s19  ;;  %v11133_v1 = vstv %s11113_s7  ;;  %v1158_v25 = vpop.permute.xlu1 %1157  ;;  %v1156_v29 = vpop.permute.xlu0 %1155  ;;  %s11139_s19 = sld [smem:[#allocation42_spill]]  ;;  %s11140_s20 = sld [smem:[#allocation44_spill]] }
 0x43e   : > { %v7621_v30 = vmul.f32 %v11127_v56, %v7608_v27  ;;  %v1528_v35 = vmul.f32 %v11129_v0, %v1119_v32  ;;  %v7627_v10 = vmul.f32 %v11131_v34, %v1119_v32  ;;  %v7631_v45 = vmul.f32 %v11133_v1, %v1119_v32  ;;  %s11162_s7 = sld [smem:[#allocation49_spill]]  ;;  %s11165_s14 = sld [smem:[#allocation51_spill]] }
 0x43f   : > { %v7635_v8 = vmul.f32 %v11137_v14, %v1119_v32  ;;  %v7639_v56 = vsel %vm1121_vm13, %v1136_v26, 0.0  ;;  %v1234_v0 = vadd.f32 %v1232_v23, %v1220_v3  ;;  %v1162_v34 = vsel %vm1148_vm14, %v1158_v25, 0.0 }
 0x440   : > { %11128 = vst [vmem:[#allocation120_spill] sm:$0xff] %v7621_v30  ;;  %11132 = vst [vmem:[#allocation121_spill] sm:$0xff] %v7627_v10  ;;  %v1233_v30 = vadd.f32 %v1231_v44, %v1219_v47  ;;  %v1159_v28 = vsel %vm1148_vm14, %v1156_v29, %v1158_v25  ;;  %v7643_v1 = vadd.f32 %v1528_v35, %v1516_v24  ;;  %v7652_v32 = vsel %vm1143_vm15, %v1162_v34, 0.0 }
 0x441   : > { %11135 = vst [vmem:[#allocation122_spill] sm:$0xff] %v7631_v45  ;;  %11138 = vst [vmem:[#allocation123_spill] sm:$0xff] %v7635_v8  ;;  %v7648_v57 = vmul.f32 %v11142_v11, %v7639_v56  ;;  %v7656_v26 = vsel %vm1142_vm4, %v1159_v28, 0.0  ;;  %v11144_v3 = vstv %s11130_s17  ;;  %v11146_v44 = vstv %s11134_s22  ;;  %v1181_v34 = vpop.permute.xlu1 %1180  ;;  %s11166_s17 = sld [smem:[#allocation53_spill]]  ;;  %s11184_s22 = sld [smem:[#allocation60_spill]] }
 0x442   : > { %11141 = vst [vmem:[#allocation124_spill] sm:$0xff] %v7643_v1  ;;  %v1244_v14 = vmul.f32 %v11144_v3, %v7639_v56  ;;  %v11145_v47 = vmov %v11144_v3  ;;  %v7667_v23 = vmul.f32 %v11146_v44, %v7656_v26  ;;  %v11148_v11 = vstv %s11136_s13  ;;  %s11167_s13 = sld [smem:[#allocation54_spill]] }
 0x443   : > { %11143 = vst [vmem:[#allocation125_spill] sm:$0xff] %v7648_v57  ;;  %v1243_v24 = vmul.f32 %v11145_v47, %v7608_v27  ;;  %v1268_v35 = vmul.f32 %v11148_v11, %v7652_v32  ;;  %v11149_v25 = vmov %v11148_v11  ;;  %v1333_v28 = vadd.f32 %v1331_v55, %v1319_v5  ;;  %v1179_v57 = vpop.permute.xlu0 %1178 }
 0x444   : > { %11147 = vst [vmem:[#allocation126_spill] sm:$0xff] %v7667_v23  ;;  %v1267_v29 = vmul.f32 %v11149_v25, %v7656_v26  ;;  %v1246_v3 = vadd.f32 %v1244_v14, %v1234_v0  ;;  %v11152_v47 = vstv %s11139_s19  ;;  %v11153_v44 = vstv %s11140_s20  ;;  %s11168_s19 = sld [smem:[#allocation56_spill]] }
 0x445   : > { %v1245_v1 = vadd.f32 %v1243_v24, %v1233_v30  ;;  %v1343_v8 = vmul.f32 %v11152_v47, %v7639_v56  ;;  %v1367_v23 = vmul.f32 %v11153_v44, %v7652_v32  ;;  %v1185_v58 = vsel %vm1171_vm0, %v1181_v34, 0.0 }
 0x446   : > { %v1182_v11 = vsel %vm1171_vm0, %v1179_v57, %v1181_v34  ;;  %v1332_v25 = vadd.f32 %v1330_v19, %v7528_v12  ;;  %v11154_v5 = vmov %v11152_v47  ;;  %v7689_v0 = vsel %vm1166_vm3, %v1185_v58, 0.0 }
 0x447   : > { %v1342_v55 = vmul.f32 %v11154_v5, %v7608_v27  ;;  %v7693_v30 = vsel %vm1165_vm2, %v1182_v11, 0.0  ;;  %v1258_v14 = vadd.f32 %v7260_v36, %v1246_v3  ;;  %v1257_v24 = vadd.f32 %v7275_v39, %v1245_v1  ;;  %v1100_v11 = vpop.permute.xlu0 %1099  ;;  %v1075_v5 = vpop.permute.xlu1 %1074 }
 0x448   : > { %v11155_v57 = vstv %s11150_s9  ;;  %v1345_v47 = vadd.f32 %v1343_v8, %v1333_v28  ;;  %v11157_v44 = vstv %s11151_s4  ;;  %v11163_v1 = vstv %s11140_s20  ;;  %s11171_s20 = sld [smem:[#allocation57_spill]]  ;;  %s11173_s9 = sld [smem:[#allocation58_spill]] }
 0x449   : > { %v1280_v34 = vmul.f32 %v11155_v57, %v7689_v0  ;;  %v11156_v12 = vmov %v11155_v57  ;;  %v7706_v58 = vmul.f32 %v11157_v44, %v7689_v0  ;;  %v1270_v36 = vadd.f32 %v1268_v35, %v1258_v14  ;;  %s11182_s4 = sld [smem:[#allocation59_spill]] }
 0x44a   : > { %v1279_v19 = vmul.f32 %v11156_v12, %v7693_v30  ;;  %v1269_v3 = vadd.f32 %v1267_v29, %v1257_v24  ;;  %v7708_v39 = vadd.f32 %v1342_v55, %v1332_v25  ;;  %v7713_v57 = vmul.f32 %v11163_v1, %v7656_v26 }
 0x44b   : > { %v1107_v8 = vsel %vm1103_vm9, 0.0, %v1100_v11  ;;  %v1082_v28 = vsel %vm1078_vm6, 0.0, %v1075_v5  ;;  %v1357_v12 = vadd.f32 %v7284_v42, %v1345_v47  ;;  %v7721_v35 = vmul.f32 %v11157_v44, %v7693_v30  ;;  %v1123_v31 = vpop.permute.xlu0 %1122 }
 0x44c   : > { %v1108_v29 = vsel %vm1097_vm10, %v1107_v8, 0.0  ;;  %v1083_v25 = vsel %vm1070_vm7, %v1082_v28, 0.0  ;;  %v7727_v55 = vadd.f32 %v1280_v34, %v1270_v36  ;;  %v7729_v14 = vadd.f32 %v1279_v19, %v1269_v3 }
 0x44d   : > { %v11169_v24 = vstv %s11158_s30  ;;  %v1312_v42 = vmul.f32 %v11170_v7, %v1083_v25  ;;  %v11172_v47 = vstv %s11160_s26  ;;  %v11174_v9 = vstv %s11161_s27 }
 0x44e   : > { %v1213_v1 = vmul.f32 %v11169_v24, %v1083_v25  ;;  %v7737_v44 = vmul.f32 %v11172_v47, %v1083_v25  ;;  %v1509_v8 = vmul.f32 %v11174_v9, %v1083_v25  ;;  %v11175_v28 = vstv %s11162_s7  ;;  %v1077_v24 = vpop.permute.xlu1 %1076 }
 0x44f   : > { %v7743_v34 = vmul.f32 %v11175_v28, %v1083_v25  ;;  %v11176_v19 = vstv %s11164_s23  ;;  %v11178_v3 = vstv %s11165_s14  ;;  %v11180_v47 = vstv %s11166_s17 }
 0x450   : > { %v7747_v36 = vmul.f32 %v11176_v19, %v1083_v25  ;;  %v7751_v7 = vmul.f32 %v11178_v3, %v1083_v25  ;;  %v1225_v40 = vmul.f32 %v11180_v47, %v1108_v29  ;;  %v1129_v9 = vsel %vm824_vm1, 0.0, %v1123_v31 }
 0x451   : > { %v1079_v6 = vsel %vm1078_vm6, %v1075_v5, %v1077_v24  ;;  %v11181_v4 = vstv %s11167_s13  ;;  %v11183_v45 = vstv %s11168_s19  ;;  %v7765_v25 = vsel %vm1120_vm12, %v1129_v9, 0.0 }
 0x452   : > { %11177 = vst [vmem:[#allocation127_spill] sm:$0xff] %v7747_v36  ;;  %11179 = vst [vmem:[#allocation128_spill] sm:$0xff] %v7751_v7  ;;  %v1324_v28 = vmul.f32 %v11181_v4, %v1108_v29  ;;  %v7761_v19 = vmul.f32 %v11183_v45, %v1108_v29  ;;  %v1084_v3 = vsel %vm1071_vm8, %v1079_v6, 0.0  ;;  %v11186_v47 = vstv %s11171_s20 }
 0x453   : > { %v1521_v7 = vmul.f32 %v11186_v47, %v1108_v29  ;;  %v11187_v15 = vstv %s11173_s9  ;;  %v11188_v5 = vstv %s11158_s30  ;;  %v11189_v4 = vstv %s11159_s29  ;;  %s11211_s30 = sld [smem:[#allocation63_spill]]  ;;  %s11213_s29 = sld [smem:[#allocation64_spill]] }
 0x454   : > { %v7773_v62 = vmul.f32 %v11187_v15, %v1108_v29  ;;  %v1214_v24 = vmul.f32 %v11188_v5, %v1084_v3  ;;  %v1313_v61 = vmul.f32 %v11189_v4, %v1084_v3  ;;  %v11191_v45 = vstv %s11160_s26  ;;  %s11215_s26 = sld [smem:[#allocation66_spill]] }
 0x455   : > { %v7781_v22 = vmul.f32 %v11191_v45, %v1084_v3  ;;  %v11192_v13 = vstv %s11161_s27  ;;  %v11193_v36 = vstv %s11162_s7  ;;  %v11194_v6 = vstv %s11164_s23  ;;  %v1102_v45 = vpop.permute.xlu1 %1101  ;;  %s11216_s27 = sld [smem:[#allocation67_spill]]  ;;  %s11217_s7 = sld [smem:[#allocation68_spill]] }
 0x456   : > { %v1510_v9 = vmul.f32 %v11192_v13, %v1084_v3  ;;  %v7787_v60 = vmul.f32 %v11193_v36, %v1084_v3  ;;  %v7791_v47 = vmul.f32 %v11194_v6, %v1084_v3  ;;  %v11196_v15 = vstv %s11165_s14  ;;  %s11225_s23 = sld [smem:[#allocation70_spill]]  ;;  %s11235_s14 = sld [smem:[#allocation71_spill]] }
 0x457   : > { %v7795_v5 = vmul.f32 %v11196_v15, %v1084_v3  ;;  %v7797_v4 = vadd.f32 %v1521_v7, %v1509_v8  ;;  %v11199_v59 = vstv %s11182_s4  ;;  %v11201_v54 = vstv %s11184_s22  ;;  %v1145_v3 = vpop.permute.xlu0 %1144 }
 0x458   : > { %11195 = vst [vmem:[#allocation129_spill] sm:$0xff] %v7791_v47  ;;  %v7801_v13 = vmul.f32 %v11199_v59, %v1108_v29  ;;  %v7805_v36 = vmul.f32 %v11201_v54, %v1108_v29  ;;  %v1104_v53 = vsel %vm1103_vm9, %v1100_v11, %v1102_v45  ;;  %v11203_v6 = vstv %s11185_s2 }
 0x459   : > { %11197 = vst [vmem:[#allocation130_spill] sm:$0xff] %v7795_v5  ;;  %11198 = vst [vmem:[#allocation131_spill] sm:$0xff] %v7797_v4  ;;  %v7811_v47 = vmul.f32 %v11203_v6, %v7765_v25  ;;  %v1109_v8 = vsel %vm1098_vm11, %v1104_v53, 0.0  ;;  %v1227_v7 = vadd.f32 %v1225_v40, %v1213_v1  ;;  %v11205_v15 = vstv %s11190_s21 }
 0x45a   : > { %11200 = vst [vmem:[#allocation132_spill] sm:$0xff] %v7801_v13  ;;  %11202 = vst [vmem:[#allocation133_spill] sm:$0xff] %v7805_v36  ;;  %v1237_v4 = vmul.f32 %v11205_v15, %v7765_v25  ;;  %v1369_v5 = vadd.f32 %v1367_v23, %v1357_v12  ;;  %v11206_v59 = vstv %s11166_s17  ;;  %v11207_v10 = vstv %s11167_s13  ;;  %v1125_v12 = vpop.permute.xlu1 %1124  ;;  %s11239_s17 = sld [smem:[#allocation74_spill]]  ;;  %s11247_s13 = sld [smem:[#allocation73_spill]] }
 0x45b   : > { %11204 = vst [vmem:[#allocation134_spill] sm:$0xff] %v7811_v47  ;;  %v1226_v13 = vmul.f32 %v11206_v59, %v1109_v8  ;;  %v1325_v54 = vmul.f32 %v11207_v10, %v1109_v8  ;;  %v11208_v29 = vstv %s11168_s19  ;;  %v11209_v11 = vstv %s11171_s20  ;;  %s7956_s19 = sld [smem:[#allocation2 + $0x1b]]  ;;  %s11316_s20 = sld [smem:[#allocation109_spill]] }
 0x45c   : > { %v1424_v36 = vmul.f32 %v11208_v29, %v1109_v8  ;;  %v1522_v45 = vmul.f32 %v11209_v11, %v1109_v8  ;;  %v11210_v6 = vstv %s11173_s9  ;;  %v11212_v18 = vstv %s11182_s4  ;;  %s11317_s9 = sld [smem:[#allocation108_spill]]  ;;  %s11318_s4 = sld [smem:[#allocation111_spill]] }
 0x45d   : > { %v7828_v47 = vmul.f32 %v11210_v6, %v1109_v8  ;;  %v7832_v53 = vmul.f32 %v11212_v18, %v1109_v8  ;;  %v11214_v40 = vstv %s11184_s22  ;;  %v1239_v1 = vadd.f32 %v1237_v4, %v1227_v7  ;;  %s11222_s22 = sld [smem:[#allocation69_spill]] }
 0x45e   : > { %v7836_v23 = vmul.f32 %v11214_v40, %v1109_v8  ;;  %v1524_v10 = vadd.f32 %v1522_v45, %v1510_v9  ;;  %v1126_v15 = vsel %vm824_vm1, %v1123_v31, %v1125_v12  ;;  %v1228_v59 = vadd.f32 %v1226_v13, %v1214_v24  ;;  %v1147_v12 = vpop.permute.xlu1 %1146 }
 0x45f   : > { %v1327_v29 = vadd.f32 %v1325_v54, %v1313_v61  ;;  %v1131_v11 = vsel %vm1121_vm13, %v1126_v15, 0.0  ;;  %vm1194_vm7 = vcmask 1022976   ;;  %v1251_v18 = vadd.f32 %v7272_v38, %v1239_v1  ;;  %v1168_v61 = vpop.permute.xlu0 %1167 }
 0x460   : > { %v7843_v8 = vadd.f32 %v7706_v58, %v1369_v5  ;;  %v1326_v6 = vadd.f32 %v1324_v28, %v1312_v42  ;;  %v11218_v4 = vstv %s11190_s21  ;;  %v11219_v7 = vstv %s11211_s30  ;;  %s11232_s21 = sld [smem:[#allocation72_spill]]  ;;  %s11329_s30 = sld [smem:[#allocation79_spill]] }
 0x461   : > { %v1238_v9 = vmul.f32 %v11218_v4, %v1131_v11  ;;  %v1337_v45 = vmul.f32 %v11219_v7, %v1131_v11  ;;  %v11220_v31 = vstv %s11213_s29  ;;  %v11221_v24 = vstv %s11185_s2  ;;  %s11233_s2 = sld [smem:[#allocation75_spill]] }
 0x462   : > { %v1436_v40 = vmul.f32 %v11220_v31, %v1131_v11  ;;  %v1534_v13 = vmul.f32 %v11221_v24, %v1131_v11  ;;  %vm1188_vm8 = vcmp.lt.s32.totalorder %v7222_v17, 13  ;;  %vm1189_vm10 = vcmp.lt.s32.totalorder %v7255_v33, 13 }
 0x463   : > { %v11223_v54 = vstv %s11215_s26  ;;  %v11224_v58 = vstv %s11216_s27  ;;  %v11226_v28 = vstv %s11217_s7  ;;  %v11227_v1 = vmov %v11219_v7 }
 0x464   : > { %v7857_v38 = vmul.f32 %v11223_v54, %v1131_v11  ;;  %v7861_v42 = vmul.f32 %v11224_v58, %v1131_v11  ;;  %v7865_v5 = vmul.f32 %v11226_v28, %v1131_v11  ;;  %v1336_v15 = vmul.f32 %v11227_v1, %v7765_v25 }
 0x465   : > { %v7870_v4 = vadd.f32 %v1534_v13, %v1524_v10  ;;  %v1149_v7 = vsel %vm1148_vm14, %v1145_v3, %v1147_v12  ;;  %v1152_v31 = vsel %vm1148_vm14, %v1147_v12, 0.0  ;;  %v1240_v24 = vadd.f32 %v1238_v9, %v1228_v59  ;;  %v1170_v12 = vpop.permute.xlu1 %1169 }
 0x466   : > { %v7876_v54 = vsel %vm1142_vm4, %v1149_v7, 0.0  ;;  %v7880_v11 = vsel %vm1143_vm15, %v1152_v31, 0.0  ;;  %v1339_v58 = vadd.f32 %v1337_v45, %v1327_v29  ;;  %v1338_v28 = vadd.f32 %v1336_v15, %v1326_v6 }
 0x467   : > { %11228 = vst [vmem:[#allocation135_spill] sm:$0xff] %v7870_v4  ;;  %v1252_v1 = vadd.f32 %v7267_v37, %v1240_v24  ;;  %v11229_v10 = vstv %s11222_s22  ;;  %v11231_v59 = vstv %s11225_s23  ;;  %v1356_v37 = vadd.f32 %v7292_v46, %v7708_v39  ;;  %s11367_s22 = sld [smem:[#allocation78_spill]]  ;;  %s6729_s23 = smov 80  }
 0x468   : > { %v1262_v13 = vmul.f32 %v11229_v10, %v7880_v11  ;;  %v11230_v3 = vmov %v11229_v10  ;;  %v1361_v9 = vmul.f32 %v11231_v59, %v7880_v11  ;;  %v1351_v7 = vadd.f32 %v7281_v41, %v1339_v58 }
 0x469   : > { %v1261_v4 = vmul.f32 %v11230_v3, %v7876_v54  ;;  %v1350_v29 = vadd.f32 %v7289_v43, %v1338_v28  ;;  %v11234_v6 = vmov %v11231_v59  ;;  %v1172_v15 = vsel %vm1171_vm0, %v1168_v61, %v1170_v12  ;;  %v1191_v3 = vpop.permute.xlu0 %1190 }
 0x46a   : > { %v1360_v45 = vmul.f32 %v11234_v6, %v7876_v54  ;;  %v1175_v31 = vsel %vm1171_vm0, %v1170_v12, 0.0  ;;  %v1264_v24 = vadd.f32 %v1262_v13, %v1252_v1  ;;  %v7903_v41 = vsel %vm1165_vm2, %v1172_v15, 0.0  ;;  %v1193_v13 = vpop.permute.xlu1 %1192 }
 0x46b   : > { %v1263_v10 = vadd.f32 %v1261_v4, %v1251_v18  ;;  %v7907_v43 = vsel %vm1166_vm3, %v1175_v31, 0.0  ;;  %v1363_v46 = vadd.f32 %v1361_v9, %v1351_v7  ;;  %v11236_v58 = vstv %s11232_s21  ;;  %s11398_s21 = smov 127  }
 0x46c   : > { %v1362_v39 = vadd.f32 %v1360_v45, %v1350_v29  ;;  %v1274_v28 = vmul.f32 %v11236_v58, %v7907_v43  ;;  %v11237_v61 = vmov %v11236_v58  ;;  %v11238_v1 = vstv %s11233_s2 }
 0x46d   : > { %v1273_v59 = vmul.f32 %v11237_v61, %v7903_v41  ;;  %v1373_v18 = vmul.f32 %v11238_v1, %v7907_v43  ;;  %v1368_v4 = vadd.f32 %v7713_v57, %v1356_v37  ;;  %v11240_v12 = vmov %v11238_v1 }
 0x46e   : > { %v1372_v6 = vmul.f32 %v11240_v12, %v7903_v41  ;;  %v1426_v9 = vadd.f32 %v1424_v36, %v7781_v22  ;;  %v1432_v7 = vadd.f32 %v7616_v16, %v7558_v2  ;;  %v11241_v29 = vstv %s11235_s14 }
 0x46f   : > { %v1442_v45 = vmul.f32 %v11241_v29, %v7639_v56  ;;  %v1195_v15 = vsel %vm1194_vm7, %v1191_v3, %v1193_v13  ;;  %v1198_v31 = vsel %vm1194_vm7, %v1193_v13, 0.0  ;;  %v1276_v57 = vadd.f32 %v1274_v28, %v1264_v24  ;;  %v1202_v28 = vpop.permute.xlu0 %1201 }
 0x470   : > { %v1275_v37 = vadd.f32 %v1273_v59, %v1263_v10  ;;  %v7932_v58 = vsel %vm1188_vm8, %v1195_v15, 0.0  ;;  %v7936_v22 = vsel %vm1189_vm10, %v1198_v31, 0.0  ;;  %v1375_v2 = vadd.f32 %v1373_v18, %v1363_v46  ;;  %v1204_v59 = vpop.permute.xlu1 %1203 }
 0x471   : > { %v1374_v16 = vadd.f32 %v1372_v6, %v1362_v39  ;;  %v11242_v36 = vstv %s11239_s17  ;;  %v11244_v13 = vstv %s7286_s28  ;;  %v1380_v10 = vadd.f32 %v7721_v35, %v1368_v4  ;;  %s10730_s28 = smov 48   ;;  %s8456_s17 = sld [smem:[#allocation2 + $0xdb]] }
 0x472   : > { %v1286_v61 = vmul.f32 %v11242_v36, %v7936_v22  ;;  %v11243_v3 = vmov %v11242_v36  ;;  %v1385_v24 = vmul.f32 %v11244_v13, %v7936_v22  ;;  %v11245_v12 = vmov %v11244_v13 }
 0x473   : > { %v1285_v1 = vmul.f32 %v11243_v3, %v7932_v58  ;;  %v1384_v46 = vmul.f32 %v11245_v12, %v7932_v58  ;;  %v1438_v39 = vadd.f32 %v1436_v40, %v1426_v9  ;;  %v1444_v18 = vadd.f32 %v1442_v45, %v1432_v7 }
 0x474   : > { %v11246_v6 = vstv %s7313_s3  ;;  %v1205_v15 = vsel %vm1194_vm7, %v1202_v28, %v1204_v59  ;;  %v1208_v35 = vsel %vm1194_vm7, %v1204_v59, 0.0  ;;  %v1288_v4 = vadd.f32 %v1286_v61, %v1276_v57 }
 0x475   : > { %v1460_v29 = vmul.f32 %v11246_v6, %v7880_v11  ;;  %v1287_v31 = vadd.f32 %v1285_v1, %v1275_v37  ;;  %v7960_v36 = vsel %vm1188_vm8, %v1205_v15, 0.0  ;;  %v7964_v40 = vsel %vm1189_vm10, %v1208_v35, 0.0 }
 0x476   : > { %v1387_v9 = vadd.f32 %v1385_v24, %v1375_v2  ;;  %v1386_v7 = vadd.f32 %v1384_v46, %v1374_v16  ;;  %v11248_v45 = vstv %s7269_s24  ;;  %v11250_v37 = vstv %s11081_s8  ;;  %s7989_s8 = sld [smem:[#allocation2 + $0x4c]]  ;;  %s11261_s24 = sld [smem:[#allocation76_spill]] }
 0x477   : > { %v1292_v3 = vmul.f32 %v11248_v45, %v7964_v40  ;;  %v11249_v13 = vmov %v11248_v45  ;;  %v1391_v61 = vmul.f32 %v11250_v37, %v7964_v40  ;;  %v11251_v17 = vmov %v11250_v37  ;;  %11436 = sst [smem:[#allocation28_spill]] %s8456_s17 }
 0x478   : > { %v1291_v57 = vmul.f32 %v11249_v13, %v7960_v36  ;;  %v1390_v1 = vmul.f32 %v11251_v17, %v7960_v36  ;;  %v1450_v33 = vadd.f32 %v7300_v48, %v1438_v39  ;;  %v1456_v28 = vadd.f32 %v7305_v49, %v1444_v18 }
 0x479   : > { %v11252_v2 = vstv %s11247_s13  ;;  %v11253_v24 = vstv %s11083_s12  ;;  %v1294_v12 = vadd.f32 %v1292_v3, %v7727_v55  ;;  %v1393_v6 = vadd.f32 %v1391_v61, %v7843_v8  ;;  %s11266_s12 = sld [smem:[#allocation96_spill]] }
 0x47a   : > { %v1466_v16 = vmul.f32 %v11252_v2, %v7652_v32  ;;  %v1472_v59 = vmul.f32 %v11253_v24, %v7907_v43  ;;  %v1293_v46 = vadd.f32 %v1291_v57, %v7729_v14  ;;  %v1392_v15 = vadd.f32 %v1390_v1, %v1380_v10  ;;  %s8458_s13 = sld [smem:[#allocation2 + $0x91]] }
 0x47b   : > { %v1462_v35 = vadd.f32 %v1460_v29, %v1450_v33  ;;  %v11254_v49 = vstv %s7278_s0  ;;  %v11255_v18 = vstv %s11085_s5  ;;  %v1296_v13 = vadd.f32 %v1294_v12, %v1288_v4  ;;  %s10733_s0 = smov 16   ;;  %s11313_s5 = sld [smem:[#allocation103_spill]] }
 0x47c   : > { %v1468_v48 = vadd.f32 %v1466_v16, %v1456_v28  ;;  %v1478_v39 = vmul.f32 %v11254_v49, %v7689_v0  ;;  %v1484_v45 = vmul.f32 %v11255_v18, %v7936_v22  ;;  %v1295_v55 = vadd.f32 %v1293_v46, %v1287_v31 }
 0x47d   : > { %v1395_v14 = vadd.f32 %v1393_v6, %v1387_v9  ;;  %v1394_v8 = vadd.f32 %v1392_v15, %v1386_v7  ;;  %v1474_v10 = vadd.f32 %v1472_v59, %v1462_v35  ;;  %v11256_v29 = vstv %s11086_s6  ;;  %1301 = vrot.lane.b32.xlu1 %v1296_v13, %s10730_s28  ;;  %s11284_s6 = sld [smem:[#allocation89_spill]] }
 0x47e   : > { %v1480_v3 = vadd.f32 %v1478_v39, %v1468_v48  ;;  %v1490_v57 = vmul.f32 %v11256_v29, %v7964_v40  ;;  %v1425_v37 = vadd.f32 %v7761_v19, %v7737_v44  ;;  %1299 = vrot.lane.b32.xlu0 %v1295_v55, %s10730_s28  ;;  %v1431_v4 = vadd.f32 %v7578_v20, %v7532_v51  ;;  %s8464_s28 = sld [smem:[#allocation2 + $0xd7]] }
 0x47f   : > { %v11257_v31 = vstv %s11213_s29  ;;  %v11258_v7 = vstv %s11235_s14  ;;  %v1580_v17 = vstv %s7956_s19  ;;  %v1486_v1 = vadd.f32 %v1484_v45, %v1474_v10  ;;  %s6728_s29 = smov 96   ;;  %s11373_s14 = sld [smem:[#allocation146_spill]] }
 0x480   : > { %v1435_v9 = vmul.f32 %v11257_v31, %v7765_v25  ;;  %v1441_v61 = vmul.f32 %v11258_v7, %v7608_v27  ;;  %v1492_v33 = vadd.f32 %v1490_v57, %v1480_v3  ;;  %v11259_v44 = vstv %s7313_s3  ;;  %s6725_s3 = smov 32   ;;  %s11399_s19 = sld [smem:[#allocation138_spill]] }
 0x481   : > { %v1459_v19 = vmul.f32 %v11259_v44, %v7876_v54  ;;  %v11260_v28 = vmov %v11252_v2  ;;  %v11262_v20 = vmov %v11253_v24  ;;  %v11263_v59 = vmov %v11254_v49  ;;  %1400 = vrot.lane.b32.xlu1 %v1395_v14, %s6725_s3 }
 0x482   : > { %v1465_v2 = vmul.f32 %v11260_v28, %v7656_v26  ;;  %v1437_v16 = vadd.f32 %v1435_v9, %v1425_v37  ;;  %v1443_v51 = vadd.f32 %v1441_v61, %v1431_v4  ;;  %v1471_v24 = vmul.f32 %v11262_v20, %v7903_v41  ;;  %1398 = vrot.lane.b32.xlu0 %v1394_v8, %s6725_s3  ;;  %v11275_v28 = vld [vmem:[#allocation114_spill] sm:$0xff]  ;;  %s11376_s3 = sld [smem:[#allocation144_spill]] }
 0x483   : > { %v1477_v12 = vmul.f32 %v11263_v59, %v7693_v30  ;;  %v1494_v46 = vadd.f32 %v1492_v33, %v1486_v1  ;;  %v11264_v6 = vmov %v11255_v18  ;;  %v11265_v35 = vmov %v11256_v29  ;;  %v11278_v59 = vld [vmem:[#allocation81_spill] sm:$0xff] }
 0x484   : > { %v1483_v15 = vmul.f32 %v11264_v6, %v7932_v58  ;;  %v1489_v48 = vmul.f32 %v11265_v35, %v7960_v36  ;;  %v1611_v49 = vadd.f32 %v7773_v62, %v7743_v34  ;;  %v1449_v39 = vadd.f32 %v7308_v50, %v1437_v16 }
 0x485   : > { %v1455_v18 = vadd.f32 %v7320_v52, %v1443_v51  ;;  %v1617_v45 = vadd.f32 %v7586_v21, %v7540_v63  ;;  %v1586_v13 = vstv %s7989_s8  ;;  %v11267_v55 = vstv %s11215_s26  ;;  %1499 = vrot.lane.b32.xlu1 %v1494_v46, %s10733_s0  ;;  %v11277_v51 = vld [vmem:[#allocation80_spill] sm:$0xff]  ;;  %s11351_s26 = sld [smem:[#allocation82_spill]]  ;;  %s11423_s8 = smov 1  }
 0x486   : > { %v1621_v10 = vmul.f32 %v11267_v55, %v7765_v25  ;;  %v11268_v3 = vstv %s11261_s24  ;;  %v11269_v62 = vstv %s11091_s18  ;;  %v11270_v14 = vstv %s11084_s11  ;;  %s11287_s18 = sld [smem:[#allocation102_spill]]  ;;  %s11288_s11 = sld [smem:[#allocation93_spill]] }
 0x487   : > { %v1627_v29 = vmul.f32 %v11268_v3, %v7608_v27  ;;  %v1645_v34 = vmul.f32 %v11269_v62, %v7876_v54  ;;  %v1651_v8 = vmul.f32 %v11270_v14, %v7656_v26  ;;  %v1461_v57 = vadd.f32 %v1459_v19, %v1449_v39 }
 0x488   : > { %v1467_v50 = vadd.f32 %v1465_v2, %v1455_v18  ;;  %v11271_v52 = vstv %s11092_s25  ;;  %v11272_v21 = vstv %s11088_s10  ;;  %v1623_v4 = vadd.f32 %v1621_v10, %v1611_v49  ;;  %v11276_v2 = vld [vmem:[#allocation121_spill] sm:$0xff]  ;;  %s11296_s10 = sld [smem:[#allocation106_spill]]  ;;  %s10732_s25 = smov 112  }
 0x489   : > { %v1657_v63 = vmul.f32 %v11271_v52, %v7903_v41  ;;  %v1663_v37 = vmul.f32 %v11272_v21, %v7693_v30  ;;  %v1629_v31 = vadd.f32 %v1627_v29, %v1617_v45  ;;  %v11273_v9 = vstv %s11266_s12  ;;  %s11421_s12 = smov 3  }
 0x48a   : > { %v1669_v7 = vmul.f32 %v11273_v9, %v7932_v58  ;;  %v11274_v61 = vstv %s7406_s16  ;;  %v1473_v33 = vadd.f32 %v1471_v24, %v1461_v57  ;;  %v1479_v44 = vadd.f32 %v1477_v12, %v1467_v50  ;;  %s11298_s16 = sld [smem:[#allocation107_spill]] }
 0x48b   : > { %v1675_v1 = vmul.f32 %v11274_v61, %v7960_v36  ;;  %v1612_v19 = vadd.f32 %v7828_v47, %v7787_v60  ;;  %v1618_v16 = vadd.f32 %v11276_v2, %v11275_v28  ;;  %v1635_v20 = vadd.f32 %v11277_v51, %v1623_v4  ;;  %v11294_v28 = vld [vmem:[#allocation116_spill] sm:$0xff] }
 0x48c   : > { %v1641_v6 = vadd.f32 %v11278_v59, %v1629_v31  ;;  %v11279_v35 = vmov %v11268_v3  ;;  %v11280_v46 = vmov %v11269_v62  ;;  %v1485_v24 = vadd.f32 %v1483_v15, %v1473_v33  ;;  %v11292_v33 = vld [vmem:[#allocation132_spill] sm:$0xff] }
 0x48d   : > { %v1628_v49 = vmul.f32 %v11279_v35, %v7639_v56  ;;  %v1646_v39 = vmul.f32 %v11280_v46, %v7880_v11  ;;  %v1491_v12 = vadd.f32 %v1489_v48, %v1479_v44  ;;  %v1624_v60 = vadd.f32 %v7857_v38, %v1612_v19  ;;  %v11293_v19 = vld [vmem:[#allocation112_spill] sm:$0xff] }
 0x48e   : > { %v11281_v47 = vmov %v11270_v14  ;;  %v1647_v45 = vadd.f32 %v1645_v34, %v1635_v20  ;;  %v1653_v55 = vadd.f32 %v1651_v8, %v1641_v6  ;;  %v11282_v3 = vmov %v11271_v52  ;;  %v11283_v14 = vld [vmem:[#allocation84_spill] sm:$0xff] }
 0x48f   : > { %v1652_v18 = vmul.f32 %v11281_v47, %v7652_v32  ;;  %v1630_v10 = vadd.f32 %v1628_v49, %v1618_v16  ;;  %v1658_v29 = vmul.f32 %v11282_v3, %v7907_v43  ;;  %v1493_v62 = vadd.f32 %v1491_v12, %v1485_v24 }
 0x490   : > { %v1636_v57 = vadd.f32 %v11283_v14, %v1624_v60  ;;  %v11285_v50 = vmov %v11272_v21  ;;  %v11286_v48 = vmov %v11273_v9  ;;  %v1659_v52 = vadd.f32 %v1657_v63, %v1647_v45  ;;  %v11289_v21 = vld [vmem:[#allocation85_spill] sm:$0xff] }
 0x491   : > { %v1664_v15 = vmul.f32 %v11285_v50, %v7689_v0  ;;  %v1670_v38 = vmul.f32 %v11286_v48, %v7936_v22  ;;  %v1665_v34 = vadd.f32 %v1663_v37, %v1653_v55  ;;  %v1642_v8 = vadd.f32 %v11289_v21, %v1630_v10  ;;  %1497 = vrot.lane.b32.xlu0 %v1493_v62, %s10733_s0  ;;  %v11302_v55 = vld [vmem:[#allocation86_spill] sm:$0xff]  ;;  %v11305_v50 = vld [vmem:[#allocation87_spill] sm:$0xff]  ;;  %s8470_s0 = sld [smem:[#allocation2 + $0x98]] }
 0x492   : > { %v11290_v4 = vmov %v11274_v61  ;;  %v1648_v9 = vadd.f32 %v1646_v39, %v1636_v57  ;;  %v11291_v61 = vld [vmem:[#allocation127_spill] sm:$0xff]  ;;  %v1716_v2 = vadd.f32 %v11294_v28, %v11293_v19  ;;  %v11295_v16 = vstv %s11216_s27  ;;  %s11357_s27 = sld [smem:[#allocation40_spill]] }
 0x493   : > { %v1676_v31 = vmul.f32 %v11290_v4, %v7964_v40  ;;  %v1710_v44 = vadd.f32 %v11292_v33, %v11291_v61  ;;  %v1720_v63 = vmul.f32 %v11295_v16, %v7765_v25  ;;  %v1671_v37 = vadd.f32 %v1669_v7, %v1659_v52  ;;  %v11307_v52 = vld [vmem:[#allocation129_spill] sm:$0xff]  ;;  %v11309_v4 = vld [vmem:[#allocation122_spill] sm:$0xff] }
 0x494   : > { %v1677_v51 = vadd.f32 %v1675_v1, %v1665_v34  ;;  %v1654_v20 = vadd.f32 %v1652_v18, %v1642_v8  ;;  %v11297_v59 = vstv %s11284_s6  ;;  %v1660_v35 = vadd.f32 %v1658_v29, %v1648_v9  ;;  %v11308_v8 = vld [vmem:[#allocation115_spill] sm:$0xff]  ;;  %s11422_s6 = smov 2  }
 0x495   : > { %v1726_v6 = vmul.f32 %v11297_v59, %v7608_v27  ;;  %v1722_v49 = vadd.f32 %v1720_v63, %v1710_v44  ;;  %v11299_v46 = vstv %s11287_s18  ;;  %v11300_v24 = vstv %s11288_s11  ;;  %s5735_s11 = sld [smem:[#allocation2 + $0x62]]  ;;  %s11424_s18 = smov 126  }
 0x496   : > { %v1744_v39 = vmul.f32 %v11299_v46, %v7876_v54  ;;  %v1750_v12 = vmul.f32 %v11300_v24, %v7656_v26  ;;  %v1679_v60 = vadd.f32 %v1677_v51, %v1671_v37  ;;  %v1666_v47 = vadd.f32 %v1664_v15, %v1654_v20 }
 0x497   : > { %v1728_v45 = vadd.f32 %v1726_v6, %v1716_v2  ;;  %v11301_v7 = vstv %s7440_s1  ;;  %v1672_v18 = vadd.f32 %v1670_v38, %v1660_v35  ;;  %v1734_v10 = vadd.f32 %v11302_v55, %v1722_v49  ;;  %v11326_v55 = vld [vmem:[#allocation113_spill] sm:$0xff]  ;;  %s11328_s1 = sld [smem:[#allocation77_spill]]  ;;  %11437 = sst [smem:[#allocation29_spill]] %s8470_s0 }
 0x498   : > { %v1756_v1 = vmul.f32 %v11301_v7, %v7903_v41  ;;  %v11303_v3 = vstv %s11097_s15  ;;  %v11304_v62 = vstv %s11296_s10  ;;  %1683 = vrot.lane.b32.xlu1 %v1679_v60, %s10732_s25  ;;  %v1678_v57 = vadd.f32 %v1676_v31, %v1666_v47  ;;  %v11322_v47 = vld [vmem:[#allocation91_spill] sm:$0xff]  ;;  %s11325_s15 = sld [smem:[#allocation110_spill]]  ;;  %s11379_s10 = sld [smem:[#allocation18_spill]] }
 0x499   : > { %v1762_v29 = vmul.f32 %v11303_v3, %v7693_v30  ;;  %v1768_v14 = vmul.f32 %v11304_v62, %v7932_v58  ;;  %v1740_v15 = vadd.f32 %v11305_v50, %v1728_v45  ;;  %v11306_v48 = vstv %s11298_s16  ;;  %s8432_s16 = sld [smem:[#allocation2 + $0xbb]]  ;;  %s8494_s0 = sld [smem:[#allocation2 + $0xc7]] }
 0x49a   : > { %v1774_v38 = vmul.f32 %v11306_v48, %v7960_v36  ;;  %v1711_v34 = vadd.f32 %v7832_v53, %v11307_v52  ;;  %v1746_v21 = vadd.f32 %v1744_v39, %v1734_v10  ;;  %v1717_v9 = vadd.f32 %v11309_v4, %v11308_v8  ;;  %v11327_v10 = vld [vmem:[#allocation117_spill] sm:$0xff] }
 0x49b   : > { %v11310_v61 = vmov %v11297_v59  ;;  %v11311_v44 = vmov %v11299_v46  ;;  %v1680_v19 = vadd.f32 %v1678_v57, %v1672_v18  ;;  %v1752_v28 = vadd.f32 %v1750_v12, %v1740_v15 }
 0x49c   : > { %v1727_v33 = vmul.f32 %v11310_v61, %v7639_v56  ;;  %v1745_v31 = vmul.f32 %v11311_v44, %v7880_v11  ;;  %v1723_v2 = vadd.f32 %v7861_v42, %v1711_v34  ;;  %v11312_v16 = vmov %v11300_v24  ;;  %v11319_v42 = vld [vmem:[#allocation90_spill] sm:$0xff] }
 0x49d   : > { %v1751_v63 = vmul.f32 %v11312_v16, %v7652_v32  ;;  %v1758_v53 = vadd.f32 %v1756_v1, %v1746_v21  ;;  %v11314_v51 = vmov %v11301_v7  ;;  %v11315_v59 = vmov %v11303_v3  ;;  %1685 = vrot.lane.b32.xlu0 %v1680_v19, %s10732_s25  ;;  %v11323_v7 = vld [vmem:[#allocation128_spill] sm:$0xff]  ;;  %v11324_v1 = vld [vmem:[#allocation133_spill] sm:$0xff]  ;;  %s8468_s25 = sld [smem:[#allocation2 + $0xde]] }
 0x49e   : > { %v1729_v37 = vadd.f32 %v1727_v33, %v1717_v9  ;;  %v1757_v20 = vmul.f32 %v11314_v51, %v7907_v43  ;;  %v1763_v6 = vmul.f32 %v11315_v59, %v7689_v0  ;;  %v1764_v35 = vadd.f32 %v1762_v29, %v1752_v28 }
 0x49f   : > { %v1735_v49 = vadd.f32 %v11319_v42, %v1723_v2  ;;  %v11320_v46 = vmov %v11304_v62  ;;  %v11321_v24 = vmov %v11306_v48  ;;  %v1770_v60 = vadd.f32 %v1768_v14, %v1758_v53  ;;  %v11342_v42 = vld [vmem:[#allocation123_spill] sm:$0xff]  ;;  %11449 = sst [smem:[#allocation43_spill]] %s8494_s0 }
 0x4a0   : > { %v1769_v39 = vmul.f32 %v11320_v46, %v7936_v22  ;;  %v1775_v12 = vmul.f32 %v11321_v24, %v7964_v40  ;;  %v1741_v45 = vadd.f32 %v11322_v47, %v1729_v37  ;;  %v1809_v18 = vadd.f32 %v11324_v1, %v11323_v7  ;;  %v11339_v37 = vld [vmem:[#allocation95_spill] sm:$0xff] }
 0x4a1   : > { %v1815_v3 = vadd.f32 %v11327_v10, %v11326_v55  ;;  %v1776_v29 = vadd.f32 %v1774_v38, %v1764_v35  ;;  %v1747_v62 = vadd.f32 %v1745_v31, %v1735_v49  ;;  %v11330_v57 = vstv %s11217_s7  ;;  %v11341_v35 = vld [vmem:[#allocation118_spill] sm:$0xff]  ;;  %s11361_s7 = sld [smem:[#allocation83_spill]] }
 0x4a2   : > { %v1819_v50 = vmul.f32 %v11330_v57, %v7765_v25  ;;  %v11331_v15 = vstv %s11313_s5  ;;  %v1753_v14 = vadd.f32 %v1751_v63, %v1741_v45  ;;  %v11332_v52 = vstv %s11316_s20  ;;  %v11338_v63 = vld [vmem:[#allocation94_spill] sm:$0xff]  ;;  %v11348_v57 = vld [vmem:[#allocation97_spill] sm:$0xff]  ;;  %s11383_s20 = sld [smem:[#allocation145_spill]]  ;;  %s8434_s5 = sld [smem:[#allocation2 + $0xb4]] }
 0x4a3   : > { %v1825_v48 = vmul.f32 %v11331_v15, %v7608_v27  ;;  %v1843_v34 = vmul.f32 %v11332_v52, %v7876_v54  ;;  %v11333_v21 = vstv %s11317_s9  ;;  %v11334_v4 = vstv %s11318_s4  ;;  %s8436_s9 = sld [smem:[#allocation2 + $0xc2]]  ;;  %s8438_s4 = sld [smem:[#allocation2 + $0xd0]] }
 0x4a4   : > { %v1849_v8 = vmul.f32 %v11333_v21, %v7656_v26  ;;  %v1855_v9 = vmul.f32 %v11334_v4, %v7903_v41  ;;  %v1778_v61 = vadd.f32 %v1776_v29, %v1770_v60  ;;  %v1759_v38 = vadd.f32 %v1757_v20, %v1747_v62  ;;  %v11340_v20 = vld [vmem:[#allocation130_spill] sm:$0xff] }
 0x4a5   : > { %v1821_v33 = vadd.f32 %v1819_v50, %v1809_v18  ;;  %v1827_v44 = vadd.f32 %v1825_v48, %v1815_v3  ;;  %v1765_v25 = vadd.f32 %v1763_v6, %v1753_v14  ;;  %v11335_v31 = vstv %s11325_s15  ;;  %s11384_s15 = sld [smem:[#allocation156_spill]] }
 0x4a6   : > { %v1861_v27 = vmul.f32 %v11335_v31, %v7693_v30  ;;  %v11336_v19 = vstv %s11328_s1  ;;  %v11337_v2 = vstv %s11329_s30  ;;  %1782 = vrot.lane.b32.xlu1 %v1778_v61, %s6728_s29  ;;  %v1771_v16 = vadd.f32 %v1769_v39, %v1759_v38  ;;  %v11355_v61 = vld [vmem:[#allocation119_spill] sm:$0xff]  ;;  %v11356_v38 = vld [vmem:[#allocation120_spill] sm:$0xff]  ;;  %s8444_s30 = sld [smem:[#allocation2 + $0xb1]] }
 0x4a7   : > { %v1867_v28 = vmul.f32 %v11336_v19, %v7932_v58  ;;  %v1873_v26 = vmul.f32 %v11337_v2, %v7960_v36  ;;  %v1833_v53 = vadd.f32 %v11338_v63, %v1821_v33  ;;  %v1839_v51 = vadd.f32 %v11339_v37, %v1827_v44  ;;  %v11363_v37 = vld [vmem:[#allocation101_spill] sm:$0xff] }
 0x4a8   : > { %v1810_v59 = vadd.f32 %v7836_v23, %v11340_v20  ;;  %v1777_v6 = vadd.f32 %v1775_v12, %v1765_v25  ;;  %v1816_v49 = vadd.f32 %v11342_v42, %v11341_v35  ;;  %v11343_v46 = vmov %v11331_v15  ;;  %v11364_v20 = vld [vmem:[#allocation104_spill] sm:$0xff]  ;;  %v11365_v42 = vld [vmem:[#allocation105_spill] sm:$0xff] }
 0x4a9   : > { %v1826_v24 = vmul.f32 %v11343_v46, %v7639_v56  ;;  %v11344_v60 = vmov %v11332_v52  ;;  %v1845_v39 = vadd.f32 %v1843_v34, %v1833_v53  ;;  %v1851_v45 = vadd.f32 %v1849_v8, %v1839_v51  ;;  %v11354_v8 = vld [vmem:[#allocation134_spill] sm:$0xff]  ;;  %v11362_v53 = vld [vmem:[#allocation135_spill] sm:$0xff] }
 0x4aa   : > { %v1844_v47 = vmul.f32 %v11344_v60, %v7880_v11  ;;  %v1822_v7 = vadd.f32 %v7865_v5, %v1810_v59  ;;  %v11345_v1 = vmov %v11333_v21  ;;  %v1779_v23 = vadd.f32 %v1777_v6, %v1771_v16  ;;  %v11350_v5 = vld [vmem:[#allocation98_spill] sm:$0xff]  ;;  %v11360_v16 = vld [vmem:[#allocation100_spill] sm:$0xff] }
 0x4ab   : > { %v1850_v18 = vmul.f32 %v11345_v1, %v7652_v32  ;;  %v1828_v55 = vadd.f32 %v1826_v24, %v1816_v49  ;;  %v11346_v12 = vmov %v11334_v4  ;;  %v11347_v3 = vmov %v11335_v31  ;;  %v11353_v21 = vld [vmem:[#allocation131_spill] sm:$0xff]  ;;  %v11358_v31 = vld [vmem:[#allocation124_spill] sm:$0xff]  ;;  %s788_s1 = scalar_lea.vmem %s11384_s15, %s11379_s10  ;;  %s8440_s15 = sld [smem:[#allocation2 + $0x8a]] }
 0x4ac   : > { %v1856_v10 = vmul.f32 %v11346_v12, %v7907_v43  ;;  %v1862_v29 = vmul.f32 %v11347_v3, %v7689_v0  ;;  %v1857_v56 = vadd.f32 %v1855_v9, %v1845_v39  ;;  %v1863_v62 = vadd.f32 %v1861_v27, %v1851_v45  ;;  %1784 = vrot.lane.b32.xlu0 %v1779_v23, %s6728_s29  ;;  %v11359_v27 = vld [vmem:[#allocation125_spill] sm:$0xff]  ;;  %v11370_v45 = vld [vmem:[#allocation126_spill] sm:$0xff]  ;;  %11430 = sst [smem:[#allocation92_spill]] %s8444_s30  ;;  %s8446_s29 = sld [smem:[#allocation2 + $0xb8]] }
 0x4ad   : > { %v1834_v50 = vadd.f32 %v11348_v57, %v1822_v7  ;;  %v11349_v15 = vmov %v11336_v19  ;;  %v1840_v14 = vadd.f32 %v11350_v5, %v1828_v55  ;;  %v11352_v52 = vmov %v11337_v2  ;;  %s8490_s10 = sld [smem:[#allocation2 + $0xb9]] }
 0x4ae   : > { %v1868_v48 = vmul.f32 %v11349_v15, %v7936_v22  ;;  %v1874_v34 = vmul.f32 %v11352_v52, %v7964_v40  ;;  %v1535_v4 = vadd.f32 %v11354_v8, %v11353_v21  ;;  %v1541_v9 = vadd.f32 %v11356_v38, %v11355_v61 }
 0x4af   : > { %v1869_v33 = vadd.f32 %v1867_v28, %v1857_v56  ;;  %v1875_v44 = vadd.f32 %v1873_v26, %v1863_v62  ;;  %v1846_v25 = vadd.f32 %v1844_v47, %v1834_v50  ;;  %v1542_v19 = vadd.f32 %v11359_v27, %v11358_v31 }
 0x4b0   : > { %v1852_v2 = vadd.f32 %v1850_v18, %v1840_v14  ;;  %v1547_v63 = vadd.f32 %v11360_v16, %v1535_v4  ;;  %v1548_v51 = vadd.f32 %v11363_v37, %v11362_v53  ;;  %v1553_v59 = vadd.f32 %v11364_v20, %v1541_v9  ;;  %v2008_v4 = vld [vmem:[%s11373_s14 + $0x18] sm:$0xff] }
 0x4b1   : > { %v1877_v6 = vadd.f32 %v1875_v44, %v1869_v33  ;;  %v1858_v35 = vadd.f32 %v1856_v10, %v1846_v25  ;;  %v1554_v49 = vadd.f32 %v11365_v42, %v1542_v19  ;;  %v11366_v28 = vstv %s11351_s26  ;;  %s8448_s26 = sld [smem:[#allocation2 + $0xbf]] }
 0x4b2   : > { %v1557_v26 = vmul.f32 %v11366_v28, %v7876_v54  ;;  %v1864_v46 = vadd.f32 %v1862_v29, %v1852_v2  ;;  %v11368_v24 = vmov %v11366_v28  ;;  %v11369_v47 = vstv %s11357_s27  ;;  %11431 = sst [smem:[#allocation24_spill]] %s8446_s29  ;;  %s8450_s27 = sld [smem:[#allocation2 + $0xc6]] }
 0x4b3   : > { %v1558_v60 = vmul.f32 %v11368_v24, %v7880_v11  ;;  %v1564_v39 = vmul.f32 %v11369_v47, %v7652_v32  ;;  %v1565_v7 = vadd.f32 %v11370_v45, %v1553_v59  ;;  %1881 = vrot.lane.b32.xlu1 %v1877_v6, %s6729_s23  ;;  %v1870_v1 = vadd.f32 %v1868_v48, %v1858_v35  ;;  %v2005_v32 = vld [vmem:[%s11373_s14] sm:$0xff]  ;;  %11447 = sst [smem:[#allocation39_spill]] %s8490_s10  ;;  %s8512_s10 = sld [smem:[#allocation2 + $0xa4]] }
 0x4b4   : > { %v1559_v18 = vadd.f32 %v1557_v26, %v1547_v63  ;;  %v11371_v23 = vstv %s11361_s7  ;;  %v1876_v10 = vadd.f32 %v1874_v34, %v1864_v46  ;;  %v11374_v29 = vstv %s11367_s22  ;;  %s8452_s7 = sld [smem:[#allocation2 + $0xcd]]  ;;  %s8454_s22 = sld [smem:[#allocation2 + $0xd4]] }
 0x4b5   : > { %v1569_v54 = vmul.f32 %v11371_v23, %v7903_v41  ;;  %v11372_v55 = vmov %v11371_v23  ;;  %v1560_v11 = vadd.f32 %v1558_v60, %v1548_v51  ;;  %v1566_v3 = vadd.f32 %v1564_v39, %v1554_v49 }
 0x4b6   : > { %v1570_v12 = vmul.f32 %v11372_v55, %v7907_v43  ;;  %v1575_v56 = vmul.f32 %v11374_v29, %v7693_v30  ;;  %v11375_v57 = vmov %v11374_v29  ;;  %v1581_v41 = vmul.f32 %v1580_v17, %v7932_v58 }
 0x4b7   : > { %v1571_v62 = vadd.f32 %v1569_v54, %v1559_v18  ;;  %v1576_v50 = vmul.f32 %v11375_v57, %v7689_v0  ;;  %v1582_v43 = vmul.f32 %v1580_v17, %v7936_v22  ;;  %v1878_v15 = vadd.f32 %v1876_v10, %v1870_v1  ;;  %2123 = vperm.xlu1 %6481, %v2005_v32   ;;  %v2007_v0 = vld [vmem:[%s11373_s14 + $0x10] sm:$0xff]  ;;  %v2000_v22 = vld [vmem:[%s11376_s3] sm:$0xff]  ;;  %s11404_s3 = sld [smem:[#allocation19_spill]]  ;;  %11432 = sst [smem:[#allocation99_spill]] %s8448_s26 }
 0x4b8   : > { %v1572_v48 = vadd.f32 %v1570_v12, %v1560_v11  ;;  %v1577_v5 = vadd.f32 %v1575_v56, %v1565_v7  ;;  %v1587_v14 = vmul.f32 %v1586_v13, %v7960_v36  ;;  %v1588_v30 = vmul.f32 %v1586_v13, %v7964_v40  ;;  %v2006_v40 = vld [vmem:[%s11373_s14 + $0x8] sm:$0xff]  ;;  %v2116_v13 = vpop.f32.mrb[2].mxu0  ;;  %11433 = sst [smem:[#allocation25_spill]] %s8450_s27  ;;  %s8472_s14 = sld [smem:[#allocation2 + $0x80]] }
 0x4b9   : > { %v1578_v52 = vadd.f32 %v1576_v50, %v1566_v3  ;;  %v1583_v34 = vadd.f32 %v1581_v41, %v1571_v62  ;;  %1883 = vrot.lane.b32.xlu0 %v1878_v15, %s6729_s23  ;;  %v6285_v61 = vpop.f32.mrb[3].mxu0  ;;  %vm1303_vm0 = vcmask 392192   ;;  %vm11377_vm2 = vcmask 130048   ;;  %s11397_s23 = sld [smem:[#allocation17_spill]]  ;;  %11458 = sst [smem:[#allocation49_spill]] %s8512_s10 }
 0x4ba   : > { %v1584_v58 = vadd.f32 %v1582_v43, %v1572_v48  ;;  %v1589_v21 = vadd.f32 %v1587_v14, %v1577_v5  ;;  %vm11378_vm3 = vmmov %vm11377_vm2  ;;  %vm1687_vm4 = vcmask 916480   ;;  %vm1885_vm11 = vcmask 654336   ;;  %v11389_v61 = vld [vmem:[#allocation23_spill] sm:$0xff]  ;;  %11434 = sst [smem:[#allocation26_spill]] %s8452_s7  ;;  %s8528_s10 = sld [smem:[#allocation2 + $0xdd]] }
 0x4bb   : > { %v1590_v17 = vadd.f32 %v1588_v30, %v1578_v52  ;;  %2133 = vperm.xlu1 %6481, %v2007_v0   ;;  %v1893_v54 = vstv %s5735_s11  ;;  %v11380_v5 = vlaneseq  ;;  %v2001_v0 = vld [vmem:[%s11383_s20] sm:$0xff]  ;;  %vm11387_vm12 = vcmask 64512   ;;  %vm11401_vm8 = vmmov %vm11377_vm2  ;;  %s11425_s11 = smov 125   ;;  %11435 = sst [smem:[#allocation27_spill]] %s8454_s22 }
 0x4bc   : > { %v1591_v8 = vadd.f32 %v1589_v21, %v1583_v34  ;;  %vm11391_vm13 = vmmov %vm11387_vm12  ;;  %vm11395_vm7 = vmmov 0  }
 0x4bd   : > { %v1592_v36 = vadd.f32 %v1590_v17, %v1584_v58  ;;  %2044 = vperm.xlu0 %6480, %v2000_v22   ;;  %v8281_v14 = vshrl.u32 %v11380_v5, 7  ;;  %v11385_v22 = vld [vmem:[#allocation20_spill] sm:$0xff]  ;;  %vm11392_vm14 = vmmov %vm11387_vm12 }
 0x4be   : > { %vm11393_vm15 = vmmov %vm11387_vm12  ;;  %11438 = sst [smem:[#allocation30_spill]] %s8472_s14 }
 0x4bf   : > { %11381 = vst [vmem:[#allocation114_spill] sm:$0xff] %v8281_v14  ;;  %v8284_v52 = vsub.s32 0, %v8281_v14  ;;  %s10731_s2 = sshll.u32 %s11397_s23, 6  ;;  %vm11402_vm10 = vmmov %vm11377_vm2  ;;  %s8476_s23 = sld [smem:[#allocation2 + $0x87]] }
 0x4c0   : > { %s8327_s24 = scalar_lea.vmem %s11399_s19, %s10731_s2  ;;  %s8460_s19 = sld [smem:[#allocation2 + $0x9f]] }
 0x4c1   : > { %2128 = vperm.xlu0 %6480, %v2006_v40   ;;  %11382 = vst [vmem:[#allocation121_spill] sm:$0xff] %v8284_v52  ;;  %v2002_v40 = vld [vmem:[%s11383_s20 + $0x8] sm:$0xff]  ;;  %11400 = sst [smem:[#allocation88_spill]] %s8327_s24 }
 0x4c2   : > { %s8466_s2 = sld [smem:[#allocation2 + $0xad]]  ;;  %11466 = sst [smem:[#allocation59_spill]] %s8528_s10 }
 0x4c3   : > { %s8545_s10 = sld [smem:[#allocation2 + $0xac]] }
 0x4c5   : > { %2138 = vperm.xlu0 %6480, %v2008_v4   ;;  %11440 = sst [smem:[#allocation32_spill]] %s8476_s23  ;;  %s8498_s23 = sld [smem:[#allocation2 + $0xd5]] }
 0x4c9   : > { %11474 = sst [smem:[#allocation67_spill]] %s8545_s10  ;;  %s8584_s10 = sld [smem:[#allocation2 + $0xb5]] }
 0x4cb   : > { %11451 = sst [smem:[#allocation44_spill]] %s8498_s23  ;;  %s8518_s23 = sld [smem:[#allocation2 + $0xba]] }
 0x4d1   : > { %11461 = sst [smem:[#allocation53_spill]] %s8518_s23  ;;  %s8534_s23 = sld [smem:[#allocation2 + $0x90]] }
 0x4d7   : > { %11469 = sst [smem:[#allocation62_spill]] %s8534_s23  ;;  %s8551_s23 = sld [smem:[#allocation2 + $0xa7]] }
 0x4dd   : > { %11476 = sst [smem:[#allocation69_spill]] %s8551_s23  ;;  %s11479_s23 = sld [smem:[#allocation29_spill]] }
 0x4ef   : > { %v1302_v38 = vpop.permute.xlu1 %1301 }
 0x4f0   : > { %v1300_v9 = vpop.permute.xlu0 %1299 }
 0x4f1   : > { %v1304_v16 = vsel %vm1303_vm0, %v1300_v9, %v1302_v38  ;;  %v1307_v63 = vsel %vm1303_vm0, 0.0, %v1300_v9  ;;  %v2003_v9 = vld [vmem:[%s11383_s20 + $0x10] sm:$0xff] }
 0x4f3   : > { %v1401_v33 = vpop.permute.xlu1 %1400 }
 0x4f4   : > { %v1399_v44 = vpop.permute.xlu0 %1398 }
 0x4f5   : > { %v1403_v27 = vsel %vm1402_vm5, %v1399_v44, %v1401_v33  ;;  %v1406_v19 = vsel %vm1402_vm5, 0.0, %v1399_v44  ;;  %vm1786_vm5 = vcmask 785408   ;;  %v11390_v33 = vmov 0.0|0.0   ;;  %v2004_v44 = vld [vmem:[%s11383_s20 + $0x18] sm:$0xff]  ;;  %s8474_s20 = sld [smem:[#allocation2 + $0xc9]] }
 0x4f6   : > { %v1407_v51 = vadd.f32 %v1406_v19, %v1307_v63  ;;  %v1408_v20 = vadd.f32 %v1403_v27, %v1304_v16 }
 0x4f7   : > { %v1500_v25 = vpop.permute.xlu1 %1499 }
 0x4fb   : > { %11439 = sst [smem:[#allocation31_spill]] %s8474_s20  ;;  %s8496_s20 = sld [smem:[#allocation2 + $0xce]] }
 0x501   : > { %11450 = sst [smem:[#allocation42_spill]] %s8496_s20  ;;  %s8516_s20 = sld [smem:[#allocation2 + $0xb3]] }
 0x503   : > { %v1498_v31 = vpop.permute.xlu0 %1497 }
 0x504   : > { %v1501_v53 = vsel %vm11377_vm2, %v1498_v31, %v1500_v25  ;;  %v1504_v37 = vsel %vm11378_vm3, 0.0, %v1498_v31  ;;  %v11394_v25 = vmov 0.0   ;;  %vm11403_vm3 = vmmov %vm11377_vm2 }
 0x505   : > { %v1505_v6 = vadd.f32 %v1504_v37, %v1407_v51  ;;  %v1506_v35 = vadd.f32 %v1501_v53, %v1408_v20 }
 0x507   : > { %v1593_v49 = vadd.f32 %v1591_v8, %v1505_v6  ;;  %v1594_v28 = vadd.f32 %v1592_v36, %v1506_v35  ;;  %v11386_v8 = vld [vmem:[#allocation22_spill] sm:$0xff]  ;;  %11460 = sst [smem:[#allocation51_spill]] %s8516_s20  ;;  %s8532_s20 = sld [smem:[#allocation2 + $0x89]] }
 0x50a   : > { %v1684_v2 = vpop.permute.xlu1 %1683 }
 0x50d   : > { %11468 = sst [smem:[#allocation65_spill]] %s8532_s20  ;;  %s8549_s20 = sld [smem:[#allocation2 + $0xd8]] }
 0x50f   : > { %v1686_v59 = vpop.permute.xlu0 %1685 }
 0x510   : > { %v1688_v46 = vsel %vm1687_vm4, %v1684_v2, %v1686_v59  ;;  %v1691_v24 = vsel %vm1687_vm4, %v1686_v59, 0.0 }
 0x511   : > { %v1692_v39 = vadd.f32 %v1688_v46, %v1593_v49  ;;  %v1693_v45 = vadd.f32 %v1691_v24, %v1594_v28  ;;  %v2952_v49 = vld [vmem:[%s8327_s24 + $0x8] sm:$0xff]  ;;  %v8334_v24 = vld [vmem:[%s8327_s24 + $0x10] sm:$0xff] }
 0x512   : > { %v2980_v28 = vsel %vm11401_vm8, %v2952_v49, 0.0 }
 0x513   : > { %11475 = sst [smem:[#allocation68_spill]] %s8549_s20  ;;  %s8570_s20 = sld [smem:[#allocation2 + $0xbd]] }
 0x518   : > { %v1783_v42 = vpop.permute.xlu1 %1782 }
 0x519   : > { %11484 = sst [smem:[#allocation71_spill]] %s8570_s20 }
 0x51e   : > { %v1785_v26 = vpop.permute.xlu0 %1784 }
 0x51f   : > { %v1787_v60 = vsel %vm1786_vm5, %v1783_v42, %v1785_v26  ;;  %v1790_v47 = vsel %vm1786_vm5, %v1785_v26, 0.0  ;;  %v2951_v26 = vld [vmem:[%s8327_s24] sm:$0xff]  ;;  %vm11405_vm5 = vmmov %vm11377_vm2 }
 0x520   : > { %v1791_v1 = vadd.f32 %v1787_v60, %v1692_v39  ;;  %v1792_v18 = vadd.f32 %v1790_v47, %v1693_v45  ;;  %v3009_v46 = vsel %vm11402_vm10, %v2951_v26, -inf  ;;  %v2977_v60 = vsel %vm11377_vm2, %v2951_v26, 0.0 }
 0x521   : > { %v2983_v47 = vsel %vm11403_vm3, %v8334_v24, 0.0 }
 0x525   : > { %v1882_v7 = vpop.permute.xlu1 %1881 }
 0x52b   : > { %v1884_v23 = vpop.permute.xlu0 %1883 }
 0x52c   : > { %v1886_v55 = vsel %vm1885_vm11, %v1882_v7, %v1884_v23  ;;  %v1889_v12 = vsel %vm1885_vm11, %v1884_v23, 0.0  ;;  %vm11408_vm11 = vcmask 523264  }
 0x52d   : > { %v1890_v10 = vadd.f32 %v1886_v55, %v1791_v1  ;;  %v1891_v32 = vadd.f32 %v1889_v12, %v1792_v18  ;;  %vm11415_vm8 = vmmov %vm11408_vm11 }
 0x52e   : > { %vm11417_vm10 = vmmov %vm11415_vm8 }
 0x52f   : > { %v1894_v11 = vadd.f32 %v1893_v54, %v1890_v10  ;;  %v1895_v3 = vadd.f32 %v1893_v54, %v1891_v32  ;;  %vm11418_vm2 = vmmov %vm11415_vm8 }
 0x530   : > { %vm11419_vm3 = vmmov %vm11418_vm2 }
 0x531   : > { %v5736_v29 = vmul.f32 -1.442695, %v1894_v11  ;;  %v5737_v56 = vmul.f32 -1.442695, %v1895_v3 }
 0x533   : > { %6554 = vpow2.f32 %v5736_v29 }
 0x534   : > { %6556 = vpow2.f32 %v5737_v56 }
 0x536   : > { %v2124_v2 = vpop.permute.xlu1 %2123 }
 0x53a   : > { %v2134_v59 = vpop.permute.xlu1 %2133 }
 0x53c   : > { %v2045_v62 = vpop.permute.xlu0 %2044 }
 0x53d   : > { %v6555_v57 = vpop.eup %6554  ;;  %v2117_v50 = vadd.f32 %v2116_v13, %v2045_v62  ;;  %v11388_v13 = vld [vmem:[#allocation21_spill] sm:$0xff] }
 0x53e   : > { %v6557_v41 = vpop.eup %6556  ;;  %v1902_v43 = vadd.f32 1.0, %v6555_v57 }
 0x53f   : > { %v1903_v15 = vadd.f32 1.0, %v6557_v41  ;;  %v2120_v48 = vmax.f32 %v2117_v50, 0.0 }
 0x540   : > { %6558 = vrcp.f32 %v1902_v43  ;;  %v2129_v19 = vpop.permute.xlu0 %2128 }
 0x541   : > { %6560 = vrcp.f32 %v1903_v15  ;;  %6286 = vmatprep.subr.mxu1 %v2120_v48 }
 0x544   : > { %v2139_v51 = vpop.permute.xlu0 %2138 }
 0x54a   : > { %v6559_v34 = vpop.eup %6558 }
 0x54b   : > { %v6561_v30 = vpop.eup %6560  ;;  %v1911_v58 = vrot.slane %v6559_v34, %v8284_v52 }
 0x54c   : > { %1984 = vmatprep.mubr.f32.mxu1 %v6561_v30  ;;  %v1915_v21 = vrot.slane %v6561_v30, %v8284_v52  ;;  %v3012_v30 = vsel %vm11405_vm5, %v2952_v49, -inf  ;;  %vm11420_vm5 = vmmov %vm11418_vm2 }
 0x54d   : > { %1985 = vmatmul.mubr.f32.vlgmr.msra.gmra.mrb[2].mxu1 %v6559_v34  ;;  %v1916_v17 = vmul.f32 %v1911_v58, %v11385_v22  ;;  %v1918_v36 = vmul.f32 %v1911_v58, %v11386_v8  ;;  %v6622_v8 = vld [vmem:[%s11404_s3 + $0x8] sm:$0xff] }
 0x54e   : > { %6287 = vmatpush3.msra.mxu1 %v2120_v48  ;;  %6288 = vmatprep.mubr.msk.f32.mxu1 %vm11387_vm12, %v2001_v0  ;;  %v1917_v4 = vmul.f32 %v1915_v21, %v11388_v13  ;;  %v1919_v38 = vmul.f32 %v1915_v21, %v11389_v61  ;;  %v6623_v13 = vld [vmem:[%s11404_s3] sm:$0xff]  ;;  %vm8352_vm12 = vmpackc.low %vm11408_vm11, %vm11408_vm11  ;;  %v2600_v61 = vstv %s8450_s27  ;;  %s8573_s27 = sld [smem:[#allocation2 + $0x8d]] }
 0x54f   : > { %6390 = vmatprep.subr.bf16.mxu1 %v11390_v33  ;;  %1991 = vst [vmem:[%s788_s1] sm:$0xff] %v1916_v17  ;;  %1993 = vst [vmem:[%s788_s1 + $0x10] sm:$0xff] %v1918_v36 }
 0x550   : > { %1992 = vst [vmem:[%s788_s1 + $0x8] sm:$0xff] %v1917_v4  ;;  %1994 = vst [vmem:[%s788_s1 + $0x18] sm:$0xff] %v1919_v38  ;;  %s8442_s1 = sld [smem:[#allocation2 + $0x83]] }
 0x551   : > { %6289 = vmatmul.mubr.msk.f32.vlgmr.msra.gmra.mrb[4].mxu1 %vm11391_vm13, %v2002_v40  ;;  %vm11411_vm13 = vmmov %vm11408_vm11 }
 0x552   : > { %6291 = vmatprep.mubr.msk.f32.mxu1 %vm11392_vm14, %v2003_v9  ;;  %vm11412_vm14 = vmmov %vm11408_vm11 }
 0x554   : > { %11487 = sst [smem:[#allocation74_spill]] %s8573_s27 }
 0x555   : > { %6292 = vmatmul.mubr.msk.f32.gmra.mrb[6].mxu1 %vm11393_vm15, %v2004_v44  ;;  %vm11414_vm15 = vmmov %vm11408_vm11  ;;  %vm11428_vm11 = vcmask 130048  }
 0x556   : > { %6354 = vmatprep.mubr.msk.f32.mxu1 %vm11395_vm7, %v11394_v25 }
 0x620   : > { %v8315_v31 = vpop.f32.mrb[2].mxu1 }
 0x621   : > { %11396 = vst [vmem:[#allocation80_spill] sm:$0xff] %v8315_v31  ;;  %v1988_v27 = vpop.f32.mrb[3].mxu1 }
 0x624   : > { %v6290_v16 = vpop.f32.mrb[4].mxu1 }
 0x625   : > { %v2225_v63 = vadd.f32 %v6290_v16, %v2129_v19  ;;  %v2219_v53 = vpop.f32.mrb[5].mxu1  ;;  %v6624_v19 = vld [vmem:[%s11404_s3 + $0x18] sm:$0xff] }
 0x626   : > { %v2220_v37 = vadd.f32 %v2219_v53, %v2124_v2 }
 0x627   : > { %2244 = vrot.lane.b32.xlu0 %v2225_v63, %s11398_s21 }
 0x628   : > { %v6293_v20 = vpop.f32.mrb[6].mxu1  ;;  %2242 = vrot.lane.b32.xlu1 %v2220_v37, %s11398_s21 }
 0x629   : > { %v2235_v6 = vadd.f32 %v6293_v20, %v2139_v51  ;;  %v2229_v35 = vpop.f32.mrb[7].mxu1 }
 0x62a   : > { %v2230_v42 = vadd.f32 %v2229_v35, %v2134_v59 }
 0x62b   : > { %2248 = vrot.lane.b32.xlu0 %v2235_v6, %s11398_s21 }
 0x62c   : > { %2246 = vrot.lane.b32.xlu1 %v2230_v42, %s11398_s21 }
 0x64a   : > { %2981 = vadd.xlane.f32.xlu0 %v2980_v28 }
 0x64e   : > { %3010 = vmax.xlane.f32.xlu0 %v3009_v46 }
 0x650   : > { %2978 = vadd.xlane.f32.xlu1 %v2977_v60 }
 0x652   : > { %2984 = vadd.xlane.f32.xlu0 %v2983_v47 }
 0x699   : > { %v2245_v39 = vpop.permute.xlu0 %2244 }
 0x69a   : > { %v2255_v45 = vadd.f32 %v2245_v39, %v2225_v63  ;;  %v2243_v7 = vpop.permute.xlu1 %2242 }
 0x69b   : > { %v2254_v1 = vadd.f32 %v2243_v7, %v2220_v37  ;;  %v6625_v37 = vld [vmem:[%s11404_s3 + $0x10] sm:$0xff]  ;;  %s8462_s3 = sld [smem:[#allocation2 + $0xa6]] }
 0x69c   : > { %v5744_v18 = vmul.f32 -1.442695, %v2255_v45 }
 0x69d   : > { %v5743_v23 = vmul.f32 -1.442695, %v2254_v1  ;;  %v2249_v54 = vpop.permute.xlu0 %2248 }
 0x69e   : > { %6562 = vpow2.f32 %v5744_v18  ;;  %v2257_v55 = vadd.f32 %v2249_v54, %v2235_v6  ;;  %v2247_v12 = vpop.permute.xlu1 %2246 }
 0x69f   : > { %6564 = vpow2.f32 %v5743_v23  ;;  %v2256_v10 = vadd.f32 %v2247_v12, %v2230_v42 }
 0x6a0   : > { %v5746_v32 = vmul.f32 -1.442695, %v2257_v55 }
 0x6a1   : > { %v5745_v11 = vmul.f32 -1.442695, %v2256_v10 }
 0x6a2   : > { %6566 = vpow2.f32 %v5746_v32 }
 0x6a3   : > { %6568 = vpow2.f32 %v5745_v11 }
 0x6a8   : > { %v6563_v3 = vpop.eup %6562 }
 0x6a9   : > { %v6565_v29 = vpop.eup %6564  ;;  %v2271_v56 = vadd.f32 1.0, %v6563_v3 }
 0x6aa   : > { %v2270_v62 = vadd.f32 1.0, %v6565_v29 }
 0x6ab   : > { %6570 = vrcp.f32 %v2271_v56 }
 0x6ac   : > { %v6567_v57 = vpop.eup %6566  ;;  %6572 = vrcp.f32 %v2270_v62 }
 0x6ad   : > { %v6569_v50 = vpop.eup %6568  ;;  %v2273_v41 = vadd.f32 1.0, %v6567_v57 }
 0x6ae   : > { %v2272_v43 = vadd.f32 1.0, %v6569_v50 }
 0x6af   : > { %6574 = vrcp.f32 %v2273_v41 }
 0x6b0   : > { %6576 = vrcp.f32 %v2272_v43  ;;  %v3015_v43 = vsel %vm11428_vm11, %v8334_v24, -inf  ;;  %v11472_v24 = vld [vmem:[#allocation55_spill] sm:$0xff] }
 0x6b5   : > { %v6571_v15 = vpop.eup %6570 }
 0x6b6   : > { %v6573_v48 = vpop.eup %6572  ;;  %2289 = vperm.xlu0 %6480, %v6571_v15   ;;  %v8428_v15 = vld [vmem:[%s8327_s24 + $0x18] sm:$0xff]  ;;  %s8492_s24 = sld [smem:[#allocation2 + $0xc0]] }
 0x6b7   : > { %2284 = vperm.xlu1 %6481, %v6573_v48  }
 0x6b9   : > { %v6575_v5 = vpop.eup %6574 }
 0x6ba   : > { %v6577_v34 = vpop.eup %6576  ;;  %2299 = vperm.xlu0 %6480, %v6575_v5   ;;  %v8541_v5 = vand.u32 7, %v11472_v24 }
 0x6bb   : > { %2294 = vperm.xlu1 %6481, %v6577_v34   ;;  %v2498_v34 = vstv %s8432_s16  ;;  %s8561_s16 = sld [smem:[#allocation2 + $0x8b]] }
 0x6bc   : > { %11448 = sst [smem:[#allocation41_spill]] %s8492_s24  ;;  %s8514_s24 = sld [smem:[#allocation2 + $0xab]] }
 0x6bd   : > { %s11492_s20 = sld [smem:[#allocation41_spill]] }
 0x6c1   : > { %11477 = sst [smem:[#allocation70_spill]] %s8561_s16  ;;  %s8575_s16 = sld [smem:[#allocation2 + $0xbe]] }
 0x6c2   : > { %11459 = sst [smem:[#allocation50_spill]] %s8514_s24  ;;  %s8530_s24 = sld [smem:[#allocation2 + $0x82]] }
 0x6c8   : > { %11467 = sst [smem:[#allocation60_spill]] %s8530_s24  ;;  %s8730_s24 = sld [smem:[#allocation2 + $0xb0]] }
 0x6ce   : > { %11540 = sst [smem:[#allocation78_spill]] %s8730_s24 }
 0x6d7   : > { %v2982_v0 = vpop.xlane.xlu0 %2981 }
 0x6d8   : > { %v3002_v56 = vmul.f32 0.0625, %v2982_v0  ;;  %v2494_v0 = vstv %s8440_s15  ;;  %s11480_s15 = sld [smem:[#allocation31_spill]] }
 0x6db   : > { %v8340_v58 = vpop.xlane.xlu0 %3010 }
 0x6dd   : > { %v2979_v22 = vpop.xlane.xlu1 %2978 }
 0x6de   : > { %v3001_v29 = vmul.f32 0.0625, %v2979_v22  ;;  %v2561_v22 = vstv %s8436_s9  ;;  %s11481_s9 = sld [smem:[#allocation32_spill]] }
 0x6df   : > { %3013 = vmax.xlane.f32.xlu1 %v3012_v30  ;;  %v8342_v21 = vpop.xlane.xlu0 %2984  ;;  %v2434_v30 = vstv %s8434_s5  ;;  %s8563_s5 = sld [smem:[#allocation2 + $0xbc]] }
 0x6e0   : > { %v8418_v57 = vsel %vm824_vm1, %v3001_v29, %v8340_v58  ;;  %v2430_v58 = vstv %s8442_s1  ;;  %s8568_s1 = sld [smem:[#allocation2 + $0x8c]] }
 0x6e1   : > { %11426 = vst [vmem:[#allocation132_spill] sm:$0xff] %v8418_v57 }
 0x6e5   : > { %11478 = sst [smem:[#allocation72_spill]] %s8563_s5 }
 0x6e6   : > { %11482 = sst [smem:[#allocation75_spill]] %s8568_s1  ;;  %s8582_s1 = sld [smem:[#allocation2 + $0x84]] }
 0x735   : > { %v2290_v17 = vpop.permute.xlu0 %2289 }
 0x736   : > { %v8345_v36 = vmul.f32 %v6622_v8, %v2290_v17  ;;  %v2285_v40 = vpop.permute.xlu1 %2284  ;;  %v2682_v17 = vstv %s8438_s4  ;;  %v2410_v8 = vstv %s8444_s30  ;;  %s8714_s4 = sld [smem:[#allocation2 + $0xda]] }
 0x737   : > { %v8348_v4 = vmul.f32 %v6623_v13, %v2285_v40  ;;  %v2474_v40 = vstv %s8446_s29  ;;  %v2537_v13 = vstv %s8448_s26 }
 0x738   : > { %11406 = vst [vmem:[#allocation81_spill] sm:$0xff] %v8345_v36  ;;  %v2307_v38 = vsel %vm11411_vm13, %v8345_v36, 0.0  ;;  %v2321_v63 = vsel %vm11414_vm15, %v8345_v36, -inf  ;;  %vm2334_vm13 = vcmp.ge.s32.totalorder %v8541_v5, 3  ;;  %vm2358_vm15 = vcmp.ge.s32.totalorder %v8541_v5, 1 }
 0x739   : > { %11407 = vst [vmem:[#allocation84_spill] sm:$0xff] %v8348_v4  ;;  %v2306_v9 = vsel %vm11412_vm14, %v8348_v4, 0.0  ;;  %v6371_v44 = vpack.c.bf16 %v8345_v36, %v8348_v4  ;;  %v2300_v27 = vpop.permute.xlu0 %2299  ;;  %v2320_v53 = vsel %vm11415_vm8, %v8348_v4, -inf  ;;  %vm2347_vm14 = vcmp.ge.s32.totalorder %v8541_v5, 2 }
 0x73a   : > { %v8363_v2 = vmul.f32 %v6624_v19, %v2300_v27  ;;  %v2295_v16 = vpop.permute.xlu1 %2294  ;;  %v2308_v20 = vadd.f32 %v2307_v38, %v2306_v9  ;;  %v2324_v42 = vmax.f32 %v2320_v53, %v2321_v63  ;;  %v2658_v38 = vstv %s8452_s7 }
 0x73b   : > { %v8370_v51 = vmul.f32 %v6625_v37, %v2295_v16  ;;  %6373 = vmatpush3.bf16.xpose.msk.msra.mxu0 %vm8352_vm12, %v6371_v44  ;;  %v2722_v9 = vstv %s8454_s22  ;;  %v2785_v44 = vstv %s8456_s17  ;;  %v2557_v27 = vstv %s8458_s13  ;;  %s11491_s17 = sld [smem:[#allocation39_spill]]  ;;  %s11493_s13 = sld [smem:[#allocation42_spill]] }
 0x73c   : > { %11413 = vst [vmem:[#allocation85_spill] sm:$0xff] %v8363_v2  ;;  %v2323_v59 = vsel %vm11417_vm10, %v8363_v2, -inf  ;;  %6374 = vmatprep.subr.bf16.mxu0 %v11390_v33  ;;  %v2311_v26 = vsel %vm11420_vm5, %v8363_v2, 0.0  ;;  %v2678_v19 = vstv %s8460_s19  ;;  %v2742_v16 = vstv %s8462_s3  ;;  %s11494_s19 = sld [smem:[#allocation44_spill]]  ;;  %s8593_s3 = sld [smem:[#allocation2 + $0x85]] }
 0x73d   : > { %11416 = vst [vmem:[#allocation127_spill] sm:$0xff] %v8370_v51  ;;  %v2309_v6 = vsel %vm11418_vm2, %v8370_v51, 0.0  ;;  %v2322_v35 = vsel %vm11419_vm3, %v8370_v51, -inf  ;;  %v6375_v47 = vpack.c.bf16 %v8363_v2, %v8370_v51  ;;  %v2746_v63 = vstv %s8464_s28 }
 0x73e   : > { %v2310_v49 = vadd.f32 %v2309_v6, %v2308_v20  ;;  %v2325_v28 = vmax.f32 %v2322_v35, %v2323_v59  ;;  %v2805_v53 = vstv %s8466_s2  ;;  %v2406_v37 = vstv %s8472_s14  ;;  %s8595_s2 = sld [smem:[#allocation2 + $0xb6]] }
 0x73f   : > { %v2809_v20 = vstv %s8468_s25  ;;  %v2620_v59 = vstv %s11479_s23  ;;  %v2624_v6 = vstv %s11480_s15  ;;  %v2470_v35 = vstv %s11481_s9  ;;  %s8601_s25 = sld [smem:[#allocation2 + $0x86]]  ;;  %s8603_s23 = sld [smem:[#allocation2 + $0xb7]] }
 0x740   : > { %v2312_v46 = vadd.f32 %v2311_v26, %v2310_v49  ;;  %v2326_v60 = vmax.f32 %v2324_v42, %v2325_v28  ;;  %s8658_s15 = sld [smem:[#allocation2 + $0xa0]]  ;;  %vm2373_vm8 = vcmask 515072   ;;  %vm2385_vm10 = vcmask 506880   ;;  %s11587_s9 = sld [smem:[#allocation60_spill]] }
 0x741   : > { %vm2369_vm2 = vcmp.lt.s32.totalorder %v8541_v5, 7  ;;  %vm2381_vm3 = vcmp.lt.s32.totalorder %v8541_v5, 6  ;;  %vm2397_vm5 = vcmask 498688  }
 0x742   : > { %v2313_v39 = vrot.slane %v2312_v46, 4  ;;  %v2327_v45 = vrot.slane %v2326_v60, 4  ;;  %v11623_v52 = vstv %s8593_s3  ;;  %s11636_s3 = smov 16  }
 0x743   : > { %6377 = vmatpush3.bf16.xpose.msk.msra.mxu0 %vm8352_vm12, %v6375_v47  ;;  %vm11429_vm12 = vmmov %vm11428_vm11  ;;  %v2482_v47 = vstv %s11491_s17  ;;  %s8728_s17 = sld [smem:[#allocation2 + $0xa9]]  ;;  %vm2393_vm11 = vcmp.lt.s32.totalorder %v8541_v5, 5 }
 0x744   : > { %v2314_v7 = vadd.f32 %v2313_v39, %v2312_v46  ;;  %v2328_v1 = vmax.f32 %v2326_v60, %v2327_v45  ;;  %6378 = vmatprep.subr.bf16.mxu0 %v11390_v33  ;;  %v2986_v48 = vsel %vm11429_vm12, %v8428_v15, 0.0  ;;  %v2545_v39 = vstv %s11492_s20  ;;  %s8637_s20 = sld [smem:[#allocation2 + $0xc5]] }
 0x745   : > { %v2608_v45 = vstv %s8494_s0  ;;  %s8625_s0 = sld [smem:[#allocation2 + $0xc4]] }
 0x746   : > { %v2315_v18 = vrot.slane %v2314_v7, 2  ;;  %v2329_v23 = vrot.slane %v2328_v1, 2  ;;  %11510 = sst [smem:[#allocation107_spill]] %s8658_s15  ;;  %s8683_s15 = sld [smem:[#allocation2 + $0xd9]] }
 0x748   : > { %v2316_v54 = vadd.f32 %v2315_v18, %v2314_v7  ;;  %v2330_v55 = vmax.f32 %v2328_v1, %v2329_v23  ;;  %v2666_v7 = vstv %s11493_s13  ;;  %v2730_v18 = vstv %s11494_s19  ;;  %s8623_s13 = sld [smem:[#allocation2 + $0x93]]  ;;  %s8681_s19 = sld [smem:[#allocation2 + $0xd2]] }
 0x74a   : > { %v2317_v12 = vrot.slane %v2316_v54, 1  ;;  %v2331_v10 = vrot.slane %v2330_v55, 1  ;;  %11505 = sst [smem:[#allocation102_spill]] %s8637_s20  ;;  %s11586_s20 = sld [smem:[#allocation59_spill]] }
 0x74b   : > { %11502 = sst [smem:[#allocation96_spill]] %s8625_s0 }
 0x74c   : > { %v2318_v32 = vadd.f32 %v2317_v12, %v2316_v54  ;;  %v8388_v11 = vmax.f32 %v2330_v55, %v2331_v10  ;;  %11521 = sst [smem:[#allocation110_spill]] %s8683_s15 }
 0x74d   : > { %s11591_s0 = sld [smem:[#allocation62_spill]] }
 0x74e   : > { %v8390_v3 = vmul.f32 0.03125, %v2318_v32  ;;  %2342 = vrot.lane.b32.xlu0 %v8388_v11, %s11421_s12  ;;  %v8609_v1 = vmul.f32 %v2498_v34, %v8388_v11  ;;  %v8621_v55 = vmul.f32 %v2434_v30, %v8388_v11  ;;  %11501 = sst [smem:[#allocation76_spill]] %s8623_s13  ;;  %s8704_s13 = sld [smem:[#allocation2 + $0xa8]] }
 0x74f   : > { %11520 = sst [smem:[#allocation111_spill]] %s8681_s19  ;;  %s8698_s19 = sld [smem:[#allocation2 + $0xe0]] }
 0x750   : > { %2336 = vrot.lane.b32.xlu1 %v8390_v3, %s11421_s12  ;;  %s8486_s12 = sld [smem:[#allocation2 + $0xaa]]  ;;  %v8618_v54 = vmul.f32 %v2494_v0, %v8390_v3  ;;  %v8630_v32 = vmul.f32 %v2430_v58, %v8390_v3  ;;  %v8633_v29 = vmul.f32 %v2557_v27, %v8390_v3  ;;  %v8656_v0 = vmul.f32 %v2682_v17, %v8388_v11 }
 0x751   : > { %v8661_v58 = vmul.f32 %v2742_v16, %v8390_v3  ;;  %v8667_v27 = vmul.f32 %v2746_v63, %v8388_v11  ;;  %v8673_v17 = vmul.f32 %v2809_v20, %v8388_v11  ;;  %v8686_v63 = vmul.f32 %v2620_v59, %v8390_v3 }
 0x752   : > { %2353 = vrot.lane.b32.xlu0 %v8388_v11, %s11422_s6 }
 0x754   : > { %2348 = vrot.lane.b32.xlu1 %v8390_v3, %s11422_s6  ;;  %s8484_s6 = sld [smem:[#allocation2 + $0xa3]] }
 0x755   : > { %11527 = sst [smem:[#allocation79_spill]] %s8698_s19  ;;  %s11574_s19 = sld [smem:[#allocation50_spill]] }
 0x756   : > { %2364 = vrot.lane.b32.xlu0 %v8388_v11, %s11423_s8  ;;  %11445 = sst [smem:[#allocation37_spill]] %s8486_s12  ;;  %s8508_s12 = sld [smem:[#allocation2 + $0x96]] }
 0x757   : > { %s11489_s7 = sld [smem:[#allocation37_spill]]  ;;  %11531 = sst [smem:[#allocation82_spill]] %s8704_s13 }
 0x758   : > { %2359 = vrot.lane.b32.xlu1 %v8390_v3, %s11423_s8  ;;  %s8482_s8 = sld [smem:[#allocation2 + $0x9c]] }
 0x75a   : > { %2376 = vrot.lane.b32.xlu0 %v8388_v11, %s11398_s21  ;;  %11444 = sst [smem:[#allocation36_spill]] %s8484_s6  ;;  %s8506_s6 = sld [smem:[#allocation2 + $0x8f]] }
 0x75b   : > { %s11488_s5 = sld [smem:[#allocation36_spill]] }
 0x75c   : > { %2370 = vrot.lane.b32.xlu1 %v8390_v3, %s11398_s21  ;;  %s8488_s21 = sld [smem:[#allocation2 + $0xb2]]  ;;  %11456 = sst [smem:[#allocation47_spill]] %s8508_s12 }
 0x75d   : > { %s8526_s12 = sld [smem:[#allocation2 + $0xd6]]  ;;  %v2781_v46 = vstv %s11489_s7  ;;  %s11571_s13 = sld [smem:[#allocation47_spill]] }
 0x75e   : > { %2388 = vrot.lane.b32.xlu0 %v8388_v11, %s11424_s18  ;;  %11443 = sst [smem:[#allocation35_spill]] %s8482_s8  ;;  %s8504_s8 = sld [smem:[#allocation2 + $0x88]] }
 0x75f   : > { %s11486_s26 = sld [smem:[#allocation35_spill]]  ;;  %s8675_s7 = sld [smem:[#allocation2 + $0xae]] }
 0x760   : > { %2382 = vrot.lane.b32.xlu1 %v8390_v3, %s11424_s18  ;;  %s8480_s18 = sld [smem:[#allocation2 + $0x95]]  ;;  %11455 = sst [smem:[#allocation46_spill]] %s8506_s6 }
 0x761   : > { %s8524_s6 = sld [smem:[#allocation2 + $0xcf]]  ;;  %v2718_v26 = vstv %s11488_s5  ;;  %s8613_s5 = sld [smem:[#allocation2 + $0xc3]] }
 0x762   : > { %2400 = vrot.lane.b32.xlu0 %v8388_v11, %s11425_s11  ;;  %11446 = sst [smem:[#allocation38_spill]] %s8488_s21  ;;  %s8510_s21 = sld [smem:[#allocation2 + $0x9d]] }
 0x763   : > { %11465 = sst [smem:[#allocation58_spill]] %s8526_s12  ;;  %s11490_s22 = sld [smem:[#allocation38_spill]] }
 0x764   : > { %2394 = vrot.lane.b32.xlu1 %v8390_v3, %s11425_s11  ;;  %s8478_s11 = sld [smem:[#allocation2 + $0x8e]]  ;;  %11454 = sst [smem:[#allocation45_spill]] %s8504_s8 }
 0x765   : > { %s8543_s12 = sld [smem:[#allocation2 + $0xa5]]  ;;  %v2654_v28 = vstv %s11486_s26  ;;  %11516 = sst [smem:[#allocation109_spill]] %s8675_s7 }
 0x766   : > { %11442 = sst [smem:[#allocation34_spill]] %s8480_s18  ;;  %s8502_s18 = sld [smem:[#allocation2 + $0x81]] }
 0x767   : > { %11464 = sst [smem:[#allocation57_spill]] %s8524_s6  ;;  %s8538_s6 = sld [smem:[#allocation2 + $0x9e]] }
 0x768   : > { %11457 = sst [smem:[#allocation48_spill]] %s8510_s21  ;;  %s11485_s29 = sld [smem:[#allocation34_spill]] }
 0x769   : > { %v2418_v60 = vstv %s11490_s22  ;;  %11499 = sst [smem:[#allocation73_spill]] %s8613_s5  ;;  %s8649_s22 = sld [smem:[#allocation2 + $0xdf]] }
 0x76a   : > { %11441 = sst [smem:[#allocation33_spill]] %s8478_s11  ;;  %s8500_s11 = sld [smem:[#allocation2 + $0xdc]] }
 0x76b   : > { %11473 = sst [smem:[#allocation66_spill]] %s8543_s12  ;;  %s8677_s21 = sld [smem:[#allocation2 + $0x99]] }
 0x76c   : > { %v3014_v62 = vpop.xlane.xlu1 %3013  ;;  %11453 = sst [smem:[#allocation61_spill]] %s8502_s18  ;;  %s11483_s30 = sld [smem:[#allocation33_spill]] }
 0x76d   : > { %v8421_v50 = vsel %vm824_vm1, %v3002_v56, %v3014_v62  ;;  %s8522_s18 = sld [smem:[#allocation2 + $0xc8]]  ;;  %11471 = sst [smem:[#allocation64_spill]] %s8538_s6 }
 0x76e   : > { %11427 = vst [vmem:[#allocation112_spill] sm:$0xff] %v8421_v50  ;;  %v2596_v49 = vstv %s11485_s29  ;;  %s11496_s14 = sld [smem:[#allocation61_spill]]  ;;  %s8611_s29 = sld [smem:[#allocation2 + $0x92]] }
 0x76f   : > { %11509 = sst [smem:[#allocation106_spill]] %s8649_s22  ;;  %s8696_s7 = sld [smem:[#allocation2 + $0xa1]] }
 0x770   : > { %11452 = sst [smem:[#allocation52_spill]] %s8500_s11  ;;  %s8520_s11 = sld [smem:[#allocation2 + $0xc1]] }
 0x771   : > { %s11495_s28 = sld [smem:[#allocation52_spill]]  ;;  %11517 = sst [smem:[#allocation108_spill]] %s8677_s21 }
 0x772   : > { %v2533_v42 = vstv %s11483_s30  ;;  %s8663_s30 = sld [smem:[#allocation2 + $0xca]]  ;;  %s8706_s26 = sld [smem:[#allocation2 + $0xaf]] }
 0x773   : > { %11463 = sst [smem:[#allocation56_spill]] %s8522_s18  ;;  %s8536_s18 = sld [smem:[#allocation2 + $0x97]] }
 0x774   : > { %v2414_v12 = vstv %s11496_s14  ;;  %s8647_s14 = sld [smem:[#allocation2 + $0xd1]]  ;;  %s11538_s8 = sld [smem:[#allocation107_spill]] }
 0x775   : > { %11525 = sst [smem:[#allocation77_spill]] %s8696_s7  ;;  %s11535_s12 = sld [smem:[#allocation96_spill]] }
 0x776   : > { %11462 = sst [smem:[#allocation54_spill]] %s8520_s11  ;;  %s11569_s27 = sld [smem:[#allocation45_spill]] }
 0x777   : > { %v2793_v23 = vstv %s11495_s28  ;;  %s8635_s28 = sld [smem:[#allocation2 + $0x94]]  ;;  %s11570_s7 = sld [smem:[#allocation46_spill]] }
 0x778   : > { %11512 = sst [smem:[#allocation103_spill]] %s8663_s30  ;;  %s8720_s30 = sld [smem:[#allocation2 + $0xa2]] }
 0x779   : > { %11470 = sst [smem:[#allocation63_spill]] %s8536_s18  ;;  %s8722_s18 = sld [smem:[#allocation2 + $0xe1]] }
 0x77a   : > { %11508 = sst [smem:[#allocation93_spill]] %s8647_s14  ;;  %s8712_s14 = sld [smem:[#allocation2 + $0xd3]] }
 0x77b   : > { %11532 = sst [smem:[#allocation40_spill]] %s8706_s26  ;;  %s11539_s15 = sld [smem:[#allocation93_spill]] }
 0x77c   : > { %s11572_s24 = sld [smem:[#allocation48_spill]]  ;;  %s11573_s26 = sld [smem:[#allocation49_spill]] }
 0x77d   : > { %11504 = sst [smem:[#allocation89_spill]] %s8635_s28  ;;  %s11582_s28 = sld [smem:[#allocation53_spill]] }
 0x77e   : > { %s11536_s6 = sld [smem:[#allocation89_spill]]  ;;  %s11583_s5 = sld [smem:[#allocation54_spill]] }
 0x77f   : > { %11533 = sst [smem:[#allocation83_spill]] %s8722_s18  ;;  %s11580_s18 = sld [smem:[#allocation51_spill]] }
 0x780   : > { %s11584_s21 = sld [smem:[#allocation57_spill]]  ;;  %s11585_s22 = sld [smem:[#allocation58_spill]] }
 0x781   : > { %3016 = vmax.xlane.f32.xlu0 %v3015_v43  ;;  %v8642_v43 = vmul.f32 %v2561_v22, %v8388_v11  ;;  %s11589_s11 = sld [smem:[#allocation65_spill]] }
 0x782   : > { %v11578_v14 = vstv %s11572_s24  ;;  %s11598_s24 = sld [smem:[#allocation68_spill]] }
 0x788   : > { %2987 = vadd.xlane.f32.xlu1 %v2986_v48  ;;  %v8645_v48 = vmul.f32 %v2678_v19, %v8390_v3  ;;  %v8670_v19 = vmul.f32 %v2805_v53, %v8390_v3  ;;  %v8689_v53 = vmul.f32 %v2624_v6, %v8388_v11 }
 0x7c0   : > { %v2343_v22 = vpop.permute.xlu0 %2342 }
 0x7c1   : > { %v2345_v56 = vsel %vm1078_vm6, 0.0, %v2343_v22 }
 0x7c2   : > { %v2346_v20 = vsel %vm2334_vm13, %v2345_v56, 0.0  ;;  %v2337_v16 = vpop.permute.xlu1 %2336 }
 0x7c3   : > { %v2411_v59 = vmul.f32 %v2410_v8, %v2346_v20  ;;  %v2475_v62 = vmul.f32 %v2474_v40, %v2346_v20  ;;  %v2538_v56 = vmul.f32 %v2537_v13, %v2346_v20  ;;  %v2339_v6 = vsel %vm1078_vm6, 0.0, %v2337_v16 }
 0x7c4   : > { %v2354_v11 = vpop.permute.xlu0 %2353  ;;  %v2601_v41 = vmul.f32 %v2600_v61, %v2346_v20  ;;  %v2659_v22 = vmul.f32 %v2658_v38, %v2346_v20  ;;  %v2340_v8 = vsel %vm2334_vm13, %v2339_v6, 0.0  ;;  %v2723_v13 = vmul.f32 %v2722_v9, %v2346_v20  ;;  %vm11671_vm13 = vmmov %vm11429_vm12 }
 0x7c5   : > { %v2356_v40 = vsel %vm1103_vm9, 0.0, %v2354_v11  ;;  %v2786_v16 = vmul.f32 %v2785_v44, %v2346_v20  ;;  %v2407_v10 = vmul.f32 %v2406_v37, %v2340_v8  ;;  %v2471_v61 = vmul.f32 %v2470_v35, %v2340_v8 }
 0x7c6   : > { %v2349_v34 = vpop.permute.xlu1 %2348  ;;  %v2534_v38 = vmul.f32 %v2533_v42, %v2340_v8  ;;  %v2597_v30 = vmul.f32 %v2596_v49, %v2340_v8  ;;  %v2655_v6 = vmul.f32 %v2654_v28, %v2340_v8  ;;  %v2357_v9 = vsel %vm2347_vm14, %v2356_v40, 0.0 }
 0x7c7   : > { %v2419_v44 = vmul.f32 %v2418_v60, %v2357_v9  ;;  %v2483_v37 = vmul.f32 %v2482_v47, %v2357_v9  ;;  %v2546_v35 = vmul.f32 %v2545_v39, %v2357_v9  ;;  %v2609_v20 = vmul.f32 %v2608_v45, %v2357_v9 }
 0x7c8   : > { %v2365_v42 = vpop.permute.xlu0 %2364  ;;  %v2719_v49 = vmul.f32 %v2718_v26, %v2340_v8  ;;  %v2782_v28 = vmul.f32 %v2781_v46, %v2340_v8  ;;  %v2794_v11 = vmul.f32 %v2793_v23, %v2357_v9  ;;  %v2351_v40 = vsel %vm1103_vm9, 0.0, %v2349_v34 }
 0x7c9   : > { %v8812_v60 = vadd.f32 %v2419_v44, %v2411_v59  ;;  %v8814_v47 = vadd.f32 %v2609_v20, %v2601_v41  ;;  %v2667_v39 = vmul.f32 %v2666_v7, %v2357_v9  ;;  %v2731_v45 = vmul.f32 %v2730_v18, %v2357_v9 }
 0x7ca   : > { %v2360_v26 = vpop.permute.xlu1 %2359  ;;  %v2484_v46 = vadd.f32 %v2483_v37, %v2475_v62  ;;  %v8822_v23 = vadd.f32 %v2546_v35, %v2538_v56  ;;  %v8824_v34 = vadd.f32 %v2794_v11, %v2786_v16  ;;  %v2352_v41 = vsel %vm2347_vm14, %v2351_v40, 0.0  ;;  %vm11673_vm14 = vmmov %vm11429_vm12 }
 0x7cb   : > { %v2415_v59 = vmul.f32 %v2414_v12, %v2352_v41  ;;  %v11575_v7 = vstv %s11569_s27  ;;  %v11576_v44 = vstv %s11570_s7  ;;  %v11577_v9 = vstv %s11571_s13  ;;  %s11592_s27 = sld [smem:[#allocation64_spill]]  ;;  %s11594_s7 = sld [smem:[#allocation66_spill]] }
 0x7cc   : > { %v2479_v8 = vmul.f32 %v11575_v7, %v2352_v41  ;;  %v2542_v18 = vmul.f32 %v11576_v44, %v2352_v41  ;;  %v2605_v20 = vmul.f32 %v11577_v9, %v2352_v41  ;;  %v2377_v3 = vpop.permute.xlu0 %2376  ;;  %v2663_v31 = vmul.f32 %v11578_v14, %v2352_v41  ;;  %s11596_s13 = sld [smem:[#allocation67_spill]] }
 0x7cd   : > { %v11579_v62 = vstv %s11573_s26  ;;  %v11581_v16 = vstv %s11574_s19  ;;  %v2367_v35 = vsel %vm824_vm1, 0.0, %v2365_v42  ;;  %v8844_v12 = vadd.f32 %v2667_v39, %v2659_v22  ;;  %s11599_s26 = sld [smem:[#allocation69_spill]]  ;;  %s11607_s19 = sld [smem:[#allocation70_spill]] }
 0x7ce   : > { %v2727_v56 = vmul.f32 %v11579_v62, %v2352_v41  ;;  %v2790_v37 = vmul.f32 %v11581_v16, %v2352_v41  ;;  %v2732_v11 = vadd.f32 %v2731_v45, %v2723_v13  ;;  %v2416_v40 = vadd.f32 %v2415_v59, %v2407_v10  ;;  %v2371_v14 = vpop.permute.xlu1 %2370 }
 0x7cf   : > { %v8846_v7 = vadd.f32 %v2605_v20, %v2597_v30  ;;  %v2480_v44 = vadd.f32 %v2479_v8, %v2471_v61  ;;  %v8848_v9 = vadd.f32 %v2542_v18, %v2534_v38  ;;  %v8854_v42 = vsel %vm2358_vm15, %v2367_v35, 0.0 }
 0x7d0   : > { %v8850_v62 = vadd.f32 %v2790_v37, %v2782_v28  ;;  %v8856_v41 = vadd.f32 %v2663_v31, %v2655_v6  ;;  %v2728_v22 = vadd.f32 %v2727_v56, %v2719_v49  ;;  %v11588_v13 = vstv %s11580_s18  ;;  %v2389_v38 = vpop.permute.xlu0 %2388  ;;  %s11608_s18 = sld [smem:[#allocation72_spill]] }
 0x7d1   : > { %v2427_v10 = vmul.f32 %v11588_v13, %v8854_v42  ;;  %v11590_v30 = vstv %s11582_s28  ;;  %v11593_v28 = vstv %s11583_s5  ;;  %v11595_v45 = vstv %s11584_s21  ;;  %s11609_s28 = sld [smem:[#allocation75_spill]]  ;;  %s11611_s5 = sld [smem:[#allocation71_spill]] }
 0x7d2   : > { %v2491_v61 = vmul.f32 %v11590_v30, %v8854_v42  ;;  %v2554_v39 = vmul.f32 %v11593_v28, %v8854_v42  ;;  %v8870_v31 = vmul.f32 %v11595_v45, %v8854_v42  ;;  %v11597_v6 = vstv %s11585_s22  ;;  %v2383_v16 = vpop.permute.xlu1 %2382  ;;  %s11613_s21 = sld [smem:[#allocation74_spill]]  ;;  %s11622_s22 = sld [smem:[#allocation73_spill]] }
 0x7d3   : > { %v2739_v49 = vmul.f32 %v11597_v6, %v8854_v42  ;;  %v2362_v59 = vsel %vm824_vm1, 0.0, %v2360_v26  ;;  %v2379_v18 = vsel %vm2373_vm8, %v2377_v3, 0.0  ;;  %v2374_v20 = vsel %vm2373_vm8, %v2371_v14, 0.0  ;;  %vm11675_vm8 = vmmov %vm11429_vm12 }
 0x7d4   : > { %v8878_v8 = vsel %vm2358_vm15, %v2362_v59, 0.0  ;;  %v2391_v56 = vsel %vm2385_vm10, %v2389_v38, 0.0  ;;  %v11600_v35 = vstv %s11586_s20  ;;  %v11601_v26 = vstv %s11587_s9  ;;  %v2401_v24 = vpop.permute.xlu0 %2400  ;;  %s11652_s20 = sld [smem:[#allocation106_spill]]  ;;  %s9060_s9 = sld [smem:[#allocation2 + $0x9b]]  ;;  %vm11674_vm15 = vmmov %vm11429_vm12 }
 0x7d5   : > { %v8883_v37 = vadd.f32 %v2739_v49, %v2732_v11  ;;  %v8888_v13 = vmul.f32 %v11600_v35, %v8854_v42  ;;  %v2423_v30 = vmul.f32 %v11601_v26, %v8878_v8  ;;  %v11602_v28 = vstv %s11589_s11  ;;  %s11655_s11 = sld [smem:[#allocation40_spill]] }
 0x7d6   : > { %v2487_v45 = vmul.f32 %v11602_v28, %v8878_v8  ;;  %v11603_v3 = vstv %s11591_s0  ;;  %v11604_v38 = vstv %s11592_s27  ;;  %v11605_v11 = vstv %s11594_s7  ;;  %s10826_s0 = smov 8   ;;  %s11658_s27 = sld [smem:[#allocation78_spill]] }
 0x7d7   : > { %v2550_v14 = vmul.f32 %v11603_v3, %v8878_v8  ;;  %v8902_v6 = vmul.f32 %v11604_v38, %v8878_v8  ;;  %v2735_v49 = vmul.f32 %v11605_v11, %v8878_v8  ;;  %v11606_v59 = vstv %s11596_s13  ;;  %s11662_s7 = sld [smem:[#allocation108_spill]]  ;;  %s11664_s13 = sld [smem:[#allocation103_spill]] }
 0x7d8   : > { %v8910_v35 = vmul.f32 %v11606_v59, %v8878_v8  ;;  %v8914_v26 = vsel %vm2369_vm2, %v2379_v18, 0.0  ;;  %v8918_v28 = vsel %vm2369_vm2, %v2374_v20, 0.0  ;;  %v8922_v3 = vsel %vm2381_vm3, %v2391_v56, 0.0  ;;  %v2395_v56 = vpop.permute.xlu1 %2394  ;;  %vm11677_vm2 = vmmov %vm11675_vm8 }
 0x7d9   : > { %v2386_v38 = vsel %vm2385_vm10, %v2383_v16, 0.0  ;;  %v8925_v11 = vadd.f32 %v2735_v49, %v2728_v22  ;;  %v11610_v59 = vstv %s11598_s24  ;;  %v11612_v18 = vstv %s11599_s26  ;;  %s11670_s24 = sld [smem:[#allocation88_spill]]  ;;  %s10825_s26 = smov 120   ;;  %vm11676_vm10 = vmmov %vm11675_vm8 }
 0x7da   : > { %v8930_v2 = vmul.f32 %v11610_v59, %v8914_v26  ;;  %v8935_v51 = vmul.f32 %v11612_v18, %v8918_v28  ;;  %v8939_v20 = vsel %vm2381_vm3, %v2386_v38, 0.0  ;;  %v2403_v16 = vsel %vm2397_vm5, %v2401_v24, 0.0  ;;  %vm11679_vm3 = vmmov %vm11677_vm2 }
 0x7db   : > { %v2398_v22 = vsel %vm2397_vm5, %v2395_v56, 0.0  ;;  %v2488_v49 = vadd.f32 %v2487_v45, %v2480_v44  ;;  %v2492_v36 = vadd.f32 %v2491_v61, %v2484_v46  ;;  %v8945_v59 = vsel %vm2393_vm11, %v2403_v16, 0.0  ;;  %vm11680_vm5 = vmmov %vm11677_vm2 }
 0x7dc   : > { %v8949_v18 = vsel %vm2393_vm11, %v2398_v22, 0.0  ;;  %v11614_v38 = vstv %s11607_s19  ;;  %v11615_v33 = vstv %s11608_s18  ;;  %v11616_v61 = vstv %s11609_s28  ;;  %s11672_s19 = smov 112   ;;  %s6733_s18 = smov 104  }
 0x7dd   : > { %v2503_v4 = vmul.f32 %v11614_v38, %v8918_v28  ;;  %v2507_v24 = vmul.f32 %v11615_v33, %v8914_v26  ;;  %v2496_v44 = vadd.f32 %v8618_v54, %v2488_v49  ;;  %v2500_v46 = vadd.f32 %v8609_v1, %v2492_v36  ;;  %s9368_s28 = sld [smem:[#allocation2 + $0x13f]] }
 0x7de   : > { %v2511_v45 = vmul.f32 %v11616_v61, %v8939_v20  ;;  %v11617_v56 = vstv %s11611_s5  ;;  %v11618_v16 = vstv %s11613_s21  ;;  %v11619_v38 = vstv %s8575_s16  ;;  %s11626_s16 = sld [smem:[#allocation76_spill]]  ;;  %s11678_s21 = sld [smem:[#allocation150_spill]] }
 0x7df   : > { %v2515_v5 = vmul.f32 %v11617_v56, %v8922_v3  ;;  %v2519_v22 = vmul.f32 %v11618_v16, %v8949_v18  ;;  %v2523_v25 = vmul.f32 %v11619_v38, %v8945_v59  ;;  %v2424_v33 = vadd.f32 %v2423_v30, %v2416_v40  ;;  %s11701_s5 = sld [smem:[#allocation147_spill]] }
 0x7e0   : > { %v2428_v57 = vadd.f32 %v2427_v10, %v8812_v60  ;;  %v2504_v54 = vadd.f32 %v2503_v4, %v2496_v44  ;;  %v2508_v49 = vadd.f32 %v2507_v24, %v2500_v46  ;;  %v11620_v36 = vstv %s8582_s1  ;;  %s11635_s1 = sld [smem:[#allocation111_spill]] }
 0x7e1   : > { %v2439_v1 = vmul.f32 %v11620_v36, %v8918_v28  ;;  %v11621_v61 = vstv %s8584_s10  ;;  %v2432_v56 = vadd.f32 %v8630_v32, %v2424_v33  ;;  %v2447_v38 = vmul.f32 %v11623_v52, %v8939_v20  ;;  %s11629_s10 = sld [smem:[#allocation102_spill]] }
 0x7e2   : > { %v2443_v50 = vmul.f32 %v11621_v61, %v8914_v26  ;;  %v2436_v16 = vadd.f32 %v8621_v55, %v2428_v57  ;;  %v11624_v40 = vstv %s8595_s2  ;;  %v2512_v4 = vadd.f32 %v2511_v45, %v2504_v54  ;;  %s9039_s2 = sld [smem:[#allocation2 + $0xcb]] }
 0x7e3   : > { %v2451_v60 = vmul.f32 %v11624_v40, %v8922_v3  ;;  %v2516_v10 = vadd.f32 %v2515_v5, %v2508_v49  ;;  %v11625_v30 = vstv %s8601_s25  ;;  %v11627_v44 = vstv %s8603_s23  ;;  %s11646_s25 = sld [smem:[#allocation56_spill]]  ;;  %s11647_s23 = sld [smem:[#allocation63_spill]] }
 0x7e4   : > { %v2455_v24 = vmul.f32 %v11625_v30, %v8949_v18  ;;  %v2459_v46 = vmul.f32 %v11627_v44, %v8945_v59  ;;  %v2440_v32 = vadd.f32 %v2439_v1, %v2432_v56  ;;  %v2444_v33 = vadd.f32 %v2443_v50, %v2436_v16  ;;  %11749 = sst [smem:[#allocation31_spill]] %s9368_s28 }
 0x7e5   : > { %v2551_v57 = vadd.f32 %v2550_v14, %v8848_v9  ;;  %v2555_v52 = vadd.f32 %v2554_v39, %v8822_v23  ;;  %v2520_v55 = vadd.f32 %v2519_v22, %v2512_v4  ;;  %v2524_v36 = vadd.f32 %v2523_v25, %v2516_v10 }
 0x7e6   : > { %v11628_v45 = vstv %s8611_s29  ;;  %v11630_v54 = vstv %s11622_s22  ;;  %v2448_v61 = vadd.f32 %v2447_v38, %v2440_v32  ;;  %v2452_v40 = vadd.f32 %v2451_v60, %v2444_v33  ;;  %s11634_s29 = sld [smem:[#allocation77_spill]]  ;;  %s9372_s22 = sld [smem:[#allocation2 + $0x14d]] }
 0x7e7   : > { %v2566_v5 = vmul.f32 %v11628_v45, %v8918_v28  ;;  %v2570_v49 = vmul.f32 %v11630_v54, %v8914_v26  ;;  %v2559_v30 = vadd.f32 %v8633_v29, %v2551_v57  ;;  %v2563_v50 = vadd.f32 %v8642_v43, %v2555_v52 }
 0x7e8   : > { %v2525_v1 = vadd.f32 %v2524_v36, %v2520_v55  ;;  %v11631_v9 = vstv %s11626_s16  ;;  %v11632_v25 = vstv %s11535_s12  ;;  %v11633_v14 = vstv %s11536_s6  ;;  %s11642_s12 = sld [smem:[#allocation82_spill]]  ;;  %s11643_s6 = sld [smem:[#allocation110_spill]] }
 0x7e9   : > { %v2574_v23 = vmul.f32 %v11631_v9, %v8939_v20  ;;  %v2578_v39 = vmul.f32 %v11632_v25, %v8922_v3  ;;  %v2582_v22 = vmul.f32 %v11633_v14, %v8949_v18  ;;  %v2456_v56 = vadd.f32 %v2455_v24, %v2448_v61  ;;  %s9374_s16 = sld [smem:[#allocation2 + $0x154]] }
 0x7ea   : > { %v2460_v16 = vadd.f32 %v2459_v46, %v2452_v40  ;;  %v2567_v38 = vadd.f32 %v2566_v5, %v2559_v30  ;;  %v2571_v60 = vadd.f32 %v2570_v49, %v2563_v50  ;;  %2527 = vrot.lane.b32.xlu0 %v2525_v1, %s11636_s3  ;;  %v11637_v29 = vstv %s11629_s10  ;;  %s11703_s10 = sld [smem:[#allocation149_spill]]  ;;  %s9424_s3 = sld [smem:[#allocation2 + $0x140]] }
 0x7eb   : > { %v2586_v43 = vmul.f32 %v11637_v29, %v8945_v59  ;;  %v2672_v4 = vadd.f32 %v8902_v6, %v8856_v41  ;;  %v2676_v10 = vadd.f32 %v8870_v31, %v8844_v12  ;;  %v11638_v44 = vstv %s11538_s8  ;;  %s6730_s8 = smov 24  }
 0x7ec   : > { %v2687_v24 = vmul.f32 %v11638_v44, %v8918_v28  ;;  %v2461_v32 = vadd.f32 %v2460_v16, %v2456_v56  ;;  %v2575_v46 = vadd.f32 %v2574_v23, %v2567_v38  ;;  %v2579_v33 = vadd.f32 %v2578_v39, %v2571_v60  ;;  %11751 = sst [smem:[#allocation89_spill]] %s9372_s22 }
 0x7ed   : > { %v11639_v57 = vstv %s11539_s15  ;;  %v2680_v55 = vadd.f32 %v8645_v48, %v2672_v4  ;;  %v2684_v36 = vadd.f32 %v8656_v0, %v2676_v10  ;;  %v11640_v45 = vstv %s11634_s29  ;;  %s9045_s15 = sld [smem:[#allocation2 + $0x9a]]  ;;  %s9376_s29 = sld [smem:[#allocation2 + $0x15b]] }
 0x7ee   : > { %v2691_v52 = vmul.f32 %v11639_v57, %v8914_v26  ;;  %v2695_v41 = vmul.f32 %v11640_v45, %v8939_v20  ;;  %v11641_v6 = vstv %s11635_s1  ;;  %2463 = vrot.lane.b32.xlu1 %v2461_v32, %s6730_s8  ;;  %v2583_v31 = vadd.f32 %v2582_v22, %v2575_v46  ;;  %s9378_s1 = sld [smem:[#allocation2 + $0x10a]]  ;;  %s9384_s8 = sld [smem:[#allocation2 + $0x134]] }
 0x7ef   : > { %v2699_v12 = vmul.f32 %v11641_v6, %v8922_v3  ;;  %v2587_v5 = vadd.f32 %v2586_v43, %v2579_v33  ;;  %v11644_v54 = vstv %s8720_s30  ;;  %v11645_v48 = vstv %s8712_s14  ;;  %s9047_s30 = sld [smem:[#allocation2 + $0xcc]]  ;;  %s11651_s14 = sld [smem:[#allocation109_spill]] }
 0x7f0   : > { %v2703_v49 = vmul.f32 %v11644_v54, %v8949_v18  ;;  %v2707_v61 = vmul.f32 %v11645_v48, %v8945_v59  ;;  %v2688_v0 = vadd.f32 %v2687_v24, %v2680_v55  ;;  %v2692_v40 = vadd.f32 %v2691_v52, %v2684_v36  ;;  %11752 = sst [smem:[#allocation107_spill]] %s9374_s16 }
 0x7f1   : > { %v2744_v30 = vadd.f32 %v8661_v58, %v8925_v11  ;;  %v2748_v50 = vadd.f32 %v8667_v27, %v8883_v37  ;;  %v2588_v1 = vadd.f32 %v2587_v5, %v2583_v31  ;;  %v11648_v9 = vstv %s11642_s12  ;;  %s9380_s12 = sld [smem:[#allocation2 + $0x13b]]  ;;  %11764 = sst [smem:[#allocation34_spill]] %s9424_s3 }
 0x7f2   : > { %v2759_v23 = vmul.f32 %v11648_v9, %v8939_v20  ;;  %v11649_v25 = vstv %s11643_s6  ;;  %v11650_v14 = vstv %s8728_s17  ;;  %v2696_v56 = vadd.f32 %v2695_v41, %v2688_v0  ;;  %s11657_s17 = sld [smem:[#allocation79_spill]]  ;;  %s9382_s6 = sld [smem:[#allocation2 + $0x103]] }
 0x7f3   : > { %v2763_v39 = vmul.f32 %v11649_v25, %v8922_v3  ;;  %v2767_v22 = vmul.f32 %v11650_v14, %v8949_v18  ;;  %v2700_v58 = vadd.f32 %v2699_v12, %v2692_v40  ;;  %v2752_v27 = vadd.f32 %v8935_v51, %v2744_v30  ;;  %2590 = vrot.lane.b32.xlu1 %v2588_v1, %s10826_s0  ;;  %11753 = sst [smem:[#allocation93_spill]] %s9376_s29  ;;  %s9418_s0 = sld [smem:[#allocation2 + $0x12a]] }
 0x7f4   : > { %v2756_v37 = vadd.f32 %v8930_v2, %v2748_v50  ;;  %v11653_v11 = vstv %s11646_s25  ;;  %v11654_v38 = vstv %s11647_s23  ;;  %v11656_v29 = vstv %s8714_s4  ;;  %s11661_s4 = sld [smem:[#allocation83_spill]]  ;;  %s9388_s25 = sld [smem:[#allocation2 + $0x150]] }
 0x7f5   : > { %v2617_v16 = vmul.f32 %v11653_v11, %v8854_v42  ;;  %v2613_v60 = vmul.f32 %v11654_v38, %v8878_v8  ;;  %v2771_v43 = vmul.f32 %v11656_v29, %v8945_v59  ;;  %v2799_v51 = vadd.f32 %v8910_v35, %v8850_v62  ;;  %v9135_v29 = vld [vmem:[%s11670_s24 + $0x38] sm:$0xff]  ;;  %s11681_s23 = sld [smem:[#allocation148_spill]] }
 0x7f6   : > { %v2704_v2 = vadd.f32 %v2703_v49, %v2696_v56  ;;  %v2708_v4 = vadd.f32 %v2707_v61, %v2700_v58  ;;  %v2760_v10 = vadd.f32 %v2759_v23, %v2752_v27  ;;  %v2764_v42 = vadd.f32 %v2763_v39, %v2756_v37  ;;  %s9444_s3 = sld [smem:[#allocation2 + $0x124]] }
 0x7f7   : > { %v2803_v8 = vadd.f32 %v8888_v13, %v8824_v34  ;;  %v2807_v44 = vadd.f32 %v8670_v19, %v2799_v51  ;;  %v11659_v24 = vstv %s11651_s14  ;;  %v11660_v46 = vstv %s11652_s20  ;;  %s9396_s14 = sld [smem:[#allocation2 + $0x15e]] }
 0x7f8   : > { %v2814_v32 = vmul.f32 %v11659_v24, %v8918_v28  ;;  %v2818_v62 = vmul.f32 %v11660_v46, %v8914_v26  ;;  %v2709_v35 = vadd.f32 %v2708_v4, %v2704_v2  ;;  %v2768_v33 = vadd.f32 %v2767_v22, %v2760_v10  ;;  %v2969_v2 = vld [vmem:[%s11678_s21] sm:$0xff]  ;;  %v2970_v4 = vld [vmem:[%s11678_s21 + $0x8] sm:$0xff]  ;;  %v2972_v10 = vld [vmem:[%s11678_s21 + $0x18] sm:$0xff]  ;;  %s9398_s20 = sld [smem:[#allocation2 + $0x126]] }
 0x7f9   : > { %v2772_v57 = vadd.f32 %v2771_v43, %v2764_v42  ;;  %v11663_v52 = vstv %s11655_s11  ;;  %v2811_v34 = vadd.f32 %v8673_v17, %v2803_v8  ;;  %v11665_v19 = vstv %s11657_s17  ;;  %v9151_v42 = vld [vmem:[%s11670_s24 + $0x30] sm:$0xff]  ;;  %v2974_v8 = vld [vmem:[%s11678_s21 + $0x28] sm:$0xff]  ;;  %s5845_s17 = sld [smem:[#allocation2 + $0xe2]]  ;;  %s9402_s11 = sld [smem:[#allocation2 + $0x118]] }
 0x7fa   : > { %v2822_v55 = vmul.f32 %v11663_v52, %v8939_v20  ;;  %v2815_v13 = vadd.f32 %v2814_v32, %v2807_v44  ;;  %v2826_v36 = vmul.f32 %v11665_v19, %v8922_v3  ;;  %v11666_v45 = vstv %s11658_s27  ;;  %v2976_v24 = vld [vmem:[%s11678_s21 + $0x38] sm:$0xff]  ;;  %s11684_s27 = sld [smem:[#allocation18_spill]] }
 0x7fb   : > { %v2830_v41 = vmul.f32 %v11666_v45, %v8949_v18  ;;  %v2773_v6 = vadd.f32 %v2772_v57, %v2768_v33  ;;  %v2636_v12 = vstv %s9045_s15  ;;  %v2640_v31 = vstv %s9039_s2  ;;  %v2960_v46 = vld [vmem:[%s11681_s23] sm:$0xff]  ;;  %v2975_v33 = vld [vmem:[%s11678_s21 + $0x30] sm:$0xff]  ;;  %s9386_s2 = sld [smem:[#allocation2 + $0x11f]]  ;;  %s9390_s23 = sld [smem:[#allocation2 + $0x111]] }
 0x7fc   : > { %v2648_v5 = vstv %s9047_s30  ;;  %v2819_v54 = vadd.f32 %v2818_v62, %v2811_v34  ;;  %v2823_v49 = vadd.f32 %v2822_v55, %v2815_v13  ;;  %v11667_v48 = vstv %s11661_s4  ;;  %v2971_v62 = vld [vmem:[%s11678_s21 + $0x10] sm:$0xff]  ;;  %s11744_s4 = smov 1   ;;  %s9392_s15 = sld [smem:[#allocation2 + $0x142]] }
 0x7fd   : > { %v2834_v61 = vmul.f32 %v11667_v48, %v8945_v59  ;;  %v2614_v0 = vadd.f32 %v2613_v60, %v8846_v7  ;;  %v2618_v17 = vadd.f32 %v2617_v16, %v8814_v47  ;;  %v11668_v40 = vstv %s11662_s7  ;;  %s11745_s7 = smov 126   ;;  %s9394_s30 = sld [smem:[#allocation2 + $0x12d]] }
 0x7fe   : > { %v2629_v30 = vmul.f32 %v11668_v40, %v8918_v28  ;;  %v11669_v50 = vstv %s11664_s13  ;;  %v2644_v9 = vstv %s9060_s9  ;;  %v2827_v23 = vadd.f32 %v2826_v36, %v2819_v54  ;;  %s11687_s13 = sld [smem:[#allocation157_spill]]  ;;  %s9400_s9 = sld [smem:[#allocation2 + $0x157]] }
 0x7ff   : > { %v2633_v1 = vmul.f32 %v11669_v50, %v8914_v26  ;;  %v2831_v25 = vadd.f32 %v2830_v41, %v2823_v49  ;;  %v2622_v39 = vadd.f32 %v8686_v63, %v2614_v0  ;;  %v2637_v14 = vmul.f32 %v2636_v12, %v8939_v20  ;;  %v9117_v20 = vld [vmem:[%s11670_s24 + $0x20] sm:$0xff]  ;;  %11761 = sst [smem:[#allocation30_spill]] %s9418_s0  ;;  %s9440_s0 = sld [smem:[#allocation2 + $0x116]] }
 0x800   : > { %v2626_v22 = vadd.f32 %v8689_v53, %v2618_v17  ;;  %v2641_v7 = vmul.f32 %v2640_v31, %v8922_v3  ;;  %v2835_v56 = vadd.f32 %v2834_v61, %v2827_v23  ;;  %v2645_v58 = vmul.f32 %v2644_v9, %v8949_v18  ;;  %v9128_v18 = vld [vmem:[%s11670_s24 + $0x28] sm:$0xff]  ;;  %11774 = sst [smem:[#allocation44_spill]] %s9444_s3  ;;  %s9460_s3 = sld [smem:[#allocation2 + $0x15d]] }
 0x801   : > { %v2630_v47 = vadd.f32 %v2629_v30, %v2622_v39  ;;  %v2649_v27 = vmul.f32 %v2648_v5, %v8945_v59  ;;  %v2989_v53 = vsel %vm11429_vm12, %v9117_v20, 0.0  ;;  %v3018_v3 = vsel %vm11671_vm13, %v8428_v15, -inf  ;;  %vm11682_vm12 = vmmov %vm11677_vm2 }
 0x802   : > { %v2634_v28 = vadd.f32 %v2633_v1, %v2626_v22  ;;  %v2836_v26 = vadd.f32 %v2835_v56, %v2831_v25  ;;  %v3021_v59 = vsel %vm11673_vm14, %v9117_v20, -inf  ;;  %v2992_v60 = vsel %vm11674_vm15, %v9128_v18, 0.0 }
 0x803   : > { %v2638_v37 = vadd.f32 %v2637_v14, %v2630_v47  ;;  %v3024_v15 = vsel %vm11675_vm8, %v9128_v18, -inf  ;;  %v2998_v43 = vsel %vm11676_vm10, %v9135_v29, 0.0  ;;  %v3030_v51 = vsel %vm11677_vm2, %v9135_v29, -inf }
 0x804   : > { %v2642_v11 = vadd.f32 %v2641_v7, %v2634_v28  ;;  %v2995_v44 = vsel %vm11679_vm3, %v9151_v42, 0.0  ;;  %v3027_v32 = vsel %vm11680_vm5, %v9151_v42, -inf  ;;  %vm2466_vm11 = vcmask 195584  }
 0x805   : > { %v2646_v16 = vadd.f32 %v2645_v58, %v2638_v37  ;;  %vm11683_vm13 = vcmask 64512   ;;  %vm2714_vm14 = vcmask 457728   ;;  %vm2841_vm15 = vcmask 326656   ;;  %11772 = sst [smem:[#allocation52_spill]] %s9440_s0  ;;  %s9456_s0 = sld [smem:[#allocation2 + $0x14f]] }
 0x806   : > { %v2650_v38 = vadd.f32 %v2649_v27, %v2642_v11  ;;  %v2845_v50 = vstv %s5845_s17  ;;  %v3003_v47 = vmul.f32 0.0625, %v8342_v21  ;;  %vm11685_vm8 = vcmask 523264   ;;  %v11686_v27 = vld [vmem:[#allocation121_spill] sm:$0xff]  ;;  %s11714_s17 = smov 127   ;;  %11782 = sst [smem:[#allocation51_spill]] %s9460_s3 }
 0x807   : > { %v11692_v21 = vmov 0.0|0.0   ;;  %vm11697_vm10 = vmmov %vm11685_vm8  ;;  %s9644_s3 = sld [smem:[#allocation2 + $0x128]] }
 0x808   : > { %v9114_v63 = vadd.f32 %v2650_v38, %v2646_v16  ;;  %v11688_v16 = vld [vmem:[#allocation112_spill] sm:$0xff]  ;;  %vm11698_vm2 = vmmov %vm11685_vm8 }
 0x809   : > { %2990 = vadd.xlane.f32.xlu0 %v2989_v53  ;;  %v11689_v38 = vld [vmem:[#allocation132_spill] sm:$0xff]  ;;  %v11691_v53 = vmov 0.0   ;;  %vm11699_vm3 = vmmov %vm11698_vm2 }
 0x80a   : > { %vm11702_vm5 = vmmov %vm11698_vm2 }
 0x80b   : > { %11780 = sst [smem:[#allocation49_spill]] %s9456_s0  ;;  %s9473_s0 = sld [smem:[#allocation2 + $0x11e]] }
 0x80d   : > { %11848 = sst [smem:[#allocation108_spill]] %s9644_s3 }
 0x80e   : > { %v3017_v52 = vpop.xlane.xlu0 %3016 }
 0x80f   : > { %v3035_v37 = vsel %vm824_vm1, %v3003_v47, %v3017_v52 }
 0x811   : > { %11788 = sst [smem:[#allocation59_spill]] %s9473_s0  ;;  %s9488_s0 = sld [smem:[#allocation2 + $0x13c]] }
 0x815   : > { %v2988_v57 = vpop.xlane.xlu1 %2987 }
 0x816   : > { %v3004_v7 = vmul.f32 0.0625, %v2988_v57 }
 0x817   : > { %3019 = vmax.xlane.f32.xlu1 %v3018_v3  ;;  %v11693_v3 = vld [vmem:[#allocation84_spill] sm:$0xff]  ;;  %11792 = sst [smem:[#allocation64_spill]] %s9488_s0 }
 0x81f   : > { %2711 = vrot.lane.b32.xlu0 %v2709_v35, %s10825_s26  ;;  %v2973_v35 = vld [vmem:[%s11678_s21 + $0x20] sm:$0xff]  ;;  %s9416_s26 = sld [smem:[#allocation2 + $0x123]]  ;;  %s9422_s21 = sld [smem:[#allocation2 + $0x139]] }
 0x825   : > { %11760 = sst [smem:[#allocation28_spill]] %s9416_s26  ;;  %s9438_s26 = sld [smem:[#allocation2 + $0x10f]] }
 0x826   : > { %11763 = sst [smem:[#allocation33_spill]] %s9422_s21 }
 0x828   : > { %2775 = vrot.lane.b32.xlu1 %v2773_v6, %s11672_s19  ;;  %s793_s19 = scalar_lea.vmem %s11687_s13, %s11684_s27  ;;  %s11743_s27 = smov 2  }
 0x829   : > { %s11746_s13 = smov 125  }
 0x82b   : > { %11771 = sst [smem:[#allocation37_spill]] %s9438_s26 }
 0x82c   : > { %s9464_s26 = sld [smem:[#allocation2 + $0x109]] }
 0x832   : > { %11784 = sst [smem:[#allocation54_spill]] %s9464_s26  ;;  %s9481_s26 = sld [smem:[#allocation2 + $0x12c]] }
 0x838   : > { %11790 = sst [smem:[#allocation65_spill]] %s9481_s26 }
 0x83e   : > { %3022 = vmax.xlane.f32.xlu0 %v3021_v59 }
 0x84c   : > { %2993 = vadd.xlane.f32.xlu1 %v2992_v60  ;;  %v11694_v60 = vld [vmem:[#allocation81_spill] sm:$0xff] }
 0x850   : > { %3025 = vmax.xlane.f32.xlu1 %v3024_v15 }
 0x854   : > { %2999 = vadd.xlane.f32.xlu1 %v2998_v43  ;;  %2838 = vrot.lane.b32.xlu0 %v2836_v26, %s6733_s18  ;;  %v11695_v43 = vld [vmem:[#allocation127_spill] sm:$0xff]  ;;  %s9366_s18 = sld [smem:[#allocation2 + $0x138]] }
 0x858   : > { %3031 = vmax.xlane.f32.xlu1 %v3030_v51 }
 0x85a   : > { %11748 = sst [smem:[#allocation29_spill]] %s9366_s18 }
 0x85c   : > { %v2528_v34 = vpop.permute.xlu0 %2527 }
 0x85d   : > { %v2530_v36 = vsel %vm11682_vm12, 0.0, %v2528_v34 }
 0x860   : > { %v2464_v55 = vpop.permute.xlu1 %2463 }
 0x861   : > { %v2467_v45 = vsel %vm2466_vm11, 0.0, %v2464_v55  ;;  %vm11704_vm11 = vmmov %vm11683_vm13 }
 0x862   : > { %v2531_v12 = vadd.f32 %v2530_v36, %v2467_v45  ;;  %v2961_v36 = vld [vmem:[%s11703_s10] sm:$0xff]  ;;  %vm11706_vm12 = vmmov %vm11704_vm11 }
 0x865   : > { %v2591_v13 = vpop.permute.xlu1 %2590 }
 0x866   : > { %v2593_v6 = vsel %vm11683_vm13, 0.0, %v2591_v13  ;;  %vm11707_vm13 = vmmov %vm11704_vm11 }
 0x867   : > { %v2594_v31 = vadd.f32 %v2593_v6, %v2531_v12 }
 0x869   : > { %3122 = vperm.xlu1 %6481, %v2969_v2   ;;  %v2652_v48 = vadd.f32 %v9114_v63, %v2594_v31  ;;  %v11690_v63 = vpack.c.bf16 %v11688_v16, %v11689_v38  ;;  %v11696_v2 = vld [vmem:[#allocation85_spill] sm:$0xff] }
 0x86d   : > { %3127 = vperm.xlu1 %6481, %v2970_v4  }
 0x871   : > { %3137 = vperm.xlu1 %6481, %v2972_v10  }
 0x873   : > { %2996 = vadd.xlane.f32.xlu0 %v2995_v44 }
 0x875   : > { %3147 = vperm.xlu1 %6481, %v2974_v8  }
 0x877   : > { %3028 = vmax.xlane.f32.xlu0 %v3027_v32 }
 0x879   : > { %3157 = vperm.xlu1 %6481, %v2976_v24  }
 0x88d   : > { %3043 = vperm.xlu0 %6480, %v2960_v46  }
 0x891   : > { %3132 = vperm.xlu0 %6480, %v2971_v62  }
 0x895   : > { %3142 = vperm.xlu0 %6480, %v2973_v35  }
 0x896   : > { %v2991_v19 = vpop.xlane.xlu0 %2990 }
 0x897   : > { %v3005_v8 = vmul.f32 0.0625, %v2991_v19  ;;  %v2959_v19 = vld [vmem:[%s11701_s5] sm:$0xff]  ;;  %s9370_s5 = sld [smem:[#allocation2 + $0x146]] }
 0x899   : > { %3152 = vperm.xlu0 %6480, %v2975_v33  }
 0x89a   : > { %v2712_v5 = vpop.permute.xlu0 %2711 }
 0x89b   : > { %v2715_v49 = vsel %vm2714_vm14, %v2712_v5, 0.0  ;;  %vm11708_vm14 = vmmov %vm11704_vm11 }
 0x89c   : > { %v2716_v17 = vadd.f32 %v2715_v49, %v2652_v48  ;;  %v2962_v49 = vld [vmem:[%s11703_s10 + $0x8] sm:$0xff]  ;;  %v2963_v48 = vld [vmem:[%s11703_s10 + $0x10] sm:$0xff] }
 0x89d   : > { %11750 = sst [smem:[#allocation96_spill]] %s9370_s5 }
 0x8a4   : > { %v3020_v41 = vpop.xlane.xlu1 %3019 }
 0x8a5   : > { %v3036_v58 = vsel %vm824_vm1, %v3004_v7, %v3020_v41 }
 0x8a6   : > { %v6382_v10 = vpack.c.bf16 %v3036_v58, %v3035_v37 }
 0x8a8   : > { %v2776_v54 = vpop.permute.xlu1 %2775 }
 0x8a9   : > { %v2778_v0 = vsel %vm1303_vm0, %v2776_v54, 0.0 }
 0x8aa   : > { %v2779_v40 = vadd.f32 %v2778_v0, %v2716_v17  ;;  %v2965_v0 = vld [vmem:[%s11703_s10 + $0x20] sm:$0xff]  ;;  %v2966_v17 = vld [vmem:[%s11703_s10 + $0x28] sm:$0xff] }
 0x8cb   : > { %v3023_v61 = vpop.xlane.xlu0 %3022 }
 0x8cc   : > { %v3037_v24 = vsel %vm824_vm1, %v3005_v8, %v3023_v61  ;;  %v2964_v61 = vld [vmem:[%s11703_s10 + $0x18] sm:$0xff] }
 0x8cf   : > { %v2839_v30 = vpop.permute.xlu0 %2838 }
 0x8d0   : > { %v2842_v1 = vsel %vm2841_vm15, %v2839_v30, 0.0  ;;  %vm11709_vm15 = vmmov %vm11704_vm11  ;;  %v2968_v30 = vld [vmem:[%s11703_s10 + $0x38] sm:$0xff] }
 0x8d1   : > { %v2843_v9 = vadd.f32 %v2842_v1, %v2779_v40  ;;  %v2967_v40 = vld [vmem:[%s11703_s10 + $0x30] sm:$0xff]  ;;  %s9420_s10 = sld [smem:[#allocation2 + $0x132]] }
 0x8d3   : > { %v2846_v23 = vadd.f32 %v2845_v50, %v2843_v9  ;;  %v11713_v50 = vmov 0  }
 0x8d5   : > { %v5846_v25 = vmul.f32 -1.442695, %v2846_v23 }
 0x8d7   : > { %6578 = vpow2.f32 %v5846_v25  ;;  %11762 = sst [smem:[#allocation32_spill]] %s9420_s10  ;;  %s9442_s10 = sld [smem:[#allocation2 + $0x11d]] }
 0x8d9   : > { %v2994_v22 = vpop.xlane.xlu1 %2993 }
 0x8da   : > { %v3006_v28 = vmul.f32 0.0625, %v2994_v22 }
 0x8dd   : > { %v3026_v11 = vpop.xlane.xlu1 %3025  ;;  %11773 = sst [smem:[#allocation42_spill]] %s9442_s10 }
 0x8de   : > { %v3038_v44 = vsel %vm824_vm1, %v3006_v28, %v3026_v11  ;;  %s9458_s10 = sld [smem:[#allocation2 + $0x156]] }
 0x8df   : > { %v6385_v32 = vpack.c.bf16 %v3038_v44, %v3037_v24 }
 0x8e1   : > { %v6579_v39 = vpop.eup %6578  ;;  %v3000_v46 = vpop.xlane.xlu1 %2999 }
 0x8e2   : > { %v2850_v14 = vadd.f32 1.0, %v6579_v39  ;;  %v3008_v35 = vmul.f32 0.0625, %v3000_v46 }
 0x8e4   : > { %6580 = vrcp.f32 %v2850_v14  ;;  %11781 = sst [smem:[#allocation50_spill]] %s9458_s10 }
 0x8e5   : > { %v3032_v57 = vpop.xlane.xlu1 %3031 }
 0x8e6   : > { %v3040_v55 = vsel %vm824_vm1, %v3008_v35, %v3032_v57 }
 0x8e9   : > { %v3123_v1 = vpop.permute.xlu1 %3122 }
 0x8ed   : > { %v3128_v9 = vpop.permute.xlu1 %3127 }
 0x8ee   : > { %v6581_v56 = vpop.eup %6580 }
 0x8ef   : > { %6303 = vmatmul.mubr.msk.f32.vlgmr.msra.gmra.mrb[4].mxu0 %vm11685_vm8, %v6581_v56  ;;  %v2856_v26 = vrot.slane %v6581_v56, %v11686_v27  ;;  %vm11710_vm8 = vmmov %vm11704_vm11 }
 0x8f0   : > { %6380 = vmatpush3.bf16.msra.mxu0 %v11690_v63  ;;  %6321 = vmatprep.mubr.msk.f32.mxu0 %vm11395_vm7, %v11691_v53  ;;  %vm11700_vm7 = vmmov %vm11698_vm2 }
 0x8f1   : > { %6381 = vmatprep.subr.bf16.mxu0 %v11692_v21  ;;  %v2857_v59 = vmul.f32 %v2856_v26, %v11693_v3  ;;  %v2858_v15 = vmul.f32 %v2856_v26, %v11694_v60  ;;  %v2859_v51 = vmul.f32 %v2856_v26, %v11695_v43  ;;  %v2860_v4 = vmul.f32 %v2856_v26, %v11696_v2  ;;  %v3138_v23 = vpop.permute.xlu1 %3137 }
 0x8f3   : > { %2947 = vst.msk [vmem:[%s793_s19] sm:$0xff] %vm11697_vm10, %v2857_v59  ;;  %vm11711_vm10 = vmmov %vm11710_vm8 }
 0x8f4   : > { %2948 = vst.msk [vmem:[%s793_s19 + $0x8] sm:$0xff] %vm11698_vm2, %v2858_v15  ;;  %6383 = vmatpush3.bf16.msra.mxu0 %v6382_v10  ;;  %vm11712_vm2 = vmmov %vm11710_vm8 }
 0x8f5   : > { %2949 = vst.msk [vmem:[%s793_s19 + $0x10] sm:$0xff] %vm11699_vm3, %v2859_v51  ;;  %6384 = vmatprep.subr.bf16.mxu0 %v11692_v21  ;;  %v3148_v28 = vpop.permute.xlu1 %3147  ;;  %vm11717_vm3 = vcmask 130048  }
 0x8f6   : > { %2950 = vst.msk [vmem:[%s793_s19 + $0x18] sm:$0xff] %vm11700_vm7, %v2860_v4  ;;  %vm9263_vm7 = vmpackc.low %vm11717_vm3, %vm11717_vm3  ;;  %s9364_s19 = sld [smem:[#allocation2 + $0x131]] }
 0x8f8   : > { %6386 = vmatpush3.bf16.msra.mxu0 %v6385_v32 }
 0x8f9   : > { %6387 = vmatprep.subr.bf16.mxu0 %v11692_v21  ;;  %v3158_v53 = vpop.permute.xlu1 %3157 }
 0x8fc   : > { %11747 = sst [smem:[#allocation19_spill]] %s9364_s19 }
 0x900   : > { %v2997_v62 = vpop.xlane.xlu0 %2996 }
 0x901   : > { %v3007_v33 = vmul.f32 0.0625, %v2997_v62 }
 0x904   : > { %v3029_v52 = vpop.xlane.xlu0 %3028 }
 0x905   : > { %v3039_v34 = vsel %vm824_vm1, %v3007_v33, %v3029_v52 }
 0x906   : > { %v6388_v13 = vpack.c.bf16 %v3040_v55, %v3039_v34 }
 0x908   : > { %6389 = vmatpush3.bf16.msra.mxu0 %v6388_v13 }
 0x90b   : > { %6322 = vmatmul.mubr.msk.f32.vlgmr.msra.gmra.mrb[6].mxu0 %vm11702_vm5, %v2959_v19  ;;  %vm11720_vm5 = vmmov %vm11717_vm3 }
 0x90c   : > { %6326 = vmatprep.mubr.msk.f32.mxu0 %vm11704_vm11, %v2961_v36  ;;  %v3044_v6 = vpop.permute.xlu0 %3043  ;;  %vm11721_vm11 = vmmov %vm11717_vm3 }
 0x910   : > { %v3133_v39 = vpop.permute.xlu0 %3132 }
 0x914   : > { %v3143_v37 = vpop.permute.xlu0 %3142 }
 0x918   : > { %v3153_v59 = vpop.permute.xlu0 %3152 }
 0x9c2   : > { %v9216_v45 = vpop.f32.mrb[4].mxu0 }
 0x9c3   : > { %11705 = vst [vmem:[#allocation116_spill] sm:$0xff] %v9216_v45  ;;  %v6304_v41 = vpop.f32.mrb[5].mxu0 }
 0x9de   : > { %v3115_v12 = vpop.f32.mrb[6].mxu0 }
 0x9df   : > { %v3116_v31 = vadd.f32 %v3115_v12, %v3044_v6  ;;  %v6323_v5 = vpop.f32.mrb[7].mxu0 }
 0x9e1   : > { %v3119_v54 = vmax.f32 %v3116_v31, 0.0 }
 0x9e3   : > { %6324 = vmatprep.subr.mxu0 %v3119_v54 }
 0x9e4   : > { %6325 = vmatpush3.msra.mxu0 %v3119_v54 }
 0x9e5   : > { %6327 = vmatmul.mubr.msk.f32.vlgmr.msra.gmra.mrb[8].mxu0 %vm11706_vm12, %v2962_v49  ;;  %vm11724_vm12 = vmmov %vm11717_vm3 }
 0x9e6   : > { %6329 = vmatprep.mubr.msk.f32.mxu0 %vm11707_vm13, %v2963_v48  ;;  %vm11725_vm13 = vmmov %vm11717_vm3 }
 0x9e9   : > { %6330 = vmatmul.mubr.msk.f32.gmra.mrb[10].mxu0 %vm11708_vm14, %v2964_v61  ;;  %vm11728_vm14 = vmmov %vm11717_vm3 }
 0x9ea   : > { %6332 = vmatprep.mubr.msk.f32.mxu0 %vm11709_vm15, %v2965_v0  ;;  %vm11730_vm15 = vmmov %vm11717_vm3 }
 0x9ed   : > { %6333 = vmatmul.mubr.msk.f32.gmra.mrb[12].mxu0 %vm11710_vm8, %v2966_v17  ;;  %vm11731_vm8 = vmmov %vm11717_vm3 }
 0x9ee   : > { %6335 = vmatprep.mubr.msk.f32.mxu0 %vm11711_vm10, %v2967_v40  ;;  %vm11732_vm10 = vmmov %vm11717_vm3 }
 0x9f1   : > { %6336 = vmatmul.mubr.msk.f32.gmra.mrb[14].mxu0 %vm11712_vm2, %v2968_v30  ;;  %vm11733_vm2 = vmmov %vm11717_vm3 }
 0x9f2   : > { %4575 = vmatprep.mubr.bf16.mxu0 %v11713_v50  ;;  %vm11734_vm3 = vmmov %vm11733_vm2 }
 0xab8   : > { %v6328_v25 = vpop.f32.mrb[8].mxu0 }
 0xab9   : > { %v3256_v14 = vadd.f32 %v6328_v25, %v3128_v9  ;;  %v3250_v22 = vpop.f32.mrb[9].mxu0 }
 0xaba   : > { %v3251_v7 = vadd.f32 %v3250_v22, %v3123_v1 }
 0xabb   : > { %3299 = vrot.lane.b32.xlu1 %v3256_v14, %s11714_s17 }
 0xabc   : > { %v6331_v56 = vpop.f32.mrb[10].mxu0  ;;  %3297 = vrot.lane.b32.xlu0 %v3251_v7, %s11714_s17 }
 0xabd   : > { %v3266_v47 = vadd.f32 %v6331_v56, %v3138_v23  ;;  %v3260_v58 = vpop.f32.mrb[11].mxu0 }
 0xabe   : > { %v3261_v26 = vadd.f32 %v3260_v58, %v3133_v39 }
 0xabf   : > { %3303 = vrot.lane.b32.xlu1 %v3266_v47, %s11714_s17 }
 0xac0   : > { %v6334_v11 = vpop.f32.mrb[12].mxu0  ;;  %3301 = vrot.lane.b32.xlu0 %v3261_v26, %s11714_s17 }
 0xac1   : > { %v3276_v16 = vadd.f32 %v6334_v11, %v3148_v28  ;;  %v3270_v38 = vpop.f32.mrb[13].mxu0 }
 0xac2   : > { %v3271_v63 = vadd.f32 %v3270_v38, %v3143_v37 }
 0xac3   : > { %3307 = vrot.lane.b32.xlu1 %v3276_v16, %s11714_s17 }
 0xac4   : > { %v6337_v3 = vpop.f32.mrb[14].mxu0  ;;  %3305 = vrot.lane.b32.xlu0 %v3271_v63, %s11714_s17 }
 0xac5   : > { %v3286_v60 = vadd.f32 %v6337_v3, %v3158_v53  ;;  %v3280_v15 = vpop.f32.mrb[15].mxu0 }
 0xac6   : > { %v3281_v43 = vadd.f32 %v3280_v15, %v3153_v59  ;;  %v6627_v59 = vld [vmem:[%s11670_s24] sm:$0xff] }
 0xac7   : > { %3311 = vrot.lane.b32.xlu1 %v3286_v60, %s11714_s17 }
 0xac8   : > { %3309 = vrot.lane.b32.xlu0 %v3281_v43, %s11714_s17 }
 0xb2d   : > { %v3300_v51 = vpop.permute.xlu1 %3299 }
 0xb2e   : > { %v3322_v2 = vadd.f32 %v3300_v51, %v3256_v14  ;;  %v3298_v4 = vpop.permute.xlu0 %3297 }
 0xb2f   : > { %v3321_v10 = vadd.f32 %v3298_v4, %v3251_v7 }
 0xb30   : > { %v5862_v8 = vmul.f32 -1.442695, %v3322_v2 }
 0xb31   : > { %v5861_v44 = vmul.f32 -1.442695, %v3321_v10  ;;  %v3304_v24 = vpop.permute.xlu1 %3303 }
 0xb32   : > { %6582 = vpow2.f32 %v5862_v8  ;;  %v3324_v32 = vadd.f32 %v3304_v24, %v3266_v47  ;;  %v3302_v46 = vpop.permute.xlu0 %3301  ;;  %v6628_v8 = vld [vmem:[%s11670_s24 + $0x18] sm:$0xff]  ;;  %v6629_v24 = vld [vmem:[%s11670_s24 + $0x10] sm:$0xff] }
 0xb33   : > { %6584 = vpow2.f32 %v5861_v44  ;;  %v3323_v62 = vadd.f32 %v3302_v46, %v3261_v26 }
 0xb34   : > { %v5864_v35 = vmul.f32 -1.442695, %v3324_v32 }
 0xb35   : > { %v5863_v33 = vmul.f32 -1.442695, %v3323_v62  ;;  %v3308_v57 = vpop.permute.xlu1 %3307 }
 0xb36   : > { %6586 = vpow2.f32 %v5864_v35  ;;  %v3326_v52 = vadd.f32 %v3308_v57, %v3276_v16  ;;  %v3306_v55 = vpop.permute.xlu0 %3305 }
 0xb37   : > { %6588 = vpow2.f32 %v5863_v33  ;;  %v3325_v34 = vadd.f32 %v3306_v55, %v3271_v63  ;;  %v6626_v63 = vld [vmem:[%s11670_s24 + $0x8] sm:$0xff]  ;;  %s11742_s24 = smov 3  }
 0xb38   : > { %v5866_v13 = vmul.f32 -1.442695, %v3326_v52 }
 0xb39   : > { %v5865_v19 = vmul.f32 -1.442695, %v3325_v34  ;;  %v3312_v36 = vpop.permute.xlu1 %3311 }
 0xb3a   : > { %6590 = vpow2.f32 %v5866_v13  ;;  %v3328_v41 = vadd.f32 %v3312_v36, %v3286_v60  ;;  %v3310_v6 = vpop.permute.xlu0 %3309 }
 0xb3b   : > { %6592 = vpow2.f32 %v5865_v19  ;;  %v3327_v12 = vadd.f32 %v3310_v6, %v3281_v43 }
 0xb3c   : > { %v6583_v31 = vpop.eup %6582  ;;  %v5868_v5 = vmul.f32 -1.442695, %v3328_v41 }
 0xb3d   : > { %v6585_v54 = vpop.eup %6584  ;;  %v3354_v49 = vadd.f32 1.0, %v6583_v31  ;;  %v5867_v48 = vmul.f32 -1.442695, %v3327_v12 }
 0xb3e   : > { %v3353_v61 = vadd.f32 1.0, %v6585_v54  ;;  %6594 = vpow2.f32 %v5868_v5 }
 0xb3f   : > { %6596 = vrcp.f32 %v3354_v49 }
 0xb40   : > { %v6587_v0 = vpop.eup %6586  ;;  %6598 = vrcp.f32 %v3353_v61 }
 0xb41   : > { %v6589_v17 = vpop.eup %6588  ;;  %v3356_v40 = vadd.f32 1.0, %v6587_v0  ;;  %6600 = vpow2.f32 %v5867_v48 }
 0xb42   : > { %v3355_v30 = vadd.f32 1.0, %v6589_v17 }
 0xb43   : > { %6602 = vrcp.f32 %v3356_v40 }
 0xb44   : > { %v6591_v1 = vpop.eup %6590  ;;  %6604 = vrcp.f32 %v3355_v30 }
 0xb45   : > { %v6593_v9 = vpop.eup %6592  ;;  %v3358_v23 = vadd.f32 1.0, %v6591_v1 }
 0xb46   : > { %v3357_v25 = vadd.f32 1.0, %v6593_v9 }
 0xb47   : > { %6606 = vrcp.f32 %v3358_v23 }
 0xb48   : > { %v6595_v39 = vpop.eup %6594  ;;  %6608 = vrcp.f32 %v3357_v25 }
 0xb49   : > { %v6597_v14 = vpop.eup %6596  ;;  %v3360_v22 = vadd.f32 1.0, %v6595_v39 }
 0xb4a   : > { %v6599_v7 = vpop.eup %6598  ;;  %3384 = vperm.xlu1 %6481, %v6597_v14  }
 0xb4b   : > { %v6601_v56 = vpop.eup %6600  ;;  %6610 = vrcp.f32 %v3360_v22  ;;  %3379 = vperm.xlu0 %6480, %v6599_v7  }
 0xb4c   : > { %v3359_v47 = vadd.f32 1.0, %v6601_v56 }
 0xb4d   : > { %v6603_v58 = vpop.eup %6602 }
 0xb4e   : > { %v6605_v28 = vpop.eup %6604  ;;  %6612 = vrcp.f32 %v3359_v47  ;;  %3394 = vperm.xlu1 %6481, %v6603_v58  }
 0xb4f   : > { %3389 = vperm.xlu0 %6480, %v6605_v28  }
 0xb51   : > { %v6607_v26 = vpop.eup %6606 }
 0xb52   : > { %v6609_v37 = vpop.eup %6608  ;;  %3404 = vperm.xlu1 %6481, %v6607_v26  }
 0xb53   : > { %3399 = vperm.xlu0 %6480, %v6609_v37  }
 0xb55   : > { %v6611_v11 = vpop.eup %6610 }
 0xb56   : > { %3414 = vperm.xlu1 %6481, %v6611_v11  }
 0xb58   : > { %v6613_v16 = vpop.eup %6612 }
 0xb59   : > { %3409 = vperm.xlu0 %6480, %v6613_v16  }
 0xbc9   : > { %v3385_v38 = vpop.permute.xlu1 %3384 }
 0xbca   : > { %v9256_v53 = vmul.f32 %v6626_v63, %v3385_v38  ;;  %v3380_v3 = vpop.permute.xlu0 %3379 }
 0xbcb   : > { %v9259_v60 = vmul.f32 %v6627_v59, %v3380_v3 }
 0xbcc   : > { %11715 = vst [vmem:[#allocation86_spill] sm:$0xff] %v9256_v53  ;;  %v3426_v43 = vsel %vm11720_vm5, %v9256_v53, 0.0  ;;  %vm11735_vm5 = vmmov %vm11733_vm2 }
 0xbcd   : > { %11716 = vst [vmem:[#allocation87_spill] sm:$0xff] %v9259_v60  ;;  %v3425_v51 = vsel %vm11721_vm11, %v9259_v60, 0.0  ;;  %v6391_v2 = vpack.c.bf16 %v9256_v53, %v9259_v60  ;;  %v3395_v4 = vpop.permute.xlu1 %3394  ;;  %v3447_v48 = vsel %vm11735_vm5, %v9259_v60, -inf  ;;  %vm11736_vm11 = vmmov %vm11733_vm2 }
 0xbce   : > { %v3390_v10 = vpop.permute.xlu0 %3389  ;;  %v9274_v44 = vmul.f32 %v6628_v8, %v3395_v4  ;;  %v3427_v46 = vadd.f32 %v3426_v43, %v3425_v51  ;;  %v3609_v8 = vstv %s9366_s18 }
 0xbcf   : > { %v9277_v32 = vmul.f32 %v6629_v24, %v3390_v10  ;;  %6393 = vmatpush3.bf16.xpose.msk.msra.mxu1 %vm9263_vm7, %v6391_v2  ;;  %v3545_v10 = vstv %s9364_s19  ;;  %v3672_v24 = vstv %s9368_s28  ;;  %s9491_s28 = sld [smem:[#allocation2 + $0x143]]  ;;  %s9501_s19 = sld [smem:[#allocation2 + $0x15f]] }
 0xbd0   : > { %11722 = vst [vmem:[#allocation129_spill] sm:$0xff] %v9274_v44  ;;  %6394 = vmatprep.subr.bf16.mxu1 %v11692_v21  ;;  %v3430_v52 = vsel %vm11725_vm13, %v9274_v44, 0.0  ;;  %v3450_v61 = vsel %vm11736_vm11, %v9274_v44, -inf  ;;  %vm11739_vm13 = vmmov %vm11733_vm2  ;;  %vm3601_vm11 = vcmask 97280  }
 0xbd1   : > { %11723 = vst [vmem:[#allocation115_spill] sm:$0xff] %v9277_v32  ;;  %v3428_v62 = vsel %vm11724_vm12, %v9277_v32, 0.0  ;;  %v3405_v35 = vpop.permute.xlu1 %3404  ;;  %v6395_v19 = vpack.c.bf16 %v9274_v44, %v9277_v32  ;;  %vm11738_vm12 = vmmov %vm11733_vm2 }
 0xbd2   : > { %v3429_v33 = vadd.f32 %v3428_v62, %v3427_v46  ;;  %v3400_v57 = vpop.permute.xlu0 %3399  ;;  %v9287_v55 = vmul.f32 %v3405_v35, %v9128_v18  ;;  %v3449_v1 = vsel %vm11738_vm12, %v9277_v32, -inf  ;;  %v3736_v46 = vstv %s9370_s5  ;;  %s9493_s5 = sld [smem:[#allocation2 + $0x151]] }
 0xbd3   : > { %v9290_v34 = vmul.f32 %v3400_v57, %v9117_v20  ;;  %v3794_v62 = vstv %s9372_s22  ;;  %v3857_v35 = vstv %s9374_s16  ;;  %v3629_v57 = vstv %s9378_s1 }
 0xbd4   : > { %11726 = vst [vmem:[#allocation122_spill] sm:$0xff] %v9287_v55  ;;  %v3431_v13 = vadd.f32 %v3430_v52, %v3429_v33  ;;  %v3434_v31 = vsel %vm11730_vm15, %v9287_v55, 0.0  ;;  %v3453_v18 = vsel %vm11731_vm8, %v9287_v55, -inf  ;;  %vm11741_vm15 = vmmov %vm11733_vm2  ;;  %v3920_v33 = vstv %s9376_s29  ;;  %s9499_s29 = sld [smem:[#allocation2 + $0x158]] }
 0xbd5   : > { %11727 = vst [vmem:[#allocation90_spill] sm:$0xff] %v9290_v34  ;;  %v3432_v36 = vsel %vm11728_vm14, %v9290_v34, 0.0  ;;  %v3415_v41 = vpop.permute.xlu1 %3414  ;;  %v3451_v20 = vsel %vm11732_vm10, %v9290_v34, -inf  ;;  %vm11740_vm14 = vmmov %vm11733_vm2  ;;  %v6399_v14 = vpack.c.bf16 %v9287_v55, %v9290_v34  ;;  %11793 = sst [smem:[#allocation66_spill]] %s9491_s28  ;;  %v3633_v52 = vstv %s9380_s12  ;;  %s9507_s12 = sld [smem:[#allocation2 + $0x104]] }
 0xbd6   : > { %v3433_v6 = vadd.f32 %v3432_v36, %v3431_v13  ;;  %v9297_v12 = vmul.f32 %v3415_v41, %v9135_v29  ;;  %v3448_v29 = vsel %vm11734_vm3, %v9256_v53, -inf  ;;  %v3452_v40 = vmax.f32 %v3447_v48, %v3451_v20  ;;  %11799 = sst [smem:[#allocation69_spill]] %s9501_s19  ;;  %s11906_s19 = sld [smem:[#allocation51_spill]] }
 0xbd7   : > { %6397 = vmatpush3.bf16.xpose.msk.msra.mxu1 %vm9263_vm7, %v6395_v19  ;;  %v3454_v17 = vmax.f32 %v3448_v29, %v3453_v18  ;;  %v3565_v13 = vstv %s9382_s6  ;;  %v3569_v19 = vstv %s9384_s8  ;;  %v3814_v36 = vstv %s9386_s2  ;;  %s9509_s6 = sld [smem:[#allocation2 + $0x10b]]  ;;  %s11806_s8 = sld [smem:[#allocation32_spill]] }
 0xbd8   : > { %11729 = vst [vmem:[#allocation91_spill] sm:$0xff] %v9297_v12  ;;  %v3457_v5 = vsel %vm11733_vm2, %v9297_v12, -inf  ;;  %v3410_v54 = vpop.permute.xlu0 %3409  ;;  %v3435_v49 = vadd.f32 %v3434_v31, %v3433_v6  ;;  %6398 = vmatprep.subr.bf16.mxu1 %v11692_v21  ;;  %11794 = sst [smem:[#allocation67_spill]] %s9493_s5  ;;  %v3818_v41 = vstv %s9388_s25  ;;  %v3692_v6 = vstv %s9390_s23  ;;  %s11804_s5 = sld [smem:[#allocation30_spill]] }
 0xbd9   : > { %v9317_v0 = vmul.f32 %v3410_v54, %v9151_v42  ;;  %v3458_v30 = vmax.f32 %v3450_v61, %v3457_v5  ;;  %v3438_v42 = vsel %vm11741_vm15, %v9297_v12, 0.0  ;;  %v3459_v22 = vmax.f32 %v3452_v40, %v3454_v17  ;;  %s11807_s2 = sld [smem:[#allocation34_spill]]  ;;  %s9518_s23 = sld [smem:[#allocation2 + $0x112]] }
 0xbda   : > { %11798 = sst [smem:[#allocation68_spill]] %s9499_s29  ;;  %v3696_v31 = vstv %s9392_s15  ;;  %v3940_v18 = vstv %s9394_s30  ;;  %v3944_v20 = vstv %s9396_s14  ;;  %v3877_v5 = vstv %s9398_s20  ;;  %s9520_s15 = sld [smem:[#allocation2 + $0x120]] }
 0xbdb   : > { %11737 = vst [vmem:[#allocation128_spill] sm:$0xff] %v9317_v0  ;;  %v3436_v9 = vsel %vm11739_vm13, %v9317_v0, 0.0  ;;  %v3455_v23 = vsel %vm11740_vm14, %v9317_v0, -inf  ;;  %v6403_v16 = vpack.c.bf16 %v9297_v12, %v9317_v0  ;;  %v3881_v54 = vstv %s9400_s9  ;;  %s9527_s20 = sld [smem:[#allocation2 + $0x127]]  ;;  %s9529_s9 = sld [smem:[#allocation2 + $0x12e]] }
 0xbdc   : > { %v3437_v25 = vadd.f32 %v3436_v9, %v3435_v49  ;;  %v3456_v39 = vmax.f32 %v3449_v1, %v3455_v23  ;;  %v3756_v49 = vstv %s9402_s11  ;;  %s9662_s29 = sld [smem:[#allocation2 + $0x14a]]  ;;  %vm3520_vm2 = vcmask 113664  }
 0xbdd   : > { %11805 = sst [smem:[#allocation70_spill]] %s9509_s6  ;;  %v3553_v23 = vstv %s11806_s8  ;;  %s9593_s8 = sld [smem:[#allocation2 + $0x153]]  ;;  %vm3532_vm3 = vcmask 105472   ;;  %vm11997_vm12 = vcmask 64512   ;;  %vm3728_vm13 = vcmask 31744  }
 0xbde   : > { %v3439_v7 = vadd.f32 %v3438_v42, %v3437_v25  ;;  %v3460_v56 = vmax.f32 %v3456_v39, %v3458_v30  ;;  %v3916_v9 = vstv %s11804_s5  ;;  %v3617_v25 = vstv %s9422_s21  ;;  %s9548_s21 = sld [smem:[#allocation2 + $0x13e]]  ;;  %s9636_s5 = sld [smem:[#allocation2 + $0x130]]  ;;  %vm11999_vm14 = vmmov %vm11997_vm12 }
 0xbdf   : > { %6401 = vmatpush3.bf16.xpose.msk.msra.mxu1 %vm9263_vm7, %v6399_v14  ;;  %11809 = sst [smem:[#allocation72_spill]] %s9518_s23  ;;  %v3680_v39 = vstv %s11807_s2  ;;  %s9652_s2 = sld [smem:[#allocation2 + $0x129]] }
 0xbe0   : > { %v3440_v47 = vrot.slane %v3439_v7, 4  ;;  %v3461_v58 = vmax.f32 %v3459_v22, %v3460_v56  ;;  %6402 = vmatprep.subr.bf16.mxu1 %v11692_v21  ;;  %v11786_v21 = vld [vmem:[#allocation55_spill] sm:$0xff]  ;;  %s9668_s6 = sld [smem:[#allocation2 + $0x11a]]  ;;  %s9670_s23 = sld [smem:[#allocation2 + $0x14b]] }
 0xbe1   : > { %v9469_v15 = vand.u32 3, %v11786_v21 }
 0xbe2   : > { %v3441_v28 = vadd.f32 %v3440_v47, %v3439_v7  ;;  %v3462_v26 = vrot.slane %v3461_v58, 4 }
 0xbe3   : > { %11832 = sst [smem:[#allocation56_spill]] %s9593_s8  ;;  %vm3482_vm8 = vcmp.ge.s32.totalorder %v9469_v15, 2  ;;  %vm3504_vm10 = vcmp.lt.s32.totalorder %v9469_v15, 3  ;;  %vm3528_vm5 = vcmp.lt.s32.totalorder %v9469_v15, 1 }
 0xbe4   : > { %v3442_v37 = vrot.slane %v3441_v28, 2  ;;  %v3463_v11 = vmax.f32 %v3461_v58, %v3462_v26  ;;  %11818 = sst [smem:[#allocation74_spill]] %s9548_s21  ;;  %s9569_s21 = sld [smem:[#allocation2 + $0x137]] }
 0xbe5   : > { %11846 = sst [smem:[#allocation78_spill]] %s9636_s5  ;;  %s11891_s5 = sld [smem:[#allocation52_spill]] }
 0xbe6   : > { %v3443_v38 = vadd.f32 %v3442_v37, %v3441_v28  ;;  %v3464_v63 = vrot.slane %v3463_v11, 2  ;;  %11851 = sst [smem:[#allocation88_spill]] %s9652_s2 }
 0xbe7   : > { %6405 = vmatpush3.bf16.xpose.msk.msra.mxu1 %vm9263_vm7, %v6403_v16  ;;  %vm3469_vm7 = vcmp.ge.s32.totalorder %v9469_v15, 3 }
 0xbe8   : > { %v3444_v3 = vrot.slane %v3443_v38, 1  ;;  %v3465_v59 = vmax.f32 %v3463_v11, %v3464_v63 }
 0xbea   : > { %v3445_v43 = vadd.f32 %v3444_v3, %v3443_v38  ;;  %v3466_v51 = vrot.slane %v3465_v59, 1  ;;  %11825 = sst [smem:[#allocation77_spill]] %s9569_s21  ;;  %s9604_s21 = sld [smem:[#allocation2 + $0x144]] }
 0xbeb   : > { %s11857_s10 = sld [smem:[#allocation77_spill]] }
 0xbec   : > { %v9336_v2 = vmul.f32 0.015625, %v3445_v43  ;;  %v9338_v4 = vmax.f32 %v3465_v59, %v3466_v51 }
 0xbee   : > { %3477 = vrot.lane.b32.xlu1 %v9338_v4, %s11742_s24  ;;  %3471 = vrot.lane.b32.xlu0 %v9336_v2, %s11742_s24  ;;  %s9406_s24 = sld [smem:[#allocation2 + $0x149]]  ;;  %v9535_v14 = vmul.f32 %v3629_v57, %v9336_v2  ;;  %v9544_v7 = vmul.f32 %v3633_v52, %v9338_v4  ;;  %v9551_v56 = vmul.f32 %v3565_v13, %v9336_v2 }
 0xbef   : > { %v9556_v28 = vmul.f32 %v3569_v19, %v9338_v4  ;;  %v9563_v26 = vmul.f32 %v3814_v36, %v9336_v2  ;;  %v9572_v16 = vmul.f32 %v3818_v41, %v9338_v4  ;;  %v9575_v38 = vmul.f32 %v3692_v6, %v9336_v2 }
 0xbf0   : > { %v9584_v59 = vmul.f32 %v3696_v31, %v9338_v4  ;;  %v9587_v43 = vmul.f32 %v3940_v18, %v9336_v2  ;;  %v9596_v57 = vmul.f32 %v3944_v20, %v9338_v4  ;;  %v9599_v52 = vmul.f32 %v3877_v5, %v9336_v2  ;;  %11835 = sst [smem:[#allocation109_spill]] %s9604_s21  ;;  %s9621_s21 = sld [smem:[#allocation2 + $0x145]] }
 0xbf1   : > { %v9607_v19 = vmul.f32 %v3881_v54, %v9338_v4  ;;  %v9610_v36 = vmul.f32 %v3756_v49, %v9336_v2  ;;  %v11959_v50 = vstv %s11857_s10  ;;  %s11968_s10 = smov 8  }
 0xbf2   : > { %3488 = vrot.lane.b32.xlu1 %v9338_v4, %s11743_s27  ;;  %3483 = vrot.lane.b32.xlu0 %v9336_v2, %s11743_s27  ;;  %s9408_s27 = sld [smem:[#allocation2 + $0x107]] }
 0xbf4   : > { %11755 = sst [smem:[#allocation24_spill]] %s9406_s24  ;;  %s9428_s24 = sld [smem:[#allocation2 + $0x14e]] }
 0xbf5   : > { %s11800_s0 = sld [smem:[#allocation24_spill]] }
 0xbf6   : > { %3499 = vrot.lane.b32.xlu1 %v9338_v4, %s11744_s4  ;;  %3494 = vrot.lane.b32.xlu0 %v9336_v2, %s11744_s4  ;;  %s9410_s4 = sld [smem:[#allocation2 + $0x10e]] }
 0xbf8   : > { %11756 = sst [smem:[#allocation99_spill]] %s9408_s27  ;;  %s9430_s27 = sld [smem:[#allocation2 + $0x155]] }
 0xbf9   : > { %s11796_s22 = sld [smem:[#allocation99_spill]] }
 0xbfa   : > { %3511 = vrot.lane.b32.xlu1 %v9338_v4, %s11714_s17  ;;  %3505 = vrot.lane.b32.xlu0 %v9336_v2, %s11714_s17  ;;  %s9404_s17 = sld [smem:[#allocation2 + $0x100]]  ;;  %11766 = sst [smem:[#allocation38_spill]] %s9428_s24  ;;  %v3802_v22 = vstv %s9428_s24 }
 0xbfb   : > { %v3760_v17 = vstv %s11800_s0  ;;  %s9539_s0 = sld [smem:[#allocation2 + $0x13d]] }
 0xbfc   : > { %11757 = sst [smem:[#allocation25_spill]] %s9410_s4  ;;  %s9432_s4 = sld [smem:[#allocation2 + $0x15c]]  ;;  %v9613_v41 = vmul.f32 %v3760_v17, %v9338_v4 }
 0xbfd   : > { %s11797_s16 = sld [smem:[#allocation25_spill]] }
 0xbfe   : > { %3523 = vrot.lane.b32.xlu1 %v9338_v4, %s11745_s7  ;;  %3517 = vrot.lane.b32.xlu0 %v9336_v2, %s11745_s7  ;;  %s9412_s7 = sld [smem:[#allocation2 + $0x115]]  ;;  %11767 = sst [smem:[#allocation39_spill]] %s9430_s27 }
 0xbff   : > { %s9448_s27 = sld [smem:[#allocation2 + $0x133]]  ;;  %v3605_v48 = vstv %s11796_s22  ;;  %s9537_s22 = sld [smem:[#allocation2 + $0x10c]] }
 0xc00   : > { %11754 = sst [smem:[#allocation92_spill]] %s9404_s17  ;;  %s11810_s30 = sld [smem:[#allocation39_spill]] }
 0xc01   : > { %s9426_s17 = sld [smem:[#allocation2 + $0x147]]  ;;  %11814 = sst [smem:[#allocation75_spill]] %s9539_s0 }
 0xc02   : > { %3535 = vrot.lane.b32.xlu1 %v9338_v4, %s11746_s13  ;;  %3529 = vrot.lane.b32.xlu0 %v9336_v2, %s11746_s13  ;;  %s9414_s13 = sld [smem:[#allocation2 + $0x11c]]  ;;  %11768 = sst [smem:[#allocation41_spill]] %s9432_s4 }
 0xc03   : > { %s9450_s4 = sld [smem:[#allocation2 + $0x13a]]  ;;  %s11795_s18 = sld [smem:[#allocation92_spill]]  ;;  %v3668_v61 = vstv %s11797_s16 }
 0xc04   : > { %11758 = sst [smem:[#allocation26_spill]] %s9412_s7  ;;  %s9434_s7 = sld [smem:[#allocation2 + $0x101]] }
 0xc05   : > { %11776 = sst [smem:[#allocation45_spill]] %s9448_s27  ;;  %s9466_s27 = sld [smem:[#allocation2 + $0x110]]  ;;  %v11951_v55 = vstv %s9537_s22 }
 0xc06   : > { %s11801_s1 = sld [smem:[#allocation26_spill]]  ;;  %s11811_s14 = sld [smem:[#allocation41_spill]]  ;;  %v3865_v47 = vstv %s11810_s30 }
 0xc07   : > { %11765 = sst [smem:[#allocation35_spill]] %s9426_s17  ;;  %s9446_s17 = sld [smem:[#allocation2 + $0x12b]] }
 0xc08   : > { %11759 = sst [smem:[#allocation27_spill]] %s9414_s13  ;;  %s9436_s13 = sld [smem:[#allocation2 + $0x108]] }
 0xc09   : > { %11777 = sst [smem:[#allocation46_spill]] %s9450_s4  ;;  %s11802_s28 = sld [smem:[#allocation27_spill]]  ;;  %v3541_v29 = vstv %s11795_s18 }
 0xc0a   : > { %11769 = sst [smem:[#allocation43_spill]] %s9434_s7  ;;  %s9452_s7 = sld [smem:[#allocation2 + $0x141]] }
 0xc0b   : > { %11785 = sst [smem:[#allocation57_spill]] %s9466_s27  ;;  %s11808_s25 = sld [smem:[#allocation35_spill]] }
 0xc0c   : > { %v3732_v40 = vstv %s11801_s1  ;;  %s11812_s11 = sld [smem:[#allocation43_spill]]  ;;  %v3928_v58 = vstv %s11811_s14  ;;  %s9567_s1 = sld [smem:[#allocation2 + $0x106]] }
 0xc0d   : > { %11775 = sst [smem:[#allocation61_spill]] %s9446_s17  ;;  %s9462_s17 = sld [smem:[#allocation2 + $0x102]] }
 0xc0e   : > { %11770 = sst [smem:[#allocation36_spill]] %s9436_s13  ;;  %s9579_s14 = sld [smem:[#allocation2 + $0x121]] }
 0xc0f   : > { %s9454_s13 = sld [smem:[#allocation2 + $0x148]]  ;;  %v3790_v30 = vstv %s11802_s28  ;;  %s9560_s28 = sld [smem:[#allocation2 + $0x136]] }
 0xc10   : > { %11778 = sst [smem:[#allocation47_spill]] %s9452_s7  ;;  %s11813_s16 = sld [smem:[#allocation36_spill]] }
 0xc11   : > { %v3744_v42 = vstv %s11808_s25  ;;  %s9558_s25 = sld [smem:[#allocation2 + $0x105]]  ;;  %s9619_s18 = sld [smem:[#allocation2 + $0x114]] }
 0xc12   : > { %v3549_v37 = vstv %s11812_s11  ;;  %11823 = sst [smem:[#allocation102_spill]] %s9567_s1  ;;  %s9591_s11 = sld [smem:[#allocation2 + $0x122]] }
 0xc13   : > { %11783 = sst [smem:[#allocation53_spill]] %s9462_s17  ;;  %s9479_s17 = sld [smem:[#allocation2 + $0x125]] }
 0xc14   : > { %11826 = sst [smem:[#allocation111_spill]] %s9579_s14  ;;  %s9602_s14 = sld [smem:[#allocation2 + $0x113]] }
 0xc15   : > { %11779 = sst [smem:[#allocation48_spill]] %s9454_s13  ;;  %s9471_s13 = sld [smem:[#allocation2 + $0x117]] }
 0xc16   : > { %11822 = sst [smem:[#allocation76_spill]] %s9560_s28  ;;  %v3613_v11 = vstv %s11813_s16  ;;  %s9581_s28 = sld [smem:[#allocation2 + $0x152]] }
 0xc17   : > { %11820 = sst [smem:[#allocation73_spill]] %s9558_s25  ;;  %s9627_s25 = sld [smem:[#allocation2 + $0x12f]] }
 0xc18   : > { %11830 = sst [smem:[#allocation110_spill]] %s9591_s11  ;;  %s11852_s24 = sld [smem:[#allocation74_spill]] }
 0xc19   : > { %11789 = sst [smem:[#allocation60_spill]] %s9479_s17  ;;  %s9646_s27 = sld [smem:[#allocation2 + $0x159]] }
 0xc1a   : > { %11834 = sst [smem:[#allocation63_spill]] %s9602_s14  ;;  %s11856_s26 = sld [smem:[#allocation102_spill]] }
 0xc1b   : > { %11787 = sst [smem:[#allocation58_spill]] %s9471_s13  ;;  %s9654_s17 = sld [smem:[#allocation2 + $0x15a]] }
 0xc1c   : > { %s9486_s13 = sld [smem:[#allocation2 + $0x135]]  ;;  %11828 = sst [smem:[#allocation82_spill]] %s9581_s28 }
 0xc1d   : > { %11839 = sst [smem:[#allocation106_spill]] %s9619_s18  ;;  %s9638_s28 = sld [smem:[#allocation2 + $0x161]] }
 0xc1e   : > { %11843 = sst [smem:[#allocation40_spill]] %s9627_s25  ;;  %s11858_s16 = sld [smem:[#allocation111_spill]] }
 0xc1f   : > { %11849 = sst [smem:[#allocation103_spill]] %s9646_s27  ;;  %s9660_s7 = sld [smem:[#allocation2 + $0x119]] }
 0xc20   : > { %s11863_s4 = sld [smem:[#allocation63_spill]]  ;;  %s11892_s27 = sld [smem:[#allocation42_spill]]  ;;  %v11958_v60 = vstv %s11856_s26 }
 0xc21   : > { %11853 = sst [smem:[#allocation18_spill]] %s9654_s17  ;;  %s11864_s17 = sld [smem:[#allocation109_spill]] }
 0xc22   : > { %11791 = sst [smem:[#allocation62_spill]] %s9486_s13  ;;  %s11803_s13 = sld [smem:[#allocation28_spill]] }
 0xc23   : > { %11847 = sst [smem:[#allocation83_spill]] %s9638_s28  ;;  %s11890_s28 = sld [smem:[#allocation37_spill]] }
 0xc24   : > { %s11899_s2 = sld [smem:[#allocation46_spill]]  ;;  %s11901_s25 = sld [smem:[#allocation47_spill]] }
 0xc25   : > { %11859 = sst [smem:[#allocation24_spill]] %s9660_s7  ;;  %s11893_s7 = sld [smem:[#allocation44_spill]] }
 0xc26   : > { %s11903_s0 = sld [smem:[#allocation48_spill]]  ;;  %s11904_s14 = sld [smem:[#allocation49_spill]] }
 0xc27   : > { %s11905_s11 = sld [smem:[#allocation50_spill]]  ;;  %s11907_s18 = sld [smem:[#allocation53_spill]] }
 0xc28   : > { %v3853_v1 = vstv %s11803_s13  ;;  %s9546_s13 = sld [smem:[#allocation2 + $0x10d]]  ;;  %s11908_s1 = sld [smem:[#allocation54_spill]] }
 0xc29   : > { %v11895_v12 = vstv %s11890_s28  ;;  %s11915_s30 = sld [smem:[#allocation57_spill]]  ;;  %s11917_s3 = sld [smem:[#allocation58_spill]] }
 0xc2a   : > { %s11919_s28 = sld [smem:[#allocation59_spill]]  ;;  %s11960_s22 = sld [smem:[#allocation110_spill]] }
 0xc2b   : > { %s11964_s26 = sld [smem:[#allocation106_spill]] }
 0xc2e   : > { %11816 = sst [smem:[#allocation71_spill]] %s9546_s13  ;;  %s9629_s13 = sld [smem:[#allocation2 + $0x160]] }
 0xc2f   : > { %s11850_s8 = sld [smem:[#allocation71_spill]] }
 0xc30   : > { %11865 = sst [smem:[#allocation71_spill]] %s9668_s6  ;;  %s11898_s6 = sld [smem:[#allocation45_spill]] }
 0xc34   : > { %11845 = sst [smem:[#allocation79_spill]] %s9629_s13  ;;  %s11894_s13 = sld [smem:[#allocation61_spill]] }
 0xc60   : > { %v3478_v17 = vpop.permute.xlu1 %3477  ;;  %v3472_v20 = vpop.permute.xlu0 %3471 }
 0xc61   : > { %v3480_v51 = vsel %vm1078_vm6, 0.0, %v3478_v17  ;;  %v3474_v49 = vsel %vm1078_vm6, 0.0, %v3472_v20  ;;  %vm3493_vm6 = vcmp.ge.s32.totalorder %v9469_v15, 1 }
 0xc62   : > { %v3481_v4 = vsel %vm3469_vm7, %v3480_v51, 0.0  ;;  %v3475_v2 = vsel %vm3469_vm7, %v3474_v49, 0.0  ;;  %vm12012_vm7 = vmmov %vm11741_vm15 }
 0xc63   : > { %v3546_v13 = vmul.f32 %v3545_v10, %v3481_v4  ;;  %v3610_v20 = vmul.f32 %v3609_v8, %v3481_v4  ;;  %v3673_v5 = vmul.f32 %v3672_v24, %v3481_v4  ;;  %v3737_v51 = vmul.f32 %v3736_v46, %v3481_v4 }
 0xc64   : > { %v3795_v49 = vmul.f32 %v3794_v62, %v3481_v4  ;;  %v3858_v31 = vmul.f32 %v3857_v35, %v3481_v4  ;;  %v3489_v6 = vpop.permute.xlu1 %3488  ;;  %v3484_v18 = vpop.permute.xlu0 %3483  ;;  %v3921_v10 = vmul.f32 %v3920_v33, %v3481_v4  ;;  %v3542_v8 = vmul.f32 %v3541_v29, %v3475_v2 }
 0xc65   : > { %v3606_v24 = vmul.f32 %v3605_v48, %v3475_v2  ;;  %v3669_v46 = vmul.f32 %v3668_v61, %v3475_v2  ;;  %v3733_v62 = vmul.f32 %v3732_v40, %v3475_v2  ;;  %v3791_v35 = vmul.f32 %v3790_v30, %v3475_v2 }
 0xc66   : > { %v3491_v21 = vsel %vm1103_vm9, 0.0, %v3489_v6  ;;  %v3486_v17 = vsel %vm1103_vm9, 0.0, %v3484_v18  ;;  %v3854_v33 = vmul.f32 %v3853_v1, %v3475_v2  ;;  %v3917_v29 = vmul.f32 %v3916_v9, %v3475_v2 }
 0xc67   : > { %v3492_v48 = vsel %vm3482_vm8, %v3491_v21, 0.0  ;;  %v3487_v61 = vsel %vm3482_vm8, %v3486_v17, 0.0  ;;  %vm3508_vm9 = vcmask 121856   ;;  %vm12013_vm8 = vmmov %vm12012_vm7 }
 0xc68   : > { %v3554_v40 = vmul.f32 %v3553_v23, %v3492_v48  ;;  %v3618_v4 = vmul.f32 %v3617_v25, %v3492_v48  ;;  %v3681_v30 = vmul.f32 %v3680_v39, %v3492_v48  ;;  %v3745_v6 = vmul.f32 %v3744_v42, %v3492_v48  ;;  %v3500_v54 = vpop.permute.xlu1 %3499  ;;  %v3495_v18 = vpop.permute.xlu0 %3494 }
 0xc69   : > { %v3803_v1 = vmul.f32 %v3802_v22, %v3492_v48  ;;  %v3866_v9 = vmul.f32 %v3865_v47, %v3492_v48  ;;  %v3929_v21 = vmul.f32 %v3928_v58, %v3492_v48  ;;  %v3550_v23 = vmul.f32 %v3549_v37, %v3487_v61 }
 0xc6a   : > { %v3555_v2 = vadd.f32 %v3554_v40, %v3546_v13  ;;  %v3619_v25 = vadd.f32 %v3618_v4, %v3610_v20  ;;  %v3682_v39 = vadd.f32 %v3681_v30, %v3673_v5  ;;  %v9756_v42 = vadd.f32 %v3745_v6, %v3737_v51 }
 0xc6b   : > { %v3804_v17 = vadd.f32 %v3803_v1, %v3795_v49  ;;  %v3867_v3 = vadd.f32 %v3866_v9, %v3858_v31  ;;  %v3930_v63 = vadd.f32 %v3929_v21, %v3921_v10  ;;  %v3551_v22 = vadd.f32 %v3550_v23, %v3542_v8 }
 0xc6c   : > { %v3614_v47 = vmul.f32 %v3613_v11, %v3487_v61  ;;  %v3677_v58 = vmul.f32 %v11895_v12, %v3487_v61  ;;  %v11896_v48 = vstv %s11891_s5  ;;  %v11897_v13 = vstv %s11892_s27  ;;  %v3512_v20 = vpop.permute.xlu1 %3511  ;;  %v3506_v5 = vpop.permute.xlu0 %3505  ;;  %s11920_s5 = sld [smem:[#allocation60_spill]]  ;;  %s11921_s27 = sld [smem:[#allocation65_spill]] }
 0xc6d   : > { %v3741_v37 = vmul.f32 %v11896_v48, %v3487_v61  ;;  %v3799_v40 = vmul.f32 %v11897_v13, %v3487_v61  ;;  %v11900_v51 = vstv %s11893_s7  ;;  %v11902_v31 = vstv %s11894_s13  ;;  %s11923_s7 = sld [smem:[#allocation62_spill]]  ;;  %s11924_s13 = sld [smem:[#allocation64_spill]] }
 0xc6e   : > { %v3862_v49 = vmul.f32 %v11900_v51, %v3487_v61  ;;  %v3925_v10 = vmul.f32 %v11902_v31, %v3487_v61  ;;  %v3502_v8 = vsel %vm824_vm1, 0.0, %v3500_v54  ;;  %v3497_v11 = vsel %vm824_vm1, 0.0, %v3495_v18 }
 0xc6f   : > { %v3615_v12 = vadd.f32 %v3614_v47, %v3606_v24  ;;  %v3678_v4 = vadd.f32 %v3677_v58, %v3669_v46  ;;  %v9773_v30 = vadd.f32 %v3741_v37, %v3733_v62  ;;  %v3800_v6 = vadd.f32 %v3799_v40, %v3791_v35 }
 0xc70   : > { %v3863_v1 = vadd.f32 %v3862_v49, %v3854_v33  ;;  %v3926_v9 = vadd.f32 %v3925_v10, %v3917_v29  ;;  %v3503_v21 = vsel %vm3493_vm6, %v3502_v8, 0.0  ;;  %v3498_v61 = vsel %vm3493_vm6, %v3497_v11, 0.0  ;;  %vm12014_vm6 = vmmov %vm12012_vm7 }
 0xc71   : > { %v11909_v54 = vstv %s11898_s6  ;;  %v11910_v24 = vstv %s11899_s2  ;;  %v11911_v46 = vstv %s11901_s25  ;;  %v11912_v62 = vstv %s11903_s0  ;;  %s11926_s6 = sld [smem:[#allocation66_spill]]  ;;  %s11928_s2 = sld [smem:[#allocation67_spill]] }
 0xc72   : > { %v3562_v18 = vmul.f32 %v11909_v54, %v3503_v21  ;;  %v3626_v23 = vmul.f32 %v11910_v24, %v3503_v21  ;;  %v3689_v47 = vmul.f32 %v11911_v46, %v3503_v21  ;;  %v9787_v58 = vmul.f32 %v11912_v62, %v3503_v21  ;;  %v3524_v54 = vpop.permute.xlu1 %3523  ;;  %v3518_v24 = vpop.permute.xlu0 %3517  ;;  %s11930_s25 = sld [smem:[#allocation68_spill]]  ;;  %s11932_s0 = sld [smem:[#allocation69_spill]] }
 0xc73   : > { %vm3516_vm1 = vcmp.lt.s32.totalorder %v9469_v15, 2  ;;  %v11913_v35 = vstv %s11904_s14  ;;  %v11914_v29 = vstv %s11905_s11  ;;  %v11916_v37 = vstv %s11906_s19  ;;  %s11934_s14 = sld [smem:[#allocation70_spill]]  ;;  %s11935_s11 = sld [smem:[#allocation72_spill]] }
 0xc74   : > { %v3811_v33 = vmul.f32 %v11913_v35, %v3503_v21  ;;  %v3874_v48 = vmul.f32 %v11914_v29, %v3503_v21  ;;  %v3937_v13 = vmul.f32 %v11916_v37, %v3503_v21  ;;  %v11918_v40 = vstv %s11907_s18  ;;  %s11945_s19 = sld [smem:[#allocation75_spill]]  ;;  %s9954_s18 = sld [smem:[#allocation2 + $0x11b]] }
 0xc75   : > { %v3558_v51 = vmul.f32 %v11918_v40, %v3498_v61  ;;  %v3563_v49 = vadd.f32 %v3562_v18, %v3555_v2  ;;  %v3627_v31 = vadd.f32 %v3626_v23, %v3619_v25  ;;  %v9799_v10 = vadd.f32 %v3689_v47, %v3682_v39 }
 0xc76   : > { %v11922_v8 = vstv %s11908_s1  ;;  %v3812_v46 = vadd.f32 %v3811_v33, %v3804_v17  ;;  %v9803_v62 = vadd.f32 %v3874_v48, %v3867_v3  ;;  %v9805_v35 = vadd.f32 %v3937_v13, %v3930_v63  ;;  %s9956_s1 = sld [smem:[#allocation2 + $0x14c]] }
 0xc77   : > { %v3622_v11 = vmul.f32 %v11922_v8, %v3498_v61  ;;  %v3559_v21 = vadd.f32 %v3558_v51, %v3551_v22  ;;  %v11925_v37 = vstv %s11915_s30  ;;  %v11927_v2 = vstv %s11917_s3  ;;  %s6734_s30 = smov 12   ;;  %s11978_s3 = sld [smem:[#allocation103_spill]] }
 0xc78   : > { %v3685_v40 = vmul.f32 %v11925_v37, %v3498_v61  ;;  %v9811_v25 = vmul.f32 %v11927_v2, %v3498_v61  ;;  %v11929_v39 = vstv %s11919_s28  ;;  %v11931_v23 = vstv %s11920_s5  ;;  %s11982_s28 = sld [smem:[#allocation18_spill]]  ;;  %s6735_s5 = smov 124  }
 0xc79   : > { %v3623_v29 = vadd.f32 %v3622_v11, %v3615_v12  ;;  %v3807_v18 = vmul.f32 %v11929_v39, %v3498_v61  ;;  %v3870_v3 = vmul.f32 %v11931_v23, %v3498_v61  ;;  %v11933_v17 = vstv %s11921_s27  ;;  %v3530_v23 = vpop.permute.xlu0 %3529  ;;  %s11987_s27 = sld [smem:[#allocation24_spill]] }
 0xc7a   : > { %v3933_v63 = vmul.f32 %v11933_v17, %v3498_v61  ;;  %v3514_v47 = vsel %vm3508_vm9, %v3512_v20, 0.0  ;;  %v3509_v22 = vsel %vm3508_vm9, %v3506_v5, 0.0  ;;  %v3686_v12 = vadd.f32 %v3685_v40, %v3678_v4  ;;  %vm12015_vm9 = vmmov %vm12014_vm6 }
 0xc7b   : > { %v3808_v33 = vadd.f32 %v3807_v18, %v3800_v6  ;;  %v9823_v48 = vsel %vm3504_vm10, %v3514_v47, 0.0  ;;  %v9827_v13 = vsel %vm3504_vm10, %v3509_v22, 0.0  ;;  %v9829_v61 = vadd.f32 %v3870_v3, %v3863_v1  ;;  %v3536_v18 = vpop.permute.xlu1 %3535  ;;  %vm12016_vm10 = vmmov %vm12014_vm6 }
 0xc7c   : > { %v9831_v20 = vadd.f32 %v3933_v63, %v3926_v9  ;;  %v11936_v5 = vstv %s11923_s7  ;;  %v11937_v6 = vstv %s11924_s13  ;;  %v11938_v8 = vstv %s11926_s6  ;;  %s11988_s7 = sld [smem:[#allocation71_spill]]  ;;  %s6736_s13 = smov 4  }
 0xc7d   : > { %v3578_v4 = vmul.f32 %v11936_v5, %v9823_v48  ;;  %v3642_v51 = vmul.f32 %v11937_v6, %v9823_v48  ;;  %v9842_v11 = vmul.f32 %v11938_v8, %v9823_v48  ;;  %v11939_v37 = vstv %s11928_s2  ;;  %s6737_s6 = smov 116   ;;  %s11996_s2 = smov 16  }
 0xc7e   : > { %v3827_v40 = vmul.f32 %v11939_v37, %v9823_v48  ;;  %v11940_v2 = vstv %s11930_s25  ;;  %v11941_v1 = vstv %s11932_s0  ;;  %v11942_v3 = vstv %s9507_s12  ;;  %s11949_s12 = sld [smem:[#allocation73_spill]]  ;;  %s11998_s25 = sld [smem:[#allocation17_spill]] }
 0xc7f   : > { %v9850_v39 = vmul.f32 %v11940_v2, %v9823_v48  ;;  %v9855_v9 = vmul.f32 %v11941_v1, %v9823_v48  ;;  %v3574_v17 = vmul.f32 %v11942_v3, %v9827_v13  ;;  %v11943_v63 = vstv %s11934_s14 }
 0xc80   : > { %v3638_v47 = vmul.f32 %v11943_v63, %v9827_v13  ;;  %v11944_v22 = vstv %s11935_s11  ;;  %v11946_v6 = vstv %s9520_s15  ;;  %v11947_v37 = vstv %s9527_s20  ;;  %s11950_s15 = sld [smem:[#allocation76_spill]]  ;;  %s11955_s20 = sld [smem:[#allocation82_spill]] }
 0xc81   : > { %v3701_v5 = vmul.f32 %v11944_v22, %v9827_v13  ;;  %v3823_v8 = vmul.f32 %v11946_v6, %v9827_v13  ;;  %v9872_v2 = vmul.f32 %v11947_v37, %v9827_v13  ;;  %v11948_v1 = vstv %s9529_s9  ;;  %s11973_s9 = sld [smem:[#allocation78_spill]] }
 0xc82   : > { %v9877_v3 = vmul.f32 %v11948_v1, %v9827_v13  ;;  %v3526_v0 = vsel %vm3520_vm2, %v3524_v54, 0.0  ;;  %v3521_v63 = vsel %vm3520_vm2, %v3518_v24, 0.0  ;;  %v3538_v37 = vsel %vm3532_vm3, %v3536_v18, 0.0  ;;  %vm12017_vm2 = vmmov %vm12014_vm6 }
 0xc83   : > { %v9883_v22 = vsel %vm3516_vm1, %v3526_v0, 0.0  ;;  %v9887_v6 = vsel %vm3516_vm1, %v3521_v63, 0.0  ;;  %v3533_v1 = vsel %vm3532_vm3, %v3530_v23, 0.0  ;;  %v9893_v54 = vsel %vm3528_vm5, %v3538_v37, 0.0  ;;  %vm12018_vm1 = vmmov %vm12017_vm2 }
 0xc84   : > { %v9897_v0 = vsel %vm3528_vm5, %v3533_v1, 0.0  ;;  %v3631_v24 = vadd.f32 %v9535_v14, %v3623_v29  ;;  %v3635_v63 = vadd.f32 %v9544_v7, %v3627_v31  ;;  %v3646_v34 = vmul.f32 %v11951_v55, %v9887_v6  ;;  %s12001_s0 = sshll.u32 %s11998_s25, 6  ;;  %vm12019_vm3 = vmmov %vm12018_vm1 }
 0xc85   : > { %v11952_v18 = vstv %s11945_s19  ;;  %v11953_v23 = vstv %s11850_s8  ;;  %v11954_v37 = vstv %s11852_s24  ;;  %v3567_v14 = vadd.f32 %v9551_v56, %v3559_v21  ;;  %s11961_s24 = sld [smem:[#allocation56_spill]]  ;;  %s11972_s8 = sld [smem:[#allocation79_spill]]  ;;  %vm12023_vm5 = vmmov %vm12018_vm1 }
 0xc86   : > { %v3650_v44 = vmul.f32 %v11952_v18, %v9883_v22  ;;  %v3654_v32 = vmul.f32 %v11953_v23, %v9897_v0  ;;  %v3658_v53 = vmul.f32 %v11954_v37, %v9893_v54  ;;  %v3639_v15 = vadd.f32 %v3638_v47, %v3631_v24  ;;  %s12002_s19 = sld [smem:[#allocation158_spill]] }
 0xc87   : > { %v3643_v1 = vadd.f32 %v3642_v51, %v3635_v63  ;;  %v3571_v7 = vadd.f32 %v9556_v28, %v3563_v49  ;;  %v11956_v31 = vstv %s11949_s12  ;;  %v11957_v29 = vstv %s11950_s15  ;;  %s12032_s15 = sld [smem:[#allocation12_spill]] }
 0xc88   : > { %v3582_v55 = vmul.f32 %v11956_v31, %v9887_v6  ;;  %v3586_v18 = vmul.f32 %v11957_v29, %v9883_v22  ;;  %v3590_v23 = vmul.f32 %v11958_v60, %v9897_v0  ;;  %v3594_v37 = vmul.f32 %v11959_v50, %v9893_v54 }
 0xc89   : > { %v3647_v47 = vadd.f32 %v3646_v34, %v3639_v15  ;;  %v3651_v51 = vadd.f32 %v3650_v44, %v3643_v1  ;;  %v3575_v24 = vadd.f32 %v3574_v17, %v3567_v14  ;;  %v3579_v56 = vadd.f32 %v3578_v4, %v3571_v7 }
 0xc8a   : > { %v3816_v28 = vadd.f32 %v9563_v26, %v3808_v33  ;;  %v3820_v49 = vadd.f32 %v9572_v16, %v3812_v46  ;;  %v11962_v21 = vstv %s11858_s16  ;;  %v11963_v31 = vstv %s11955_s20  ;;  %s11969_s16 = sld [smem:[#allocation40_spill]] }
 0xc8b   : > { %v3831_v63 = vmul.f32 %v11962_v21, %v9887_v6  ;;  %v3835_v29 = vmul.f32 %v11963_v31, %v9883_v22  ;;  %v3655_v60 = vadd.f32 %v3654_v32, %v3647_v47  ;;  %v3659_v27 = vadd.f32 %v3658_v53, %v3651_v51 }
 0xc8c   : > { %v3583_v45 = vadd.f32 %v3582_v55, %v3575_v24  ;;  %v3587_v50 = vadd.f32 %v3586_v18, %v3579_v56  ;;  %v3824_v34 = vadd.f32 %v3823_v8, %v3816_v28  ;;  %v3828_v44 = vadd.f32 %v3827_v40, %v3820_v49  ;;  %s798_s12 = scalar_lea.vmem %s12002_s19, %s12001_s0  ;;  %s12030_s19 = sld [smem:[#allocation155_spill]] }
 0xc8d   : > { %v11965_v4 = vstv %s11960_s22  ;;  %v11966_v16 = vstv %s11961_s24  ;;  %v3660_v33 = vadd.f32 %v3659_v27, %v3655_v60  ;;  %v3694_v1 = vadd.f32 %v9575_v38, %v3686_v12  ;;  %s12020_s22 = sld [smem:[#allocation152_spill]] }
 0xc8e   : > { %v3839_v26 = vmul.f32 %v11965_v4, %v9897_v0  ;;  %v3843_v46 = vmul.f32 %v11966_v16, %v9893_v54  ;;  %v3591_v17 = vadd.f32 %v3590_v23, %v3583_v45  ;;  %v3595_v15 = vadd.f32 %v3594_v37, %v3587_v50 }
 0xc8f   : > { %v3832_v32 = vadd.f32 %v3831_v63, %v3824_v34  ;;  %v3836_v53 = vadd.f32 %v3835_v29, %v3828_v44  ;;  %v3698_v14 = vadd.f32 %v9584_v59, %v9799_v10  ;;  %v11967_v8 = vstv %s11863_s4  ;;  %3662 = vrot.lane.b32.xlu1 %v3660_v33, %s11968_s10  ;;  %s11974_s4 = sld [smem:[#allocation83_spill]] }
 0xc90   : > { %v3709_v40 = vmul.f32 %v11967_v8, %v9887_v6  ;;  %v3596_v7 = vadd.f32 %v3595_v15, %v3591_v17  ;;  %v3702_v55 = vadd.f32 %v3701_v5, %v3694_v1  ;;  %v11970_v27 = vstv %s11864_s17  ;;  %s11976_s17 = sld [smem:[#allocation108_spill]] }
 0xc91   : > { %v3713_v45 = vmul.f32 %v11970_v27, %v9883_v22  ;;  %v11971_v18 = vstv %s11964_s26  ;;  %v3840_v59 = vadd.f32 %v3839_v26, %v3832_v32  ;;  %v3844_v10 = vadd.f32 %v3843_v46, %v3836_v53  ;;  %s6118_s26 = sshll.u32 %s12032_s15, 4 }
 0xc92   : > { %v3717_v38 = vmul.f32 %v11971_v18, %v9897_v0  ;;  %v3706_v12 = vadd.f32 %v9842_v11, %v3698_v14  ;;  %v11975_v23 = vstv %s9621_s21  ;;  %3598 = vrot.lane.b32.xlu0 %v3596_v7, %s6734_s30  ;;  %v3710_v37 = vadd.f32 %v3709_v40, %v3702_v55  ;;  %s11980_s21 = sld [smem:[#allocation88_spill]]  ;;  %s12026_s30 = sld [smem:[#allocation154_spill]] }
 0xc93   : > { %v3721_v5 = vmul.f32 %v11975_v23, %v9893_v54  ;;  %v3942_v47 = vadd.f32 %v9587_v43, %v9831_v20  ;;  %v3946_v51 = vadd.f32 %v9596_v57, %v9805_v35  ;;  %v11977_v24 = vstv %s11969_s16 }
 0xc94   : > { %v3957_v56 = vmul.f32 %v11977_v24, %v9887_v6  ;;  %v3845_v28 = vadd.f32 %v3844_v10, %v3840_v59  ;;  %v3714_v49 = vadd.f32 %v3713_v45, %v3706_v12  ;;  %v11979_v11 = vstv %s11972_s8 }
 0xc95   : > { %v3961_v21 = vmul.f32 %v11979_v11, %v9883_v22  ;;  %v11981_v63 = vstv %s11973_s9  ;;  %v3718_v29 = vadd.f32 %v3717_v38, %v3710_v37  ;;  %v3950_v43 = vadd.f32 %v9877_v3, %v3942_v47  ;;  %v11995_v47 = vld [vmem:[#allocation116_spill] sm:$0xff] }
 0xc96   : > { %v3965_v31 = vmul.f32 %v11981_v63, %v9897_v0  ;;  %v3954_v20 = vadd.f32 %v9855_v9, %v3946_v51  ;;  %v11983_v57 = vstv %s11974_s4  ;;  %3847 = vrot.lane.b32.xlu1 %v3845_v28, %s6735_s5  ;;  %v3722_v60 = vadd.f32 %v3721_v5, %v3714_v49 }
 0xc97   : > { %v3969_v35 = vmul.f32 %v11983_v57, %v9893_v54  ;;  %v3879_v50 = vadd.f32 %v9599_v52, %v9829_v61  ;;  %v3883_v34 = vadd.f32 %v9607_v19, %v9803_v62  ;;  %v11984_v44 = vstv %s11976_s17  ;;  %s12021_s17 = smov 48  }
 0xc98   : > { %v3894_v3 = vmul.f32 %v11984_v44, %v9887_v6  ;;  %v3958_v4 = vadd.f32 %v3957_v56, %v3950_v43  ;;  %v3962_v26 = vadd.f32 %v3961_v21, %v3954_v20  ;;  %v11985_v9 = vstv %s11978_s3  ;;  %s6738_s3 = smov [#allocation5]  }
 0xc99   : > { %v3898_v16 = vmul.f32 %v11985_v9, %v9883_v22  ;;  %v11986_v46 = vstv %s11980_s21  ;;  %v3723_v17 = vadd.f32 %v3722_v60, %v3718_v29  ;;  %v3887_v15 = vadd.f32 %v9872_v2, %v3879_v50  ;;  %s6649_s21 = sshll.u32 %s6738_s3, 4  ;;  %s6650_s21 = int_to_ptr.vmem [resolvable:$false] %s6649_s21 }
 0xc9a   : > { %v3902_v33 = vmul.f32 %v11986_v46, %v9897_v0  ;;  %v3891_v52 = vadd.f32 %v9850_v39, %v3883_v34  ;;  %v11989_v19 = vstv %s11982_s28  ;;  %v3966_v61 = vadd.f32 %v3965_v31, %v3958_v4  ;;  %v12000_v46 = vld [vmem:[#allocation121_spill] sm:$0xff]  ;;  %s6651_s28 = scalar_lea.vmem %s6650_s21, 32 }
 0xc9b   : > { %v3906_v62 = vmul.f32 %v11989_v19, %v9893_v54  ;;  %v3970_v1 = vadd.f32 %v3969_v35, %v3962_v26  ;;  %v3780_v32 = vstv %s9954_s18  ;;  %v3784_v53 = vstv %s9956_s1  ;;  %3725 = vrot.lane.b32.xlu0 %v3723_v17, %s6736_s13  ;;  %v12005_v19 = vld [vmem:[#allocation86_spill] sm:$0xff]  ;;  %s12034_s18 = sld [smem:[#allocation159_spill]] }
 0xc9c   : > { %v3895_v14 = vadd.f32 %v3894_v3, %v3887_v15  ;;  %v3899_v8 = vadd.f32 %v3898_v16, %v3891_v52  ;;  %v3750_v40 = vadd.f32 %v9811_v25, %v9773_v30  ;;  %v3754_v2 = vadd.f32 %v9787_v58, %v9756_v42  ;;  %v12004_v15 = vld [vmem:[#allocation87_spill] sm:$0xff] }
 0xc9d   : > { %v3971_v7 = vadd.f32 %v3970_v1, %v3966_v61  ;;  %v11990_v39 = vstv %s11987_s27  ;;  %v11991_v27 = vstv %s9662_s29  ;;  %v11992_v18 = vstv %s11988_s7  ;;  %s11994_s29 = smov 120   ;;  %v12006_v61 = vld [vmem:[#allocation115_spill] sm:$0xff] }
 0xc9e   : > { %v3765_v55 = vmul.f32 %v11990_v39, %v9827_v13  ;;  %v3769_v45 = vmul.f32 %v11991_v27, %v9823_v48  ;;  %v3773_v38 = vmul.f32 %v11992_v18, %v9887_v6  ;;  %v3903_v59 = vadd.f32 %v3902_v33, %v3895_v14  ;;  %v12008_v14 = vld [vmem:[#allocation90_spill] sm:$0xff] }
 0xc9f   : > { %v3907_v10 = vadd.f32 %v3906_v62, %v3899_v8  ;;  %v3758_v12 = vadd.f32 %v9610_v36, %v3750_v40  ;;  %v3762_v23 = vadd.f32 %v9613_v41, %v3754_v2  ;;  %3973 = vrot.lane.b32.xlu1 %v3971_v7, %s6737_s6  ;;  %v11993_v42 = vstv %s9670_s23  ;;  %s5967_s23 = sld [smem:[#allocation2 + $0x162]]  ;;  %v12009_v40 = vld [vmem:[#allocation122_spill] sm:$0xff]  ;;  %v12010_v7 = vld [vmem:[#allocation128_spill] sm:$0xff] }
 0xca0   : > { %v3777_v30 = vmul.f32 %v11993_v42, %v9883_v22  ;;  %v3781_v58 = vmul.f32 %v3780_v32, %v9897_v0  ;;  %v3785_v48 = vmul.f32 %v3784_v53, %v9893_v54  ;;  %v2946_v36 = vmul.f32 0.015625, %v11995_v47  ;;  %v12007_v32 = vld [vmem:[#allocation129_spill] sm:$0xff]  ;;  %v4121_v18 = vld [vmem:[%s12020_s22 + $0x20] sm:$0xff]  ;;  %v4134_v47 = vld [vmem:[%s12020_s22 + $0x88] sm:$0xff] }
 0xca1   : > { %v3908_v25 = vadd.f32 %v3907_v10, %v3903_v59  ;;  %v3766_v13 = vadd.f32 %v3765_v55, %v3758_v12  ;;  %v3770_v5 = vadd.f32 %v3769_v45, %v3762_v23  ;;  %v12003_v17 = vmov 0   ;;  %v12011_v55 = vld [vmem:[#allocation91_spill] sm:$0xff]  ;;  %s10488_s1 = scalar_lea.hbm %s12034_s18, %s6118_s26 }
 0xca2   : > { %v4117_v45 = vld [vmem:[%s12020_s22] sm:$0xff]  ;;  %v4122_v12 = vld [vmem:[%s12020_s22 + $0x28] sm:$0xff] }
 0xca3   : > { %3910 = vrot.lane.b32.xlu0 %v3908_v25, %s11994_s29  ;;  %v3774_v6 = vadd.f32 %v3773_v38, %v3766_v13  ;;  %v3778_v37 = vadd.f32 %v3777_v30, %v3770_v5  ;;  %v4118_v38 = vld [vmem:[%s12020_s22 + $0x8] sm:$0xff]  ;;  %v5978_v59 = vcombine.low %v4117_v45, %v4121_v18  ;;  %v5979_v10 = vcombine.high %v4117_v45, %v4121_v18  ;;  %v4125_v23 = vld [vmem:[%s12020_s22 + $0x40] sm:$0xff] }
 0xca4   : > { %v4129_v42 = vld [vmem:[%s12020_s22 + $0x60] sm:$0xff]  ;;  %v5980_v30 = vcombine.low %v4118_v38, %v4122_v12  ;;  %v4126_v13 = vld [vmem:[%s12020_s22 + $0x48] sm:$0xff] }
 0xca5   : > { %v3782_v51 = vadd.f32 %v3781_v58, %v3774_v6  ;;  %v3786_v41 = vadd.f32 %v3785_v48, %v3778_v37  ;;  %v3979_v34 = vstv %s5967_s23  ;;  %v5981_v58 = vcombine.high %v4118_v38, %v4122_v12  ;;  %v4130_v5 = vld [vmem:[%s12020_s22 + $0x68] sm:$0xff]  ;;  %v4133_v48 = vld [vmem:[%s12020_s22 + $0x80] sm:$0xff]  ;;  %4543 = vmatprep.subr.bf16.mxu0 %v5979_v10  ;;  %v4119_v38 = vld [vmem:[%s12020_s22 + $0x10] sm:$0xff]  ;;  %s12029_s23 = sld [smem:[#allocation153_spill]] }
 0xca6   : > { %v5987_v25 = vcombine.high %v4125_v23, %v4129_v42  ;;  %v5989_v6 = vcombine.high %v4126_v13, %v4130_v5  ;;  %v4137_v37 = vld [vmem:[%s12020_s22 + $0xa0] sm:$0xff]  ;;  %4544 = vmatpush1.bf16.msra.mxu0 %v5978_v59  ;;  %v4123_v59 = vld [vmem:[%s12020_s22 + $0x30] sm:$0xff]  ;;  %v4120_v10 = vld [vmem:[%s12020_s22 + $0x18] sm:$0xff] }
 0xca7   : > { %4106 = vrot.lane.b32.xlu0 %v2946_v36, %s11996_s2  ;;  %v3787_v24 = vadd.f32 %v3786_v41, %v3782_v51  ;;  %v4138_v36 = vld [vmem:[%s12020_s22 + $0xa8] sm:$0xff]  ;;  %4584 = vmatprep.subr.bf16.mxu1 %v5981_v58  ;;  %v5986_v51 = vcombine.low %v4125_v23, %v4129_v42  ;;  %v5988_v41 = vcombine.low %v4126_v13, %v4130_v5  ;;  %v4124_v42 = vld [vmem:[%s12020_s22 + $0x38] sm:$0xff] }
 0xca8   : > { %4545 = vmatprep.subr.bf16.mxu0 %v5987_v25  ;;  %v5982_v12 = vcombine.low %v4119_v38, %v4123_v59  ;;  %v5983_v23 = vcombine.high %v4119_v38, %v4123_v59  ;;  %v5985_v58 = vcombine.high %v4120_v10, %v4124_v42 }
 0xcaa   : > { %4546 = vmatpush1.bf16.msra.mxu0 %v5986_v51  ;;  %v4128_v51 = vld [vmem:[%s12020_s22 + $0x58] sm:$0xff] }
 0xd01   : > { %v3663_v56 = vpop.permute.xlu1 %3662 }
 0xd02   : > { %v3665_v0 = vsel %vm11997_vm12, 0.0, %v3663_v56  ;;  %v5997_v56 = vcombine.high %v4134_v47, %v4138_v36 }
 0xd04   : > { %v3599_v22 = vpop.permute.xlu0 %3598 }
 0xd05   : > { %v3602_v28 = vsel %vm3601_vm11, 0.0, %v3599_v22  ;;  %v4141_v22 = vld [vmem:[%s12020_s22 + $0xc0] sm:$0xff] }
 0xd06   : > { %v3666_v49 = vadd.f32 %v3665_v0, %v3602_v28  ;;  %v4145_v0 = vld [vmem:[%s12020_s22 + $0xe0] sm:$0xff]  ;;  %v4142_v28 = vld [vmem:[%s12020_s22 + $0xc8] sm:$0xff] }
 0xd08   : > { %v3848_v54 = vpop.permute.xlu1 %3847 }
 0xd09   : > { %v3850_v29 = vsel %vm3601_vm11, %v3848_v54, 0.0  ;;  %v5994_v54 = vcombine.low %v4133_v48, %v4137_v37  ;;  %vm10174_vm11 = vmpackc.low %vm1687_vm4, %vm1687_vm4 }
 0xd0d   : > { %v3726_v11 = vpop.permute.xlu0 %3725 }
 0xd0e   : > { %v3729_v21 = vsel %vm3728_vm13, 0.0, %v3726_v11  ;;  %v5996_v11 = vcombine.low %v4134_v47, %v4138_v36  ;;  %v4127_v47 = vld [vmem:[%s12020_s22 + $0x50] sm:$0xff] }
 0xd0f   : > { %v3730_v63 = vadd.f32 %v3729_v21, %v3666_v49  ;;  %v4146_v49 = vld [vmem:[%s12020_s22 + $0xe8] sm:$0xff]  ;;  %v6003_v21 = vcombine.high %v4141_v22, %v4145_v0  ;;  %v4131_v36 = vld [vmem:[%s12020_s22 + $0x70] sm:$0xff] }
 0xd11   : > { %v3788_v31 = vadd.f32 %v3787_v24, %v3730_v63  ;;  %v3974_v43 = vpop.permute.xlu1 %3973  ;;  %v5995_v24 = vcombine.high %v4133_v48, %v4137_v37  ;;  %v6005_v63 = vcombine.high %v4142_v28, %v4146_v49 }
 0xd12   : > { %v3976_v50 = vsel %vm3728_vm13, %v3974_v43, 0.0  ;;  %v4150_v43 = vld [vmem:[%s12020_s22 + $0x108] sm:$0xff] }
 0xd13   : > { %v3851_v20 = vadd.f32 %v3850_v29, %v3788_v31  ;;  %4547 = vmatprep.subr.bf16.mxu0 %v5995_v24  ;;  %v4149_v31 = vld [vmem:[%s12020_s22 + $0x100] sm:$0xff] }
 0xd14   : > { %v4153_v29 = vld [vmem:[%s12020_s22 + $0x120] sm:$0xff]  ;;  %4548 = vmatpush1.bf16.msra.mxu0 %v5994_v54 }
 0xd15   : > { %v3911_v57 = vpop.permute.xlu0 %3910  ;;  %4549 = vmatprep.subr.bf16.mxu0 %v6003_v21  ;;  %v4139_v21 = vld [vmem:[%s12020_s22 + $0xb0] sm:$0xff] }
 0xd16   : > { %v3913_v35 = vsel %vm11999_vm14, %v3911_v57, 0.0  ;;  %v6002_v57 = vcombine.low %v4141_v22, %v4145_v0 }
 0xd17   : > { %v3914_v60 = vadd.f32 %v3913_v35, %v3851_v20  ;;  %v4154_v20 = vld [vmem:[%s12020_s22 + $0x128] sm:$0xff]  ;;  %v6004_v35 = vcombine.low %v4142_v28, %v4146_v49  ;;  %v5991_v49 = vcombine.high %v4127_v47, %v4131_v36 }
 0xd18   : > { %4550 = vmatpush1.bf16.msra.mxu0 %v6002_v57 }
 0xd19   : > { %v3977_v44 = vadd.f32 %v3976_v50, %v3914_v60  ;;  %v6011_v60 = vcombine.high %v4149_v31, %v4153_v29  ;;  %v6013_v50 = vcombine.high %v4150_v43, %v4154_v20  ;;  %v4107_v48 = vpop.permute.xlu0 %4106 }
 0xd1b   : > { %v3980_v3 = vadd.f32 %v3979_v34, %v3977_v44  ;;  %v4157_v34 = vld [vmem:[%s12020_s22 + $0x140] sm:$0xff]  ;;  %4551 = vmatprep.subr.bf16.mxu0 %v6011_v60  ;;  %v4147_v60 = vld [vmem:[%s12020_s22 + $0xf0] sm:$0xff] }
 0xd1c   : > { %v4161_v44 = vld [vmem:[%s12020_s22 + $0x160] sm:$0xff] }
 0xd1d   : > { %v5968_v4 = vmul.f32 -1.442695, %v3980_v3  ;;  %v4158_v3 = vld [vmem:[%s12020_s22 + $0x148] sm:$0xff] }
 0xd1f   : > { %6614 = vpow2.f32 %v5968_v4  ;;  %v4162_v4 = vld [vmem:[%s12020_s22 + $0x168] sm:$0xff] }
 0xd29   : > { %v6615_v26 = vpop.eup %6614 }
 0xd2a   : > { %v3984_v9 = vadd.f32 1.0, %v6615_v26  ;;  %v6010_v26 = vcombine.low %v4149_v31, %v4153_v29  ;;  %v4140_v31 = vld [vmem:[%s12020_s22 + $0xb8] sm:$0xff]  ;;  %v5990_v29 = vcombine.low %v4127_v47, %v4131_v36 }
 0xd2c   : > { %6616 = vrcp.f32 %v3984_v9  ;;  %v6012_v9 = vcombine.low %v4150_v43, %v4154_v20  ;;  %4552 = vmatpush1.bf16.msra.mxu0 %v6010_v26 }
 0xd36   : > { %v6617_v16 = vpop.eup %6616 }
 0xd37   : > { %6355 = vmatmul.mubr.msk.f32.vlgmr.msra.gmra.mrb[8].mxu1 %vm11741_vm15, %v6617_v16  ;;  %v3990_v33 = vrot.slane %v6617_v16, %v12000_v46  ;;  %v6019_v16 = vcombine.high %v4157_v34, %v4161_v44 }
 0xd38   : > { %4616 = vmatprep.mubr.bf16.mxu1 %v12003_v17  ;;  %4585 = vmatpush1.bf16.msra.mxu1 %v5980_v30  ;;  %v5984_v30 = vcombine.low %v4120_v10, %v4124_v42  ;;  %v4175_v10 = vld [vmem:[%s12020_s22 + $0x1d0] sm:$0xff]  ;;  %v4180_v42 = vld [vmem:[%s12020_s22 + $0x1f8] sm:$0xff] }
 0xd39   : > { %v3991_v52 = vmul.f32 %v3990_v33, %v12004_v15  ;;  %v3992_v62 = vmul.f32 %v3990_v33, %v12005_v19  ;;  %v3993_v1 = vmul.f32 %v3990_v33, %v12006_v61  ;;  %v3994_v53 = vmul.f32 %v3990_v33, %v12007_v32  ;;  %4586 = vmatprep.subr.bf16.mxu1 %v5989_v6  ;;  %v4165_v15 = vld [vmem:[%s12020_s22 + $0x180] sm:$0xff]  ;;  %v4166_v19 = vld [vmem:[%s12020_s22 + $0x188] sm:$0xff] }
 0xd3a   : > { %v3995_v8 = vmul.f32 %v3990_v33, %v12008_v14  ;;  %v3996_v2 = vmul.f32 %v3990_v33, %v12009_v40  ;;  %v3997_v39 = vmul.f32 %v3990_v33, %v12010_v7  ;;  %v3998_v27 = vmul.f32 %v3990_v33, %v12011_v55  ;;  %4553 = vmatprep.subr.bf16.mxu0 %v6019_v16  ;;  %v4173_v14 = vld [vmem:[%s12020_s22 + $0x1c0] sm:$0xff]  ;;  %v4174_v40 = vld [vmem:[%s12020_s22 + $0x1c8] sm:$0xff]  ;;  %v4155_v16 = vld [vmem:[%s12020_s22 + $0x130] sm:$0xff] }
 0xd3b   : > { %4097 = vst.msk [vmem:[%s798_s12] sm:$0xff] %vm12012_vm7, %v3991_v52  ;;  %v6021_v33 = vcombine.high %v4158_v3, %v4162_v4  ;;  %v4169_v52 = vld [vmem:[%s12020_s22 + $0x1a0] sm:$0xff]  ;;  %v6018_v61 = vcombine.low %v4157_v34, %v4161_v44  ;;  %v12022_v6 = vld [vmem:[#allocation80_spill] sm:$0xff]  ;;  %v4148_v34 = vld [vmem:[%s12020_s22 + $0xf8] sm:$0xff] }
 0xd3c   : > { %4098 = vst.msk [vmem:[%s798_s12 + $0x8] sm:$0xff] %vm12013_vm8, %v3992_v62  ;;  %4587 = vmatpush1.bf16.msra.mxu1 %v5988_v41  ;;  %v4170_v62 = vld [vmem:[%s12020_s22 + $0x1a8] sm:$0xff]  ;;  %v6027_v32 = vcombine.high %v4165_v15, %v4169_v52  ;;  %v6026_v7 = vcombine.low %v4165_v15, %v4169_v52  ;;  %v1990_v37 = vmul.f32 0.00390625, %v12022_v6  ;;  %v4132_v41 = vld [vmem:[%s12020_s22 + $0x78] sm:$0xff]  ;;  %v6482_v6 = vld [vmem:[%s12026_s30 + $0x40] sm:$0xff]  }
 0xd3d   : > { %4099 = vst.msk [vmem:[%s798_s12 + $0x10] sm:$0xff] %vm12014_vm6, %v3993_v1  ;;  %4588 = vmatprep.subr.bf16.mxu1 %v5997_v56  ;;  %v6020_v1 = vcombine.low %v4158_v3, %v4162_v4  ;;  %4554 = vmatpush1.bf16.msra.mxu0 %v6018_v61  ;;  %v5993_v54 = vcombine.high %v4128_v51, %v4132_v41  ;;  %v4159_v61 = vld [vmem:[%s12020_s22 + $0x150] sm:$0xff] }
 0xd3e   : > { %4100 = vst.msk [vmem:[%s798_s12 + $0x18] sm:$0xff] %vm12015_vm9, %v3994_v53  ;;  %v6029_v53 = vcombine.high %v4166_v19, %v4170_v62  ;;  %4555 = vmatprep.subr.bf16.mxu0 %v6027_v32  ;;  %v4113_v24 = vsel %vm12023_vm5, %v1990_v37, %v4107_v48  ;;  %v5992_v43 = vcombine.low %v4128_v51, %v4132_v41  ;;  %v4160_v32 = vld [vmem:[%s12020_s22 + $0x158] sm:$0xff] }
 0xd3f   : > { %4101 = vst.msk [vmem:[%s798_s12 + $0x20] sm:$0xff] %vm12016_vm10, %v3995_v8  ;;  %v4177_v8 = vld [vmem:[%s12020_s22 + $0x1e0] sm:$0xff] }
 0xd40   : > { %4102 = vst.msk [vmem:[%s798_s12 + $0x28] sm:$0xff] %vm12017_vm2, %v3996_v2  ;;  %4589 = vmatpush1.bf16.msra.mxu1 %v5996_v11  ;;  %v4178_v2 = vld [vmem:[%s12020_s22 + $0x1e8] sm:$0xff]  ;;  %v6035_v55 = vcombine.high %v4173_v14, %v4177_v8  ;;  %v6034_v45 = vcombine.low %v4173_v14, %v4177_v8  ;;  %v4135_v11 = vld [vmem:[%s12020_s22 + $0x90] sm:$0xff] }
 0xd41   : > { %4103 = vst.msk [vmem:[%s798_s12 + $0x30] sm:$0xff] %vm12018_vm1, %v3997_v39  ;;  %4590 = vmatprep.subr.bf16.mxu1 %v6005_v63  ;;  %v6028_v39 = vcombine.low %v4166_v19, %v4170_v62  ;;  %4556 = vmatpush1.bf16.msra.mxu0 %v6026_v7  ;;  %v6036_v18 = vcombine.low %v4174_v40, %v4178_v2  ;;  %v4136_v63 = vld [vmem:[%s12020_s22 + $0x98] sm:$0xff]  ;;  %v4167_v7 = vld [vmem:[%s12020_s22 + $0x190] sm:$0xff] }
 0xd42   : > { %4104 = vst.msk [vmem:[%s798_s12 + $0x38] sm:$0xff] %vm12019_vm3, %v3998_v27  ;;  %v6037_v27 = vcombine.high %v4174_v40, %v4178_v2  ;;  %4557 = vmatprep.subr.bf16.mxu0 %v6035_v55  ;;  %v5999_v20 = vcombine.high %v4135_v11, %v4139_v21  ;;  %v6001_v57 = vcombine.high %v4136_v63, %v4140_v31  ;;  %v4168_v55 = vld [vmem:[%s12020_s22 + $0x198] sm:$0xff]  ;;  %s12031_s12 = sld [smem:[#allocation9_spill]] }
 0xd43   : > { %v5998_v44 = vcombine.low %v4135_v11, %v4139_v21  ;;  %v6000_v3 = vcombine.low %v4136_v63, %v4140_v31 }
 0xd44   : > { %4591 = vmatpush1.bf16.msra.mxu1 %v6004_v35  ;;  %v4143_v35 = vld [vmem:[%s12020_s22 + $0xd0] sm:$0xff] }
 0xd45   : > { %4592 = vmatprep.subr.bf16.mxu1 %v6013_v50  ;;  %4558 = vmatpush1.bf16.msra.mxu0 %v6034_v45  ;;  %v4144_v50 = vld [vmem:[%s12020_s22 + $0xd8] sm:$0xff]  ;;  %v6007_v4 = vcombine.high %v4143_v35, %v4147_v60  ;;  %v6006_v15 = vcombine.low %v4143_v35, %v4147_v60 }
 0xd46   : > { %4625 = vmatprep.subr.bf16.mxu0 %v5983_v23  ;;  %v6009_v26 = vcombine.high %v4144_v50, %v4148_v34  ;;  %v6008_v52 = vcombine.low %v4144_v50, %v4148_v34  ;;  %v4176_v23 = vld [vmem:[%s12020_s22 + $0x1d8] sm:$0xff] }
 0xd47   : > { %v6040_v48 = vcombine.low %v4176_v23, %v4180_v42 }
 0xd48   : > { %4593 = vmatpush1.bf16.msra.mxu1 %v6012_v9  ;;  %v4151_v9 = vld [vmem:[%s12020_s22 + $0x110] sm:$0xff]  ;;  %s767_s24 = sand.u32 1, %s12031_s12  }
 0xd49   : > { %4594 = vmatprep.subr.bf16.mxu1 %v6021_v33  ;;  %v4156_v33 = vld [vmem:[%s12020_s22 + $0x138] sm:$0xff]  ;;  %v6015_v19 = vcombine.high %v4151_v9, %v4155_v16  ;;  %v6014_v14 = vcombine.low %v4151_v9, %v4155_v16  ;;  %s768_s10 = scalar_lea.vmem [#allocation5], %s767_s24  ;;  %s5428_s4 = scalar_lea.sflag [#allocation3], %s767_s24 }
 0xd4a   : > { %s5449_s16 = sshll.u32 %s768_s10, 4  ;;  %s10490_s16 = int_to_ptr.vmem [resolvable:$true] %s5449_s16 }
 0xd4b   : > { %p6652_p13 = scmp.lt.s32.totalorder %s10490_s16, %s6650_s21 }
 0xd4c   : > { %4595 = vmatpush1.bf16.msra.mxu1 %v6020_v1  ;;  %v4163_v1 = vld [vmem:[%s12020_s22 + $0x170] sm:$0xff] }
 0xd4d   : > { %4596 = vmatprep.subr.bf16.mxu1 %v6029_v53  ;;  %v4164_v53 = vld [vmem:[%s12020_s22 + $0x178] sm:$0xff]  ;;  %v6023_v40 = vcombine.high %v4159_v61, %v4163_v1  ;;  %v6022_v45 = vcombine.low %v4159_v61, %v4163_v1 }
 0xd4e   : > { %v6025_v2 = vcombine.high %v4160_v32, %v4164_v53 }
 0xd50   : > { %4597 = vmatpush1.bf16.msra.mxu1 %v6028_v39  ;;  %v4171_v39 = vld [vmem:[%s12020_s22 + $0x1b0] sm:$0xff] }
 0xd51   : > { %4598 = vmatprep.subr.bf16.mxu1 %v6037_v27  ;;  %v4172_v27 = vld [vmem:[%s12020_s22 + $0x1b8] sm:$0xff]  ;;  %v6031_v38 = vcombine.high %v4167_v7, %v4171_v39 }
 0xd52   : > { %v6033_v59 = vcombine.high %v4168_v55, %v4172_v27 }
 0xd54   : > { %4599 = vmatpush1.bf16.msra.mxu1 %v6036_v18  ;;  %v6024_v18 = vcombine.low %v4160_v32, %v4164_v53 }
 0xd55   : > { %4666 = vmatprep.subr.bf16.mxu1 %v5985_v58  ;;  %v6032_v58 = vcombine.low %v4168_v55, %v4172_v27 }
 0xe0a   : > { %v4092_v25 = vpop.f32.mrb[8].mxu1 }
 0xe0b   : > { %v4096_v13 = vmul.f32 0.0625, %v4092_v25  ;;  %v6356_v5 = vpop.f32.mrb[9].mxu1 }
 0xe0d   : > { %4110 = vrot.lane.b32.xlu1 %v4096_v13, %s12021_s17  ;;  %v6041_v13 = vcombine.high %v4176_v23, %v4180_v42  ;;  %s12027_s17 = smov %s12026_s30  ;;  %s6645_s30 = scalar_lea.vmem %s10490_s16, 16 }
 0xe0e   : > { %v6483_v37 = vld [vmem:[%s12027_s17 + $0xc0] sm:$0xff]   ;;  %v6486_v51 = vld [vmem:[%s12027_s17 + $0x48] sm:$0xff]   ;;  %v6491_v22 = vld [vmem:[%s12027_s17 + $0xd0] sm:$0xff]   ;;  %p6646_p9 = scmp.ne.s32.totalorder %s10490_s16, %s6645_s30  ;;  %p6653_p0 = scmp.lt.s32.totalorder %s6651_s28, %s6645_s30 }
 0xe0f   : > { %v6484_v47 = vld [vmem:[%s12027_s17] sm:$0xff]   ;;  %v6487_v41 = vld [vmem:[%s12027_s17 + $0xc8] sm:$0xff]   ;;  %v6495_v11 = vld [vmem:[%s12027_s17 + $0xd8] sm:$0xff]  }
 0xe10   : > { %v6485_v36 = vld [vmem:[%s12027_s17 + $0x80] sm:$0xff]   ;;  %v6496_v21 = vld [vmem:[%s12027_s17 + $0x18] sm:$0xff]   ;;  %v6503_v35 = vld [vmem:[%s12027_s17 + $0xe8] sm:$0xff]   ;;  %p6647_p10 = pnand %p6646_p9, %p6897_p5  ;;  %p6654_p1 = por %p6653_p0, %p6652_p13 }
 0xe11   : > { %v6497_v63 = vld [vmem:[%s12027_s17 + $0x98] sm:$0xff]   ;;  %v6498_v31 = vld [vmem:[%s12027_s17 + $0x60] sm:$0xff]   ;;  %v6504_v60 = vld [vmem:[%s12027_s17 + $0x28] sm:$0xff]  }
 0xe12   : > { %v6505_v50 = vld [vmem:[%s12027_s17 + $0xa8] sm:$0xff]   ;;  %v6506_v34 = vld [vmem:[%s12027_s17 + $0x70] sm:$0xff]   ;;  %v6511_v9 = vld [vmem:[%s12027_s17 + $0xf8] sm:$0xff]   ;;  %p6648_p12 = pneg %p6647_p10 }
 0xe13   : > { %v6512_v16 = vld [vmem:[%s12027_s17 + $0x38] sm:$0xff]  }
 0xe14   : > { %p6655_p2 = pnand %p6654_p1, %p6648_p12 }
 0xe7f   : > { %v4111_v56 = vpop.permute.xlu1 %4110 }
 0xe80   : > { %v4114_v0 = vsel %vm1303_vm0, %v4113_v24, %v4111_v56  ;;  %v6488_v24 = vld [vmem:[%s12027_s17 + $0x8] sm:$0xff]   ;;  %vm5397_vm0 = vcmask 1040384  }
 0xe81   : > { %v10179_v28 = vpack.c.bf16 %v4114_v0, %v4114_v0  ;;  %v6489_v56 = vld [vmem:[%s12027_s17 + $0x88] sm:$0xff]   ;;  %v6490_v0 = vld [vmem:[%s12027_s17 + $0x50] sm:$0xff]  }
 0xe83   : > { %6044 = vmatmul.mubr.msk.bf16.vlgmr.msra.gmra.mrb[16].mxu0 %vm10174_vm11, %v10179_v28  ;;  %6047 = vmatmul.mubr.msk.bf16.vlgmr.msra.gmra.mrb[12].mxu1 %vm10174_vm11, %v10179_v28 }
 0xe84   : > { %4626 = vmatpush1.bf16.msra.mxu0 %v5982_v12  ;;  %4667 = vmatpush1.bf16.msra.mxu1 %v5984_v30  ;;  %v4179_v12 = vld [vmem:[%s12020_s22 + $0x1f0] sm:$0xff]  ;;  %v6030_v30 = vcombine.low %v4167_v7, %v4171_v39 }
 0xe85   : > { %4627 = vmatprep.subr.bf16.mxu0 %v5991_v49  ;;  %4668 = vmatprep.subr.bf16.mxu1 %v5993_v54  ;;  %v6039_v25 = vcombine.high %v4175_v10, %v4179_v12  ;;  %v6038_v5 = vcombine.low %v4175_v10, %v4179_v12  ;;  %v6493_v49 = vld [vmem:[%s12027_s17 + $0x90] sm:$0xff]   ;;  %v6494_v54 = vld [vmem:[%s12027_s17 + $0x58] sm:$0xff]  }
 0xe86   : > { %4657 = vmatprep.mubr.bf16.mxu0 %v12003_v17  ;;  %4698 = vmatprep.mubr.bf16.mxu1 %v12003_v17  ;;  %v4152_v17 = vld [vmem:[%s12020_s22 + $0x118] sm:$0xff] }
 0xe87   : > { %v6017_v62 = vcombine.high %v4152_v17, %v4156_v33  ;;  %v6016_v8 = vcombine.low %v4152_v17, %v4156_v33  ;;  %v6513_v17 = vld [vmem:[%s12027_s17 + $0xb8] sm:$0xff]   ;;  %v6514_v33 = vld [vmem:[%s12027_s17 + $0x140] sm:$0xff]  }
 0xe88   : > { %4628 = vmatpush1.bf16.msra.mxu0 %v5990_v29  ;;  %4669 = vmatpush1.bf16.msra.mxu1 %v5992_v43  ;;  %v6499_v29 = vld [vmem:[%s12027_s17 + $0xe0] sm:$0xff]  }
 0xe89   : > { %4629 = vmatprep.subr.bf16.mxu0 %v5999_v20  ;;  %4670 = vmatprep.subr.bf16.mxu1 %v6001_v57  ;;  %v6500_v43 = vld [vmem:[%s12027_s17 + $0x20] sm:$0xff]   ;;  %v6502_v57 = vld [vmem:[%s12027_s17 + $0x68] sm:$0xff]  }
 0xe8a   : > { %v6501_v20 = vld [vmem:[%s12027_s17 + $0xa0] sm:$0xff]  }
 0xe8c   : > { %4630 = vmatpush1.bf16.msra.mxu0 %v5998_v44  ;;  %4671 = vmatpush1.bf16.msra.mxu1 %v6000_v3  ;;  %v6507_v44 = vld [vmem:[%s12027_s17 + $0xf0] sm:$0xff]  }
 0xe8d   : > { %4631 = vmatprep.subr.bf16.mxu0 %v6007_v4  ;;  %4672 = vmatprep.subr.bf16.mxu1 %v6009_v26  ;;  %v6508_v3 = vld [vmem:[%s12027_s17 + $0x30] sm:$0xff]   ;;  %v6510_v26 = vld [vmem:[%s12027_s17 + $0x78] sm:$0xff]  }
 0xe8e   : > { %v6509_v4 = vld [vmem:[%s12027_s17 + $0xb0] sm:$0xff]  }
 0xe90   : > { %4632 = vmatpush1.bf16.msra.mxu0 %v6006_v15  ;;  %4673 = vmatpush1.bf16.msra.mxu1 %v6008_v52  ;;  %v6515_v15 = vld [vmem:[%s12027_s17 + $0x1c0] sm:$0xff]  }
 0xe91   : > { %4633 = vmatprep.subr.bf16.mxu0 %v6015_v19  ;;  %4674 = vmatprep.subr.bf16.mxu1 %v6017_v62  ;;  %v12028_v52 = vld [vmem:[#allocation114_spill] sm:$0xff] }
 0xe92   : > { %v4513_v19 = vsub.s32 2, %v12028_v52  ;;  %v10373_v62 = vld [vmem:[%s12029_s23] sm:$0xff]  ;;  %v4509_v61 = vsub.s32 1, %v12028_v52  ;;  %v4517_v1 = vsub.s32 3, %v12028_v52 }
 0xe93   : > { %v4506_v32 = vrot.slane %v10373_v62, %v12000_v46 }
 0xe94   : > { %4634 = vmatpush1.bf16.msra.mxu0 %v6014_v14  ;;  %4675 = vmatpush1.bf16.msra.mxu1 %v6016_v8  ;;  %v4514_v53 = vrot.slane %v10373_v62, %v4513_v19  ;;  %v4510_v14 = vrot.slane %v10373_v62, %v4509_v61  ;;  %v4518_v8 = vrot.slane %v10373_v62, %v4517_v1 }
 0xe95   : > { %4635 = vmatprep.subr.bf16.mxu0 %v6023_v40  ;;  %4676 = vmatprep.subr.bf16.mxu1 %v6025_v2 }
 0xe98   : > { %4636 = vmatpush1.bf16.msra.mxu0 %v6022_v45  ;;  %4677 = vmatpush1.bf16.msra.mxu1 %v6024_v18 }
 0xe99   : > { %4637 = vmatprep.subr.bf16.mxu0 %v6031_v38  ;;  %4678 = vmatprep.subr.bf16.mxu1 %v6033_v59 }
 0xe9c   : > { %4638 = vmatpush1.bf16.msra.mxu0 %v6030_v30  ;;  %4679 = vmatpush1.bf16.msra.mxu1 %v6032_v58 }
 0xe9d   : > { %4639 = vmatprep.subr.bf16.mxu0 %v6039_v25  ;;  %4680 = vmatprep.subr.bf16.mxu1 %v6041_v13  ;;  %v6516_v13 = vld [vmem:[%s12027_s17 + $0x100] sm:$0xff]  }
 0xea0   : > { %4640 = vmatpush1.bf16.msra.mxu0 %v6038_v5  ;;  %4681 = vmatpush1.bf16.msra.mxu1 %v6040_v48  ;;  %v6517_v5 = vld [vmem:[%s12027_s17 + $0x180] sm:$0xff]  }
 0xea1   : > { %6175 = vmatprep.subr.bf16.mxu0 %v6482_v6  ;;  %6197 = vmatprep.subr.bf16.mxu1 %v6483_v37  ;;  %v6518_v37 = vld [vmem:[%s12027_s17 + $0x148] sm:$0xff]  }
 0xea3   : > { %6050 = vmatmul.mubr.msk.bf16.vlgmr.msra.gmra.mrb[20].mxu0 %vm10174_vm11, %v10179_v28  ;;  %6053 = vmatmul.mubr.msk.bf16.vlgmr.msra.gmra.mrb[16].mxu1 %vm10174_vm11, %v10179_v28  ;;  %v6492_v28 = vld [vmem:[%s12027_s17 + $0x10] sm:$0xff]  }
 0xea4   : > { %6176 = vmatpush3.bf16.msra.mxu0 %v6484_v47  ;;  %6198 = vmatpush3.bf16.msra.mxu1 %v6485_v36  ;;  %v6519_v47 = vld [vmem:[%s12027_s17 + $0x1c8] sm:$0xff]  }
 0xea5   : > { %6177 = vmatprep.subr.bf16.mxu0 %v6486_v51  ;;  %6199 = vmatprep.subr.bf16.mxu1 %v6487_v41  ;;  %v6520_v36 = vld [vmem:[%s12027_s17 + $0x108] sm:$0xff]   ;;  %v6522_v41 = vld [vmem:[%s12027_s17 + $0x150] sm:$0xff]  }
 0xea6   : > { %v6521_v51 = vld [vmem:[%s12027_s17 + $0x188] sm:$0xff]  }
 0xea8   : > { %6178 = vmatpush3.bf16.msra.mxu0 %v6488_v24  ;;  %6200 = vmatpush3.bf16.msra.mxu1 %v6489_v56  ;;  %v6523_v24 = vld [vmem:[%s12027_s17 + $0x1d0] sm:$0xff]  }
 0xea9   : > { %6179 = vmatprep.subr.bf16.mxu0 %v6490_v0  ;;  %6201 = vmatprep.subr.bf16.mxu1 %v6491_v22  ;;  %v6524_v56 = vld [vmem:[%s12027_s17 + $0x110] sm:$0xff]   ;;  %v6526_v22 = vld [vmem:[%s12027_s17 + $0x158] sm:$0xff]  }
 0xeaa   : > { %v6525_v0 = vld [vmem:[%s12027_s17 + $0x190] sm:$0xff]  }
 0xeac   : > { %6180 = vmatpush3.bf16.msra.mxu0 %v6492_v28  ;;  %6202 = vmatpush3.bf16.msra.mxu1 %v6493_v49  ;;  %v6527_v28 = vld [vmem:[%s12027_s17 + $0x1d8] sm:$0xff]  }
 0xead   : > { %6181 = vmatprep.subr.bf16.mxu0 %v6494_v54  ;;  %6203 = vmatprep.subr.bf16.mxu1 %v6495_v11  ;;  %v6528_v49 = vld [vmem:[%s12027_s17 + $0x118] sm:$0xff]   ;;  %v6530_v11 = vld [vmem:[%s12027_s17 + $0x160] sm:$0xff]  }
 0xeae   : > { %v6529_v54 = vld [vmem:[%s12027_s17 + $0x198] sm:$0xff]  }
 0xeb0   : > { %6182 = vmatpush3.bf16.msra.mxu0 %v6496_v21  ;;  %6204 = vmatpush3.bf16.msra.mxu1 %v6497_v63  ;;  %v6531_v21 = vld [vmem:[%s12027_s17 + $0x1e0] sm:$0xff]  }
 0xeb1   : > { %6183 = vmatprep.subr.bf16.mxu0 %v6498_v31  ;;  %6205 = vmatprep.subr.bf16.mxu1 %v6499_v29  ;;  %v6532_v63 = vld [vmem:[%s12027_s17 + $0x120] sm:$0xff]   ;;  %v6534_v29 = vld [vmem:[%s12027_s17 + $0x168] sm:$0xff]  }
 0xeb2   : > { %v6533_v31 = vld [vmem:[%s12027_s17 + $0x1a0] sm:$0xff]  }
 0xeb4   : > { %6184 = vmatpush3.bf16.msra.mxu0 %v6500_v43  ;;  %6206 = vmatpush3.bf16.msra.mxu1 %v6501_v20  ;;  %v6535_v43 = vld [vmem:[%s12027_s17 + $0x1e8] sm:$0xff]   ;;  %v4521_v20 = vsub.s32 4, %v12028_v52 }
 0xeb5   : > { %6185 = vmatprep.subr.bf16.mxu0 %v6502_v57  ;;  %6207 = vmatprep.subr.bf16.mxu1 %v6503_v35  ;;  %v4529_v57 = vsub.s32 6, %v12028_v52  ;;  %v6536_v35 = vld [vmem:[%s12027_s17 + $0x128] sm:$0xff]  }
 0xeb8   : > { %6186 = vmatpush3.bf16.msra.mxu0 %v6504_v60  ;;  %6208 = vmatpush3.bf16.msra.mxu1 %v6505_v50  ;;  %v6537_v60 = vld [vmem:[%s12027_s17 + $0x1a8] sm:$0xff]   ;;  %v4525_v50 = vsub.s32 5, %v12028_v52 }
 0xeb9   : > { %6187 = vmatprep.subr.bf16.mxu0 %v6506_v34  ;;  %6209 = vmatprep.subr.bf16.mxu1 %v6507_v44  ;;  %v4533_v34 = vsub.s32 7, %v12028_v52  ;;  %v6538_v44 = vld [vmem:[%s12027_s17 + $0x170] sm:$0xff]   ;;  %v6543_v52 = vld [vmem:[%s12027_s17 + $0x1f8] sm:$0xff]  }
 0xebc   : > { %6188 = vmatpush3.bf16.msra.mxu0 %v6508_v3  ;;  %6210 = vmatpush3.bf16.msra.mxu1 %v6509_v4  ;;  %v6539_v3 = vld [vmem:[%s12027_s17 + $0x1f0] sm:$0xff]   ;;  %v4522_v4 = vrot.slane %v10373_v62, %v4521_v20 }
 0xebd   : > { %6189 = vmatprep.subr.bf16.mxu0 %v6510_v26  ;;  %6211 = vmatprep.subr.bf16.mxu1 %v6511_v9  ;;  %v4530_v26 = vrot.slane %v10373_v62, %v4529_v57  ;;  %v4526_v9 = vrot.slane %v10373_v62, %v4525_v50 }
 0xec0   : > { %6190 = vmatpush3.bf16.msra.mxu0 %v6512_v16  ;;  %6212 = vmatpush3.bf16.msra.mxu1 %v6513_v17  ;;  %v4534_v16 = vrot.slane %v10373_v62, %v4533_v34  ;;  %v6540_v17 = vld [vmem:[%s12027_s17 + $0x130] sm:$0xff]  }
 0xec1   : > { %6219 = vmatprep.subr.bf16.mxu0 %v6514_v33  ;;  %6241 = vmatprep.subr.bf16.mxu1 %v6515_v15  ;;  %v6541_v33 = vld [vmem:[%s12027_s17 + $0x1b0] sm:$0xff]   ;;  %v6542_v15 = vld [vmem:[%s12027_s17 + $0x178] sm:$0xff]  }
 0xf56   : > { %v4577_v40 = vpop.f32.mrb[16].mxu0  ;;  %v4618_v2 = vpop.f32.mrb[12].mxu1 }
 0xf57   : > { %v4578_v7 = vadd.f32 %v4577_v40, %v4506_v32  ;;  %v4619_v39 = vadd.f32 %v4618_v2, %v4514_v53  ;;  %v4579_v55 = vpop.f32.mrb[17].mxu0  ;;  %v4620_v27 = vpop.f32.mrb[13].mxu1 }
 0xf58   : > { %v4580_v45 = vadd.f32 %v4579_v55, %v4510_v14  ;;  %v4621_v18 = vadd.f32 %v4620_v27, %v4518_v8  ;;  %v4581_v38 = vpop.f32.mrb[18].mxu0  ;;  %v4622_v59 = vpop.f32.mrb[14].mxu1 }
 0xf59   : > { %v4707_v10 = vmax.f32 %v4578_v7, 0.0  ;;  %v4709_v12 = vmax.f32 %v4619_v39, 0.0  ;;  %v4582_v23 = vpop.f32.mrb[19].mxu0  ;;  %v4623_v46 = vpop.f32.mrb[15].mxu1  ;;  %v6544_v7 = vld [vmem:[%s12027_s17 + $0x138] sm:$0xff]  }
 0xf5a   : > { %v4708_v42 = vmax.f32 %v4580_v45, 0.0  ;;  %v4710_v30 = vmax.f32 %v4621_v18, 0.0  ;;  %v6545_v39 = vld [vmem:[%s12027_s17 + $0x1b8] sm:$0xff]  }
 0xf5b   : > { %v4715_v48 = vpack.c.bf16 %v4707_v10, %v4707_v10  ;;  %v4717_v6 = vpack.c.bf16 %v4709_v12, %v4709_v12 }
 0xf5c   : > { %v4716_v58 = vpack.c.bf16 %v4708_v42, %v4708_v42  ;;  %v4718_v25 = vpack.c.bf16 %v4710_v30, %v4710_v30 }
 0xf5e   : > { %5268 = vmatprep.mubr.bf16.mxu0 %v4716_v58  ;;  %5308 = vmatprep.mubr.bf16.mxu1 %v4718_v25  ;;  %v4851_v58 = vld [vmem:[%s12030_s19] sm:$0x1] }
 0xf5f   : > { %5269 = vmatmul.mubr.bf16.vlgmr.msra.gmra.mrb[24].mxu0 %v4715_v48  ;;  %5309 = vmatmul.mubr.bf16.vlgmr.msra.gmra.mrb[20].mxu1 %v4717_v6 }
 0xf60   : > { %6220 = vmatpush3.bf16.msra.mxu0 %v6516_v13  ;;  %6242 = vmatpush3.bf16.msra.mxu1 %v6517_v5 }
 0xf61   : > { %6221 = vmatprep.subr.bf16.mxu0 %v6518_v37  ;;  %6243 = vmatprep.subr.bf16.mxu1 %v6519_v47 }
 0xf64   : > { %6222 = vmatpush3.bf16.msra.mxu0 %v6520_v36  ;;  %6244 = vmatpush3.bf16.msra.mxu1 %v6521_v51 }
 0xf65   : > { %6223 = vmatprep.subr.bf16.mxu0 %v6522_v41  ;;  %6245 = vmatprep.subr.bf16.mxu1 %v6523_v24 }
 0xf68   : > { %6224 = vmatpush3.bf16.msra.mxu0 %v6524_v56  ;;  %6246 = vmatpush3.bf16.msra.mxu1 %v6525_v0 }
 0xf69   : > { %6225 = vmatprep.subr.bf16.mxu0 %v6526_v22  ;;  %6247 = vmatprep.subr.bf16.mxu1 %v6527_v28 }
 0xf6c   : > { %6226 = vmatpush3.bf16.msra.mxu0 %v6528_v49  ;;  %6248 = vmatpush3.bf16.msra.mxu1 %v6529_v54 }
 0xf6d   : > { %6227 = vmatprep.subr.bf16.mxu0 %v6530_v11  ;;  %6249 = vmatprep.subr.bf16.mxu1 %v6531_v21 }
 0xf70   : > { %6228 = vmatpush3.bf16.msra.mxu0 %v6532_v63  ;;  %6250 = vmatpush3.bf16.msra.mxu1 %v6533_v31 }
 0xf71   : > { %6229 = vmatprep.subr.bf16.mxu0 %v6534_v29  ;;  %6251 = vmatprep.subr.bf16.mxu1 %v6535_v43 }
 0xf74   : > { %6230 = vmatpush3.bf16.msra.mxu0 %v6536_v35  ;;  %6252 = vmatpush3.bf16.msra.mxu1 %v6537_v60 }
 0xf75   : > { %6231 = vmatprep.subr.bf16.mxu0 %v6538_v44  ;;  %6253 = vmatprep.subr.bf16.mxu1 %v6539_v3 }
 0xf76   : > { %v4659_v19 = vpop.f32.mrb[20].mxu0  ;;  %v4700_v62 = vpop.f32.mrb[16].mxu1 }
 0xf77   : > { %v4660_v61 = vadd.f32 %v4659_v19, %v4522_v4  ;;  %v4701_v1 = vadd.f32 %v4700_v62, %v4530_v26  ;;  %v4661_v32 = vpop.f32.mrb[21].mxu0  ;;  %v4702_v53 = vpop.f32.mrb[17].mxu1 }
 0xf78   : > { %v4662_v14 = vadd.f32 %v4661_v32, %v4526_v9  ;;  %v4703_v8 = vadd.f32 %v4702_v53, %v4534_v16  ;;  %v4663_v40 = vpop.f32.mrb[22].mxu0  ;;  %v4704_v2 = vpop.f32.mrb[18].mxu1  ;;  %6232 = vmatpush3.bf16.msra.mxu0 %v6540_v17  ;;  %6254 = vmatpush3.bf16.msra.mxu1 %v6541_v33 }
 0xf79   : > { %v4711_v55 = vmax.f32 %v4660_v61, 0.0  ;;  %v4713_v27 = vmax.f32 %v4701_v1, 0.0  ;;  %v4664_v45 = vpop.f32.mrb[23].mxu0  ;;  %v4705_v18 = vpop.f32.mrb[19].mxu1  ;;  %6233 = vmatprep.subr.bf16.mxu0 %v6542_v15  ;;  %6255 = vmatprep.subr.bf16.mxu1 %v6543_v52 }
 0xf7a   : > { %v4712_v38 = vmax.f32 %v4662_v14, 0.0  ;;  %v4714_v59 = vmax.f32 %v4703_v8, 0.0 }
 0xf7b   : > { %v4719_v23 = vpack.c.bf16 %v4711_v55, %v4711_v55  ;;  %v4721_v46 = vpack.c.bf16 %v4713_v27, %v4713_v27 }
 0xf7c   : > { %v4720_v10 = vpack.c.bf16 %v4712_v38, %v4712_v38  ;;  %v4722_v12 = vpack.c.bf16 %v4714_v59, %v4714_v59  ;;  %6234 = vmatpush3.bf16.msra.mxu0 %v6544_v7  ;;  %6256 = vmatpush3.bf16.msra.mxu1 %v6545_v39 }
 0xf7e   : > { %5348 = vmatprep.mubr.bf16.mxu0 %v4720_v10  ;;  %5388 = vmatprep.mubr.bf16.mxu1 %v4722_v12 }
 0xf7f   : > { %5349 = vmatmul.mubr.bf16.vlgmr.msra.gmra.mrb[28].mxu0 %v4719_v23  ;;  %5389 = vmatmul.mubr.bf16.vlgmr.msra.gmra.mrb[24].mxu1 %v4721_v46 }
0x1032   : > { %v6191_v42 = vpop.f32.mrb[24].mxu0  ;;  %v6213_v30 = vpop.f32.mrb[20].mxu1 }
0x1033   : > { %v6192_v25 = vpop.f32.mrb[25].mxu0  ;;  %v6214_v13 = vpop.f32.mrb[21].mxu1 }
0x1034   : > { %v6193_v5 = vadd.f32 %v6192_v25, %v6191_v42  ;;  %v6215_v48 = vadd.f32 %v6214_v13, %v6213_v30  ;;  %v6194_v6 = vpop.f32.mrb[26].mxu0  ;;  %v6216_v37 = vpop.f32.mrb[22].mxu1 }
0x1035   : > { %v6195_v47 = vpop.f32.mrb[27].mxu0  ;;  %v6217_v36 = vpop.f32.mrb[23].mxu1 }
0x1036   : > { %v5271_v51 = vadd.f32 %v6193_v5, %v4851_v58 }
0x1038   : > { %v5311_v41 = vadd.f32 %v6215_v48, %v5271_v51 }
0x1052   : > { %v6235_v24 = vpop.f32.mrb[28].mxu0  ;;  %v6257_v56 = vpop.f32.mrb[24].mxu1 }
0x1053   : > { %v6236_v0 = vpop.f32.mrb[29].mxu0  ;;  %v6258_v22 = vpop.f32.mrb[25].mxu1 }
0x1054   : > { %v6237_v28 = vadd.f32 %v6236_v0, %v6235_v24  ;;  %v6259_v49 = vadd.f32 %v6258_v22, %v6257_v56  ;;  %v6238_v54 = vpop.f32.mrb[30].mxu0  ;;  %v6260_v11 = vpop.f32.mrb[26].mxu1 }
0x1055   : > { %v6239_v21 = vpop.f32.mrb[31].mxu0  ;;  %v6261_v63 = vpop.f32.mrb[27].mxu1 }
0x1056   : > { %v5351_v31 = vadd.f32 %v6237_v28, %v5311_v41 }
0x1058   : > { %v5391_v29 = vadd.f32 %v6259_v49, %v5351_v31 }
0x105a   : > { %v5396_v43 = vmul.f32 %v5391_v29, %v5391_v29 }
0x105c   : > { %v5398_v20 = vsel %vm5397_vm0, %v5396_v43, 0.0 }
0x105d   : > { %5399 = vadd.xlane.f32.xlu0 %v5398_v20 }
0x10ea   : > { %v5400_v57 = vpop.xlane.xlu0 %5399 }
0x10eb   : > { %6618 = vrsqrt.f32 %v5400_v57  ;;  %vm5403_vm4 = vcmp.eq.f32.partialorder %v5400_v57, inf  ;;  %v5406_v50 = vand.u32 2147483648, %v5400_v57  ;;  %vm5405_vm12 = vcmp.eq.f32.partialorder %v5400_v57, 0.0 }
0x10f5   : > { %v6619_v35 = vpop.eup %6618 }
0x10f6   : > { %v5402_v60 = vmul.f32 %v6619_v35, %v5400_v57 }
0x10f8   : > { %v5404_v34 = vsel %vm5403_vm4, %v5400_v57, %v5402_v60 }
0x10f9   : > { %v5407_v44 = vsel %vm5405_vm12, %v5406_v50, %v5404_v34 }
0x10fa   : > { %v5408_v3 = vmax.f32 %v5407_v44, 1e-12 }
0x10fc   : > { %6620 = vrcp.f32 %v5408_v3 }
0x1106   : > { %v6621_v4 = vpop.eup %6620 }
0x1107   : > { %v5410_v26 = vmul.f32 %v6621_v4, %v5391_v29 }
0x1109   : > { %5411 = vst [vmem:[%s768_s10] sm:$0x1] %v5410_v26 }
0x110a   : > { %6658 = shalt.err (!%p6655_p2)
}
0x110b   : > { %s6659_s5 = scalar_lea.hbm %s10488_s1, 16  ;;  %s6663_s13 = scalar_lea.hbm %s12034_s18, 32 }
0x110c   : > { %p6660_p3 = scmp.ne.s32.totalorder %s10488_s1, %s6659_s5  ;;  %p6664_p8 = scmp.lt.u32.totalorder %s10488_s1, %s12034_s18 }
0x110d   : > { %p6665_p11 = scmp.lt.u32.totalorder %s6663_s13, %s6659_s5  ;;  %p6667_p10 = scmp.lt.u32.totalorder %s6659_s5, %s10488_s1 }
0x110e   : > { %p6661_p4 = pnand %p6660_p3, %p6897_p5 }
0x110f   : > { %p6666_p9 = por %p6665_p11, %p6664_p8 }
0x1110   : > { %p6662_p7 = pneg %p6661_p4 }
0x1111   : > { %p6668_p12 = por %p6667_p10, %p6666_p9 }
0x1113   : > { %p6669_p13 = pnand %p6668_p12, %p6662_p7 }
0x1115   : > { %6672 = shalt.err (!%p6669_p13)
}
0x1116   : > { %6410 = dma.vmem_to_hbm [thread:$0]  (%p6897_p5), %s10490_s16, 16, %s10488_s1, %s5428_s4  }
0x1117 PF: > { %s12035_s2 = sld [smem:[#allocation11_spill]]  ;;  %s12036_s23 = sld [smem:[#allocation8_spill]] }
0x111d   : > { %p6422_p0 = scmp.ge.s32.totalorder %s12035_s2, 2  ;;  %s5485_s0 = sand.u32 1, %s12036_s23  }
0x111e   : > { %s5486_s14 = scalar_lea.sflag [#allocation3], %s5485_s0 }
0x111f   : > { %p6417_p1 = pnand %p6422_p0, %p6901_p6 }
0x1121   : > { %6694 = dma.done.wait (!%p6417_p1), %s5486_s14, 16  }
0x1122   : > { %6696 = vsyncadd (!%p6417_p1), %s5486_s14, 4294967280  ;;  %s12038_s25 = sld [smem:[#allocation13_spill]]  ;;  %s12039_s4 = sld [smem:[#allocation9_spill]] }
0x1123   : > { %s12040_s30 = sld [smem:[#allocation10_spill]]  ;;  %s12041_s24 = sld [smem:[#allocation14_spill]] }
0x1128   : > { %p35_p2 = scmp.ge.s32.totalorder %s12038_s25, 4  }
0x112a   :  { %37 = sbr.rel (!%p35_p2) target bundleno = 29 (0x1d), region = 182 }
0x1131   :  { %5490 = vsyncpa [#allocation3], 1 }
0x1132   :  { %5492 = vsyncpa [#allocation3 + $0x1], 1 }
0x1133   :  { %5493 = vsyncpa [#allocation4], 1 }
0x1134   :  { %5495 = vsyncpa [#allocation4 + $0x1], 1 }

</bundles_post_ra>
